<compile_context>
chip_gen: v6e
topology: v6e:2x2x1
jax: 0.10.0
libtpu: 0.0.40
codegen_flags: <defaults>
</compile_context>

<pallas_src>
import functools
import math

import jax
import jax.numpy as jnp
from jax import lax
from jax.experimental import pallas as pl
from jax.experimental.pallas import tpu as pltpu

# ---- small-model hyperparameters (DenseNet-BC style, scaled down) ----------
GROWTH_RATE = 8
BLOCK_CONFIG = (2, 2, 2, 2)
NUM_INIT_FEATURES = 16
BN_SIZE = 2
NUM_CLASSES = 10
BN_EPS = 1e-5


# ---------------------------------------------------------------------------
# Pallas kernel 1: fused GEMM
#   optional prologue : training-mode BatchNorm (batch stats over rows) + ReLU
#                       applied to the GEMM input X (this is the "norm -> relu
#                       -> conv" pattern of DenseNet layers / transitions)
#   core              : Y = X @ W on the MXU (single block, no K loop)
#   optional epilogue : bias add, training-mode BatchNorm + ReLU on Y
# All operands are whole-array VMEM blocks (no grid), so the weight is DMA'd
# exactly once and there is no per-step pipeline overhead.
# ---------------------------------------------------------------------------
def _fused_gemm_kernel(*refs, has_pre_bn, pre_relu, has_bias, has_post_bn,
                       post_relu, eps):
    idx = 0
    x_ref = refs[idx]; idx += 1
    w_ref = refs[idx]; idx += 1
    if has_pre_bn:
        pg_ref = refs[idx]; pb_ref = refs[idx + 1]; idx += 2
    if has_bias:
        bias_ref = refs[idx]; idx += 1
    if has_post_bn:
        qg_ref = refs[idx]; qb_ref = refs[idx + 1]; idx += 2
    o_ref = refs[idx]

    x = x_ref[...]
    if has_pre_bn:
        m = jnp.mean(x, axis=0, keepdims=True)
        v = jnp.mean(jnp.square(x - m), axis=0, keepdims=True)
        x = (x - m) * lax.rsqrt(v + eps) * pg_ref[...] + pb_ref[...]
        if pre_relu:
            x = jnp.maximum(x, 0.0)

    y = jnp.dot(x, w_ref[...], preferred_element_type=jnp.float32)

    if has_bias:
        y = y + bias_ref[...]
    if has_post_bn:
        m2 = jnp.mean(y, axis=0, keepdims=True)
        v2 = jnp.mean(jnp.square(y - m2), axis=0, keepdims=True)
        y = (y - m2) * lax.rsqrt(v2 + eps) * qg_ref[...] + qb_ref[...]
        if post_relu:
            y = jnp.maximum(y, 0.0)

    o_ref[...] = y


def fused_gemm(x, w, *, pre_bn=None, pre_relu=False, bias=None,
               post_bn=None, post_relu=False, eps=BN_EPS):
    """Single-block fused (M,K)@(K,N) with optional BN/ReLU prologue+epilogue."""
    M, K = x.shape
    Kw, Nout = w.shape
    assert K == Kw, (K, Kw)
    ops = [x, w]
    if pre_bn is not None:
        ops += [pre_bn[0], pre_bn[1]]          # (1, K) each
    if bias is not None:
        ops.append(bias)                        # (1, N)
    if post_bn is not None:
        ops += [post_bn[0], post_bn[1]]         # (1, N) each
    kern = functools.partial(
        _fused_gemm_kernel,
        has_pre_bn=pre_bn is not None, pre_relu=pre_relu,
        has_bias=bias is not None,
        has_post_bn=post_bn is not None, post_relu=post_relu,
        eps=eps)
    return pl.pallas_call(
        kern,
        out_shape=jax.ShapeDtypeStruct((M, Nout), jnp.float32),
    )(*ops)


# ---------------------------------------------------------------------------
# Pallas kernel 2: standalone fused BatchNorm(batch stats) + ReLU.
# Only used once per forward (final bn_norm before the classifier); every other
# BN in the network is fused into the GEMM above.
# ---------------------------------------------------------------------------
def _bn_relu_kernel(x_ref, g_ref, b_ref, o_ref, *, eps):
    x = x_ref[...]
    m = jnp.mean(x, axis=0, keepdims=True)
    v = jnp.mean(jnp.square(x - m), axis=0, keepdims=True)
    o_ref[...] = jnp.maximum((x - m) * lax.rsqrt(v + eps) * g_ref[...] + b_ref[...], 0.0)


def batchnorm_relu_flat(x2, gamma_row, beta_row, eps=BN_EPS):
    return pl.pallas_call(
        functools.partial(_bn_relu_kernel, eps=eps),
        out_shape=jax.ShapeDtypeStruct(x2.shape, jnp.float32),
    )(x2, gamma_row, beta_row)


# ---------------------------------------------------------------------------
# im2col glue (plain JAX).  Builds a single expanded patch matrix per conv.
# TODO(synk): fully folding the (dy,dx) taps into the GEMM K axis (shifted-window
# BlockSpec) would avoid materializing the kh*kw-expanded matrix entirely; at
# these tiny spatial sizes (<=16x16) the single concat is kept for robustness.
# ---------------------------------------------------------------------------
def _im2col(x, kh, kw, stride, padding):
    N, H, W, C = x.shape
    if padding:
        x = jnp.pad(x, ((0, 0), (padding, padding), (padding, padding), (0, 0)))
    Ho = (H + 2 * padding - kh) // stride + 1
    Wo = (W + 2 * padding - kw) // stride + 1
    cols = [x[:, dy:dy + Ho * stride:stride, dx:dx + Wo * stride:stride, :]
            for dy in range(kh) for dx in range(kw)]
    patches = jnp.concatenate(cols, axis=-1).reshape(N * Ho * Wo, kh * kw * C)
    return patches, Ho, Wo


# ---------------------------------------------------------------------------
# Pooling glue
# TODO(synk): pooling stays in plain JAX (lax.reduce_window / reshape-mean);
# the GEMM/BN hot paths above carry the compute.
# ---------------------------------------------------------------------------
def maxpool_3x3_s2_p1(x):
    return lax.reduce_window(
        x, -jnp.inf, lax.max,
        window_dimensions=(1, 3, 3, 1),
        window_strides=(1, 2, 2, 1),
        padding=((0, 0), (1, 1), (1, 1), (0, 0)))


def avgpool_2x2_s2(x):
    N, H, W, C = x.shape
    return x.reshape(N, H // 2, 2, W // 2, 2, C).mean(axis=(2, 4))


# ---------------------------------------------------------------------------
# Sub-modules
# ---------------------------------------------------------------------------
def dense_layer(x, p):
    """norm1 -> relu1 -> conv1(1x1) -> norm2 -> relu2 -> conv2(3x3), with
    norm1/relu1 as GEMM prologue and norm2/relu2 as GEMM epilogue (1 call),
    followed by the 3x3 conv GEMM (1 call)."""
    Nb, H, W, C = x.shape
    flat = x.reshape(Nb * H * W, C)
    mid = fused_gemm(flat, p['conv1_wm'],
                     pre_bn=(p['norm1_g'], p['norm1_b']), pre_relu=True,
                     post_bn=(p['norm2_g'], p['norm2_b']), post_relu=True)
    mid_nhwc = mid.reshape(Nb, H, W, -1)
    patches, Ho, Wo = _im2col(mid_nhwc, 3, 3, stride=1, padding=1)
    out = fused_gemm(patches, p['conv2_wm'])
    return out.reshape(Nb, Ho, Wo, -1)      # drop_rate == 0, so no dropout


def gate_forward(x, p):
    """FeedforwardGateII: conv3x3(stride 2) -> bn -> relu (fused) -> global
    spatial average (the AvgPool2d kernel always covers the full post-conv
    extent) -> 1x1 linear conv with bias (fused GEMM)."""
    Nb, H, W, C = x.shape
    patches, Ho, Wo = _im2col(x, 3, 3, stride=2, padding=1)
    h = fused_gemm(patches, p['conv1_wm'],
                   post_bn=(p['bn1_g'], p['bn1_b']), post_relu=True)
    h = h.reshape(Nb, Ho, Wo, C).mean(axis=(1, 2))               # (N, C)
    logits = fused_gemm(h, p['lin_wm'], bias=p['lin_b'])          # (N, growth)
    prob = jax.nn.sigmoid(logits)
    logprob = jax.nn.log_softmax(logits, axis=-1)
    hard = (prob > 0.5).astype(jnp.float32)
    mask = hard - lax.stop_gradient(prob) + prob                  # straight-through
    return mask, logprob                                          # mask: (N, growth)


def transition(x, p):
    """norm -> relu -> conv1x1 (one fused GEMM) -> avgpool 2x2."""
    Nb, H, W, C = x.shape
    flat = x.reshape(Nb * H * W, C)
    h = fused_gemm(flat, p['conv_wm'],
                   pre_bn=(p['norm_g'], p['norm_b']), pre_relu=True)
    return avgpool_2x2_s2(h.reshape(Nb, H, W, -1))


# ---------------------------------------------------------------------------
# Full forward pass
# ---------------------------------------------------------------------------
def densenet_forward(params, x_nchw):
    x = jnp.transpose(x_nchw, (0, 2, 3, 1))                      # NCHW -> NHWC
    Nb = x.shape[0]

    # base_layer: conv0(7x7,s2,p3) + norm0 + relu0 fused into one GEMM, then maxpool
    patches, Ho, Wo = _im2col(x, 7, 7, stride=2, padding=3)
    h = fused_gemm(patches, params['conv0_wm'],
                   post_bn=(params['norm0_g'], params['norm0_b']), post_relu=True)
    features = maxpool_3x3_s2_p1(h.reshape(Nb, Ho, Wo, -1))

    masks, gprobs = [], []
    mask = None
    for b in range(4):
        nlayers = BLOCK_CONFIG[b]
        for i in range(nlayers):
            new_features = dense_layer(features, params[f'block{b}_layer{i}'])
            if not (b == 0 and i == 0):
                # TODO(synk): mask multiply stays as one tiny fused XLA op; folding
                # it into the conv2 GEMM epilogue needs a sublane-splitting reshape.
                new_features = new_features * mask[:, None, None, :]
            features = jnp.concatenate([features, new_features], axis=-1)
            mask, gprob = gate_forward(features, params[f'block{b}_gate{i}'])
            if not (b == 3 and i == nlayers - 1):
                gprobs.append(gprob)
                masks.append(mask)
        if b < 3:
            features = transition(features, params[f'trans{b}'])

    Nf, Hf, Wf, Cf = features.shape
    out = batchnorm_relu_flat(features.reshape(Nf * Hf * Wf, Cf),
                              params['bn_norm_g'], params['bn_norm_b'])
    out = out.reshape(Nf, Hf, Wf, Cf).mean(axis=(1, 2))           # final avg pool (kernel == spatial)
    out = fused_gemm(out, params['classifier_wm'], bias=params['classifier_b'])
    return out, masks, gprobs


# ---------------------------------------------------------------------------
# Deterministic parameter construction.
# Conv weights: kaiming-normal in PyTorch OIHW, pre-reshaped ONCE here into the
# (kh*kw*Cin, Cout) GEMM operand.  BN gamma/beta and biases stored as (1, C)
# rows so the hot path has zero reshape/transpose/pad ops.
# ---------------------------------------------------------------------------
def init_params(key):
    state = {'key': key}

    def nk():
        state['key'], sub = jax.random.split(state['key'])
        return sub

    def conv_wm(cout, cin, kh, kw):
        fan_in = cin * kh * kw
        std = math.sqrt(2.0 / fan_in)
        w = (std * jax.random.normal(nk(), (cout, cin, kh, kw))).astype(jnp.float32)
        return jnp.transpose(w, (2, 3, 1, 0)).reshape(kh * kw * cin, cout)

    def uniform_row(n, fan_in):
        bound = 1.0 / math.sqrt(fan_in)
        return jax.random.uniform(nk(), (1, n), jnp.float32, -bound, bound)

    ones = lambda c: jnp.ones((1, c), jnp.float32)
    zeros = lambda c: jnp.zeros((1, c), jnp.float32)

    params = {}
    params['conv0_wm'] = conv_wm(NUM_INIT_FEATURES, 3, 7, 7)
    params['norm0_g'], params['norm0_b'] = ones(NUM_INIT_FEATURES), zeros(NUM_INIT_FEATURES)

    nf = NUM_INIT_FEATURES
    for b in range(4):
        for i in range(BLOCK_CONFIG[b]):
            in_ch = nf + i * GROWTH_RATE
            mid = BN_SIZE * GROWTH_RATE
            params[f'block{b}_layer{i}'] = dict(
                norm1_g=ones(in_ch), norm1_b=zeros(in_ch),
                conv1_wm=conv_wm(mid, in_ch, 1, 1),
                norm2_g=ones(mid), norm2_b=zeros(mid),
                conv2_wm=conv_wm(GROWTH_RATE, mid, 3, 3))
            gc = nf + (i + 1) * GROWTH_RATE
            params[f'block{b}_gate{i}'] = dict(
                conv1_wm=conv_wm(gc, gc, 3, 3),
                bn1_g=ones(gc), bn1_b=zeros(gc),
                lin_wm=conv_wm(GROWTH_RATE, gc, 1, 1),
                lin_b=uniform_row(GROWTH_RATE, gc))
        nf = nf + BLOCK_CONFIG[b] * GROWTH_RATE
        if b < 3:
            params[f'trans{b}'] = dict(
                norm_g=ones(nf), norm_b=zeros(nf),
                conv_wm=conv_wm(nf // 2, nf, 1, 1))
            nf = nf // 2

    params['bn_norm_g'], params['bn_norm_b'] = ones(nf), zeros(nf)
    # classifier stored pre-transposed as (nf, num_classes)
    bound = 1.0 / math.sqrt(nf)
    params['classifier_wm'] = jax.random.uniform(
        nk(), (nf, NUM_CLASSES), jnp.float32, -bound, bound)
    params['classifier_b'] = zeros(NUM_CLASSES)
    return params


if __name__ == "__main__":
    key = jax.random.PRNGKey(0)
    pkey, xkey = jax.random.split(key)
    params = init_params(pkey)
    x = jax.random.normal(xkey, (2, 3, 32, 32), dtype=jnp.float32)  # NCHW input

    fwd = jax.jit(densenet_forward)
    out, masks, gprobs = fwd(params, x)
    jax.block_until_ready(out)
    jax.block_until_ready(masks)
    jax.block_until_ready(gprobs)

    assert out.shape == (2, NUM_CLASSES)
    assert len(masks) == sum(BLOCK_CONFIG) - 1
    assert all(m.shape == (2, GROWTH_RATE) for m in masks)
    print("KERNEL_OK")
</pallas_src>

<mosaic_0001>
module attributes {stable_mosaic.version = 11 : i64} {
  func.func @_fused_gemm_kernel(%arg0: memref<128x16xf32, #tpu.memory_space<vmem>>, %arg1: memref<16x16xf32, #tpu.memory_space<vmem>>, %arg2: memref<1x16xf32, #tpu.memory_space<vmem>>, %arg3: memref<1x16xf32, #tpu.memory_space<vmem>>, %arg4: memref<1x16xf32, #tpu.memory_space<vmem>>, %arg5: memref<1x16xf32, #tpu.memory_space<vmem>>, %arg6: memref<128x16xf32, #tpu.memory_space<vmem>>) attributes {dimension_semantics = [], scalar_prefetch = 0 : i64, scratch_operands = 0 : i64, tpu.core_type = #tpu.core_type<tc>} {
    %c0 = arith.constant 0 : index
    %c0_0 = arith.constant 0 : index
    %0 = vector.load %arg0[%c0, %c0_0] : memref<128x16xf32, #tpu.memory_space<vmem>>, vector<128x16xf32>
    %cst = arith.constant dense<0.000000e+00> : vector<16xf32>
    %1 = vector.multi_reduction <add>, %0, %cst [0] : vector<128x16xf32> to vector<16xf32>
    %2 = vector.shape_cast %1 : vector<16xf32> to vector<1x16xf32>
    %cst_1 = arith.constant 1.280000e+02 : f32
    %3 = vector.broadcast %cst_1 : f32 to vector<1x16xf32>
    %4 = arith.divf %2, %3 : vector<1x16xf32>
    %5 = vector.broadcast %4 : vector<1x16xf32> to vector<128x16xf32>
    %6 = arith.subf %0, %5 : vector<128x16xf32>
    %7 = arith.mulf %6, %6 : vector<128x16xf32>
    %cst_2 = arith.constant dense<0.000000e+00> : vector<16xf32>
    %8 = vector.multi_reduction <add>, %7, %cst_2 [0] : vector<128x16xf32> to vector<16xf32>
    %9 = vector.shape_cast %8 : vector<16xf32> to vector<1x16xf32>
    %cst_3 = arith.constant 1.280000e+02 : f32
    %10 = vector.broadcast %cst_3 : f32 to vector<1x16xf32>
    %11 = arith.divf %9, %10 : vector<1x16xf32>
    %12 = vector.broadcast %4 : vector<1x16xf32> to vector<128x16xf32>
    %13 = arith.subf %0, %12 : vector<128x16xf32>
    %cst_4 = arith.constant 9.99999974E-6 : f32
    %14 = vector.broadcast %cst_4 : f32 to vector<1x16xf32>
    %15 = arith.addf %11, %14 : vector<1x16xf32>
    %16 = math.rsqrt %15 : vector<1x16xf32>
    %17 = vector.broadcast %16 : vector<1x16xf32> to vector<128x16xf32>
    %18 = arith.mulf %13, %17 : vector<128x16xf32>
    %c0_5 = arith.constant 0 : index
    %c0_6 = arith.constant 0 : index
    %19 = vector.load %arg2[%c0_5, %c0_6] : memref<1x16xf32, #tpu.memory_space<vmem>>, vector<1x16xf32>
    %20 = vector.broadcast %19 : vector<1x16xf32> to vector<128x16xf32>
    %21 = arith.mulf %18, %20 : vector<128x16xf32>
    %c0_7 = arith.constant 0 : index
    %c0_8 = arith.constant 0 : index
    %22 = vector.load %arg3[%c0_7, %c0_8] : memref<1x16xf32, #tpu.memory_space<vmem>>, vector<1x16xf32>
    %23 = vector.broadcast %22 : vector<1x16xf32> to vector<128x16xf32>
    %24 = arith.addf %21, %23 : vector<128x16xf32>
    %cst_9 = arith.constant 0.000000e+00 : f32
    %25 = vector.broadcast %cst_9 : f32 to vector<128x16xf32>
    %26 = arith.maximumf %24, %25 : vector<128x16xf32>
    %c0_10 = arith.constant 0 : index
    %c0_11 = arith.constant 0 : index
    %27 = vector.load %arg1[%c0_10, %c0_11] : memref<16x16xf32, #tpu.memory_space<vmem>>, vector<16x16xf32>
    %cst_12 = arith.constant dense<0.000000e+00> : vector<128x16xf32>
    %28 = tpu.matmul %26, %27, %cst_12 {dimension_numbers = #tpu.dot_dimension_numbers<[1], [0], [0], [1], [0, 0, 1, 1], [], []>} : vector<128x16xf32>, vector<16x16xf32>, vector<128x16xf32> -> vector<128x16xf32>
    %cst_13 = arith.constant dense<0.000000e+00> : vector<16xf32>
    %29 = vector.multi_reduction <add>, %28, %cst_13 [0] : vector<128x16xf32> to vector<16xf32>
    %30 = vector.shape_cast %29 : vector<16xf32> to vector<1x16xf32>
    %cst_14 = arith.constant 1.280000e+02 : f32
    %31 = vector.broadcast %cst_14 : f32 to vector<1x16xf32>
    %32 = arith.divf %30, %31 : vector<1x16xf32>
    %33 = vector.broadcast %32 : vector<1x16xf32> to vector<128x16xf32>
    %34 = arith.subf %28, %33 : vector<128x16xf32>
    %35 = arith.mulf %34, %34 : vector<128x16xf32>
    %cst_15 = arith.constant dense<0.000000e+00> : vector<16xf32>
    %36 = vector.multi_reduction <add>, %35, %cst_15 [0] : vector<128x16xf32> to vector<16xf32>
    %37 = vector.shape_cast %36 : vector<16xf32> to vector<1x16xf32>
    %cst_16 = arith.constant 1.280000e+02 : f32
    %38 = vector.broadcast %cst_16 : f32 to vector<1x16xf32>
    %39 = arith.divf %37, %38 : vector<1x16xf32>
    %40 = vector.broadcast %32 : vector<1x16xf32> to vector<128x16xf32>
    %41 = arith.subf %28, %40 : vector<128x16xf32>
    %cst_17 = arith.constant 9.99999974E-6 : f32
    %42 = vector.broadcast %cst_17 : f32 to vector<1x16xf32>
    %43 = arith.addf %39, %42 : vector<1x16xf32>
    %44 = math.rsqrt %43 : vector<1x16xf32>
    %45 = vector.broadcast %44 : vector<1x16xf32> to vector<128x16xf32>
    %46 = arith.mulf %41, %45 : vector<128x16xf32>
    %c0_18 = arith.constant 0 : index
    %c0_19 = arith.constant 0 : index
    %47 = vector.load %arg4[%c0_18, %c0_19] : memref<1x16xf32, #tpu.memory_space<vmem>>, vector<1x16xf32>
    %48 = vector.broadcast %47 : vector<1x16xf32> to vector<128x16xf32>
    %49 = arith.mulf %46, %48 : vector<128x16xf32>
    %c0_20 = arith.constant 0 : index
    %c0_21 = arith.constant 0 : index
    %50 = vector.load %arg5[%c0_20, %c0_21] : memref<1x16xf32, #tpu.memory_space<vmem>>, vector<1x16xf32>
    %51 = vector.broadcast %50 : vector<1x16xf32> to vector<128x16xf32>
    %52 = arith.addf %49, %51 : vector<128x16xf32>
    %cst_22 = arith.constant 0.000000e+00 : f32
    %53 = vector.broadcast %cst_22 : f32 to vector<128x16xf32>
    %54 = arith.maximumf %52, %53 : vector<128x16xf32>
    %c0_23 = arith.constant 0 : index
    %c0_24 = arith.constant 0 : index
    %55 = vector.load %arg6[%c0_23, %c0_24] : memref<128x16xf32, #tpu.memory_space<vmem>>, vector<128x16xf32>
    tpu.vector_store %arg6[%c0_23, %c0_24], %54 {strides = array<i32>} : memref<128x16xf32, #tpu.memory_space<vmem>>, vector<128x16xf32>,
    return
  }
}

module attributes {stable_mosaic.version = 11 : i64} {
  func.func @_fused_gemm_kernel(%arg0: memref<512x147xf32, #tpu.memory_space<vmem>>, %arg1: memref<147x16xf32, #tpu.memory_space<vmem>>, %arg2: memref<1x16xf32, #tpu.memory_space<vmem>>, %arg3: memref<1x16xf32, #tpu.memory_space<vmem>>, %arg4: memref<512x16xf32, #tpu.memory_space<vmem>>) attributes {dimension_semantics = [], scalar_prefetch = 0 : i64, scratch_operands = 0 : i64, tpu.core_type = #tpu.core_type<tc>} {
    %c0 = arith.constant 0 : index
    %c0_0 = arith.constant 0 : index
    %0 = vector.load %arg0[%c0, %c0_0] : memref<512x147xf32, #tpu.memory_space<vmem>>, vector<512x147xf32>
    %c0_1 = arith.constant 0 : index
    %c0_2 = arith.constant 0 : index
    %1 = vector.load %arg1[%c0_1, %c0_2] : memref<147x16xf32, #tpu.memory_space<vmem>>, vector<147x16xf32>
    %cst = arith.constant dense<0.000000e+00> : vector<512x16xf32>
    %2 = tpu.matmul %0, %1, %cst {dimension_numbers = #tpu.dot_dimension_numbers<[1], [0], [0], [1], [0, 0, 1, 1], [], []>} : vector<512x147xf32>, vector<147x16xf32>, vector<512x16xf32> -> vector<512x16xf32>
    %cst_3 = arith.constant dense<0.000000e+00> : vector<16xf32>
    %3 = vector.multi_reduction <add>, %2, %cst_3 [0] : vector<512x16xf32> to vector<16xf32>
    %4 = vector.shape_cast %3 : vector<16xf32> to vector<1x16xf32>
    %cst_4 = arith.constant 5.120000e+02 : f32
    %5 = vector.broadcast %cst_4 : f32 to vector<1x16xf32>
    %6 = arith.divf %4, %5 : vector<1x16xf32>
    %7 = vector.broadcast %6 : vector<1x16xf32> to vector<512x16xf32>
    %8 = arith.subf %2, %7 : vector<512x16xf32>
    %9 = arith.mulf %8, %8 : vector<512x16xf32>
    %cst_5 = arith.constant dense<0.000000e+00> : vector<16xf32>
    %10 = vector.multi_reduction <add>, %9, %cst_5 [0] : vector<512x16xf32> to vector<16xf32>
    %11 = vector.shape_cast %10 : vector<16xf32> to vector<1x16xf32>
    %cst_6 = arith.constant 5.120000e+02 : f32
    %12 = vector.broadcast %cst_6 : f32 to vector<1x16xf32>
    %13 = arith.divf %11, %12 : vector<1x16xf32>
    %14 = vector.broadcast %6 : vector<1x16xf32> to vector<512x16xf32>
    %15 = arith.subf %2, %14 : vector<512x16xf32>
    %cst_7 = arith.constant 9.99999974E-6 : f32
    %16 = vector.broadcast %cst_7 : f32 to vector<1x16xf32>
    %17 = arith.addf %13, %16 : vector<1x16xf32>
    %18 = math.rsqrt %17 : vector<1x16xf32>
    %19 = vector.broadcast %18 : vector<1x16xf32> to vector<512x16xf32>
    %20 = arith.mulf %15, %19 : vector<512x16xf32>
    %c0_8 = arith.constant 0 : index
    %c0_9 = arith.constant 0 : index
    %21 = vector.load %arg2[%c0_8, %c0_9] : memref<1x16xf32, #tpu.memory_space<vmem>>, vector<1x16xf32>
    %22 = vector.broadcast %21 : vector<1x16xf32> to vector<512x16xf32>
    %23 = arith.mulf %20, %22 : vector<512x16xf32>
    %c0_10 = arith.constant 0 : index
    %c0_11 = arith.constant 0 : index
    %24 = vector.load %arg3[%c0_10, %c0_11] : memref<1x16xf32, #tpu.memory_space<vmem>>, vector<1x16xf32>
    %25 = vector.broadcast %24 : vector<1x16xf32> to vector<512x16xf32>
    %26 = arith.addf %23, %25 : vector<512x16xf32>
    %cst_12 = arith.constant 0.000000e+00 : f32
    %27 = vector.broadcast %cst_12 : f32 to vector<512x16xf32>
    %28 = arith.maximumf %26, %27 : vector<512x16xf32>
    %c0_13 = arith.constant 0 : index
    %c0_14 = arith.constant 0 : index
    %29 = vector.load %arg4[%c0_13, %c0_14] : memref<512x16xf32, #tpu.memory_space<vmem>>, vector<512x16xf32>
    tpu.vector_store %arg4[%c0_13, %c0_14], %28 {strides = array<i32>} : memref<512x16xf32, #tpu.memory_space<vmem>>, vector<512x16xf32>,
    return
  }
}

module attributes {stable_mosaic.version = 11 : i64} {
  func.func @_fused_gemm_kernel(%arg0: memref<128x144xf32, #tpu.memory_space<vmem>>, %arg1: memref<144x8xf32, #tpu.memory_space<vmem>>, %arg2: memref<128x8xf32, #tpu.memory_space<vmem>>) attributes {dimension_semantics = [], scalar_prefetch = 0 : i64, scratch_operands = 0 : i64, tpu.core_type = #tpu.core_type<tc>} {
    %c0 = arith.constant 0 : index
    %c0_0 = arith.constant 0 : index
    %0 = vector.load %arg0[%c0, %c0_0] : memref<128x144xf32, #tpu.memory_space<vmem>>, vector<128x144xf32>
    %c0_1 = arith.constant 0 : index
    %c0_2 = arith.constant 0 : index
    %1 = vector.load %arg1[%c0_1, %c0_2] : memref<144x8xf32, #tpu.memory_space<vmem>>, vector<144x8xf32>
    %cst = arith.constant dense<0.000000e+00> : vector<128x8xf32>
    %2 = tpu.matmul %0, %1, %cst {dimension_numbers = #tpu.dot_dimension_numbers<[1], [0], [0], [1], [0, 0, 1, 1], [], []>} : vector<128x144xf32>, vector<144x8xf32>, vector<128x8xf32> -> vector<128x8xf32>
    %c0_3 = arith.constant 0 : index
    %c0_4 = arith.constant 0 : index
    %3 = vector.load %arg2[%c0_3, %c0_4] : memref<128x8xf32, #tpu.memory_space<vmem>>, vector<128x8xf32>
    tpu.vector_store %arg2[%c0_3, %c0_4], %2 {strides = array<i32>} : memref<128x8xf32, #tpu.memory_space<vmem>>, vector<128x8xf32>,
    return
  }
}

module attributes {stable_mosaic.version = 11 : i64} {
  func.func @_fused_gemm_kernel(%arg0: memref<2x24xf32, #tpu.memory_space<vmem>>, %arg1: memref<24x8xf32, #tpu.memory_space<vmem>>, %arg2: memref<1x8xf32, #tpu.memory_space<vmem>>, %arg3: memref<2x8xf32, #tpu.memory_space<vmem>>) attributes {dimension_semantics = [], scalar_prefetch = 0 : i64, scratch_operands = 0 : i64, tpu.core_type = #tpu.core_type<tc>} {
    %c0 = arith.constant 0 : index
    %c0_0 = arith.constant 0 : index
    %0 = vector.load %arg0[%c0, %c0_0] : memref<2x24xf32, #tpu.memory_space<vmem>>, vector<2x24xf32>
    %c0_1 = arith.constant 0 : index
    %c0_2 = arith.constant 0 : index
    %1 = vector.load %arg1[%c0_1, %c0_2] : memref<24x8xf32, #tpu.memory_space<vmem>>, vector<24x8xf32>
    %cst = arith.constant dense<0.000000e+00> : vector<2x8xf32>
    %2 = tpu.matmul %0, %1, %cst {dimension_numbers = #tpu.dot_dimension_numbers<[1], [0], [0], [1], [0, 0, 1, 1], [], []>} : vector<2x24xf32>, vector<24x8xf32>, vector<2x8xf32> -> vector<2x8xf32>
    %c0_3 = arith.constant 0 : index
    %c0_4 = arith.constant 0 : index
    %3 = vector.load %arg2[%c0_3, %c0_4] : memref<1x8xf32, #tpu.memory_space<vmem>>, vector<1x8xf32>
    %4 = vector.broadcast %3 : vector<1x8xf32> to vector<2x8xf32>
    %5 = arith.addf %2, %4 : vector<2x8xf32>
    %c0_5 = arith.constant 0 : index
    %c0_6 = arith.constant 0 : index
    %6 = vector.load %arg3[%c0_5, %c0_6] : memref<2x8xf32, #tpu.memory_space<vmem>>, vector<2x8xf32>
    tpu.vector_store %arg3[%c0_5, %c0_6], %5 {strides = array<i32>} : memref<2x8xf32, #tpu.memory_space<vmem>>, vector<2x8xf32>,
    return
  }
}

module attributes {stable_mosaic.version = 11 : i64} {
  func.func @_fused_gemm_kernel(%arg0: memref<32x216xf32, #tpu.memory_space<vmem>>, %arg1: memref<216x24xf32, #tpu.memory_space<vmem>>, %arg2: memref<1x24xf32, #tpu.memory_space<vmem>>, %arg3: memref<1x24xf32, #tpu.memory_space<vmem>>, %arg4: memref<32x24xf32, #tpu.memory_space<vmem>>) attributes {dimension_semantics = [], scalar_prefetch = 0 : i64, scratch_operands = 0 : i64, tpu.core_type = #tpu.core_type<tc>} {
    %c0 = arith.constant 0 : index
    %c0_0 = arith.constant 0 : index
    %0 = vector.load %arg0[%c0, %c0_0] : memref<32x216xf32, #tpu.memory_space<vmem>>, vector<32x216xf32>
    %c0_1 = arith.constant 0 : index
    %c0_2 = arith.constant 0 : index
    %1 = vector.load %arg1[%c0_1, %c0_2] : memref<216x24xf32, #tpu.memory_space<vmem>>, vector<216x24xf32>
    %cst = arith.constant dense<0.000000e+00> : vector<32x24xf32>
    %2 = tpu.matmul %0, %1, %cst {dimension_numbers = #tpu.dot_dimension_numbers<[1], [0], [0], [1], [0, 0, 1, 1], [], []>} : vector<32x216xf32>, vector<216x24xf32>, vector<32x24xf32> -> vector<32x24xf32>
    %cst_3 = arith.constant dense<0.000000e+00> : vector<24xf32>
    %3 = vector.multi_reduction <add>, %2, %cst_3 [0] : vector<32x24xf32> to vector<24xf32>
    %4 = vector.shape_cast %3 : vector<24xf32> to vector<1x24xf32>
    %cst_4 = arith.constant 3.200000e+01 : f32
    %5 = vector.broadcast %cst_4 : f32 to vector<1x24xf32>
    %6 = arith.divf %4, %5 : vector<1x24xf32>
    %7 = vector.broadcast %6 : vector<1x24xf32> to vector<32x24xf32>
    %8 = arith.subf %2, %7 : vector<32x24xf32>
    %9 = arith.mulf %8, %8 : vector<32x24xf32>
    %cst_5 = arith.constant dense<0.000000e+00> : vector<24xf32>
    %10 = vector.multi_reduction <add>, %9, %cst_5 [0] : vector<32x24xf32> to vector<24xf32>
    %11 = vector.shape_cast %10 : vector<24xf32> to vector<1x24xf32>
    %cst_6 = arith.constant 3.200000e+01 : f32
    %12 = vector.broadcast %cst_6 : f32 to vector<1x24xf32>
    %13 = arith.divf %11, %12 : vector<1x24xf32>
    %14 = vector.broadcast %6 : vector<1x24xf32> to vector<32x24xf32>
    %15 = arith.subf %2, %14 : vector<32x24xf32>
    %cst_7 = arith.constant 9.99999974E-6 : f32
    %16 = vector.broadcast %cst_7 : f32 to vector<1x24xf32>
    %17 = arith.addf %13, %16 : vector<1x24xf32>
    %18 = math.rsqrt %17 : vector<1x24xf32>
    %19 = vector.broadcast %18 : vector<1x24xf32> to vector<32x24xf32>
    %20 = arith.mulf %15, %19 : vector<32x24xf32>
    %c0_8 = arith.constant 0 : index
    %c0_9 = arith.constant 0 : index
    %21 = vector.load %arg2[%c0_8, %c0_9] : memref<1x24xf32, #tpu.memory_space<vmem>>, vector<1x24xf32>
    %22 = vector.broadcast %21 : vector<1x24xf32> to vector<32x24xf32>
    %23 = arith.mulf %20, %22 : vector<32x24xf32>
    %c0_10 = arith.constant 0 : index
    %c0_11 = arith.constant 0 : index
    %24 = vector.load %arg3[%c0_10, %c0_11] : memref<1x24xf32, #tpu.memory_space<vmem>>, vector<1x24xf32>
    %25 = vector.broadcast %24 : vector<1x24xf32> to vector<32x24xf32>
    %26 = arith.addf %23, %25 : vector<32x24xf32>
    %cst_12 = arith.constant 0.000000e+00 : f32
    %27 = vector.broadcast %cst_12 : f32 to vector<32x24xf32>
    %28 = arith.maximumf %26, %27 : vector<32x24xf32>
    %c0_13 = arith.constant 0 : index
    %c0_14 = arith.constant 0 : index
    %29 = vector.load %arg4[%c0_13, %c0_14] : memref<32x24xf32, #tpu.memory_space<vmem>>, vector<32x24xf32>
    tpu.vector_store %arg4[%c0_13, %c0_14], %28 {strides = array<i32>} : memref<32x24xf32, #tpu.memory_space<vmem>>, vector<32x24xf32>,
    return
  }
}

module attributes {stable_mosaic.version = 11 : i64} {
  func.func @_fused_gemm_kernel(%arg0: memref<128x24xf32, #tpu.memory_space<vmem>>, %arg1: memref<24x16xf32, #tpu.memory_space<vmem>>, %arg2: memref<1x24xf32, #tpu.memory_space<vmem>>, %arg3: memref<1x24xf32, #tpu.memory_space<vmem>>, %arg4: memref<1x16xf32, #tpu.memory_space<vmem>>, %arg5: memref<1x16xf32, #tpu.memory_space<vmem>>, %arg6: memref<128x16xf32, #tpu.memory_space<vmem>>) attributes {dimension_semantics = [], scalar_prefetch = 0 : i64, scratch_operands = 0 : i64, tpu.core_type = #tpu.core_type<tc>} {
    %c0 = arith.constant 0 : index
    %c0_0 = arith.constant 0 : index
    %0 = vector.load %arg0[%c0, %c0_0] : memref<128x24xf32, #tpu.memory_space<vmem>>, vector<128x24xf32>
    %cst = arith.constant dense<0.000000e+00> : vector<24xf32>
    %1 = vector.multi_reduction <add>, %0, %cst [0] : vector<128x24xf32> to vector<24xf32>
    %2 = vector.shape_cast %1 : vector<24xf32> to vector<1x24xf32>
    %cst_1 = arith.constant 1.280000e+02 : f32
    %3 = vector.broadcast %cst_1 : f32 to vector<1x24xf32>
    %4 = arith.divf %2, %3 : vector<1x24xf32>
    %5 = vector.broadcast %4 : vector<1x24xf32> to vector<128x24xf32>
    %6 = arith.subf %0, %5 : vector<128x24xf32>
    %7 = arith.mulf %6, %6 : vector<128x24xf32>
    %cst_2 = arith.constant dense<0.000000e+00> : vector<24xf32>
    %8 = vector.multi_reduction <add>, %7, %cst_2 [0] : vector<128x24xf32> to vector<24xf32>
    %9 = vector.shape_cast %8 : vector<24xf32> to vector<1x24xf32>
    %cst_3 = arith.constant 1.280000e+02 : f32
    %10 = vector.broadcast %cst_3 : f32 to vector<1x24xf32>
    %11 = arith.divf %9, %10 : vector<1x24xf32>
    %12 = vector.broadcast %4 : vector<1x24xf32> to vector<128x24xf32>
    %13 = arith.subf %0, %12 : vector<128x24xf32>
    %cst_4 = arith.constant 9.99999974E-6 : f32
    %14 = vector.broadcast %cst_4 : f32 to vector<1x24xf32>
    %15 = arith.addf %11, %14 : vector<1x24xf32>
    %16 = math.rsqrt %15 : vector<1x24xf32>
    %17 = vector.broadcast %16 : vector<1x24xf32> to vector<128x24xf32>
    %18 = arith.mulf %13, %17 : vector<128x24xf32>
    %c0_5 = arith.constant 0 : index
    %c0_6 = arith.constant 0 : index
    %19 = vector.load %arg2[%c0_5, %c0_6] : memref<1x24xf32, #tpu.memory_space<vmem>>, vector<1x24xf32>
    %20 = vector.broadcast %19 : vector<1x24xf32> to vector<128x24xf32>
    %21 = arith.mulf %18, %20 : vector<128x24xf32>
    %c0_7 = arith.constant 0 : index
    %c0_8 = arith.constant 0 : index
    %22 = vector.load %arg3[%c0_7, %c0_8] : memref<1x24xf32, #tpu.memory_space<vmem>>, vector<1x24xf32>
    %23 = vector.broadcast %22 : vector<1x24xf32> to vector<128x24xf32>
    %24 = arith.addf %21, %23 : vector<128x24xf32>
    %cst_9 = arith.constant 0.000000e+00 : f32
    %25 = vector.broadcast %cst_9 : f32 to vector<128x24xf32>
    %26 = arith.maximumf %24, %25 : vector<128x24xf32>
    %c0_10 = arith.constant 0 : index
    %c0_11 = arith.constant 0 : index
    %27 = vector.load %arg1[%c0_10, %c0_11] : memref<24x16xf32, #tpu.memory_space<vmem>>, vector<24x16xf32>
    %cst_12 = arith.constant dense<0.000000e+00> : vector<128x16xf32>
    %28 = tpu.matmul %26, %27, %cst_12 {dimension_numbers = #tpu.dot_dimension_numbers<[1], [0], [0], [1], [0, 0, 1, 1], [], []>} : vector<128x24xf32>, vector<24x16xf32>, vector<128x16xf32> -> vector<128x16xf32>
    %cst_13 = arith.constant dense<0.000000e+00> : vector<16xf32>
    %29 = vector.multi_reduction <add>, %28, %cst_13 [0] : vector<128x16xf32> to vector<16xf32>
    %30 = vector.shape_cast %29 : vector<16xf32> to vector<1x16xf32>
    %cst_14 = arith.constant 1.280000e+02 : f32
    %31 = vector.broadcast %cst_14 : f32 to vector<1x16xf32>
    %32 = arith.divf %30, %31 : vector<1x16xf32>
    %33 = vector.broadcast %32 : vector<1x16xf32> to vector<128x16xf32>
    %34 = arith.subf %28, %33 : vector<128x16xf32>
    %35 = arith.mulf %34, %34 : vector<128x16xf32>
    %cst_15 = arith.constant dense<0.000000e+00> : vector<16xf32>
    %36 = vector.multi_reduction <add>, %35, %cst_15 [0] : vector<128x16xf32> to vector<16xf32>
    %37 = vector.shape_cast %36 : vector<16xf32> to vector<1x16xf32>
    %cst_16 = arith.constant 1.280000e+02 : f32
    %38 = vector.broadcast %cst_16 : f32 to vector<1x16xf32>
    %39 = arith.divf %37, %38 : vector<1x16xf32>
    %40 = vector.broadcast %32 : vector<1x16xf32> to vector<128x16xf32>
    %41 = arith.subf %28, %40 : vector<128x16xf32>
    %cst_17 = arith.constant 9.99999974E-6 : f32
    %42 = vector.broadcast %cst_17 : f32 to vector<1x16xf32>
    %43 = arith.addf %39, %42 : vector<1x16xf32>
    %44 = math.rsqrt %43 : vector<1x16xf32>
    %45 = vector.broadcast %44 : vector<1x16xf32> to vector<128x16xf32>
    %46 = arith.mulf %41, %45 : vector<128x16xf32>
    %c0_18 = arith.constant 0 : index
    %c0_19 = arith.constant 0 : index
    %47 = vector.load %arg4[%c0_18, %c0_19] : memref<1x16xf32, #tpu.memory_space<vmem>>, vector<1x16xf32>
    %48 = vector.broadcast %47 : vector<1x16xf32> to vector<128x16xf32>
    %49 = arith.mulf %46, %48 : vector<128x16xf32>
    %c0_20 = arith.constant 0 : index
    %c0_21 = arith.constant 0 : index
    %50 = vector.load %arg5[%c0_20, %c0_21] : memref<1x16xf32, #tpu.memory_space<vmem>>, vector<1x16xf32>
    %51 = vector.broadcast %50 : vector<1x16xf32> to vector<128x16xf32>
    %52 = arith.addf %49, %51 : vector<128x16xf32>
    %cst_22 = arith.constant 0.000000e+00 : f32
    %53 = vector.broadcast %cst_22 : f32 to vector<128x16xf32>
    %54 = arith.maximumf %52, %53 : vector<128x16xf32>
    %c0_23 = arith.constant 0 : index
    %c0_24 = arith.constant 0 : index
    %55 = vector.load %arg6[%c0_23, %c0_24] : memref<128x16xf32, #tpu.memory_space<vmem>>, vector<128x16xf32>
    tpu.vector_store %arg6[%c0_23, %c0_24], %54 {strides = array<i32>} : memref<128x16xf32, #tpu.memory_space<vmem>>, vector<128x16xf32>,
    return
  }
}

module attributes {stable_mosaic.version = 11 : i64} {
  func.func @_fused_gemm_kernel(%arg0: memref<32x288xf32, #tpu.memory_space<vmem>>, %arg1: memref<288x32xf32, #tpu.memory_space<vmem>>, %arg2: memref<1x32xf32, #tpu.memory_space<vmem>>, %arg3: memref<1x32xf32, #tpu.memory_space<vmem>>, %arg4: memref<32x32xf32, #tpu.memory_space<vmem>>) attributes {dimension_semantics = [], scalar_prefetch = 0 : i64, scratch_operands = 0 : i64, tpu.core_type = #tpu.core_type<tc>} {
    %c0 = arith.constant 0 : index
    %c0_0 = arith.constant 0 : index
    %0 = vector.load %arg0[%c0, %c0_0] : memref<32x288xf32, #tpu.memory_space<vmem>>, vector<32x288xf32>
    %c0_1 = arith.constant 0 : index
    %c0_2 = arith.constant 0 : index
    %1 = vector.load %arg1[%c0_1, %c0_2] : memref<288x32xf32, #tpu.memory_space<vmem>>, vector<288x32xf32>
    %cst = arith.constant dense<0.000000e+00> : vector<32x32xf32>
    %2 = tpu.matmul %0, %1, %cst {dimension_numbers = #tpu.dot_dimension_numbers<[1], [0], [0], [1], [0, 0, 1, 1], [], []>} : vector<32x288xf32>, vector<288x32xf32>, vector<32x32xf32> -> vector<32x32xf32>
    %cst_3 = arith.constant dense<0.000000e+00> : vector<32xf32>
    %3 = vector.multi_reduction <add>, %2, %cst_3 [0] : vector<32x32xf32> to vector<32xf32>
    %4 = vector.shape_cast %3 : vector<32xf32> to vector<1x32xf32>
    %cst_4 = arith.constant 3.200000e+01 : f32
    %5 = vector.broadcast %cst_4 : f32 to vector<1x32xf32>
    %6 = arith.divf %4, %5 : vector<1x32xf32>
    %7 = vector.broadcast %6 : vector<1x32xf32> to vector<32x32xf32>
    %8 = arith.subf %2, %7 : vector<32x32xf32>
    %9 = arith.mulf %8, %8 : vector<32x32xf32>
    %cst_5 = arith.constant dense<0.000000e+00> : vector<32xf32>
    %10 = vector.multi_reduction <add>, %9, %cst_5 [0] : vector<32x32xf32> to vector<32xf32>
    %11 = vector.shape_cast %10 : vector<32xf32> to vector<1x32xf32>
    %cst_6 = arith.constant 3.200000e+01 : f32
    %12 = vector.broadcast %cst_6 : f32 to vector<1x32xf32>
    %13 = arith.divf %11, %12 : vector<1x32xf32>
    %14 = vector.broadcast %6 : vector<1x32xf32> to vector<32x32xf32>
    %15 = arith.subf %2, %14 : vector<32x32xf32>
    %cst_7 = arith.constant 9.99999974E-6 : f32
    %16 = vector.broadcast %cst_7 : f32 to vector<1x32xf32>
    %17 = arith.addf %13, %16 : vector<1x32xf32>
    %18 = math.rsqrt %17 : vector<1x32xf32>
    %19 = vector.broadcast %18 : vector<1x32xf32> to vector<32x32xf32>
    %20 = arith.mulf %15, %19 : vector<32x32xf32>
    %c0_8 = arith.constant 0 : index
    %c0_9 = arith.constant 0 : index
    %21 = vector.load %arg2[%c0_8, %c0_9] : memref<1x32xf32, #tpu.memory_space<vmem>>, vector<1x32xf32>
    %22 = vector.broadcast %21 : vector<1x32xf32> to vector<32x32xf32>
    %23 = arith.mulf %20, %22 : vector<32x32xf32>
    %c0_10 = arith.constant 0 : index
    %c0_11 = arith.constant 0 : index
    %24 = vector.load %arg3[%c0_10, %c0_11] : memref<1x32xf32, #tpu.memory_space<vmem>>, vector<1x32xf32>
    %25 = vector.broadcast %24 : vector<1x32xf32> to vector<32x32xf32>
    %26 = arith.addf %23, %25 : vector<32x32xf32>
    %cst_12 = arith.constant 0.000000e+00 : f32
    %27 = vector.broadcast %cst_12 : f32 to vector<32x32xf32>
    %28 = arith.maximumf %26, %27 : vector<32x32xf32>
    %c0_13 = arith.constant 0 : index
    %c0_14 = arith.constant 0 : index
    %29 = vector.load %arg4[%c0_13, %c0_14] : memref<32x32xf32, #tpu.memory_space<vmem>>, vector<32x32xf32>
    tpu.vector_store %arg4[%c0_13, %c0_14], %28 {strides = array<i32>} : memref<32x32xf32, #tpu.memory_space<vmem>>, vector<32x32xf32>,
    return
  }
}

module attributes {stable_mosaic.version = 11 : i64} {
  func.func @_fused_gemm_kernel(%arg0: memref<2x32xf32, #tpu.memory_space<vmem>>, %arg1: memref<32x8xf32, #tpu.memory_space<vmem>>, %arg2: memref<1x8xf32, #tpu.memory_space<vmem>>, %arg3: memref<2x8xf32, #tpu.memory_space<vmem>>) attributes {dimension_semantics = [], scalar_prefetch = 0 : i64, scratch_operands = 0 : i64, tpu.core_type = #tpu.core_type<tc>} {
    %c0 = arith.constant 0 : index
    %c0_0 = arith.constant 0 : index
    %0 = vector.load %arg0[%c0, %c0_0] : memref<2x32xf32, #tpu.memory_space<vmem>>, vector<2x32xf32>
    %c0_1 = arith.constant 0 : index
    %c0_2 = arith.constant 0 : index
    %1 = vector.load %arg1[%c0_1, %c0_2] : memref<32x8xf32, #tpu.memory_space<vmem>>, vector<32x8xf32>
    %cst = arith.constant dense<0.000000e+00> : vector<2x8xf32>
    %2 = tpu.matmul %0, %1, %cst {dimension_numbers = #tpu.dot_dimension_numbers<[1], [0], [0], [1], [0, 0, 1, 1], [], []>} : vector<2x32xf32>, vector<32x8xf32>, vector<2x8xf32> -> vector<2x8xf32>
    %c0_3 = arith.constant 0 : index
    %c0_4 = arith.constant 0 : index
    %3 = vector.load %arg2[%c0_3, %c0_4] : memref<1x8xf32, #tpu.memory_space<vmem>>, vector<1x8xf32>
    %4 = vector.broadcast %3 : vector<1x8xf32> to vector<2x8xf32>
    %5 = arith.addf %2, %4 : vector<2x8xf32>
    %c0_5 = arith.constant 0 : index
    %c0_6 = arith.constant 0 : index
    %6 = vector.load %arg3[%c0_5, %c0_6] : memref<2x8xf32, #tpu.memory_space<vmem>>, vector<2x8xf32>
    tpu.vector_store %arg3[%c0_5, %c0_6], %5 {strides = array<i32>} : memref<2x8xf32, #tpu.memory_space<vmem>>, vector<2x8xf32>,
    return
  }
}

module attributes {stable_mosaic.version = 11 : i64} {
  func.func @_fused_gemm_kernel(%arg0: memref<128x32xf32, #tpu.memory_space<vmem>>, %arg1: memref<32x16xf32, #tpu.memory_space<vmem>>, %arg2: memref<1x32xf32, #tpu.memory_space<vmem>>, %arg3: memref<1x32xf32, #tpu.memory_space<vmem>>, %arg4: memref<128x16xf32, #tpu.memory_space<vmem>>) attributes {dimension_semantics = [], scalar_prefetch = 0 : i64, scratch_operands = 0 : i64, tpu.core_type = #tpu.core_type<tc>} {
    %c0 = arith.constant 0 : index
    %c0_0 = arith.constant 0 : index
    %0 = vector.load %arg0[%c0, %c0_0] : memref<128x32xf32, #tpu.memory_space<vmem>>, vector<128x32xf32>
    %cst = arith.constant dense<0.000000e+00> : vector<32xf32>
    %1 = vector.multi_reduction <add>, %0, %cst [0] : vector<128x32xf32> to vector<32xf32>
    %2 = vector.shape_cast %1 : vector<32xf32> to vector<1x32xf32>
    %cst_1 = arith.constant 1.280000e+02 : f32
    %3 = vector.broadcast %cst_1 : f32 to vector<1x32xf32>
    %4 = arith.divf %2, %3 : vector<1x32xf32>
    %5 = vector.broadcast %4 : vector<1x32xf32> to vector<128x32xf32>
    %6 = arith.subf %0, %5 : vector<128x32xf32>
    %7 = arith.mulf %6, %6 : vector<128x32xf32>
    %cst_2 = arith.constant dense<0.000000e+00> : vector<32xf32>
    %8 = vector.multi_reduction <add>, %7, %cst_2 [0] : vector<128x32xf32> to vector<32xf32>
    %9 = vector.shape_cast %8 : vector<32xf32> to vector<1x32xf32>
    %cst_3 = arith.constant 1.280000e+02 : f32
    %10 = vector.broadcast %cst_3 : f32 to vector<1x32xf32>
    %11 = arith.divf %9, %10 : vector<1x32xf32>
    %12 = vector.broadcast %4 : vector<1x32xf32> to vector<128x32xf32>
    %13 = arith.subf %0, %12 : vector<128x32xf32>
    %cst_4 = arith.constant 9.99999974E-6 : f32
    %14 = vector.broadcast %cst_4 : f32 to vector<1x32xf32>
    %15 = arith.addf %11, %14 : vector<1x32xf32>
    %16 = math.rsqrt %15 : vector<1x32xf32>
    %17 = vector.broadcast %16 : vector<1x32xf32> to vector<128x32xf32>
    %18 = arith.mulf %13, %17 : vector<128x32xf32>
    %c0_5 = arith.constant 0 : index
    %c0_6 = arith.constant 0 : index
    %19 = vector.load %arg2[%c0_5, %c0_6] : memref<1x32xf32, #tpu.memory_space<vmem>>, vector<1x32xf32>
    %20 = vector.broadcast %19 : vector<1x32xf32> to vector<128x32xf32>
    %21 = arith.mulf %18, %20 : vector<128x32xf32>
    %c0_7 = arith.constant 0 : index
    %c0_8 = arith.constant 0 : index
    %22 = vector.load %arg3[%c0_7, %c0_8] : memref<1x32xf32, #tpu.memory_space<vmem>>, vector<1x32xf32>
    %23 = vector.broadcast %22 : vector<1x32xf32> to vector<128x32xf32>
    %24 = arith.addf %21, %23 : vector<128x32xf32>
    %cst_9 = arith.constant 0.000000e+00 : f32
    %25 = vector.broadcast %cst_9 : f32 to vector<128x32xf32>
    %26 = arith.maximumf %24, %25 : vector<128x32xf32>
    %c0_10 = arith.constant 0 : index
    %c0_11 = arith.constant 0 : index
    %27 = vector.load %arg1[%c0_10, %c0_11] : memref<32x16xf32, #tpu.memory_space<vmem>>, vector<32x16xf32>
    %cst_12 = arith.constant dense<0.000000e+00> : vector<128x16xf32>
    %28 = tpu.matmul %26, %27, %cst_12 {dimension_numbers = #tpu.dot_dimension_numbers<[1], [0], [0], [1], [0, 0, 1, 1], [], []>} : vector<128x32xf32>, vector<32x16xf32>, vector<128x16xf32> -> vector<128x16xf32>
    %c0_13 = arith.constant 0 : index
    %c0_14 = arith.constant 0 : index
    %29 = vector.load %arg4[%c0_13, %c0_14] : memref<128x16xf32, #tpu.memory_space<vmem>>, vector<128x16xf32>
    tpu.vector_store %arg4[%c0_13, %c0_14], %28 {strides = array<i32>} : memref<128x16xf32, #tpu.memory_space<vmem>>, vector<128x16xf32>,
    return
  }
}

module attributes {stable_mosaic.version = 11 : i64} {
  func.func @_fused_gemm_kernel(%arg0: memref<32x16xf32, #tpu.memory_space<vmem>>, %arg1: memref<16x16xf32, #tpu.memory_space<vmem>>, %arg2: memref<1x16xf32, #tpu.memory_space<vmem>>, %arg3: memref<1x16xf32, #tpu.memory_space<vmem>>, %arg4: memref<1x16xf32, #tpu.memory_space<vmem>>, %arg5: memref<1x16xf32, #tpu.memory_space<vmem>>, %arg6: memref<32x16xf32, #tpu.memory_space<vmem>>) attributes {dimension_semantics = [], scalar_prefetch = 0 : i64, scratch_operands = 0 : i64, tpu.core_type = #tpu.core_type<tc>} {
    %c0 = arith.constant 0 : index
    %c0_0 = arith.constant 0 : index
    %0 = vector.load %arg0[%c0, %c0_0] : memref<32x16xf32, #tpu.memory_space<vmem>>, vector<32x16xf32>
    %cst = arith.constant dense<0.000000e+00> : vector<16xf32>
    %1 = vector.multi_reduction <add>, %0, %cst [0] : vector<32x16xf32> to vector<16xf32>
    %2 = vector.shape_cast %1 : vector<16xf32> to vector<1x16xf32>
    %cst_1 = arith.constant 3.200000e+01 : f32
    %3 = vector.broadcast %cst_1 : f32 to vector<1x16xf32>
    %4 = arith.divf %2, %3 : vector<1x16xf32>
    %5 = vector.broadcast %4 : vector<1x16xf32> to vector<32x16xf32>
    %6 = arith.subf %0, %5 : vector<32x16xf32>
    %7 = arith.mulf %6, %6 : vector<32x16xf32>
    %cst_2 = arith.constant dense<0.000000e+00> : vector<16xf32>
    %8 = vector.multi_reduction <add>, %7, %cst_2 [0] : vector<32x16xf32> to vector<16xf32>
    %9 = vector.shape_cast %8 : vector<16xf32> to vector<1x16xf32>
    %cst_3 = arith.constant 3.200000e+01 : f32
    %10 = vector.broadcast %cst_3 : f32 to vector<1x16xf32>
    %11 = arith.divf %9, %10 : vector<1x16xf32>
    %12 = vector.broadcast %4 : vector<1x16xf32> to vector<32x16xf32>
    %13 = arith.subf %0, %12 : vector<32x16xf32>
    %cst_4 = arith.constant 9.99999974E-6 : f32
    %14 = vector.broadcast %cst_4 : f32 to vector<1x16xf32>
    %15 = arith.addf %11, %14 : vector<1x16xf32>
    %16 = math.rsqrt %15 : vector<1x16xf32>
    %17 = vector.broadcast %16 : vector<1x16xf32> to vector<32x16xf32>
    %18 = arith.mulf %13, %17 : vector<32x16xf32>
    %c0_5 = arith.constant 0 : index
    %c0_6 = arith.constant 0 : index
    %19 = vector.load %arg2[%c0_5, %c0_6] : memref<1x16xf32, #tpu.memory_space<vmem>>, vector<1x16xf32>
    %20 = vector.broadcast %19 : vector<1x16xf32> to vector<32x16xf32>
    %21 = arith.mulf %18, %20 : vector<32x16xf32>
    %c0_7 = arith.constant 0 : index
    %c0_8 = arith.constant 0 : index
    %22 = vector.load %arg3[%c0_7, %c0_8] : memref<1x16xf32, #tpu.memory_space<vmem>>, vector<1x16xf32>
    %23 = vector.broadcast %22 : vector<1x16xf32> to vector<32x16xf32>
    %24 = arith.addf %21, %23 : vector<32x16xf32>
    %cst_9 = arith.constant 0.000000e+00 : f32
    %25 = vector.broadcast %cst_9 : f32 to vector<32x16xf32>
    %26 = arith.maximumf %24, %25 : vector<32x16xf32>
    %c0_10 = arith.constant 0 : index
    %c0_11 = arith.constant 0 : index
    %27 = vector.load %arg1[%c0_10, %c0_11] : memref<16x16xf32, #tpu.memory_space<vmem>>, vector<16x16xf32>
    %cst_12 = arith.constant dense<0.000000e+00> : vector<32x16xf32>
    %28 = tpu.matmul %26, %27, %cst_12 {dimension_numbers = #tpu.dot_dimension_numbers<[1], [0], [0], [1], [0, 0, 1, 1], [], []>} : vector<32x16xf32>, vector<16x16xf32>, vector<32x16xf32> -> vector<32x16xf32>
    %cst_13 = arith.constant dense<0.000000e+00> : vector<16xf32>
    %29 = vector.multi_reduction <add>, %28, %cst_13 [0] : vector<32x16xf32> to vector<16xf32>
    %30 = vector.shape_cast %29 : vector<16xf32> to vector<1x16xf32>
    %cst_14 = arith.constant 3.200000e+01 : f32
    %31 = vector.broadcast %cst_14 : f32 to vector<1x16xf32>
    %32 = arith.divf %30, %31 : vector<1x16xf32>
    %33 = vector.broadcast %32 : vector<1x16xf32> to vector<32x16xf32>
    %34 = arith.subf %28, %33 : vector<32x16xf32>
    %35 = arith.mulf %34, %34 : vector<32x16xf32>
    %cst_15 = arith.constant dense<0.000000e+00> : vector<16xf32>
    %36 = vector.multi_reduction <add>, %35, %cst_15 [0] : vector<32x16xf32> to vector<16xf32>
    %37 = vector.shape_cast %36 : vector<16xf32> to vector<1x16xf32>
    %cst_16 = arith.constant 3.200000e+01 : f32
    %38 = vector.broadcast %cst_16 : f32 to vector<1x16xf32>
    %39 = arith.divf %37, %38 : vector<1x16xf32>
    %40 = vector.broadcast %32 : vector<1x16xf32> to vector<32x16xf32>
    %41 = arith.subf %28, %40 : vector<32x16xf32>
    %cst_17 = arith.constant 9.99999974E-6 : f32
    %42 = vector.broadcast %cst_17 : f32 to vector<1x16xf32>
    %43 = arith.addf %39, %42 : vector<1x16xf32>
    %44 = math.rsqrt %43 : vector<1x16xf32>
    %45 = vector.broadcast %44 : vector<1x16xf32> to vector<32x16xf32>
    %46 = arith.mulf %41, %45 : vector<32x16xf32>
    %c0_18 = arith.constant 0 : index
    %c0_19 = arith.constant 0 : index
    %47 = vector.load %arg4[%c0_18, %c0_19] : memref<1x16xf32, #tpu.memory_space<vmem>>, vector<1x16xf32>
    %48 = vector.broadcast %47 : vector<1x16xf32> to vector<32x16xf32>
    %49 = arith.mulf %46, %48 : vector<32x16xf32>
    %c0_20 = arith.constant 0 : index
    %c0_21 = arith.constant 0 : index
    %50 = vector.load %arg5[%c0_20, %c0_21] : memref<1x16xf32, #tpu.memory_space<vmem>>, vector<1x16xf32>
    %51 = vector.broadcast %50 : vector<1x16xf32> to vector<32x16xf32>
    %52 = arith.addf %49, %51 : vector<32x16xf32>
    %cst_22 = arith.constant 0.000000e+00 : f32
    %53 = vector.broadcast %cst_22 : f32 to vector<32x16xf32>
    %54 = arith.maximumf %52, %53 : vector<32x16xf32>
    %c0_23 = arith.constant 0 : index
    %c0_24 = arith.constant 0 : index
    %55 = vector.load %arg6[%c0_23, %c0_24] : memref<32x16xf32, #tpu.memory_space<vmem>>, vector<32x16xf32>
    tpu.vector_store %arg6[%c0_23, %c0_24], %54 {strides = array<i32>} : memref<32x16xf32, #tpu.memory_space<vmem>>, vector<32x16xf32>,
    return
  }
}

module attributes {stable_mosaic.version = 11 : i64} {
  func.func @_fused_gemm_kernel(%arg0: memref<32x144xf32, #tpu.memory_space<vmem>>, %arg1: memref<144x8xf32, #tpu.memory_space<vmem>>, %arg2: memref<32x8xf32, #tpu.memory_space<vmem>>) attributes {dimension_semantics = [], scalar_prefetch = 0 : i64, scratch_operands = 0 : i64, tpu.core_type = #tpu.core_type<tc>} {
    %c0 = arith.constant 0 : index
    %c0_0 = arith.constant 0 : index
    %0 = vector.load %arg0[%c0, %c0_0] : memref<32x144xf32, #tpu.memory_space<vmem>>, vector<32x144xf32>
    %c0_1 = arith.constant 0 : index
    %c0_2 = arith.constant 0 : index
    %1 = vector.load %arg1[%c0_1, %c0_2] : memref<144x8xf32, #tpu.memory_space<vmem>>, vector<144x8xf32>
    %cst = arith.constant dense<0.000000e+00> : vector<32x8xf32>
    %2 = tpu.matmul %0, %1, %cst {dimension_numbers = #tpu.dot_dimension_numbers<[1], [0], [0], [1], [0, 0, 1, 1], [], []>} : vector<32x144xf32>, vector<144x8xf32>, vector<32x8xf32> -> vector<32x8xf32>
    %c0_3 = arith.constant 0 : index
    %c0_4 = arith.constant 0 : index
    %3 = vector.load %arg2[%c0_3, %c0_4] : memref<32x8xf32, #tpu.memory_space<vmem>>, vector<32x8xf32>
    tpu.vector_store %arg2[%c0_3, %c0_4], %2 {strides = array<i32>} : memref<32x8xf32, #tpu.memory_space<vmem>>, vector<32x8xf32>,
    return
  }
}

module attributes {stable_mosaic.version = 11 : i64} {
  func.func @_fused_gemm_kernel(%arg0: memref<8x216xf32, #tpu.memory_space<vmem>>, %arg1: memref<216x24xf32, #tpu.memory_space<vmem>>, %arg2: memref<1x24xf32, #tpu.memory_space<vmem>>, %arg3: memref<1x24xf32, #tpu.memory_space<vmem>>, %arg4: memref<8x24xf32, #tpu.memory_space<vmem>>) attributes {dimension_semantics = [], scalar_prefetch = 0 : i64, scratch_operands = 0 : i64, tpu.core_type = #tpu.core_type<tc>} {
    %c0 = arith.constant 0 : index
    %c0_0 = arith.constant 0 : index
    %0 = vector.load %arg0[%c0, %c0_0] : memref<8x216xf32, #tpu.memory_space<vmem>>, vector<8x216xf32>
    %c0_1 = arith.constant 0 : index
    %c0_2 = arith.constant 0 : index
    %1 = vector.load %arg1[%c0_1, %c0_2] : memref<216x24xf32, #tpu.memory_space<vmem>>, vector<216x24xf32>
    %cst = arith.constant dense<0.000000e+00> : vector<8x24xf32>
    %2 = tpu.matmul %0, %1, %cst {dimension_numbers = #tpu.dot_dimension_numbers<[1], [0], [0], [1], [0, 0, 1, 1], [], []>} : vector<8x216xf32>, vector<216x24xf32>, vector<8x24xf32> -> vector<8x24xf32>
    %cst_3 = arith.constant dense<0.000000e+00> : vector<24xf32>
    %3 = vector.multi_reduction <add>, %2, %cst_3 [0] : vector<8x24xf32> to vector<24xf32>
    %4 = vector.shape_cast %3 : vector<24xf32> to vector<1x24xf32>
    %cst_4 = arith.constant 8.000000e+00 : f32
    %5 = vector.broadcast %cst_4 : f32 to vector<1x24xf32>
    %6 = arith.divf %4, %5 : vector<1x24xf32>
    %7 = vector.broadcast %6 : vector<1x24xf32> to vector<8x24xf32>
    %8 = arith.subf %2, %7 : vector<8x24xf32>
    %9 = arith.mulf %8, %8 : vector<8x24xf32>
    %cst_5 = arith.constant dense<0.000000e+00> : vector<24xf32>
    %10 = vector.multi_reduction <add>, %9, %cst_5 [0] : vector<8x24xf32> to vector<24xf32>
    %11 = vector.shape_cast %10 : vector<24xf32> to vector<1x24xf32>
    %cst_6 = arith.constant 8.000000e+00 : f32
    %12 = vector.broadcast %cst_6 : f32 to vector<1x24xf32>
    %13 = arith.divf %11, %12 : vector<1x24xf32>
    %14 = vector.broadcast %6 : vector<1x24xf32> to vector<8x24xf32>
    %15 = arith.subf %2, %14 : vector<8x24xf32>
    %cst_7 = arith.constant 9.99999974E-6 : f32
    %16 = vector.broadcast %cst_7 : f32 to vector<1x24xf32>
    %17 = arith.addf %13, %16 : vector<1x24xf32>
    %18 = math.rsqrt %17 : vector<1x24xf32>
    %19 = vector.broadcast %18 : vector<1x24xf32> to vector<8x24xf32>
    %20 = arith.mulf %15, %19 : vector<8x24xf32>
    %c0_8 = arith.constant 0 : index
    %c0_9 = arith.constant 0 : index
    %21 = vector.load %arg2[%c0_8, %c0_9] : memref<1x24xf32, #tpu.memory_space<vmem>>, vector<1x24xf32>
    %22 = vector.broadcast %21 : vector<1x24xf32> to vector<8x24xf32>
    %23 = arith.mulf %20, %22 : vector<8x24xf32>
    %c0_10 = arith.constant 0 : index
    %c0_11 = arith.constant 0 : index
    %24 = vector.load %arg3[%c0_10, %c0_11] : memref<1x24xf32, #tpu.memory_space<vmem>>, vector<1x24xf32>
    %25 = vector.broadcast %24 : vector<1x24xf32> to vector<8x24xf32>
    %26 = arith.addf %23, %25 : vector<8x24xf32>
    %cst_12 = arith.constant 0.000000e+00 : f32
    %27 = vector.broadcast %cst_12 : f32 to vector<8x24xf32>
    %28 = arith.maximumf %26, %27 : vector<8x24xf32>
    %c0_13 = arith.constant 0 : index
    %c0_14 = arith.constant 0 : index
    %29 = vector.load %arg4[%c0_13, %c0_14] : memref<8x24xf32, #tpu.memory_space<vmem>>, vector<8x24xf32>
    tpu.vector_store %arg4[%c0_13, %c0_14], %28 {strides = array<i32>} : memref<8x24xf32, #tpu.memory_space<vmem>>, vector<8x24xf32>,
    return
  }
}

module attributes {stable_mosaic.version = 11 : i64} {
  func.func @_fused_gemm_kernel(%arg0: memref<32x24xf32, #tpu.memory_space<vmem>>, %arg1: memref<24x16xf32, #tpu.memory_space<vmem>>, %arg2: memref<1x24xf32, #tpu.memory_space<vmem>>, %arg3: memref<1x24xf32, #tpu.memory_space<vmem>>, %arg4: memref<1x16xf32, #tpu.memory_space<vmem>>, %arg5: memref<1x16xf32, #tpu.memory_space<vmem>>, %arg6: memref<32x16xf32, #tpu.memory_space<vmem>>) attributes {dimension_semantics = [], scalar_prefetch = 0 : i64, scratch_operands = 0 : i64, tpu.core_type = #tpu.core_type<tc>} {
    %c0 = arith.constant 0 : index
    %c0_0 = arith.constant 0 : index
    %0 = vector.load %arg0[%c0, %c0_0] : memref<32x24xf32, #tpu.memory_space<vmem>>, vector<32x24xf32>
    %cst = arith.constant dense<0.000000e+00> : vector<24xf32>
    %1 = vector.multi_reduction <add>, %0, %cst [0] : vector<32x24xf32> to vector<24xf32>
    %2 = vector.shape_cast %1 : vector<24xf32> to vector<1x24xf32>
    %cst_1 = arith.constant 3.200000e+01 : f32
    %3 = vector.broadcast %cst_1 : f32 to vector<1x24xf32>
    %4 = arith.divf %2, %3 : vector<1x24xf32>
    %5 = vector.broadcast %4 : vector<1x24xf32> to vector<32x24xf32>
    %6 = arith.subf %0, %5 : vector<32x24xf32>
    %7 = arith.mulf %6, %6 : vector<32x24xf32>
    %cst_2 = arith.constant dense<0.000000e+00> : vector<24xf32>
    %8 = vector.multi_reduction <add>, %7, %cst_2 [0] : vector<32x24xf32> to vector<24xf32>
    %9 = vector.shape_cast %8 : vector<24xf32> to vector<1x24xf32>
    %cst_3 = arith.constant 3.200000e+01 : f32
    %10 = vector.broadcast %cst_3 : f32 to vector<1x24xf32>
    %11 = arith.divf %9, %10 : vector<1x24xf32>
    %12 = vector.broadcast %4 : vector<1x24xf32> to vector<32x24xf32>
    %13 = arith.subf %0, %12 : vector<32x24xf32>
    %cst_4 = arith.constant 9.99999974E-6 : f32
    %14 = vector.broadcast %cst_4 : f32 to vector<1x24xf32>
    %15 = arith.addf %11, %14 : vector<1x24xf32>
    %16 = math.rsqrt %15 : vector<1x24xf32>
    %17 = vector.broadcast %16 : vector<1x24xf32> to vector<32x24xf32>
    %18 = arith.mulf %13, %17 : vector<32x24xf32>
    %c0_5 = arith.constant 0 : index
    %c0_6 = arith.constant 0 : index
    %19 = vector.load %arg2[%c0_5, %c0_6] : memref<1x24xf32, #tpu.memory_space<vmem>>, vector<1x24xf32>
    %20 = vector.broadcast %19 : vector<1x24xf32> to vector<32x24xf32>
    %21 = arith.mulf %18, %20 : vector<32x24xf32>
    %c0_7 = arith.constant 0 : index
    %c0_8 = arith.constant 0 : index
    %22 = vector.load %arg3[%c0_7, %c0_8] : memref<1x24xf32, #tpu.memory_space<vmem>>, vector<1x24xf32>
    %23 = vector.broadcast %22 : vector<1x24xf32> to vector<32x24xf32>
    %24 = arith.addf %21, %23 : vector<32x24xf32>
    %cst_9 = arith.constant 0.000000e+00 : f32
    %25 = vector.broadcast %cst_9 : f32 to vector<32x24xf32>
    %26 = arith.maximumf %24, %25 : vector<32x24xf32>
    %c0_10 = arith.constant 0 : index
    %c0_11 = arith.constant 0 : index
    %27 = vector.load %arg1[%c0_10, %c0_11] : memref<24x16xf32, #tpu.memory_space<vmem>>, vector<24x16xf32>
    %cst_12 = arith.constant dense<0.000000e+00> : vector<32x16xf32>
    %28 = tpu.matmul %26, %27, %cst_12 {dimension_numbers = #tpu.dot_dimension_numbers<[1], [0], [0], [1], [0, 0, 1, 1], [], []>} : vector<32x24xf32>, vector<24x16xf32>, vector<32x16xf32> -> vector<32x16xf32>
    %cst_13 = arith.constant dense<0.000000e+00> : vector<16xf32>
    %29 = vector.multi_reduction <add>, %28, %cst_13 [0] : vector<32x16xf32> to vector<16xf32>
    %30 = vector.shape_cast %29 : vector<16xf32> to vector<1x16xf32>
    %cst_14 = arith.constant 3.200000e+01 : f32
    %31 = vector.broadcast %cst_14 : f32 to vector<1x16xf32>
    %32 = arith.divf %30, %31 : vector<1x16xf32>
    %33 = vector.broadcast %32 : vector<1x16xf32> to vector<32x16xf32>
    %34 = arith.subf %28, %33 : vector<32x16xf32>
    %35 = arith.mulf %34, %34 : vector<32x16xf32>
    %cst_15 = arith.constant dense<0.000000e+00> : vector<16xf32>
    %36 = vector.multi_reduction <add>, %35, %cst_15 [0] : vector<32x16xf32> to vector<16xf32>
    %37 = vector.shape_cast %36 : vector<16xf32> to vector<1x16xf32>
    %cst_16 = arith.constant 3.200000e+01 : f32
    %38 = vector.broadcast %cst_16 : f32 to vector<1x16xf32>
    %39 = arith.divf %37, %38 : vector<1x16xf32>
    %40 = vector.broadcast %32 : vector<1x16xf32> to vector<32x16xf32>
    %41 = arith.subf %28, %40 : vector<32x16xf32>
    %cst_17 = arith.constant 9.99999974E-6 : f32
    %42 = vector.broadcast %cst_17 : f32 to vector<1x16xf32>
    %43 = arith.addf %39, %42 : vector<1x16xf32>
    %44 = math.rsqrt %43 : vector<1x16xf32>
    %45 = vector.broadcast %44 : vector<1x16xf32> to vector<32x16xf32>
    %46 = arith.mulf %41, %45 : vector<32x16xf32>
    %c0_18 = arith.constant 0 : index
    %c0_19 = arith.constant 0 : index
    %47 = vector.load %arg4[%c0_18, %c0_19] : memref<1x16xf32, #tpu.memory_space<vmem>>, vector<1x16xf32>
    %48 = vector.broadcast %47 : vector<1x16xf32> to vector<32x16xf32>
    %49 = arith.mulf %46, %48 : vector<32x16xf32>
    %c0_20 = arith.constant 0 : index
    %c0_21 = arith.constant 0 : index
    %50 = vector.load %arg5[%c0_20, %c0_21] : memref<1x16xf32, #tpu.memory_space<vmem>>, vector<1x16xf32>
    %51 = vector.broadcast %50 : vector<1x16xf32> to vector<32x16xf32>
    %52 = arith.addf %49, %51 : vector<32x16xf32>
    %cst_22 = arith.constant 0.000000e+00 : f32
    %53 = vector.broadcast %cst_22 : f32 to vector<32x16xf32>
    %54 = arith.maximumf %52, %53 : vector<32x16xf32>
    %c0_23 = arith.constant 0 : index
    %c0_24 = arith.constant 0 : index
    %55 = vector.load %arg6[%c0_23, %c0_24] : memref<32x16xf32, #tpu.memory_space<vmem>>, vector<32x16xf32>
    tpu.vector_store %arg6[%c0_23, %c0_24], %54 {strides = array<i32>} : memref<32x16xf32, #tpu.memory_space<vmem>>, vector<32x16xf32>,
    return
  }
}

module attributes {stable_mosaic.version = 11 : i64} {
  func.func @_fused_gemm_kernel(%arg0: memref<8x288xf32, #tpu.memory_space<vmem>>, %arg1: memref<288x32xf32, #tpu.memory_space<vmem>>, %arg2: memref<1x32xf32, #tpu.memory_space<vmem>>, %arg3: memref<1x32xf32, #tpu.memory_space<vmem>>, %arg4: memref<8x32xf32, #tpu.memory_space<vmem>>) attributes {dimension_semantics = [], scalar_prefetch = 0 : i64, scratch_operands = 0 : i64, tpu.core_type = #tpu.core_type<tc>} {
    %c0 = arith.constant 0 : index
    %c0_0 = arith.constant 0 : index
    %0 = vector.load %arg0[%c0, %c0_0] : memref<8x288xf32, #tpu.memory_space<vmem>>, vector<8x288xf32>
    %c0_1 = arith.constant 0 : index
    %c0_2 = arith.constant 0 : index
    %1 = vector.load %arg1[%c0_1, %c0_2] : memref<288x32xf32, #tpu.memory_space<vmem>>, vector<288x32xf32>
    %cst = arith.constant dense<0.000000e+00> : vector<8x32xf32>
    %2 = tpu.matmul %0, %1, %cst {dimension_numbers = #tpu.dot_dimension_numbers<[1], [0], [0], [1], [0, 0, 1, 1], [], []>} : vector<8x288xf32>, vector<288x32xf32>, vector<8x32xf32> -> vector<8x32xf32>
    %cst_3 = arith.constant dense<0.000000e+00> : vector<32xf32>
    %3 = vector.multi_reduction <add>, %2, %cst_3 [0] : vector<8x32xf32> to vector<32xf32>
    %4 = vector.shape_cast %3 : vector<32xf32> to vector<1x32xf32>
    %cst_4 = arith.constant 8.000000e+00 : f32
    %5 = vector.broadcast %cst_4 : f32 to vector<1x32xf32>
    %6 = arith.divf %4, %5 : vector<1x32xf32>
    %7 = vector.broadcast %6 : vector<1x32xf32> to vector<8x32xf32>
    %8 = arith.subf %2, %7 : vector<8x32xf32>
    %9 = arith.mulf %8, %8 : vector<8x32xf32>
    %cst_5 = arith.constant dense<0.000000e+00> : vector<32xf32>
    %10 = vector.multi_reduction <add>, %9, %cst_5 [0] : vector<8x32xf32> to vector<32xf32>
    %11 = vector.shape_cast %10 : vector<32xf32> to vector<1x32xf32>
    %cst_6 = arith.constant 8.000000e+00 : f32
    %12 = vector.broadcast %cst_6 : f32 to vector<1x32xf32>
    %13 = arith.divf %11, %12 : vector<1x32xf32>
    %14 = vector.broadcast %6 : vector<1x32xf32> to vector<8x32xf32>
    %15 = arith.subf %2, %14 : vector<8x32xf32>
    %cst_7 = arith.constant 9.99999974E-6 : f32
    %16 = vector.broadcast %cst_7 : f32 to vector<1x32xf32>
    %17 = arith.addf %13, %16 : vector<1x32xf32>
    %18 = math.rsqrt %17 : vector<1x32xf32>
    %19 = vector.broadcast %18 : vector<1x32xf32> to vector<8x32xf32>
    %20 = arith.mulf %15, %19 : vector<8x32xf32>
    %c0_8 = arith.constant 0 : index
    %c0_9 = arith.constant 0 : index
    %21 = vector.load %arg2[%c0_8, %c0_9] : memref<1x32xf32, #tpu.memory_space<vmem>>, vector<1x32xf32>
    %22 = vector.broadcast %21 : vector<1x32xf32> to vector<8x32xf32>
    %23 = arith.mulf %20, %22 : vector<8x32xf32>
    %c0_10 = arith.constant 0 : index
    %c0_11 = arith.constant 0 : index
    %24 = vector.load %arg3[%c0_10, %c0_11] : memref<1x32xf32, #tpu.memory_space<vmem>>, vector<1x32xf32>
    %25 = vector.broadcast %24 : vector<1x32xf32> to vector<8x32xf32>
    %26 = arith.addf %23, %25 : vector<8x32xf32>
    %cst_12 = arith.constant 0.000000e+00 : f32
    %27 = vector.broadcast %cst_12 : f32 to vector<8x32xf32>
    %28 = arith.maximumf %26, %27 : vector<8x32xf32>
    %c0_13 = arith.constant 0 : index
    %c0_14 = arith.constant 0 : index
    %29 = vector.load %arg4[%c0_13, %c0_14] : memref<8x32xf32, #tpu.memory_space<vmem>>, vector<8x32xf32>
    tpu.vector_store %arg4[%c0_13, %c0_14], %28 {strides = array<i32>} : memref<8x32xf32, #tpu.memory_space<vmem>>, vector<8x32xf32>,
    return
  }
}

module attributes {stable_mosaic.version = 11 : i64} {
  func.func @_fused_gemm_kernel(%arg0: memref<32x32xf32, #tpu.memory_space<vmem>>, %arg1: memref<32x16xf32, #tpu.memory_space<vmem>>, %arg2: memref<1x32xf32, #tpu.memory_space<vmem>>, %arg3: memref<1x32xf32, #tpu.memory_space<vmem>>, %arg4: memref<32x16xf32, #tpu.memory_space<vmem>>) attributes {dimension_semantics = [], scalar_prefetch = 0 : i64, scratch_operands = 0 : i64, tpu.core_type = #tpu.core_type<tc>} {
    %c0 = arith.constant 0 : index
    %c0_0 = arith.constant 0 : index
    %0 = vector.load %arg0[%c0, %c0_0] : memref<32x32xf32, #tpu.memory_space<vmem>>, vector<32x32xf32>
    %cst = arith.constant dense<0.000000e+00> : vector<32xf32>
    %1 = vector.multi_reduction <add>, %0, %cst [0] : vector<32x32xf32> to vector<32xf32>
    %2 = vector.shape_cast %1 : vector<32xf32> to vector<1x32xf32>
    %cst_1 = arith.constant 3.200000e+01 : f32
    %3 = vector.broadcast %cst_1 : f32 to vector<1x32xf32>
    %4 = arith.divf %2, %3 : vector<1x32xf32>
    %5 = vector.broadcast %4 : vector<1x32xf32> to vector<32x32xf32>
    %6 = arith.subf %0, %5 : vector<32x32xf32>
    %7 = arith.mulf %6, %6 : vector<32x32xf32>
    %cst_2 = arith.constant dense<0.000000e+00> : vector<32xf32>
    %8 = vector.multi_reduction <add>, %7, %cst_2 [0] : vector<32x32xf32> to vector<32xf32>
    %9 = vector.shape_cast %8 : vector<32xf32> to vector<1x32xf32>
    %cst_3 = arith.constant 3.200000e+01 : f32
    %10 = vector.broadcast %cst_3 : f32 to vector<1x32xf32>
    %11 = arith.divf %9, %10 : vector<1x32xf32>
    %12 = vector.broadcast %4 : vector<1x32xf32> to vector<32x32xf32>
    %13 = arith.subf %0, %12 : vector<32x32xf32>
    %cst_4 = arith.constant 9.99999974E-6 : f32
    %14 = vector.broadcast %cst_4 : f32 to vector<1x32xf32>
    %15 = arith.addf %11, %14 : vector<1x32xf32>
    %16 = math.rsqrt %15 : vector<1x32xf32>
    %17 = vector.broadcast %16 : vector<1x32xf32> to vector<32x32xf32>
    %18 = arith.mulf %13, %17 : vector<32x32xf32>
    %c0_5 = arith.constant 0 : index
    %c0_6 = arith.constant 0 : index
    %19 = vector.load %arg2[%c0_5, %c0_6] : memref<1x32xf32, #tpu.memory_space<vmem>>, vector<1x32xf32>
    %20 = vector.broadcast %19 : vector<1x32xf32> to vector<32x32xf32>
    %21 = arith.mulf %18, %20 : vector<32x32xf32>
    %c0_7 = arith.constant 0 : index
    %c0_8 = arith.constant 0 : index
    %22 = vector.load %arg3[%c0_7, %c0_8] : memref<1x32xf32, #tpu.memory_space<vmem>>, vector<1x32xf32>
    %23 = vector.broadcast %22 : vector<1x32xf32> to vector<32x32xf32>
    %24 = arith.addf %21, %23 : vector<32x32xf32>
    %cst_9 = arith.constant 0.000000e+00 : f32
    %25 = vector.broadcast %cst_9 : f32 to vector<32x32xf32>
    %26 = arith.maximumf %24, %25 : vector<32x32xf32>
    %c0_10 = arith.constant 0 : index
    %c0_11 = arith.constant 0 : index
    %27 = vector.load %arg1[%c0_10, %c0_11] : memref<32x16xf32, #tpu.memory_space<vmem>>, vector<32x16xf32>
    %cst_12 = arith.constant dense<0.000000e+00> : vector<32x16xf32>
    %28 = tpu.matmul %26, %27, %cst_12 {dimension_numbers = #tpu.dot_dimension_numbers<[1], [0], [0], [1], [0, 0, 1, 1], [], []>} : vector<32x32xf32>, vector<32x16xf32>, vector<32x16xf32> -> vector<32x16xf32>
    %c0_13 = arith.constant 0 : index
    %c0_14 = arith.constant 0 : index
    %29 = vector.load %arg4[%c0_13, %c0_14] : memref<32x16xf32, #tpu.memory_space<vmem>>, vector<32x16xf32>
    tpu.vector_store %arg4[%c0_13, %c0_14], %28 {strides = array<i32>} : memref<32x16xf32, #tpu.memory_space<vmem>>, vector<32x16xf32>,
    return
  }
}

module attributes {stable_mosaic.version = 11 : i64} {
  func.func @_fused_gemm_kernel(%arg0: memref<8x16xf32, #tpu.memory_space<vmem>>, %arg1: memref<16x16xf32, #tpu.memory_space<vmem>>, %arg2: memref<1x16xf32, #tpu.memory_space<vmem>>, %arg3: memref<1x16xf32, #tpu.memory_space<vmem>>, %arg4: memref<1x16xf32, #tpu.memory_space<vmem>>, %arg5: memref<1x16xf32, #tpu.memory_space<vmem>>, %arg6: memref<8x16xf32, #tpu.memory_space<vmem>>) attributes {dimension_semantics = [], scalar_prefetch = 0 : i64, scratch_operands = 0 : i64, tpu.core_type = #tpu.core_type<tc>} {
    %c0 = arith.constant 0 : index
    %c0_0 = arith.constant 0 : index
    %0 = vector.load %arg0[%c0, %c0_0] : memref<8x16xf32, #tpu.memory_space<vmem>>, vector<8x16xf32>
    %cst = arith.constant dense<0.000000e+00> : vector<16xf32>
    %1 = vector.multi_reduction <add>, %0, %cst [0] : vector<8x16xf32> to vector<16xf32>
    %2 = vector.shape_cast %1 : vector<16xf32> to vector<1x16xf32>
    %cst_1 = arith.constant 8.000000e+00 : f32
    %3 = vector.broadcast %cst_1 : f32 to vector<1x16xf32>
    %4 = arith.divf %2, %3 : vector<1x16xf32>
    %5 = vector.broadcast %4 : vector<1x16xf32> to vector<8x16xf32>
    %6 = arith.subf %0, %5 : vector<8x16xf32>
    %7 = arith.mulf %6, %6 : vector<8x16xf32>
    %cst_2 = arith.constant dense<0.000000e+00> : vector<16xf32>
    %8 = vector.multi_reduction <add>, %7, %cst_2 [0] : vector<8x16xf32> to vector<16xf32>
    %9 = vector.shape_cast %8 : vector<16xf32> to vector<1x16xf32>
    %cst_3 = arith.constant 8.000000e+00 : f32
    %10 = vector.broadcast %cst_3 : f32 to vector<1x16xf32>
    %11 = arith.divf %9, %10 : vector<1x16xf32>
    %12 = vector.broadcast %4 : vector<1x16xf32> to vector<8x16xf32>
    %13 = arith.subf %0, %12 : vector<8x16xf32>
    %cst_4 = arith.constant 9.99999974E-6 : f32
    %14 = vector.broadcast %cst_4 : f32 to vector<1x16xf32>
    %15 = arith.addf %11, %14 : vector<1x16xf32>
    %16 = math.rsqrt %15 : vector<1x16xf32>
    %17 = vector.broadcast %16 : vector<1x16xf32> to vector<8x16xf32>
    %18 = arith.mulf %13, %17 : vector<8x16xf32>
    %c0_5 = arith.constant 0 : index
    %c0_6 = arith.constant 0 : index
    %19 = vector.load %arg2[%c0_5, %c0_6] : memref<1x16xf32, #tpu.memory_space<vmem>>, vector<1x16xf32>
    %20 = vector.broadcast %19 : vector<1x16xf32> to vector<8x16xf32>
    %21 = arith.mulf %18, %20 : vector<8x16xf32>
    %c0_7 = arith.constant 0 : index
    %c0_8 = arith.constant 0 : index
    %22 = vector.load %arg3[%c0_7, %c0_8] : memref<1x16xf32, #tpu.memory_space<vmem>>, vector<1x16xf32>
    %23 = vector.broadcast %22 : vector<1x16xf32> to vector<8x16xf32>
    %24 = arith.addf %21, %23 : vector<8x16xf32>
    %cst_9 = arith.constant 0.000000e+00 : f32
    %25 = vector.broadcast %cst_9 : f32 to vector<8x16xf32>
    %26 = arith.maximumf %24, %25 : vector<8x16xf32>
    %c0_10 = arith.constant 0 : index
    %c0_11 = arith.constant 0 : index
    %27 = vector.load %arg1[%c0_10, %c0_11] : memref<16x16xf32, #tpu.memory_space<vmem>>, vector<16x16xf32>
    %cst_12 = arith.constant dense<0.000000e+00> : vector<8x16xf32>
    %28 = tpu.matmul %26, %27, %cst_12 {dimension_numbers = #tpu.dot_dimension_numbers<[1], [0], [0], [1], [0, 0, 1, 1], [], []>} : vector<8x16xf32>, vector<16x16xf32>, vector<8x16xf32> -> vector<8x16xf32>
    %cst_13 = arith.constant dense<0.000000e+00> : vector<16xf32>
    %29 = vector.multi_reduction <add>, %28, %cst_13 [0] : vector<8x16xf32> to vector<16xf32>
    %30 = vector.shape_cast %29 : vector<16xf32> to vector<1x16xf32>
    %cst_14 = arith.constant 8.000000e+00 : f32
    %31 = vector.broadcast %cst_14 : f32 to vector<1x16xf32>
    %32 = arith.divf %30, %31 : vector<1x16xf32>
    %33 = vector.broadcast %32 : vector<1x16xf32> to vector<8x16xf32>
    %34 = arith.subf %28, %33 : vector<8x16xf32>
    %35 = arith.mulf %34, %34 : vector<8x16xf32>
    %cst_15 = arith.constant dense<0.000000e+00> : vector<16xf32>
    %36 = vector.multi_reduction <add>, %35, %cst_15 [0] : vector<8x16xf32> to vector<16xf32>
    %37 = vector.shape_cast %36 : vector<16xf32> to vector<1x16xf32>
    %cst_16 = arith.constant 8.000000e+00 : f32
    %38 = vector.broadcast %cst_16 : f32 to vector<1x16xf32>
    %39 = arith.divf %37, %38 : vector<1x16xf32>
    %40 = vector.broadcast %32 : vector<1x16xf32> to vector<8x16xf32>
    %41 = arith.subf %28, %40 : vector<8x16xf32>
    %cst_17 = arith.constant 9.99999974E-6 : f32
    %42 = vector.broadcast %cst_17 : f32 to vector<1x16xf32>
    %43 = arith.addf %39, %42 : vector<1x16xf32>
    %44 = math.rsqrt %43 : vector<1x16xf32>
    %45 = vector.broadcast %44 : vector<1x16xf32> to vector<8x16xf32>
    %46 = arith.mulf %41, %45 : vector<8x16xf32>
    %c0_18 = arith.constant 0 : index
    %c0_19 = arith.constant 0 : index
    %47 = vector.load %arg4[%c0_18, %c0_19] : memref<1x16xf32, #tpu.memory_space<vmem>>, vector<1x16xf32>
    %48 = vector.broadcast %47 : vector<1x16xf32> to vector<8x16xf32>
    %49 = arith.mulf %46, %48 : vector<8x16xf32>
    %c0_20 = arith.constant 0 : index
    %c0_21 = arith.constant 0 : index
    %50 = vector.load %arg5[%c0_20, %c0_21] : memref<1x16xf32, #tpu.memory_space<vmem>>, vector<1x16xf32>
    %51 = vector.broadcast %50 : vector<1x16xf32> to vector<8x16xf32>
    %52 = arith.addf %49, %51 : vector<8x16xf32>
    %cst_22 = arith.constant 0.000000e+00 : f32
    %53 = vector.broadcast %cst_22 : f32 to vector<8x16xf32>
    %54 = arith.maximumf %52, %53 : vector<8x16xf32>
    %c0_23 = arith.constant 0 : index
    %c0_24 = arith.constant 0 : index
    %55 = vector.load %arg6[%c0_23, %c0_24] : memref<8x16xf32, #tpu.memory_space<vmem>>, vector<8x16xf32>
    tpu.vector_store %arg6[%c0_23, %c0_24], %54 {strides = array<i32>} : memref<8x16xf32, #tpu.memory_space<vmem>>, vector<8x16xf32>,
    return
  }
}

module attributes {stable_mosaic.version = 11 : i64} {
  func.func @_fused_gemm_kernel(%arg0: memref<8x144xf32, #tpu.memory_space<vmem>>, %arg1: memref<144x8xf32, #tpu.memory_space<vmem>>, %arg2: memref<8x8xf32, #tpu.memory_space<vmem>>) attributes {dimension_semantics = [], scalar_prefetch = 0 : i64, scratch_operands = 0 : i64, tpu.core_type = #tpu.core_type<tc>} {
    %c0 = arith.constant 0 : index
    %c0_0 = arith.constant 0 : index
    %0 = vector.load %arg0[%c0, %c0_0] : memref<8x144xf32, #tpu.memory_space<vmem>>, vector<8x144xf32>
    %c0_1 = arith.constant 0 : index
    %c0_2 = arith.constant 0 : index
    %1 = vector.load %arg1[%c0_1, %c0_2] : memref<144x8xf32, #tpu.memory_space<vmem>>, vector<144x8xf32>
    %cst = arith.constant dense<0.000000e+00> : vector<8x8xf32>
    %2 = tpu.matmul %0, %1, %cst {dimension_numbers = #tpu.dot_dimension_numbers<[1], [0], [0], [1], [0, 0, 1, 1], [], []>} : vector<8x144xf32>, vector<144x8xf32>, vector<8x8xf32> -> vector<8x8xf32>
    %c0_3 = arith.constant 0 : index
    %c0_4 = arith.constant 0 : index
    %3 = vector.load %arg2[%c0_3, %c0_4] : memref<8x8xf32, #tpu.memory_space<vmem>>, vector<8x8xf32>
    tpu.vector_store %arg2[%c0_3, %c0_4], %2 {strides = array<i32>} : memref<8x8xf32, #tpu.memory_space<vmem>>, vector<8x8xf32>,
    return
  }
}

module attributes {stable_mosaic.version = 11 : i64} {
  func.func @_fused_gemm_kernel(%arg0: memref<2x216xf32, #tpu.memory_space<vmem>>, %arg1: memref<216x24xf32, #tpu.memory_space<vmem>>, %arg2: memref<1x24xf32, #tpu.memory_space<vmem>>, %arg3: memref<1x24xf32, #tpu.memory_space<vmem>>, %arg4: memref<2x24xf32, #tpu.memory_space<vmem>>) attributes {dimension_semantics = [], scalar_prefetch = 0 : i64, scratch_operands = 0 : i64, tpu.core_type = #tpu.core_type<tc>} {
    %c0 = arith.constant 0 : index
    %c0_0 = arith.constant 0 : index
    %0 = vector.load %arg0[%c0, %c0_0] : memref<2x216xf32, #tpu.memory_space<vmem>>, vector<2x216xf32>
    %c0_1 = arith.constant 0 : index
    %c0_2 = arith.constant 0 : index
    %1 = vector.load %arg1[%c0_1, %c0_2] : memref<216x24xf32, #tpu.memory_space<vmem>>, vector<216x24xf32>
    %cst = arith.constant dense<0.000000e+00> : vector<2x24xf32>
    %2 = tpu.matmul %0, %1, %cst {dimension_numbers = #tpu.dot_dimension_numbers<[1], [0], [0], [1], [0, 0, 1, 1], [], []>} : vector<2x216xf32>, vector<216x24xf32>, vector<2x24xf32> -> vector<2x24xf32>
    %cst_3 = arith.constant dense<0.000000e+00> : vector<24xf32>
    %3 = vector.multi_reduction <add>, %2, %cst_3 [0] : vector<2x24xf32> to vector<24xf32>
    %4 = vector.shape_cast %3 : vector<24xf32> to vector<1x24xf32>
    %cst_4 = arith.constant 2.000000e+00 : f32
    %5 = vector.broadcast %cst_4 : f32 to vector<1x24xf32>
    %6 = arith.divf %4, %5 : vector<1x24xf32>
    %7 = vector.broadcast %6 : vector<1x24xf32> to vector<2x24xf32>
    %8 = arith.subf %2, %7 : vector<2x24xf32>
    %9 = arith.mulf %8, %8 : vector<2x24xf32>
    %cst_5 = arith.constant dense<0.000000e+00> : vector<24xf32>
    %10 = vector.multi_reduction <add>, %9, %cst_5 [0] : vector<2x24xf32> to vector<24xf32>
    %11 = vector.shape_cast %10 : vector<24xf32> to vector<1x24xf32>
    %cst_6 = arith.constant 2.000000e+00 : f32
    %12 = vector.broadcast %cst_6 : f32 to vector<1x24xf32>
    %13 = arith.divf %11, %12 : vector<1x24xf32>
    %14 = vector.broadcast %6 : vector<1x24xf32> to vector<2x24xf32>
    %15 = arith.subf %2, %14 : vector<2x24xf32>
    %cst_7 = arith.constant 9.99999974E-6 : f32
    %16 = vector.broadcast %cst_7 : f32 to vector<1x24xf32>
    %17 = arith.addf %13, %16 : vector<1x24xf32>
    %18 = math.rsqrt %17 : vector<1x24xf32>
    %19 = vector.broadcast %18 : vector<1x24xf32> to vector<2x24xf32>
    %20 = arith.mulf %15, %19 : vector<2x24xf32>
    %c0_8 = arith.constant 0 : index
    %c0_9 = arith.constant 0 : index
    %21 = vector.load %arg2[%c0_8, %c0_9] : memref<1x24xf32, #tpu.memory_space<vmem>>, vector<1x24xf32>
    %22 = vector.broadcast %21 : vector<1x24xf32> to vector<2x24xf32>
    %23 = arith.mulf %20, %22 : vector<2x24xf32>
    %c0_10 = arith.constant 0 : index
    %c0_11 = arith.constant 0 : index
    %24 = vector.load %arg3[%c0_10, %c0_11] : memref<1x24xf32, #tpu.memory_space<vmem>>, vector<1x24xf32>
    %25 = vector.broadcast %24 : vector<1x24xf32> to vector<2x24xf32>
    %26 = arith.addf %23, %25 : vector<2x24xf32>
    %cst_12 = arith.constant 0.000000e+00 : f32
    %27 = vector.broadcast %cst_12 : f32 to vector<2x24xf32>
    %28 = arith.maximumf %26, %27 : vector<2x24xf32>
    %c0_13 = arith.constant 0 : index
    %c0_14 = arith.constant 0 : index
    %29 = vector.load %arg4[%c0_13, %c0_14] : memref<2x24xf32, #tpu.memory_space<vmem>>, vector<2x24xf32>
    tpu.vector_store %arg4[%c0_13, %c0_14], %28 {strides = array<i32>} : memref<2x24xf32, #tpu.memory_space<vmem>>, vector<2x24xf32>,
    return
  }
}

module attributes {stable_mosaic.version = 11 : i64} {
  func.func @_fused_gemm_kernel(%arg0: memref<8x24xf32, #tpu.memory_space<vmem>>, %arg1: memref<24x16xf32, #tpu.memory_space<vmem>>, %arg2: memref<1x24xf32, #tpu.memory_space<vmem>>, %arg3: memref<1x24xf32, #tpu.memory_space<vmem>>, %arg4: memref<1x16xf32, #tpu.memory_space<vmem>>, %arg5: memref<1x16xf32, #tpu.memory_space<vmem>>, %arg6: memref<8x16xf32, #tpu.memory_space<vmem>>) attributes {dimension_semantics = [], scalar_prefetch = 0 : i64, scratch_operands = 0 : i64, tpu.core_type = #tpu.core_type<tc>} {
    %c0 = arith.constant 0 : index
    %c0_0 = arith.constant 0 : index
    %0 = vector.load %arg0[%c0, %c0_0] : memref<8x24xf32, #tpu.memory_space<vmem>>, vector<8x24xf32>
    %cst = arith.constant dense<0.000000e+00> : vector<24xf32>
    %1 = vector.multi_reduction <add>, %0, %cst [0] : vector<8x24xf32> to vector<24xf32>
    %2 = vector.shape_cast %1 : vector<24xf32> to vector<1x24xf32>
    %cst_1 = arith.constant 8.000000e+00 : f32
    %3 = vector.broadcast %cst_1 : f32 to vector<1x24xf32>
    %4 = arith.divf %2, %3 : vector<1x24xf32>
    %5 = vector.broadcast %4 : vector<1x24xf32> to vector<8x24xf32>
    %6 = arith.subf %0, %5 : vector<8x24xf32>
    %7 = arith.mulf %6, %6 : vector<8x24xf32>
    %cst_2 = arith.constant dense<0.000000e+00> : vector<24xf32>
    %8 = vector.multi_reduction <add>, %7, %cst_2 [0] : vector<8x24xf32> to vector<24xf32>
    %9 = vector.shape_cast %8 : vector<24xf32> to vector<1x24xf32>
    %cst_3 = arith.constant 8.000000e+00 : f32
    %10 = vector.broadcast %cst_3 : f32 to vector<1x24xf32>
    %11 = arith.divf %9, %10 : vector<1x24xf32>
    %12 = vector.broadcast %4 : vector<1x24xf32> to vector<8x24xf32>
    %13 = arith.subf %0, %12 : vector<8x24xf32>
    %cst_4 = arith.constant 9.99999974E-6 : f32
    %14 = vector.broadcast %cst_4 : f32 to vector<1x24xf32>
    %15 = arith.addf %11, %14 : vector<1x24xf32>
    %16 = math.rsqrt %15 : vector<1x24xf32>
    %17 = vector.broadcast %16 : vector<1x24xf32> to vector<8x24xf32>
    %18 = arith.mulf %13, %17 : vector<8x24xf32>
    %c0_5 = arith.constant 0 : index
    %c0_6 = arith.constant 0 : index
    %19 = vector.load %arg2[%c0_5, %c0_6] : memref<1x24xf32, #tpu.memory_space<vmem>>, vector<1x24xf32>
    %20 = vector.broadcast %19 : vector<1x24xf32> to vector<8x24xf32>
    %21 = arith.mulf %18, %20 : vector<8x24xf32>
    %c0_7 = arith.constant 0 : index
    %c0_8 = arith.constant 0 : index
    %22 = vector.load %arg3[%c0_7, %c0_8] : memref<1x24xf32, #tpu.memory_space<vmem>>, vector<1x24xf32>
    %23 = vector.broadcast %22 : vector<1x24xf32> to vector<8x24xf32>
    %24 = arith.addf %21, %23 : vector<8x24xf32>
    %cst_9 = arith.constant 0.000000e+00 : f32
    %25 = vector.broadcast %cst_9 : f32 to vector<8x24xf32>
    %26 = arith.maximumf %24, %25 : vector<8x24xf32>
    %c0_10 = arith.constant 0 : index
    %c0_11 = arith.constant 0 : index
    %27 = vector.load %arg1[%c0_10, %c0_11] : memref<24x16xf32, #tpu.memory_space<vmem>>, vector<24x16xf32>
    %cst_12 = arith.constant dense<0.000000e+00> : vector<8x16xf32>
    %28 = tpu.matmul %26, %27, %cst_12 {dimension_numbers = #tpu.dot_dimension_numbers<[1], [0], [0], [1], [0, 0, 1, 1], [], []>} : vector<8x24xf32>, vector<24x16xf32>, vector<8x16xf32> -> vector<8x16xf32>
    %cst_13 = arith.constant dense<0.000000e+00> : vector<16xf32>
    %29 = vector.multi_reduction <add>, %28, %cst_13 [0] : vector<8x16xf32> to vector<16xf32>
    %30 = vector.shape_cast %29 : vector<16xf32> to vector<1x16xf32>
    %cst_14 = arith.constant 8.000000e+00 : f32
    %31 = vector.broadcast %cst_14 : f32 to vector<1x16xf32>
    %32 = arith.divf %30, %31 : vector<1x16xf32>
    %33 = vector.broadcast %32 : vector<1x16xf32> to vector<8x16xf32>
    %34 = arith.subf %28, %33 : vector<8x16xf32>
    %35 = arith.mulf %34, %34 : vector<8x16xf32>
    %cst_15 = arith.constant dense<0.000000e+00> : vector<16xf32>
    %36 = vector.multi_reduction <add>, %35, %cst_15 [0] : vector<8x16xf32> to vector<16xf32>
    %37 = vector.shape_cast %36 : vector<16xf32> to vector<1x16xf32>
    %cst_16 = arith.constant 8.000000e+00 : f32
    %38 = vector.broadcast %cst_16 : f32 to vector<1x16xf32>
    %39 = arith.divf %37, %38 : vector<1x16xf32>
    %40 = vector.broadcast %32 : vector<1x16xf32> to vector<8x16xf32>
    %41 = arith.subf %28, %40 : vector<8x16xf32>
    %cst_17 = arith.constant 9.99999974E-6 : f32
    %42 = vector.broadcast %cst_17 : f32 to vector<1x16xf32>
    %43 = arith.addf %39, %42 : vector<1x16xf32>
    %44 = math.rsqrt %43 : vector<1x16xf32>
    %45 = vector.broadcast %44 : vector<1x16xf32> to vector<8x16xf32>
    %46 = arith.mulf %41, %45 : vector<8x16xf32>
    %c0_18 = arith.constant 0 : index
    %c0_19 = arith.constant 0 : index
    %47 = vector.load %arg4[%c0_18, %c0_19] : memref<1x16xf32, #tpu.memory_space<vmem>>, vector<1x16xf32>
    %48 = vector.broadcast %47 : vector<1x16xf32> to vector<8x16xf32>
    %49 = arith.mulf %46, %48 : vector<8x16xf32>
    %c0_20 = arith.constant 0 : index
    %c0_21 = arith.constant 0 : index
    %50 = vector.load %arg5[%c0_20, %c0_21] : memref<1x16xf32, #tpu.memory_space<vmem>>, vector<1x16xf32>
    %51 = vector.broadcast %50 : vector<1x16xf32> to vector<8x16xf32>
    %52 = arith.addf %49, %51 : vector<8x16xf32>
    %cst_22 = arith.constant 0.000000e+00 : f32
    %53 = vector.broadcast %cst_22 : f32 to vector<8x16xf32>
    %54 = arith.maximumf %52, %53 : vector<8x16xf32>
    %c0_23 = arith.constant 0 : index
    %c0_24 = arith.constant 0 : index
    %55 = vector.load %arg6[%c0_23, %c0_24] : memref<8x16xf32, #tpu.memory_space<vmem>>, vector<8x16xf32>
    tpu.vector_store %arg6[%c0_23, %c0_24], %54 {strides = array<i32>} : memref<8x16xf32, #tpu.memory_space<vmem>>, vector<8x16xf32>,
    return
  }
}

module attributes {stable_mosaic.version = 11 : i64} {
  func.func @_fused_gemm_kernel(%arg0: memref<2x288xf32, #tpu.memory_space<vmem>>, %arg1: memref<288x32xf32, #tpu.memory_space<vmem>>, %arg2: memref<1x32xf32, #tpu.memory_space<vmem>>, %arg3: memref<1x32xf32, #tpu.memory_space<vmem>>, %arg4: memref<2x32xf32, #tpu.memory_space<vmem>>) attributes {dimension_semantics = [], scalar_prefetch = 0 : i64, scratch_operands = 0 : i64, tpu.core_type = #tpu.core_type<tc>} {
    %c0 = arith.constant 0 : index
    %c0_0 = arith.constant 0 : index
    %0 = vector.load %arg0[%c0, %c0_0] : memref<2x288xf32, #tpu.memory_space<vmem>>, vector<2x288xf32>
    %c0_1 = arith.constant 0 : index
    %c0_2 = arith.constant 0 : index
    %1 = vector.load %arg1[%c0_1, %c0_2] : memref<288x32xf32, #tpu.memory_space<vmem>>, vector<288x32xf32>
    %cst = arith.constant dense<0.000000e+00> : vector<2x32xf32>
    %2 = tpu.matmul %0, %1, %cst {dimension_numbers = #tpu.dot_dimension_numbers<[1], [0], [0], [1], [0, 0, 1, 1], [], []>} : vector<2x288xf32>, vector<288x32xf32>, vector<2x32xf32> -> vector<2x32xf32>
    %cst_3 = arith.constant dense<0.000000e+00> : vector<32xf32>
    %3 = vector.multi_reduction <add>, %2, %cst_3 [0] : vector<2x32xf32> to vector<32xf32>
    %4 = vector.shape_cast %3 : vector<32xf32> to vector<1x32xf32>
    %cst_4 = arith.constant 2.000000e+00 : f32
    %5 = vector.broadcast %cst_4 : f32 to vector<1x32xf32>
    %6 = arith.divf %4, %5 : vector<1x32xf32>
    %7 = vector.broadcast %6 : vector<1x32xf32> to vector<2x32xf32>
    %8 = arith.subf %2, %7 : vector<2x32xf32>
    %9 = arith.mulf %8, %8 : vector<2x32xf32>
    %cst_5 = arith.constant dense<0.000000e+00> : vector<32xf32>
    %10 = vector.multi_reduction <add>, %9, %cst_5 [0] : vector<2x32xf32> to vector<32xf32>
    %11 = vector.shape_cast %10 : vector<32xf32> to vector<1x32xf32>
    %cst_6 = arith.constant 2.000000e+00 : f32
    %12 = vector.broadcast %cst_6 : f32 to vector<1x32xf32>
    %13 = arith.divf %11, %12 : vector<1x32xf32>
    %14 = vector.broadcast %6 : vector<1x32xf32> to vector<2x32xf32>
    %15 = arith.subf %2, %14 : vector<2x32xf32>
    %cst_7 = arith.constant 9.99999974E-6 : f32
    %16 = vector.broadcast %cst_7 : f32 to vector<1x32xf32>
    %17 = arith.addf %13, %16 : vector<1x32xf32>
    %18 = math.rsqrt %17 : vector<1x32xf32>
    %19 = vector.broadcast %18 : vector<1x32xf32> to vector<2x32xf32>
    %20 = arith.mulf %15, %19 : vector<2x32xf32>
    %c0_8 = arith.constant 0 : index
    %c0_9 = arith.constant 0 : index
    %21 = vector.load %arg2[%c0_8, %c0_9] : memref<1x32xf32, #tpu.memory_space<vmem>>, vector<1x32xf32>
    %22 = vector.broadcast %21 : vector<1x32xf32> to vector<2x32xf32>
    %23 = arith.mulf %20, %22 : vector<2x32xf32>
    %c0_10 = arith.constant 0 : index
    %c0_11 = arith.constant 0 : index
    %24 = vector.load %arg3[%c0_10, %c0_11] : memref<1x32xf32, #tpu.memory_space<vmem>>, vector<1x32xf32>
    %25 = vector.broadcast %24 : vector<1x32xf32> to vector<2x32xf32>
    %26 = arith.addf %23, %25 : vector<2x32xf32>
    %cst_12 = arith.constant 0.000000e+00 : f32
    %27 = vector.broadcast %cst_12 : f32 to vector<2x32xf32>
    %28 = arith.maximumf %26, %27 : vector<2x32xf32>
    %c0_13 = arith.constant 0 : index
    %c0_14 = arith.constant 0 : index
    %29 = vector.load %arg4[%c0_13, %c0_14] : memref<2x32xf32, #tpu.memory_space<vmem>>, vector<2x32xf32>
    tpu.vector_store %arg4[%c0_13, %c0_14], %28 {strides = array<i32>} : memref<2x32xf32, #tpu.memory_space<vmem>>, vector<2x32xf32>,
    return
  }
}

module attributes {stable_mosaic.version = 11 : i64} {
  func.func @_fused_gemm_kernel(%arg0: memref<8x32xf32, #tpu.memory_space<vmem>>, %arg1: memref<32x16xf32, #tpu.memory_space<vmem>>, %arg2: memref<1x32xf32, #tpu.memory_space<vmem>>, %arg3: memref<1x32xf32, #tpu.memory_space<vmem>>, %arg4: memref<8x16xf32, #tpu.memory_space<vmem>>) attributes {dimension_semantics = [], scalar_prefetch = 0 : i64, scratch_operands = 0 : i64, tpu.core_type = #tpu.core_type<tc>} {
    %c0 = arith.constant 0 : index
    %c0_0 = arith.constant 0 : index
    %0 = vector.load %arg0[%c0, %c0_0] : memref<8x32xf32, #tpu.memory_space<vmem>>, vector<8x32xf32>
    %cst = arith.constant dense<0.000000e+00> : vector<32xf32>
    %1 = vector.multi_reduction <add>, %0, %cst [0] : vector<8x32xf32> to vector<32xf32>
    %2 = vector.shape_cast %1 : vector<32xf32> to vector<1x32xf32>
    %cst_1 = arith.constant 8.000000e+00 : f32
    %3 = vector.broadcast %cst_1 : f32 to vector<1x32xf32>
    %4 = arith.divf %2, %3 : vector<1x32xf32>
    %5 = vector.broadcast %4 : vector<1x32xf32> to vector<8x32xf32>
    %6 = arith.subf %0, %5 : vector<8x32xf32>
    %7 = arith.mulf %6, %6 : vector<8x32xf32>
    %cst_2 = arith.constant dense<0.000000e+00> : vector<32xf32>
    %8 = vector.multi_reduction <add>, %7, %cst_2 [0] : vector<8x32xf32> to vector<32xf32>
    %9 = vector.shape_cast %8 : vector<32xf32> to vector<1x32xf32>
    %cst_3 = arith.constant 8.000000e+00 : f32
    %10 = vector.broadcast %cst_3 : f32 to vector<1x32xf32>
    %11 = arith.divf %9, %10 : vector<1x32xf32>
    %12 = vector.broadcast %4 : vector<1x32xf32> to vector<8x32xf32>
    %13 = arith.subf %0, %12 : vector<8x32xf32>
    %cst_4 = arith.constant 9.99999974E-6 : f32
    %14 = vector.broadcast %cst_4 : f32 to vector<1x32xf32>
    %15 = arith.addf %11, %14 : vector<1x32xf32>
    %16 = math.rsqrt %15 : vector<1x32xf32>
    %17 = vector.broadcast %16 : vector<1x32xf32> to vector<8x32xf32>
    %18 = arith.mulf %13, %17 : vector<8x32xf32>
    %c0_5 = arith.constant 0 : index
    %c0_6 = arith.constant 0 : index
    %19 = vector.load %arg2[%c0_5, %c0_6] : memref<1x32xf32, #tpu.memory_space<vmem>>, vector<1x32xf32>
    %20 = vector.broadcast %19 : vector<1x32xf32> to vector<8x32xf32>
    %21 = arith.mulf %18, %20 : vector<8x32xf32>
    %c0_7 = arith.constant 0 : index
    %c0_8 = arith.constant 0 : index
    %22 = vector.load %arg3[%c0_7, %c0_8] : memref<1x32xf32, #tpu.memory_space<vmem>>, vector<1x32xf32>
    %23 = vector.broadcast %22 : vector<1x32xf32> to vector<8x32xf32>
    %24 = arith.addf %21, %23 : vector<8x32xf32>
    %cst_9 = arith.constant 0.000000e+00 : f32
    %25 = vector.broadcast %cst_9 : f32 to vector<8x32xf32>
    %26 = arith.maximumf %24, %25 : vector<8x32xf32>
    %c0_10 = arith.constant 0 : index
    %c0_11 = arith.constant 0 : index
    %27 = vector.load %arg1[%c0_10, %c0_11] : memref<32x16xf32, #tpu.memory_space<vmem>>, vector<32x16xf32>
    %cst_12 = arith.constant dense<0.000000e+00> : vector<8x16xf32>
    %28 = tpu.matmul %26, %27, %cst_12 {dimension_numbers = #tpu.dot_dimension_numbers<[1], [0], [0], [1], [0, 0, 1, 1], [], []>} : vector<8x32xf32>, vector<32x16xf32>, vector<8x16xf32> -> vector<8x16xf32>
    %c0_13 = arith.constant 0 : index
    %c0_14 = arith.constant 0 : index
    %29 = vector.load %arg4[%c0_13, %c0_14] : memref<8x16xf32, #tpu.memory_space<vmem>>, vector<8x16xf32>
    tpu.vector_store %arg4[%c0_13, %c0_14], %28 {strides = array<i32>} : memref<8x16xf32, #tpu.memory_space<vmem>>, vector<8x16xf32>,
    return
  }
}

module attributes {stable_mosaic.version = 11 : i64} {
  func.func @_fused_gemm_kernel(%arg0: memref<2x16xf32, #tpu.memory_space<vmem>>, %arg1: memref<16x16xf32, #tpu.memory_space<vmem>>, %arg2: memref<1x16xf32, #tpu.memory_space<vmem>>, %arg3: memref<1x16xf32, #tpu.memory_space<vmem>>, %arg4: memref<1x16xf32, #tpu.memory_space<vmem>>, %arg5: memref<1x16xf32, #tpu.memory_space<vmem>>, %arg6: memref<2x16xf32, #tpu.memory_space<vmem>>) attributes {dimension_semantics = [], scalar_prefetch = 0 : i64, scratch_operands = 0 : i64, tpu.core_type = #tpu.core_type<tc>} {
    %c0 = arith.constant 0 : index
    %c0_0 = arith.constant 0 : index
    %0 = vector.load %arg0[%c0, %c0_0] : memref<2x16xf32, #tpu.memory_space<vmem>>, vector<2x16xf32>
    %cst = arith.constant dense<0.000000e+00> : vector<16xf32>
    %1 = vector.multi_reduction <add>, %0, %cst [0] : vector<2x16xf32> to vector<16xf32>
    %2 = vector.shape_cast %1 : vector<16xf32> to vector<1x16xf32>
    %cst_1 = arith.constant 2.000000e+00 : f32
    %3 = vector.broadcast %cst_1 : f32 to vector<1x16xf32>
    %4 = arith.divf %2, %3 : vector<1x16xf32>
    %5 = vector.broadcast %4 : vector<1x16xf32> to vector<2x16xf32>
    %6 = arith.subf %0, %5 : vector<2x16xf32>
    %7 = arith.mulf %6, %6 : vector<2x16xf32>
    %cst_2 = arith.constant dense<0.000000e+00> : vector<16xf32>
    %8 = vector.multi_reduction <add>, %7, %cst_2 [0] : vector<2x16xf32> to vector<16xf32>
    %9 = vector.shape_cast %8 : vector<16xf32> to vector<1x16xf32>
    %cst_3 = arith.constant 2.000000e+00 : f32
    %10 = vector.broadcast %cst_3 : f32 to vector<1x16xf32>
    %11 = arith.divf %9, %10 : vector<1x16xf32>
    %12 = vector.broadcast %4 : vector<1x16xf32> to vector<2x16xf32>
    %13 = arith.subf %0, %12 : vector<2x16xf32>
    %cst_4 = arith.constant 9.99999974E-6 : f32
    %14 = vector.broadcast %cst_4 : f32 to vector<1x16xf32>
    %15 = arith.addf %11, %14 : vector<1x16xf32>
    %16 = math.rsqrt %15 : vector<1x16xf32>
    %17 = vector.broadcast %16 : vector<1x16xf32> to vector<2x16xf32>
    %18 = arith.mulf %13, %17 : vector<2x16xf32>
    %c0_5 = arith.constant 0 : index
    %c0_6 = arith.constant 0 : index
    %19 = vector.load %arg2[%c0_5, %c0_6] : memref<1x16xf32, #tpu.memory_space<vmem>>, vector<1x16xf32>
    %20 = vector.broadcast %19 : vector<1x16xf32> to vector<2x16xf32>
    %21 = arith.mulf %18, %20 : vector<2x16xf32>
    %c0_7 = arith.constant 0 : index
    %c0_8 = arith.constant 0 : index
    %22 = vector.load %arg3[%c0_7, %c0_8] : memref<1x16xf32, #tpu.memory_space<vmem>>, vector<1x16xf32>
    %23 = vector.broadcast %22 : vector<1x16xf32> to vector<2x16xf32>
    %24 = arith.addf %21, %23 : vector<2x16xf32>
    %cst_9 = arith.constant 0.000000e+00 : f32
    %25 = vector.broadcast %cst_9 : f32 to vector<2x16xf32>
    %26 = arith.maximumf %24, %25 : vector<2x16xf32>
    %c0_10 = arith.constant 0 : index
    %c0_11 = arith.constant 0 : index
    %27 = vector.load %arg1[%c0_10, %c0_11] : memref<16x16xf32, #tpu.memory_space<vmem>>, vector<16x16xf32>
    %cst_12 = arith.constant dense<0.000000e+00> : vector<2x16xf32>
    %28 = tpu.matmul %26, %27, %cst_12 {dimension_numbers = #tpu.dot_dimension_numbers<[1], [0], [0], [1], [0, 0, 1, 1], [], []>} : vector<2x16xf32>, vector<16x16xf32>, vector<2x16xf32> -> vector<2x16xf32>
    %cst_13 = arith.constant dense<0.000000e+00> : vector<16xf32>
    %29 = vector.multi_reduction <add>, %28, %cst_13 [0] : vector<2x16xf32> to vector<16xf32>
    %30 = vector.shape_cast %29 : vector<16xf32> to vector<1x16xf32>
    %cst_14 = arith.constant 2.000000e+00 : f32
    %31 = vector.broadcast %cst_14 : f32 to vector<1x16xf32>
    %32 = arith.divf %30, %31 : vector<1x16xf32>
    %33 = vector.broadcast %32 : vector<1x16xf32> to vector<2x16xf32>
    %34 = arith.subf %28, %33 : vector<2x16xf32>
    %35 = arith.mulf %34, %34 : vector<2x16xf32>
    %cst_15 = arith.constant dense<0.000000e+00> : vector<16xf32>
    %36 = vector.multi_reduction <add>, %35, %cst_15 [0] : vector<2x16xf32> to vector<16xf32>
    %37 = vector.shape_cast %36 : vector<16xf32> to vector<1x16xf32>
    %cst_16 = arith.constant 2.000000e+00 : f32
    %38 = vector.broadcast %cst_16 : f32 to vector<1x16xf32>
    %39 = arith.divf %37, %38 : vector<1x16xf32>
    %40 = vector.broadcast %32 : vector<1x16xf32> to vector<2x16xf32>
    %41 = arith.subf %28, %40 : vector<2x16xf32>
    %cst_17 = arith.constant 9.99999974E-6 : f32
    %42 = vector.broadcast %cst_17 : f32 to vector<1x16xf32>
    %43 = arith.addf %39, %42 : vector<1x16xf32>
    %44 = math.rsqrt %43 : vector<1x16xf32>
    %45 = vector.broadcast %44 : vector<1x16xf32> to vector<2x16xf32>
    %46 = arith.mulf %41, %45 : vector<2x16xf32>
    %c0_18 = arith.constant 0 : index
    %c0_19 = arith.constant 0 : index
    %47 = vector.load %arg4[%c0_18, %c0_19] : memref<1x16xf32, #tpu.memory_space<vmem>>, vector<1x16xf32>
    %48 = vector.broadcast %47 : vector<1x16xf32> to vector<2x16xf32>
    %49 = arith.mulf %46, %48 : vector<2x16xf32>
    %c0_20 = arith.constant 0 : index
    %c0_21 = arith.constant 0 : index
    %50 = vector.load %arg5[%c0_20, %c0_21] : memref<1x16xf32, #tpu.memory_space<vmem>>, vector<1x16xf32>
    %51 = vector.broadcast %50 : vector<1x16xf32> to vector<2x16xf32>
    %52 = arith.addf %49, %51 : vector<2x16xf32>
    %cst_22 = arith.constant 0.000000e+00 : f32
    %53 = vector.broadcast %cst_22 : f32 to vector<2x16xf32>
    %54 = arith.maximumf %52, %53 : vector<2x16xf32>
    %c0_23 = arith.constant 0 : index
    %c0_24 = arith.constant 0 : index
    %55 = vector.load %arg6[%c0_23, %c0_24] : memref<2x16xf32, #tpu.memory_space<vmem>>, vector<2x16xf32>
    tpu.vector_store %arg6[%c0_23, %c0_24], %54 {strides = array<i32>} : memref<2x16xf32, #tpu.memory_space<vmem>>, vector<2x16xf32>,
    return
  }
}

module attributes {stable_mosaic.version = 11 : i64} {
  func.func @_fused_gemm_kernel(%arg0: memref<2x144xf32, #tpu.memory_space<vmem>>, %arg1: memref<144x8xf32, #tpu.memory_space<vmem>>, %arg2: memref<2x8xf32, #tpu.memory_space<vmem>>) attributes {dimension_semantics = [], scalar_prefetch = 0 : i64, scratch_operands = 0 : i64, tpu.core_type = #tpu.core_type<tc>} {
    %c0 = arith.constant 0 : index
    %c0_0 = arith.constant 0 : index
    %0 = vector.load %arg0[%c0, %c0_0] : memref<2x144xf32, #tpu.memory_space<vmem>>, vector<2x144xf32>
    %c0_1 = arith.constant 0 : index
    %c0_2 = arith.constant 0 : index
    %1 = vector.load %arg1[%c0_1, %c0_2] : memref<144x8xf32, #tpu.memory_space<vmem>>, vector<144x8xf32>
    %cst = arith.constant dense<0.000000e+00> : vector<2x8xf32>
    %2 = tpu.matmul %0, %1, %cst {dimension_numbers = #tpu.dot_dimension_numbers<[1], [0], [0], [1], [0, 0, 1, 1], [], []>} : vector<2x144xf32>, vector<144x8xf32>, vector<2x8xf32> -> vector<2x8xf32>
    %c0_3 = arith.constant 0 : index
    %c0_4 = arith.constant 0 : index
    %3 = vector.load %arg2[%c0_3, %c0_4] : memref<2x8xf32, #tpu.memory_space<vmem>>, vector<2x8xf32>
    tpu.vector_store %arg2[%c0_3, %c0_4], %2 {strides = array<i32>} : memref<2x8xf32, #tpu.memory_space<vmem>>, vector<2x8xf32>,
    return
  }
}

module attributes {stable_mosaic.version = 11 : i64} {
  func.func @_fused_gemm_kernel(%arg0: memref<2x216xf32, #tpu.memory_space<vmem>>, %arg1: memref<216x24xf32, #tpu.memory_space<vmem>>, %arg2: memref<1x24xf32, #tpu.memory_space<vmem>>, %arg3: memref<1x24xf32, #tpu.memory_space<vmem>>, %arg4: memref<2x24xf32, #tpu.memory_space<vmem>>) attributes {dimension_semantics = [], scalar_prefetch = 0 : i64, scratch_operands = 0 : i64, tpu.core_type = #tpu.core_type<tc>} {
    %c0 = arith.constant 0 : index
    %c0_0 = arith.constant 0 : index
    %0 = vector.load %arg0[%c0, %c0_0] : memref<2x216xf32, #tpu.memory_space<vmem>>, vector<2x216xf32>
    %c0_1 = arith.constant 0 : index
    %c0_2 = arith.constant 0 : index
    %1 = vector.load %arg1[%c0_1, %c0_2] : memref<216x24xf32, #tpu.memory_space<vmem>>, vector<216x24xf32>
    %cst = arith.constant dense<0.000000e+00> : vector<2x24xf32>
    %2 = tpu.matmul %0, %1, %cst {dimension_numbers = #tpu.dot_dimension_numbers<[1], [0], [0], [1], [0, 0, 1, 1], [], []>} : vector<2x216xf32>, vector<216x24xf32>, vector<2x24xf32> -> vector<2x24xf32>
    %cst_3 = arith.constant dense<0.000000e+00> : vector<24xf32>
    %3 = vector.multi_reduction <add>, %2, %cst_3 [0] : vector<2x24xf32> to vector<24xf32>
    %4 = vector.shape_cast %3 : vector<24xf32> to vector<1x24xf32>
    %cst_4 = arith.constant 2.000000e+00 : f32
    %5 = vector.broadcast %cst_4 : f32 to vector<1x24xf32>
    %6 = arith.divf %4, %5 : vector<1x24xf32>
    %7 = vector.broadcast %6 : vector<1x24xf32> to vector<2x24xf32>
    %8 = arith.subf %2, %7 : vector<2x24xf32>
    %9 = arith.mulf %8, %8 : vector<2x24xf32>
    %cst_5 = arith.constant dense<0.000000e+00> : vector<24xf32>
    %10 = vector.multi_reduction <add>, %9, %cst_5 [0] : vector<2x24xf32> to vector<24xf32>
    %11 = vector.shape_cast %10 : vector<24xf32> to vector<1x24xf32>
    %cst_6 = arith.constant 2.000000e+00 : f32
    %12 = vector.broadcast %cst_6 : f32 to vector<1x24xf32>
    %13 = arith.divf %11, %12 : vector<1x24xf32>
    %14 = vector.broadcast %6 : vector<1x24xf32> to vector<2x24xf32>
    %15 = arith.subf %2, %14 : vector<2x24xf32>
    %cst_7 = arith.constant 9.99999974E-6 : f32
    %16 = vector.broadcast %cst_7 : f32 to vector<1x24xf32>
    %17 = arith.addf %13, %16 : vector<1x24xf32>
    %18 = math.rsqrt %17 : vector<1x24xf32>
    %19 = vector.broadcast %18 : vector<1x24xf32> to vector<2x24xf32>
    %20 = arith.mulf %15, %19 : vector<2x24xf32>
    %c0_8 = arith.constant 0 : index
    %c0_9 = arith.constant 0 : index
    %21 = vector.load %arg2[%c0_8, %c0_9] : memref<1x24xf32, #tpu.memory_space<vmem>>, vector<1x24xf32>
    %22 = vector.broadcast %21 : vector<1x24xf32> to vector<2x24xf32>
    %23 = arith.mulf %20, %22 : vector<2x24xf32>
    %c0_10 = arith.constant 0 : index
    %c0_11 = arith.constant 0 : index
    %24 = vector.load %arg3[%c0_10, %c0_11] : memref<1x24xf32, #tpu.memory_space<vmem>>, vector<1x24xf32>
    %25 = vector.broadcast %24 : vector<1x24xf32> to vector<2x24xf32>
    %26 = arith.addf %23, %25 : vector<2x24xf32>
    %cst_12 = arith.constant 0.000000e+00 : f32
    %27 = vector.broadcast %cst_12 : f32 to vector<2x24xf32>
    %28 = arith.maximumf %26, %27 : vector<2x24xf32>
    %c0_13 = arith.constant 0 : index
    %c0_14 = arith.constant 0 : index
    %29 = vector.load %arg4[%c0_13, %c0_14] : memref<2x24xf32, #tpu.memory_space<vmem>>, vector<2x24xf32>
    tpu.vector_store %arg4[%c0_13, %c0_14], %28 {strides = array<i32>} : memref<2x24xf32, #tpu.memory_space<vmem>>, vector<2x24xf32>,
    return
  }
}

module attributes {stable_mosaic.version = 11 : i64} {
  func.func @_fused_gemm_kernel(%arg0: memref<2x24xf32, #tpu.memory_space<vmem>>, %arg1: memref<24x16xf32, #tpu.memory_space<vmem>>, %arg2: memref<1x24xf32, #tpu.memory_space<vmem>>, %arg3: memref<1x24xf32, #tpu.memory_space<vmem>>, %arg4: memref<1x16xf32, #tpu.memory_space<vmem>>, %arg5: memref<1x16xf32, #tpu.memory_space<vmem>>, %arg6: memref<2x16xf32, #tpu.memory_space<vmem>>) attributes {dimension_semantics = [], scalar_prefetch = 0 : i64, scratch_operands = 0 : i64, tpu.core_type = #tpu.core_type<tc>} {
    %c0 = arith.constant 0 : index
    %c0_0 = arith.constant 0 : index
    %0 = vector.load %arg0[%c0, %c0_0] : memref<2x24xf32, #tpu.memory_space<vmem>>, vector<2x24xf32>
    %cst = arith.constant dense<0.000000e+00> : vector<24xf32>
    %1 = vector.multi_reduction <add>, %0, %cst [0] : vector<2x24xf32> to vector<24xf32>
    %2 = vector.shape_cast %1 : vector<24xf32> to vector<1x24xf32>
    %cst_1 = arith.constant 2.000000e+00 : f32
    %3 = vector.broadcast %cst_1 : f32 to vector<1x24xf32>
    %4 = arith.divf %2, %3 : vector<1x24xf32>
    %5 = vector.broadcast %4 : vector<1x24xf32> to vector<2x24xf32>
    %6 = arith.subf %0, %5 : vector<2x24xf32>
    %7 = arith.mulf %6, %6 : vector<2x24xf32>
    %cst_2 = arith.constant dense<0.000000e+00> : vector<24xf32>
    %8 = vector.multi_reduction <add>, %7, %cst_2 [0] : vector<2x24xf32> to vector<24xf32>
    %9 = vector.shape_cast %8 : vector<24xf32> to vector<1x24xf32>
    %cst_3 = arith.constant 2.000000e+00 : f32
    %10 = vector.broadcast %cst_3 : f32 to vector<1x24xf32>
    %11 = arith.divf %9, %10 : vector<1x24xf32>
    %12 = vector.broadcast %4 : vector<1x24xf32> to vector<2x24xf32>
    %13 = arith.subf %0, %12 : vector<2x24xf32>
    %cst_4 = arith.constant 9.99999974E-6 : f32
    %14 = vector.broadcast %cst_4 : f32 to vector<1x24xf32>
    %15 = arith.addf %11, %14 : vector<1x24xf32>
    %16 = math.rsqrt %15 : vector<1x24xf32>
    %17 = vector.broadcast %16 : vector<1x24xf32> to vector<2x24xf32>
    %18 = arith.mulf %13, %17 : vector<2x24xf32>
    %c0_5 = arith.constant 0 : index
    %c0_6 = arith.constant 0 : index
    %19 = vector.load %arg2[%c0_5, %c0_6] : memref<1x24xf32, #tpu.memory_space<vmem>>, vector<1x24xf32>
    %20 = vector.broadcast %19 : vector<1x24xf32> to vector<2x24xf32>
    %21 = arith.mulf %18, %20 : vector<2x24xf32>
    %c0_7 = arith.constant 0 : index
    %c0_8 = arith.constant 0 : index
    %22 = vector.load %arg3[%c0_7, %c0_8] : memref<1x24xf32, #tpu.memory_space<vmem>>, vector<1x24xf32>
    %23 = vector.broadcast %22 : vector<1x24xf32> to vector<2x24xf32>
    %24 = arith.addf %21, %23 : vector<2x24xf32>
    %cst_9 = arith.constant 0.000000e+00 : f32
    %25 = vector.broadcast %cst_9 : f32 to vector<2x24xf32>
    %26 = arith.maximumf %24, %25 : vector<2x24xf32>
    %c0_10 = arith.constant 0 : index
    %c0_11 = arith.constant 0 : index
    %27 = vector.load %arg1[%c0_10, %c0_11] : memref<24x16xf32, #tpu.memory_space<vmem>>, vector<24x16xf32>
    %cst_12 = arith.constant dense<0.000000e+00> : vector<2x16xf32>
    %28 = tpu.matmul %26, %27, %cst_12 {dimension_numbers = #tpu.dot_dimension_numbers<[1], [0], [0], [1], [0, 0, 1, 1], [], []>} : vector<2x24xf32>, vector<24x16xf32>, vector<2x16xf32> -> vector<2x16xf32>
    %cst_13 = arith.constant dense<0.000000e+00> : vector<16xf32>
    %29 = vector.multi_reduction <add>, %28, %cst_13 [0] : vector<2x16xf32> to vector<16xf32>
    %30 = vector.shape_cast %29 : vector<16xf32> to vector<1x16xf32>
    %cst_14 = arith.constant 2.000000e+00 : f32
    %31 = vector.broadcast %cst_14 : f32 to vector<1x16xf32>
    %32 = arith.divf %30, %31 : vector<1x16xf32>
    %33 = vector.broadcast %32 : vector<1x16xf32> to vector<2x16xf32>
    %34 = arith.subf %28, %33 : vector<2x16xf32>
    %35 = arith.mulf %34, %34 : vector<2x16xf32>
    %cst_15 = arith.constant dense<0.000000e+00> : vector<16xf32>
    %36 = vector.multi_reduction <add>, %35, %cst_15 [0] : vector<2x16xf32> to vector<16xf32>
    %37 = vector.shape_cast %36 : vector<16xf32> to vector<1x16xf32>
    %cst_16 = arith.constant 2.000000e+00 : f32
    %38 = vector.broadcast %cst_16 : f32 to vector<1x16xf32>
    %39 = arith.divf %37, %38 : vector<1x16xf32>
    %40 = vector.broadcast %32 : vector<1x16xf32> to vector<2x16xf32>
    %41 = arith.subf %28, %40 : vector<2x16xf32>
    %cst_17 = arith.constant 9.99999974E-6 : f32
    %42 = vector.broadcast %cst_17 : f32 to vector<1x16xf32>
    %43 = arith.addf %39, %42 : vector<1x16xf32>
    %44 = math.rsqrt %43 : vector<1x16xf32>
    %45 = vector.broadcast %44 : vector<1x16xf32> to vector<2x16xf32>
    %46 = arith.mulf %41, %45 : vector<2x16xf32>
    %c0_18 = arith.constant 0 : index
    %c0_19 = arith.constant 0 : index
    %47 = vector.load %arg4[%c0_18, %c0_19] : memref<1x16xf32, #tpu.memory_space<vmem>>, vector<1x16xf32>
    %48 = vector.broadcast %47 : vector<1x16xf32> to vector<2x16xf32>
    %49 = arith.mulf %46, %48 : vector<2x16xf32>
    %c0_20 = arith.constant 0 : index
    %c0_21 = arith.constant 0 : index
    %50 = vector.load %arg5[%c0_20, %c0_21] : memref<1x16xf32, #tpu.memory_space<vmem>>, vector<1x16xf32>
    %51 = vector.broadcast %50 : vector<1x16xf32> to vector<2x16xf32>
    %52 = arith.addf %49, %51 : vector<2x16xf32>
    %cst_22 = arith.constant 0.000000e+00 : f32
    %53 = vector.broadcast %cst_22 : f32 to vector<2x16xf32>
    %54 = arith.maximumf %52, %53 : vector<2x16xf32>
    %c0_23 = arith.constant 0 : index
    %c0_24 = arith.constant 0 : index
    %55 = vector.load %arg6[%c0_23, %c0_24] : memref<2x16xf32, #tpu.memory_space<vmem>>, vector<2x16xf32>
    tpu.vector_store %arg6[%c0_23, %c0_24], %54 {strides = array<i32>} : memref<2x16xf32, #tpu.memory_space<vmem>>, vector<2x16xf32>,
    return
  }
}

module attributes {stable_mosaic.version = 11 : i64} {
  func.func @_bn_relu_kernel(%arg0: memref<2x32xf32, #tpu.memory_space<vmem>>, %arg1: memref<1x32xf32, #tpu.memory_space<vmem>>, %arg2: memref<1x32xf32, #tpu.memory_space<vmem>>, %arg3: memref<2x32xf32, #tpu.memory_space<vmem>>) attributes {dimension_semantics = [], scalar_prefetch = 0 : i64, scratch_operands = 0 : i64, tpu.core_type = #tpu.core_type<tc>} {
    %c0 = arith.constant 0 : index
    %c0_0 = arith.constant 0 : index
    %0 = vector.load %arg0[%c0, %c0_0] : memref<2x32xf32, #tpu.memory_space<vmem>>, vector<2x32xf32>
    %cst = arith.constant dense<0.000000e+00> : vector<32xf32>
    %1 = vector.multi_reduction <add>, %0, %cst [0] : vector<2x32xf32> to vector<32xf32>
    %2 = vector.shape_cast %1 : vector<32xf32> to vector<1x32xf32>
    %cst_1 = arith.constant 2.000000e+00 : f32
    %3 = vector.broadcast %cst_1 : f32 to vector<1x32xf32>
    %4 = arith.divf %2, %3 : vector<1x32xf32>
    %5 = vector.broadcast %4 : vector<1x32xf32> to vector<2x32xf32>
    %6 = arith.subf %0, %5 : vector<2x32xf32>
    %7 = arith.mulf %6, %6 : vector<2x32xf32>
    %cst_2 = arith.constant dense<0.000000e+00> : vector<32xf32>
    %8 = vector.multi_reduction <add>, %7, %cst_2 [0] : vector<2x32xf32> to vector<32xf32>
    %9 = vector.shape_cast %8 : vector<32xf32> to vector<1x32xf32>
    %cst_3 = arith.constant 2.000000e+00 : f32
    %10 = vector.broadcast %cst_3 : f32 to vector<1x32xf32>
    %11 = arith.divf %9, %10 : vector<1x32xf32>
    %12 = vector.broadcast %4 : vector<1x32xf32> to vector<2x32xf32>
    %13 = arith.subf %0, %12 : vector<2x32xf32>
    %cst_4 = arith.constant 9.99999974E-6 : f32
    %14 = vector.broadcast %cst_4 : f32 to vector<1x32xf32>
    %15 = arith.addf %11, %14 : vector<1x32xf32>
    %16 = math.rsqrt %15 : vector<1x32xf32>
    %17 = vector.broadcast %16 : vector<1x32xf32> to vector<2x32xf32>
    %18 = arith.mulf %13, %17 : vector<2x32xf32>
    %c0_5 = arith.constant 0 : index
    %c0_6 = arith.constant 0 : index
    %19 = vector.load %arg1[%c0_5, %c0_6] : memref<1x32xf32, #tpu.memory_space<vmem>>, vector<1x32xf32>
    %20 = vector.broadcast %19 : vector<1x32xf32> to vector<2x32xf32>
    %21 = arith.mulf %18, %20 : vector<2x32xf32>
    %c0_7 = arith.constant 0 : index
    %c0_8 = arith.constant 0 : index
    %22 = vector.load %arg2[%c0_7, %c0_8] : memref<1x32xf32, #tpu.memory_space<vmem>>, vector<1x32xf32>
    %23 = vector.broadcast %22 : vector<1x32xf32> to vector<2x32xf32>
    %24 = arith.addf %21, %23 : vector<2x32xf32>
    %cst_9 = arith.constant 0.000000e+00 : f32
    %25 = vector.broadcast %cst_9 : f32 to vector<2x32xf32>
    %26 = arith.maximumf %24, %25 : vector<2x32xf32>
    %c0_10 = arith.constant 0 : index
    %c0_11 = arith.constant 0 : index
    %27 = vector.load %arg3[%c0_10, %c0_11] : memref<2x32xf32, #tpu.memory_space<vmem>>, vector<2x32xf32>
    tpu.vector_store %arg3[%c0_10, %c0_11], %26 {strides = array<i32>} : memref<2x32xf32, #tpu.memory_space<vmem>>, vector<2x32xf32>,
    return
  }
}

module attributes {stable_mosaic.version = 11 : i64} {
  func.func @_fused_gemm_kernel(%arg0: memref<2x32xf32, #tpu.memory_space<vmem>>, %arg1: memref<32x10xf32, #tpu.memory_space<vmem>>, %arg2: memref<1x10xf32, #tpu.memory_space<vmem>>, %arg3: memref<2x10xf32, #tpu.memory_space<vmem>>) attributes {dimension_semantics = [], scalar_prefetch = 0 : i64, scratch_operands = 0 : i64, tpu.core_type = #tpu.core_type<tc>} {
    %c0 = arith.constant 0 : index
    %c0_0 = arith.constant 0 : index
    %0 = vector.load %arg0[%c0, %c0_0] : memref<2x32xf32, #tpu.memory_space<vmem>>, vector<2x32xf32>
    %c0_1 = arith.constant 0 : index
    %c0_2 = arith.constant 0 : index
    %1 = vector.load %arg1[%c0_1, %c0_2] : memref<32x10xf32, #tpu.memory_space<vmem>>, vector<32x10xf32>
    %cst = arith.constant dense<0.000000e+00> : vector<2x10xf32>
    %2 = tpu.matmul %0, %1, %cst {dimension_numbers = #tpu.dot_dimension_numbers<[1], [0], [0], [1], [0, 0, 1, 1], [], []>} : vector<2x32xf32>, vector<32x10xf32>, vector<2x10xf32> -> vector<2x10xf32>
    %c0_3 = arith.constant 0 : index
    %c0_4 = arith.constant 0 : index
    %3 = vector.load %arg2[%c0_3, %c0_4] : memref<1x10xf32, #tpu.memory_space<vmem>>, vector<1x10xf32>
    %4 = vector.broadcast %3 : vector<1x10xf32> to vector<2x10xf32>
    %5 = arith.addf %2, %4 : vector<2x10xf32>
    %c0_5 = arith.constant 0 : index
    %c0_6 = arith.constant 0 : index
    %6 = vector.load %arg3[%c0_5, %c0_6] : memref<2x10xf32, #tpu.memory_space<vmem>>, vector<2x10xf32>
    tpu.vector_store %arg3[%c0_5, %c0_6], %5 {strides = array<i32>} : memref<2x10xf32, #tpu.memory_space<vmem>>, vector<2x10xf32>,
    return
  }
}

</mosaic_0001>

<bundles_post_ra>
// kernel: densenet_forward.37
= control target key start
LH: loop header
LB: loop body
LE: loop exit
PB: predicated region body
PF: predicated region fallthrough
CT: control target
= control target key end

     0   :  { %vm39_vm0 = vcmask 130048   ;;  %s1128_s1 = inlined_call_operand.vmem [shape: f32[16,16], index: 1, kind: input, shape index: {}]   ;;  %s1129_s0 = inlined_call_operand.vmem [shape: f32[128,16], index: 0, kind: input, shape index: {}]   ;;  %s1130_s2 = inlined_call_operand.vmem [shape: f32[1,16], index: 2, kind: input, shape index: {}]   ;;  %s1131_s3 = inlined_call_operand.vmem [shape: f32[1,16], index: 3, kind: input, shape index: {}]   ;;  %s1132_s4 = inlined_call_operand.vmem [shape: f32[1,16], index: 4, kind: input, shape index: {}]   ;;  %s1133_s5 = inlined_call_operand.vmem [shape: f32[1,16], index: 5, kind: input, shape index: {}]   ;;  %s1134_s6 = inlined_call_operand.vmem [shape: f32[128,16], index: 6, kind: output, shape index: {}]  }
   0x1   :  { %v230_v0 = vld [vmem:[%s1128_s1 + $0x8] sm:$0xff]  ;;  %v229_v1 = vld [vmem:[%s1128_s1] sm:$0xff]  ;;  %v25_v4 = vld [vmem:[%s1129_s0 + $0x10] sm:$0xff] }
   0x2   :  { %v23_v2 = vld [vmem:[%s1129_s0] sm:$0xff]  ;;  %670 = vmatprep.subr.mxu0 %v230_v0  ;;  %v24_v3 = vld [vmem:[%s1129_s0 + $0x8] sm:$0xff]  ;;  %v26_v5 = vld [vmem:[%s1129_s0 + $0x18] sm:$0xff]  ;;  %698 = vmatprep.subr.mxu1 %v230_v0  ;;  %v43_v8 = vsel %vm39_vm0, %v25_v4, 0.0 }
   0x3   :  { %v40_v6 = vsel %vm39_vm0, %v23_v2, 0.0  ;;  %671 = vmatpush3.msra.mxu0 %v230_v0  ;;  %v41_v7 = vsel %vm39_vm0, %v24_v3, 0.0  ;;  %700 = vmatpush3.msra.mxu1 %v230_v0  ;;  %v27_v9 = vld [vmem:[%s1129_s0 + $0x20] sm:$0xff]  ;;  %v45_v11 = vsel %vm39_vm0, %v26_v5, 0.0  ;;  %v28_v12 = vld [vmem:[%s1129_s0 + $0x28] sm:$0xff]  ;;  %v29_v15 = vld [vmem:[%s1129_s0 + $0x30] sm:$0xff] }
   0x4   :  { %672 = vmatprep.subr.mxu0 %v229_v1  ;;  %v42_v10 = vadd.f32 %v41_v7, %v40_v6  ;;  %699 = vmatprep.subr.mxu1 %v229_v1  ;;  %v47_v14 = vsel %vm39_vm0, %v27_v9, 0.0  ;;  %v49_v17 = vsel %vm39_vm0, %v28_v12, 0.0  ;;  %v30_v18 = vld [vmem:[%s1129_s0 + $0x38] sm:$0xff]  ;;  %v51_v20 = vsel %vm39_vm0, %v29_v15, 0.0  ;;  %v31_v21 = vld [vmem:[%s1129_s0 + $0x40] sm:$0xff]  ;;  %v32_v24 = vld [vmem:[%s1129_s0 + $0x48] sm:$0xff] }
   0x5   :  { %673 = vmatpush3.msra.mxu0 %v229_v1  ;;  %701 = vmatpush3.msra.mxu1 %v229_v1  ;;  %v53_v23 = vsel %vm39_vm0, %v30_v18, 0.0  ;;  %v55_v26 = vsel %vm39_vm0, %v31_v21, 0.0  ;;  %v33_v27 = vld [vmem:[%s1129_s0 + $0x50] sm:$0xff]  ;;  %v57_v29 = vsel %vm39_vm0, %v32_v24, 0.0  ;;  %v34_v30 = vld [vmem:[%s1129_s0 + $0x58] sm:$0xff]  ;;  %v35_v33 = vld [vmem:[%s1129_s0 + $0x60] sm:$0xff] }
   0x6   :  { %v44_v13 = vadd.f32 %v43_v8, %v42_v10  ;;  %v59_v32 = vsel %vm39_vm0, %v33_v27, 0.0  ;;  %v61_v35 = vsel %vm39_vm0, %v34_v30, 0.0  ;;  %v36_v36 = vld [vmem:[%s1129_s0 + $0x68] sm:$0xff]  ;;  %v63_v38 = vsel %vm39_vm0, %v35_v33, 0.0  ;;  %v37_v39 = vld [vmem:[%s1129_s0 + $0x70] sm:$0xff]  ;;  %v38_v42 = vld [vmem:[%s1129_s0 + $0x78] sm:$0xff] }
   0x7   :  { %v65_v41 = vsel %vm39_vm0, %v36_v36, 0.0  ;;  %v67_v44 = vsel %vm39_vm0, %v37_v39, 0.0  ;;  %v69_v46 = vsel %vm39_vm0, %v38_v42, 0.0 }
   0x8   :  { %v46_v16 = vadd.f32 %v45_v11, %v44_v13 }
   0xa   :  { %v48_v19 = vadd.f32 %v47_v14, %v46_v16 }
   0xc   :  { %v50_v22 = vadd.f32 %v49_v17, %v48_v19 }
   0xe   :  { %v52_v25 = vadd.f32 %v51_v20, %v50_v22 }
  0x10   :  { %v54_v28 = vadd.f32 %v53_v23, %v52_v25 }
  0x12   :  { %v56_v31 = vadd.f32 %v55_v26, %v54_v28 }
  0x14   :  { %v58_v34 = vadd.f32 %v57_v29, %v56_v31 }
  0x16   :  { %v60_v37 = vadd.f32 %v59_v32, %v58_v34 }
  0x18   :  { %v62_v40 = vadd.f32 %v61_v35, %v60_v37 }
  0x1a   :  { %v64_v43 = vadd.f32 %v63_v38, %v62_v40 }
  0x1c   :  { %v66_v45 = vadd.f32 %v65_v41, %v64_v43 }
  0x1e   :  { %v68_v47 = vadd.f32 %v67_v44, %v66_v45 }
  0x20   :  { %v70_v48 = vadd.f32 %v69_v46, %v68_v47 }
  0x22   :  { %v71_v49 = vrot.slane %v70_v48, 4 }
  0x24   :  { %v72_v50 = vadd.f32 %v71_v49, %v70_v48 }
  0x26   :  { %v73_v51 = vrot.slane %v72_v50, 2 }
  0x28   :  { %v74_v52 = vadd.f32 %v73_v51, %v72_v50 }
  0x2a   :  { %v75_v53 = vrot.slane %v74_v52, 1 }
  0x2c   :  { %v76_v54 = vadd.f32 %v75_v53, %v74_v52 }
  0x2e   :  { %v78_v55 = vmul.f32 0.0078125, %v76_v54 }
  0x30   :  { %v811_v56 = vsub.f32 %v23_v2, %v78_v55  ;;  %v813_v57 = vsub.f32 %v24_v3, %v78_v55  ;;  %v815_v58 = vsub.f32 %v25_v4, %v78_v55  ;;  %v817_v59 = vsub.f32 %v26_v5, %v78_v55 }
  0x31   :  { %v819_v60 = vsub.f32 %v27_v9, %v78_v55  ;;  %v827_v0 = vsub.f32 %v28_v12, %v78_v55  ;;  %v831_v2 = vsub.f32 %v29_v15, %v78_v55  ;;  %v838_v8 = vsub.f32 %v30_v18, %v78_v55 }
  0x32   :  { %v95_v61 = vmul.f32 %v811_v56, %v811_v56  ;;  %v96_v62 = vmul.f32 %v813_v57, %v813_v57  ;;  %v97_v63 = vmul.f32 %v815_v58, %v815_v58  ;;  %v98_v1 = vmul.f32 %v817_v59, %v817_v59 }
  0x33   :  { %v99_v3 = vmul.f32 %v819_v60, %v819_v60  ;;  %v100_v9 = vmul.f32 %v827_v0, %v827_v0  ;;  %v843_v12 = vsub.f32 %v31_v21, %v78_v55  ;;  %v101_v13 = vmul.f32 %v831_v2, %v831_v2 }
  0x34   :  { %v111_v4 = vsel %vm39_vm0, %v95_v61, 0.0  ;;  %v112_v5 = vsel %vm39_vm0, %v96_v62, 0.0  ;;  %v114_v6 = vsel %vm39_vm0, %v97_v63, 0.0  ;;  %v116_v10 = vsel %vm39_vm0, %v98_v1, 0.0 }
  0x35   :  { %v113_v7 = vadd.f32 %v112_v5, %v111_v4  ;;  %v118_v14 = vsel %vm39_vm0, %v99_v3, 0.0  ;;  %v848_v16 = vsub.f32 %v32_v24, %v78_v55  ;;  %v102_v17 = vmul.f32 %v838_v8, %v838_v8 }
  0x36   :  { %v120_v18 = vsel %vm39_vm0, %v100_v9, 0.0  ;;  %v853_v20 = vsub.f32 %v33_v27, %v78_v55  ;;  %v103_v21 = vmul.f32 %v843_v12, %v843_v12  ;;  %v122_v22 = vsel %vm39_vm0, %v101_v13, 0.0 }
  0x37   :  { %v115_v11 = vadd.f32 %v114_v6, %v113_v7  ;;  %v858_v25 = vsub.f32 %v34_v30, %v78_v55  ;;  %v104_v24 = vmul.f32 %v848_v16, %v848_v16  ;;  %v124_v26 = vsel %vm39_vm0, %v102_v17, 0.0  ;;  %v894_v7 = vld [vmem:[%s1130_s2] ss:$0 sm:$0xff] }
  0x38   :  { %v863_v29 = vsub.f32 %v35_v33, %v78_v55  ;;  %v105_v27 = vmul.f32 %v853_v20, %v853_v20  ;;  %v126_v31 = vsel %vm39_vm0, %v103_v21, 0.0  ;;  %v868_v34 = vsub.f32 %v36_v36, %v78_v55 }
  0x39   :  { %v117_v15 = vadd.f32 %v116_v10, %v115_v11  ;;  %v106_v30 = vmul.f32 %v858_v25, %v858_v25  ;;  %v128_v35 = vsel %vm39_vm0, %v104_v24, 0.0  ;;  %v873_v38 = vsub.f32 %v37_v39, %v78_v55 }
  0x3a   :  { %v107_v33 = vmul.f32 %v863_v29, %v863_v29  ;;  %v130_v40 = vsel %vm39_vm0, %v105_v27, 0.0  ;;  %v878_v43 = vsub.f32 %v38_v42, %v78_v55  ;;  %v108_v36 = vmul.f32 %v868_v34, %v868_v34 }
  0x3b   :  { %v119_v19 = vadd.f32 %v118_v14, %v117_v15  ;;  %v132_v44 = vsel %vm39_vm0, %v106_v30, 0.0  ;;  %v109_v46 = vmul.f32 %v873_v38, %v873_v38  ;;  %v903_v14 = vld [vmem:[%s1131_s3] ss:$0 sm:$0xff] }
  0x3c   :  { %v134_v39 = vsel %vm39_vm0, %v107_v33, 0.0  ;;  %v110_v48 = vmul.f32 %v878_v43, %v878_v43  ;;  %v136_v49 = vsel %vm39_vm0, %v108_v36, 0.0 }
  0x3d   :  { %v121_v23 = vadd.f32 %v120_v18, %v119_v19  ;;  %v138_v42 = vsel %vm39_vm0, %v109_v46, 0.0 }
  0x3e   :  { %v140_v52 = vsel %vm39_vm0, %v110_v48, 0.0 }
  0x3f   :  { %v123_v28 = vadd.f32 %v122_v22, %v121_v23 }
  0x41   :  { %v125_v32 = vadd.f32 %v124_v26, %v123_v28 }
  0x43   :  { %v127_v37 = vadd.f32 %v126_v31, %v125_v32 }
  0x45   :  { %v129_v41 = vadd.f32 %v128_v35, %v127_v37 }
  0x47   :  { %v131_v45 = vadd.f32 %v130_v40, %v129_v41 }
  0x49   :  { %v133_v47 = vadd.f32 %v132_v44, %v131_v45 }
  0x4b   :  { %v135_v50 = vadd.f32 %v134_v39, %v133_v47 }
  0x4d   :  { %v137_v51 = vadd.f32 %v136_v49, %v135_v50 }
  0x4f   :  { %v139_v53 = vadd.f32 %v138_v42, %v137_v51 }
  0x51   :  { %v141_v54 = vadd.f32 %v140_v52, %v139_v53 }
  0x53   :  { %v142_v55 = vrot.slane %v141_v54, 4 }
  0x55   :  { %v143_v61 = vadd.f32 %v142_v55, %v141_v54 }
  0x57   :  { %v144_v62 = vrot.slane %v143_v61, 2 }
  0x59   :  { %v145_v63 = vadd.f32 %v144_v62, %v143_v61 }
  0x5b   :  { %v146_v1 = vrot.slane %v145_v63, 1 }
  0x5d   :  { %v147_v3 = vadd.f32 %v146_v1, %v145_v63 }
  0x5f   :  { %v148_v4 = vmul.f32 0.0078125, %v147_v3 }
  0x61   :  { %v149_v5 = vadd.f32 1e-05, %v148_v4 }
  0x63   :  { %702 = vrsqrt.f32 %v149_v5 }
  0x70   :  { %v703_v6 = vpop.eup %702 }
  0x71   :  { %v151_v9 = vmul.f32 %v703_v6, %v811_v56  ;;  %v152_v10 = vmul.f32 %v703_v6, %v813_v57  ;;  %v153_v11 = vmul.f32 %v703_v6, %v815_v58  ;;  %v154_v13 = vmul.f32 %v703_v6, %v817_v59 }
  0x72   :  { %v155_v15 = vmul.f32 %v703_v6, %v819_v60  ;;  %v156_v17 = vmul.f32 %v703_v6, %v827_v0  ;;  %v157_v18 = vmul.f32 %v703_v6, %v831_v2  ;;  %v158_v60 = vmul.f32 %v703_v6, %v838_v8 }
  0x73   :  { %v174_v19 = vmul.f32 %v894_v7, %v151_v9  ;;  %v175_v56 = vmul.f32 %v894_v7, %v152_v10  ;;  %v176_v57 = vmul.f32 %v894_v7, %v153_v11  ;;  %v177_v58 = vmul.f32 %v894_v7, %v154_v13 }
  0x74   :  { %v178_v59 = vmul.f32 %v894_v7, %v155_v15  ;;  %v179_v21 = vmul.f32 %v894_v7, %v156_v17  ;;  %v180_v22 = vmul.f32 %v894_v7, %v157_v18  ;;  %v181_v8 = vmul.f32 %v894_v7, %v158_v60 }
  0x75   :  { %v197_v0 = vadd.f32 %v903_v14, %v174_v19  ;;  %v198_v2 = vadd.f32 %v903_v14, %v175_v56  ;;  %v199_v23 = vadd.f32 %v903_v14, %v176_v57  ;;  %v200_v24 = vadd.f32 %v903_v14, %v177_v58 }
  0x76   :  { %v201_v26 = vadd.f32 %v903_v14, %v178_v59  ;;  %v202_v30 = vadd.f32 %v903_v14, %v179_v21  ;;  %v203_v35 = vadd.f32 %v903_v14, %v180_v22  ;;  %v159_v37 = vmul.f32 %v703_v6, %v843_v12 }
  0x77   :  { %v213_v28 = vmax.f32 %v197_v0, 0.0  ;;  %v214_v27 = vmax.f32 %v198_v2, 0.0  ;;  %v215_v31 = vmax.f32 %v199_v23, 0.0  ;;  %v216_v32 = vmax.f32 %v200_v24, 0.0 }
  0x78   :  { %v160_v33 = vmul.f32 %v703_v6, %v848_v16  ;;  %v161_v40 = vmul.f32 %v703_v6, %v853_v20  ;;  %v162_v41 = vmul.f32 %v703_v6, %v858_v25  ;;  %v217_v36 = vmax.f32 %v201_v26, 0.0 }
  0x79   :  { %674 = vmatprep.mubr.msk.f32.mxu0 %vm39_vm0, %v213_v28  ;;  %v163_v44 = vmul.f32 %v703_v6, %v863_v29  ;;  %v164_v45 = vmul.f32 %v703_v6, %v868_v34  ;;  %v165_v46 = vmul.f32 %v703_v6, %v873_v38  ;;  %v182_v39 = vmul.f32 %v894_v7, %v159_v37 }
  0x7a   :  { %675 = vmatmul.mubr.msk.f32.vlgmr.msra.gmra.mxu0 %vm39_vm0, %v214_v27  ;;  %v183_v12 = vmul.f32 %v894_v7, %v160_v33  ;;  %v184_v16 = vmul.f32 %v894_v7, %v161_v40  ;;  %v185_v20 = vmul.f32 %v894_v7, %v162_v41  ;;  %v218_v25 = vmax.f32 %v202_v30, 0.0 }
  0x7b   :  { %677 = vmatprep.mubr.msk.f32.mxu0 %vm39_vm0, %v215_v31  ;;  %v204_v47 = vadd.f32 %v903_v14, %v181_v8  ;;  %v186_v48 = vmul.f32 %v894_v7, %v163_v44  ;;  %v219_v29 = vmax.f32 %v203_v35, 0.0  ;;  %v205_v34 = vadd.f32 %v903_v14, %v182_v39 }
  0x7c   :  { %v206_v38 = vadd.f32 %v903_v14, %v183_v12  ;;  %v207_v49 = vadd.f32 %v903_v14, %v184_v16  ;;  %v208_v50 = vadd.f32 %v903_v14, %v185_v20  ;;  %v187_v42 = vmul.f32 %v894_v7, %v164_v45 }
  0x7d   :  { %v188_v51 = vmul.f32 %v894_v7, %v165_v46  ;;  %v166_v52 = vmul.f32 %v703_v6, %v878_v43  ;;  %v221_v53 = vmax.f32 %v205_v34, 0.0  ;;  %v209_v61 = vadd.f32 %v903_v14, %v186_v48 }
  0x7e   :  { %678 = vmatmul.mubr.msk.f32.gmra.mxu0 %vm39_vm0, %v216_v32  ;;  %v222_v54 = vmax.f32 %v206_v38, 0.0  ;;  %v223_v55 = vmax.f32 %v207_v49, 0.0  ;;  %v220_v62 = vmax.f32 %v204_v47, 0.0  ;;  %v224_v63 = vmax.f32 %v208_v50, 0.0 }
  0x7f   :  { %680 = vmatprep.mubr.msk.f32.mxu0 %vm39_vm0, %v217_v36  ;;  %686 = vmatprep.mubr.msk.f32.mxu1 %vm39_vm0, %v221_v53  ;;  %v210_v1 = vadd.f32 %v903_v14, %v187_v42  ;;  %v189_v3 = vmul.f32 %v894_v7, %v166_v52  ;;  %v225_v43 = vmax.f32 %v209_v61, 0.0  ;;  %v211_v4 = vadd.f32 %v903_v14, %v188_v51 }
  0x80   :  { %687 = vmatmul.mubr.msk.f32.vlgmr.msra.gmra.mxu1 %vm39_vm0, %v222_v54 }
  0x81   :  { %689 = vmatprep.mubr.msk.f32.mxu1 %vm39_vm0, %v223_v55  ;;  %v226_v5 = vmax.f32 %v210_v1, 0.0  ;;  %v212_v6 = vadd.f32 %v903_v14, %v189_v3  ;;  %v227_v9 = vmax.f32 %v211_v4, 0.0 }
  0x82   :  { %681 = vmatmul.mubr.msk.f32.gmra.mxu0 %vm39_vm0, %v218_v25 }
  0x83   :  { %683 = vmatprep.mubr.msk.f32.mxu0 %vm39_vm0, %v219_v29  ;;  %v228_v7 = vmax.f32 %v212_v6, 0.0 }
  0x84   :  { %690 = vmatmul.mubr.msk.f32.gmra.mxu1 %vm39_vm0, %v224_v63 }
  0x85   :  { %692 = vmatprep.mubr.msk.f32.mxu1 %vm39_vm0, %v225_v43 }
  0x86   :  { %684 = vmatmul.mubr.msk.f32.gmra.mxu0 %vm39_vm0, %v220_v62 }
  0x88   :  { %693 = vmatmul.mubr.msk.f32.gmra.mxu1 %vm39_vm0, %v226_v5 }
  0x89   :  { %695 = vmatprep.mubr.msk.f32.mxu1 %vm39_vm0, %v227_v9 }
  0x8c   :  { %696 = vmatmul.mubr.msk.f32.gmra.mxu1 %vm39_vm0, %v228_v7 }
 0x13a   :  { %v676_v10 = vpop.f32.mrf.mxu0 }
 0x13b   :  { %v425_v17 = vsel %vm39_vm0, %v676_v10, 0.0 }
 0x13c   :  { %v345_v11 = vpop.f32.mrf.mxu0 }
 0x13d   :  { %v424_v13 = vsel %vm39_vm0, %v345_v11, 0.0 }
 0x13e   :  { %v679_v15 = vpop.f32.mrf.mxu0  ;;  %v426_v18 = vadd.f32 %v425_v17, %v424_v13 }
 0x13f   :  { %v429_v59 = vsel %vm39_vm0, %v679_v15, 0.0 }
 0x140   :  { %v355_v19 = vpop.f32.mrf.mxu0  ;;  %v968_v58 = vpop.f32.mrf.mxu1 }
 0x141   :  { %v427_v14 = vsel %vm39_vm0, %v355_v19, 0.0  ;;  %v441_v36 = vsel %vm39_vm0, %v968_v58, 0.0 }
 0x142   :  { %v428_v56 = vadd.f32 %v427_v14, %v426_v18  ;;  %v682_v57 = vpop.f32.mrf.mxu0  ;;  %v385_v60 = vpop.f32.mrf.mxu1 }
 0x143   :  { %v433_v26 = vsel %vm39_vm0, %v682_v57, 0.0  ;;  %v439_v33 = vsel %vm39_vm0, %v385_v60, 0.0 }
 0x144   :  { %v365_v21 = vpop.f32.mrf.mxu0  ;;  %v430_v22 = vadd.f32 %v429_v59, %v428_v56  ;;  %v972_v24 = vpop.f32.mrf.mxu1 }
 0x145   :  { %v431_v0 = vsel %vm39_vm0, %v365_v21, 0.0  ;;  %v445_v12 = vsel %vm39_vm0, %v972_v24, 0.0 }
 0x146   :  { %v432_v2 = vadd.f32 %v431_v0, %v430_v22  ;;  %v685_v23 = vpop.f32.mrf.mxu0  ;;  %v395_v31 = vpop.f32.mrf.mxu1 }
 0x147   :  { %v437_v8 = vsel %vm39_vm0, %v685_v23, 0.0  ;;  %v443_v45 = vsel %vm39_vm0, %v395_v31, 0.0 }
 0x148   :  { %v375_v28 = vpop.f32.mrf.mxu0  ;;  %v434_v27 = vadd.f32 %v433_v26, %v432_v2  ;;  %v976_v35 = vpop.f32.mrf.mxu1 }
 0x149   :  { %v435_v32 = vsel %vm39_vm0, %v375_v28, 0.0  ;;  %v449_v48 = vsel %vm39_vm0, %v976_v35, 0.0 }
 0x14a   :  { %v436_v30 = vadd.f32 %v435_v32, %v434_v27  ;;  %v405_v41 = vpop.f32.mrf.mxu1 }
 0x14b   :  { %v447_v20 = vsel %vm39_vm0, %v405_v41, 0.0 }
 0x14c   :  { %v438_v37 = vadd.f32 %v437_v8, %v436_v30  ;;  %v983_v39 = vpop.f32.mrf.mxu1 }
 0x14d   :  { %v453_v49 = vsel %vm39_vm0, %v983_v39, 0.0 }
 0x14e   :  { %v440_v40 = vadd.f32 %v439_v33, %v438_v37  ;;  %v415_v47 = vpop.f32.mrf.mxu1 }
 0x14f   :  { %v451_v34 = vsel %vm39_vm0, %v415_v47, 0.0 }
 0x150   :  { %v442_v44 = vadd.f32 %v441_v36, %v440_v40 }
 0x152   :  { %v444_v46 = vadd.f32 %v443_v45, %v442_v44 }
 0x154   :  { %v446_v16 = vadd.f32 %v445_v12, %v444_v46 }
 0x156   :  { %v448_v25 = vadd.f32 %v447_v20, %v446_v16 }
 0x158   :  { %v450_v29 = vadd.f32 %v449_v48, %v448_v25 }
 0x15a   :  { %v452_v38 = vadd.f32 %v451_v34, %v450_v29 }
 0x15c   :  { %v454_v50 = vadd.f32 %v453_v49, %v452_v38 }
 0x15e   :  { %v455_v42 = vrot.slane %v454_v50, 4 }
 0x160   :  { %v456_v51 = vadd.f32 %v455_v42, %v454_v50 }
 0x162   :  { %v457_v52 = vrot.slane %v456_v51, 2 }
 0x164   :  { %v458_v53 = vadd.f32 %v457_v52, %v456_v51 }
 0x166   :  { %v459_v54 = vrot.slane %v458_v53, 1 }
 0x168   :  { %v460_v55 = vadd.f32 %v459_v54, %v458_v53 }
 0x16a   :  { %v461_v61 = vmul.f32 0.0078125, %v460_v55 }
 0x16c   :  { %v993_v62 = vsub.f32 %v345_v11, %v461_v61  ;;  %v995_v63 = vsub.f32 %v676_v10, %v461_v61  ;;  %v997_v1 = vsub.f32 %v355_v19, %v461_v61  ;;  %v999_v3 = vsub.f32 %v679_v15, %v461_v61 }
 0x16d   :  { %v1005_v5 = vsub.f32 %v365_v21, %v461_v61  ;;  %v1009_v9 = vsub.f32 %v682_v57, %v461_v61  ;;  %v1015_v15 = vsub.f32 %v375_v28, %v461_v61  ;;  %v1020_v14 = vsub.f32 %v685_v23, %v461_v61 }
 0x16e   :  { %v478_v43 = vmul.f32 %v993_v62, %v993_v62  ;;  %v479_v4 = vmul.f32 %v995_v63, %v995_v63  ;;  %v480_v6 = vmul.f32 %v997_v1, %v997_v1  ;;  %v481_v7 = vmul.f32 %v999_v3, %v999_v3 }
 0x16f   :  { %v482_v17 = vmul.f32 %v1005_v5, %v1005_v5  ;;  %v483_v56 = vmul.f32 %v1009_v9, %v1009_v9  ;;  %v1025_v21 = vsub.f32 %v385_v60, %v461_v61  ;;  %v484_v22 = vmul.f32 %v1015_v15, %v1015_v15 }
 0x170   :  { %v494_v10 = vsel %vm39_vm0, %v478_v43, 0.0  ;;  %v495_v11 = vsel %vm39_vm0, %v479_v4, 0.0  ;;  %v497_v18 = vsel %vm39_vm0, %v480_v6, 0.0  ;;  %v499_v57 = vsel %vm39_vm0, %v481_v7, 0.0 }
 0x171   :  { %v496_v13 = vadd.f32 %v495_v11, %v494_v10  ;;  %v501_v0 = vsel %vm39_vm0, %v482_v17, 0.0  ;;  %v471_v26 = vsub.f32 %v968_v58, %v461_v61  ;;  %v485_v23 = vmul.f32 %v1020_v14, %v1020_v14 }
 0x172   :  { %v503_v28 = vsel %vm39_vm0, %v483_v56, 0.0  ;;  %v472_v32 = vsub.f32 %v395_v31, %v461_v61  ;;  %v486_v30 = vmul.f32 %v1025_v21, %v1025_v21  ;;  %v505_v60 = vsel %vm39_vm0, %v484_v22, 0.0 }
 0x173   :  { %v498_v19 = vadd.f32 %v497_v18, %v496_v13  ;;  %v473_v37 = vsub.f32 %v972_v24, %v461_v61  ;;  %v487_v33 = vmul.f32 %v471_v26, %v471_v26  ;;  %v507_v40 = vsel %vm39_vm0, %v485_v23, 0.0  ;;  %v650_v23 = vld [vmem:[%s1132_s4] ss:$0 sm:$0xff] }
 0x174   :  { %v474_v58 = vsub.f32 %v405_v41, %v461_v61  ;;  %v488_v44 = vmul.f32 %v472_v32, %v472_v32  ;;  %v509_v45 = vsel %vm39_vm0, %v486_v30, 0.0  ;;  %v475_v12 = vsub.f32 %v976_v35, %v461_v61 }
 0x175   :  { %v500_v59 = vadd.f32 %v499_v57, %v498_v19  ;;  %v489_v31 = vmul.f32 %v473_v37, %v473_v37  ;;  %v511_v16 = vsel %vm39_vm0, %v487_v33, 0.0  ;;  %v476_v25 = vsub.f32 %v415_v47, %v461_v61 }
 0x176   :  { %v490_v48 = vmul.f32 %v474_v58, %v474_v58  ;;  %v513_v29 = vsel %vm39_vm0, %v488_v44, 0.0  ;;  %v477_v34 = vsub.f32 %v983_v39, %v461_v61  ;;  %v491_v38 = vmul.f32 %v475_v12, %v475_v12  ;;  %v651_v44 = vld [vmem:[%s1133_s5] ss:$0 sm:$0xff] }
 0x177   :  { %v502_v2 = vadd.f32 %v501_v0, %v500_v59  ;;  %v515_v41 = vsel %vm39_vm0, %v489_v31, 0.0  ;;  %v492_v50 = vmul.f32 %v476_v25, %v476_v25 }
 0x178   :  { %v517_v42 = vsel %vm39_vm0, %v490_v48, 0.0  ;;  %v493_v35 = vmul.f32 %v477_v34, %v477_v34  ;;  %v519_v52 = vsel %vm39_vm0, %v491_v38, 0.0 }
 0x179   :  { %v504_v27 = vadd.f32 %v503_v28, %v502_v2  ;;  %v521_v47 = vsel %vm39_vm0, %v492_v50, 0.0 }
 0x17a   :  { %v523_v55 = vsel %vm39_vm0, %v493_v35, 0.0 }
 0x17b   :  { %v506_v8 = vadd.f32 %v505_v60, %v504_v27 }
 0x17d   :  { %v508_v36 = vadd.f32 %v507_v40, %v506_v8 }
 0x17f   :  { %v510_v46 = vadd.f32 %v509_v45, %v508_v36 }
 0x181   :  { %v512_v20 = vadd.f32 %v511_v16, %v510_v46 }
 0x183   :  { %v514_v24 = vadd.f32 %v513_v29, %v512_v20 }
 0x185   :  { %v516_v49 = vadd.f32 %v515_v41, %v514_v24 }
 0x187   :  { %v518_v51 = vadd.f32 %v517_v42, %v516_v49 }
 0x189   :  { %v520_v53 = vadd.f32 %v519_v52, %v518_v51 }
 0x18b   :  { %v522_v54 = vadd.f32 %v521_v47, %v520_v53 }
 0x18d   :  { %v524_v43 = vadd.f32 %v523_v55, %v522_v54 }
 0x18f   :  { %v525_v4 = vrot.slane %v524_v43, 4 }
 0x191   :  { %v526_v39 = vadd.f32 %v525_v4, %v524_v43 }
 0x193   :  { %v527_v61 = vrot.slane %v526_v39, 2 }
 0x195   :  { %v528_v6 = vadd.f32 %v527_v61, %v526_v39 }
 0x197   :  { %v529_v7 = vrot.slane %v528_v6, 1 }
 0x199   :  { %v530_v10 = vadd.f32 %v529_v7, %v528_v6 }
 0x19b   :  { %v531_v11 = vmul.f32 0.0078125, %v530_v10 }
 0x19d   :  { %v532_v13 = vadd.f32 1e-05, %v531_v11 }
 0x19f   :  { %704 = vrsqrt.f32 %v532_v13 }
 0x1ac   :  { %v705_v17 = vpop.eup %704 }
 0x1ad   :  { %v534_v18 = vmul.f32 %v705_v17, %v993_v62  ;;  %v535_v19 = vmul.f32 %v705_v17, %v995_v63  ;;  %v536_v56 = vmul.f32 %v705_v17, %v997_v1  ;;  %v537_v57 = vmul.f32 %v705_v17, %v999_v3 }
 0x1ae   :  { %v538_v59 = vmul.f32 %v705_v17, %v1005_v5  ;;  %v539_v22 = vmul.f32 %v705_v17, %v1009_v9  ;;  %v540_v0 = vmul.f32 %v705_v17, %v1015_v15  ;;  %v541_v2 = vmul.f32 %v705_v17, %v1020_v14 }
 0x1af   :  { %v542_v62 = vmul.f32 %v705_v17, %v1025_v21  ;;  %v543_v28 = vmul.f32 %v705_v17, %v471_v26  ;;  %v544_v63 = vmul.f32 %v705_v17, %v472_v32  ;;  %v545_v27 = vmul.f32 %v705_v17, %v473_v37 }
 0x1b0   :  { %v546_v1 = vmul.f32 %v705_v17, %v474_v58  ;;  %v547_v30 = vmul.f32 %v705_v17, %v475_v12  ;;  %v548_v3 = vmul.f32 %v705_v17, %v476_v25  ;;  %v549_v60 = vmul.f32 %v705_v17, %v477_v34 }
 0x1b1   :  { %v557_v5 = vmul.f32 %v650_v23, %v534_v18  ;;  %v558_v8 = vmul.f32 %v650_v23, %v535_v19  ;;  %v559_v9 = vmul.f32 %v650_v23, %v536_v56  ;;  %v560_v33 = vmul.f32 %v650_v23, %v537_v57 }
 0x1b2   :  { %v561_v15 = vmul.f32 %v650_v23, %v538_v59  ;;  %v562_v40 = vmul.f32 %v650_v23, %v539_v22  ;;  %v563_v14 = vmul.f32 %v650_v23, %v540_v0  ;;  %v564_v36 = vmul.f32 %v650_v23, %v541_v2 }
 0x1b3   :  { %v565_v21 = vmul.f32 %v650_v23, %v542_v62  ;;  %v566_v26 = vmul.f32 %v650_v23, %v543_v28  ;;  %v567_v32 = vmul.f32 %v650_v23, %v544_v63  ;;  %v568_v37 = vmul.f32 %v650_v23, %v545_v27 }
 0x1b4   :  { %v569_v58 = vmul.f32 %v650_v23, %v546_v1  ;;  %v570_v45 = vmul.f32 %v650_v23, %v547_v30  ;;  %v571_v46 = vmul.f32 %v650_v23, %v548_v3  ;;  %v572_v12 = vmul.f32 %v650_v23, %v549_v60 }
 0x1b5   :  { %v580_v31 = vadd.f32 %v651_v44, %v557_v5  ;;  %v581_v16 = vadd.f32 %v651_v44, %v558_v8  ;;  %v582_v20 = vadd.f32 %v651_v44, %v559_v9  ;;  %v583_v25 = vadd.f32 %v651_v44, %v560_v33 }
 0x1b6   :  { %v584_v48 = vadd.f32 %v651_v44, %v561_v15  ;;  %v585_v29 = vadd.f32 %v651_v44, %v562_v40  ;;  %v586_v24 = vadd.f32 %v651_v44, %v563_v14  ;;  %v587_v34 = vadd.f32 %v651_v44, %v564_v36 }
 0x1b7   :  { %v588_v38 = vadd.f32 %v651_v44, %v565_v21  ;;  %v589_v41 = vadd.f32 %v651_v44, %v566_v26  ;;  %v590_v49 = vadd.f32 %v651_v44, %v567_v32  ;;  %v591_v50 = vadd.f32 %v651_v44, %v568_v37 }
 0x1b8   :  { %v592_v42 = vadd.f32 %v651_v44, %v569_v58  ;;  %v593_v51 = vadd.f32 %v651_v44, %v570_v45  ;;  %v594_v35 = vadd.f32 %v651_v44, %v571_v46  ;;  %v595_v52 = vadd.f32 %v651_v44, %v572_v12 }
 0x1b9   :  { %v596_v53 = vmax.f32 %v580_v31, 0.0  ;;  %v597_v47 = vmax.f32 %v581_v16, 0.0  ;;  %v598_v54 = vmax.f32 %v582_v20, 0.0  ;;  %v599_v55 = vmax.f32 %v583_v25, 0.0 }
 0x1ba   :  { %v600_v43 = vmax.f32 %v584_v48, 0.0  ;;  %v601_v4 = vmax.f32 %v585_v29, 0.0  ;;  %v602_v39 = vmax.f32 %v586_v24, 0.0  ;;  %v603_v61 = vmax.f32 %v587_v34, 0.0 }
 0x1bb   :  { %v604_v6 = vmax.f32 %v588_v38, 0.0  ;;  %v605_v7 = vmax.f32 %v589_v41, 0.0  ;;  %v606_v10 = vmax.f32 %v590_v49, 0.0  ;;  %v607_v11 = vmax.f32 %v591_v50, 0.0  ;;  %612 = vst.msk [vmem:[%s1134_s6] sm:$0xff] %vm39_vm0, %v596_v53  ;;  %613 = vst.msk [vmem:[%s1134_s6 + $0x8] sm:$0xff] %vm39_vm0, %v597_v47 }
 0x1bc   :  { %614 = vst.msk [vmem:[%s1134_s6 + $0x10] sm:$0xff] %vm39_vm0, %v598_v54  ;;  %615 = vst.msk [vmem:[%s1134_s6 + $0x18] sm:$0xff] %vm39_vm0, %v599_v55  ;;  %v608_v13 = vmax.f32 %v592_v42, 0.0  ;;  %v609_v17 = vmax.f32 %v593_v51, 0.0  ;;  %v610_v18 = vmax.f32 %v594_v35, 0.0  ;;  %v611_v19 = vmax.f32 %v595_v52, 0.0 }
 0x1bd   :  { %616 = vst.msk [vmem:[%s1134_s6 + $0x20] sm:$0xff] %vm39_vm0, %v600_v43  ;;  %617 = vst.msk [vmem:[%s1134_s6 + $0x28] sm:$0xff] %vm39_vm0, %v601_v4 }
 0x1be   :  { %618 = vst.msk [vmem:[%s1134_s6 + $0x30] sm:$0xff] %vm39_vm0, %v602_v39  ;;  %619 = vst.msk [vmem:[%s1134_s6 + $0x38] sm:$0xff] %vm39_vm0, %v603_v61 }
 0x1bf   :  { %620 = vst.msk [vmem:[%s1134_s6 + $0x40] sm:$0xff] %vm39_vm0, %v604_v6  ;;  %621 = vst.msk [vmem:[%s1134_s6 + $0x48] sm:$0xff] %vm39_vm0, %v605_v7 }
 0x1c0   :  { %622 = vst.msk [vmem:[%s1134_s6 + $0x50] sm:$0xff] %vm39_vm0, %v606_v10  ;;  %623 = vst.msk [vmem:[%s1134_s6 + $0x58] sm:$0xff] %vm39_vm0, %v607_v11 }
 0x1c1   :  { %624 = vst.msk [vmem:[%s1134_s6 + $0x60] sm:$0xff] %vm39_vm0, %v608_v13  ;;  %625 = vst.msk [vmem:[%s1134_s6 + $0x68] sm:$0xff] %vm39_vm0, %v609_v17 }
 0x1c2   :  { %626 = vst.msk [vmem:[%s1134_s6 + $0x70] sm:$0xff] %vm39_vm0, %v610_v18  ;;  %627 = vst.msk [vmem:[%s1134_s6 + $0x78] sm:$0xff] %vm39_vm0, %v611_v19 }

// kernel: densenet_forward.36
= control target key start
LH: loop header
LB: loop body
LE: loop exit
PB: predicated region body
PF: predicated region fallthrough
CT: control target
= control target key end

     0   :  { %v1592_v0 = vmov 0.0   ;;  %vm164_vm0 = vcmask 154624   ;;  %vm357_vm1 = vcmask 1042432   ;;  %vm746_vm2 = vcmask 130048   ;;  %s3967_s1 = inlined_call_operand.vmem [shape: f32[147,16], index: 1, kind: input, shape index: {}]   ;;  %s3968_s0 = inlined_call_operand.vmem [shape: f32[512,147], index: 0, kind: input, shape index: {}]   ;;  %s3969_s2 = inlined_call_operand.vmem [shape: f32[1,16], index: 2, kind: input, shape index: {}]   ;;  %s3970_s3 = inlined_call_operand.vmem [shape: f32[1,16], index: 3, kind: input, shape index: {}]   ;;  %s3971_s4 = inlined_call_operand.vmem [shape: f32[512,16], index: 4, kind: output, shape index: {}]  }
   0x1   :  { %361 = vmatprep.subr.mxu0 %v1592_v0  ;;  %v160_v1 = vld [vmem:[%s3967_s1 + $0x78] sm:$0xff]  ;;  %v159_v2 = vld [vmem:[%s3967_s1 + $0x70] sm:$0xff]  ;;  %1551 = vmatprep.subr.mxu1 %v1592_v0  ;;  %v158_v3 = vld [vmem:[%s3967_s1 + $0x68] sm:$0xff] }
   0x2   :  { %362 = vmatpush1.msra.mxu0 %v160_v1  ;;  %1570 = vmatpush1.msra.mxu1 %v160_v1  ;;  %v157_v4 = vld [vmem:[%s3967_s1 + $0x60] sm:$0xff]  ;;  %v156_v5 = vld [vmem:[%s3967_s1 + $0x58] sm:$0xff]  ;;  %v18_v6 = vld [vmem:[%s3968_s0 + $0x8] sm:$0xff] }
   0x3   :  { %363 = vmatprep.subr.mxu0 %v1592_v0  ;;  %1552 = vmatprep.subr.mxu1 %v1592_v0  ;;  %v155_v7 = vld [vmem:[%s3967_s1 + $0x50] sm:$0xff]  ;;  %v154_v8 = vld [vmem:[%s3967_s1 + $0x48] sm:$0xff]  ;;  %v153_v9 = vld [vmem:[%s3967_s1 + $0x40] sm:$0xff] }
   0x4   :  { %364 = vmatpush1.msra.mxu0 %v159_v2  ;;  %1571 = vmatpush1.msra.mxu1 %v159_v2  ;;  %v152_v10 = vld [vmem:[%s3967_s1 + $0x38] sm:$0xff]  ;;  %v151_v11 = vld [vmem:[%s3967_s1 + $0x30] sm:$0xff]  ;;  %v150_v12 = vld [vmem:[%s3967_s1 + $0x28] sm:$0xff] }
   0x5   :  { %365 = vmatprep.subr.mxu0 %v1592_v0  ;;  %1553 = vmatprep.subr.mxu1 %v1592_v0  ;;  %v149_v13 = vld [vmem:[%s3967_s1 + $0x20] sm:$0xff]  ;;  %v148_v14 = vld [vmem:[%s3967_s1 + $0x18] sm:$0xff]  ;;  %v147_v15 = vld [vmem:[%s3967_s1 + $0x10] sm:$0xff] }
   0x6   :  { %366 = vmatpush1.msra.mxu0 %v158_v3  ;;  %1572 = vmatpush1.msra.mxu1 %v158_v3  ;;  %v146_v16 = vld [vmem:[%s3967_s1 + $0x8] sm:$0xff]  ;;  %v145_v17 = vld [vmem:[%s3967_s1] sm:$0xff]  ;;  %v163_v18 = vld [vmem:[%s3967_s1 + $0x90] sm:$0x7] }
   0x7   :  { %367 = vmatprep.subr.mxu0 %v1592_v0  ;;  %1554 = vmatprep.subr.mxu1 %v1592_v0  ;;  %v162_v19 = vld [vmem:[%s3967_s1 + $0x88] sm:$0xff]  ;;  %v161_v20 = vld [vmem:[%s3967_s1 + $0x80] sm:$0xff]  ;;  %v20_v22 = vld [vmem:[%s3968_s0 + $0x18] sm:$0xff] }
   0x8   :  { %368 = vmatpush1.msra.mxu0 %v157_v4  ;;  %1485 = vmatprep.mubr.msk.f32.mxu0 %vm164_vm0, %v18_v6  ;;  %v17_v21 = vld [vmem:[%s3968_s0] sm:$0xff]  ;;  %v82_v23 = vld [vmem:[%s3968_s0 + $0x208] sm:$0xff]  ;;  %v84_v25 = vld [vmem:[%s3968_s0 + $0x218] sm:$0xff] }
   0x9   :  { %369 = vmatprep.subr.mxu0 %v1592_v0  ;;  %1573 = vmatpush1.msra.mxu1 %v157_v4  ;;  %v81_v24 = vld [vmem:[%s3968_s0 + $0x200] sm:$0xff]  ;;  %v19_v26 = vld [vmem:[%s3968_s0 + $0x10] sm:$0xff]  ;;  %v22_v27 = vld [vmem:[%s3968_s0 + $0x28] sm:$0xff] }
   0xa   :  { %370 = vmatpush1.msra.mxu0 %v156_v5  ;;  %1555 = vmatprep.subr.mxu1 %v1592_v0  ;;  %v83_v28 = vld [vmem:[%s3968_s0 + $0x210] sm:$0xff]  ;;  %v86_v29 = vld [vmem:[%s3968_s0 + $0x228] sm:$0xff]  ;;  %v21_v30 = vld [vmem:[%s3968_s0 + $0x20] sm:$0xff] }
   0xb   :  { %371 = vmatprep.subr.mxu0 %v1592_v0  ;;  %1574 = vmatpush1.msra.mxu1 %v156_v5  ;;  %v24_v31 = vld [vmem:[%s3968_s0 + $0x38] sm:$0xff]  ;;  %v85_v32 = vld [vmem:[%s3968_s0 + $0x220] sm:$0xff]  ;;  %v23_v34 = vld [vmem:[%s3968_s0 + $0x30] sm:$0xff] }
   0xc   :  { %372 = vmatpush1.msra.mxu0 %v155_v7  ;;  %1556 = vmatprep.subr.mxu1 %v1592_v0  ;;  %v88_v33 = vld [vmem:[%s3968_s0 + $0x238] sm:$0xff]  ;;  %v26_v35 = vld [vmem:[%s3968_s0 + $0x48] sm:$0xff]  ;;  %v87_v36 = vld [vmem:[%s3968_s0 + $0x230] sm:$0xff] }
   0xd   :  { %373 = vmatprep.subr.mxu0 %v1592_v0  ;;  %1575 = vmatpush1.msra.mxu1 %v155_v7  ;;  %v90_v37 = vld [vmem:[%s3968_s0 + $0x248] sm:$0xff]  ;;  %v25_v38 = vld [vmem:[%s3968_s0 + $0x40] sm:$0xff]  ;;  %v28_v39 = vld [vmem:[%s3968_s0 + $0x58] sm:$0xff] }
   0xe   :  { %374 = vmatpush1.msra.mxu0 %v154_v8  ;;  %1557 = vmatprep.subr.mxu1 %v1592_v0  ;;  %v89_v40 = vld [vmem:[%s3968_s0 + $0x240] sm:$0xff]  ;;  %v92_v41 = vld [vmem:[%s3968_s0 + $0x258] sm:$0xff]  ;;  %v27_v42 = vld [vmem:[%s3968_s0 + $0x50] sm:$0xff] }
   0xf   :  { %375 = vmatprep.subr.mxu0 %v1592_v0  ;;  %1576 = vmatpush1.msra.mxu1 %v154_v8  ;;  %v30_v43 = vld [vmem:[%s3968_s0 + $0x68] sm:$0xff]  ;;  %v91_v44 = vld [vmem:[%s3968_s0 + $0x250] sm:$0xff]  ;;  %v29_v46 = vld [vmem:[%s3968_s0 + $0x60] sm:$0xff] }
  0x10   :  { %376 = vmatpush1.msra.mxu0 %v153_v9  ;;  %1558 = vmatprep.subr.mxu1 %v1592_v0  ;;  %v94_v45 = vld [vmem:[%s3968_s0 + $0x268] sm:$0xff]  ;;  %v32_v47 = vld [vmem:[%s3968_s0 + $0x78] sm:$0xff]  ;;  %v93_v48 = vld [vmem:[%s3968_s0 + $0x260] sm:$0xff] }
  0x11   :  { %377 = vmatprep.subr.mxu0 %v1592_v0  ;;  %1577 = vmatpush1.msra.mxu1 %v153_v9  ;;  %v96_v49 = vld [vmem:[%s3968_s0 + $0x278] sm:$0xff]  ;;  %v31_v50 = vld [vmem:[%s3968_s0 + $0x70] sm:$0xff]  ;;  %v34_v51 = vld [vmem:[%s3968_s0 + $0x88] sm:$0xff] }
  0x12   :  { %378 = vmatpush1.msra.mxu0 %v152_v10  ;;  %1559 = vmatprep.subr.mxu1 %v1592_v0  ;;  %v95_v52 = vld [vmem:[%s3968_s0 + $0x270] sm:$0xff]  ;;  %v98_v53 = vld [vmem:[%s3968_s0 + $0x288] sm:$0xff]  ;;  %v33_v54 = vld [vmem:[%s3968_s0 + $0x80] sm:$0xff] }
  0x13   :  { %379 = vmatprep.subr.mxu0 %v1592_v0  ;;  %1578 = vmatpush1.msra.mxu1 %v152_v10  ;;  %v36_v55 = vld [vmem:[%s3968_s0 + $0x98] sm:$0xff]  ;;  %v97_v56 = vld [vmem:[%s3968_s0 + $0x280] sm:$0xff]  ;;  %v35_v58 = vld [vmem:[%s3968_s0 + $0x90] sm:$0xff] }
  0x14   :  { %380 = vmatpush1.msra.mxu0 %v151_v11  ;;  %1560 = vmatprep.subr.mxu1 %v1592_v0  ;;  %v100_v57 = vld [vmem:[%s3968_s0 + $0x298] sm:$0xff]  ;;  %v38_v59 = vld [vmem:[%s3968_s0 + $0xa8] sm:$0xff]  ;;  %v99_v60 = vld [vmem:[%s3968_s0 + $0x290] sm:$0xff] }
  0x15   :  { %381 = vmatprep.subr.mxu0 %v1592_v0  ;;  %1579 = vmatpush1.msra.mxu1 %v151_v11  ;;  %v102_v61 = vld [vmem:[%s3968_s0 + $0x2a8] sm:$0xff]  ;;  %v37_v62 = vld [vmem:[%s3968_s0 + $0xa0] sm:$0xff]  ;;  %v40_v63 = vld [vmem:[%s3968_s0 + $0xb8] sm:$0xff] }
  0x16   :  { %382 = vmatpush1.msra.mxu0 %v150_v12  ;;  %1561 = vmatprep.subr.mxu1 %v1592_v0  ;;  %v104_v1 = vld [vmem:[%s3968_s0 + $0x2b8] sm:$0xff]  ;;  %v39_v2 = vld [vmem:[%s3968_s0 + $0xb0] sm:$0xff]  ;;  %v42_v3 = vld [vmem:[%s3968_s0 + $0xc8] sm:$0xff] }
  0x17   :  { %383 = vmatprep.subr.mxu0 %v1592_v0  ;;  %1580 = vmatpush1.msra.mxu1 %v150_v12  ;;  %v103_v4 = vld [vmem:[%s3968_s0 + $0x2b0] sm:$0xff]  ;;  %v106_v5 = vld [vmem:[%s3968_s0 + $0x2c8] sm:$0xff]  ;;  %v41_v6 = vld [vmem:[%s3968_s0 + $0xc0] sm:$0xff] }
  0x18   :  { %384 = vmatpush1.msra.mxu0 %v149_v13  ;;  %1562 = vmatprep.subr.mxu1 %v1592_v0  ;;  %v44_v7 = vld [vmem:[%s3968_s0 + $0xd8] sm:$0xff]  ;;  %v105_v8 = vld [vmem:[%s3968_s0 + $0x2c0] sm:$0xff]  ;;  %v43_v10 = vld [vmem:[%s3968_s0 + $0xd0] sm:$0xff] }
  0x19   :  { %385 = vmatprep.subr.mxu0 %v1592_v0  ;;  %1581 = vmatpush1.msra.mxu1 %v149_v13  ;;  %v108_v9 = vld [vmem:[%s3968_s0 + $0x2d8] sm:$0xff]  ;;  %v46_v11 = vld [vmem:[%s3968_s0 + $0xe8] sm:$0xff]  ;;  %v107_v12 = vld [vmem:[%s3968_s0 + $0x2d0] sm:$0xff] }
  0x1a   :  { %386 = vmatpush1.msra.mxu0 %v148_v14  ;;  %1563 = vmatprep.subr.mxu1 %v1592_v0  ;;  %v110_v13 = vld [vmem:[%s3968_s0 + $0x2e8] sm:$0xff] }
  0x1b   :  { %387 = vmatprep.subr.mxu0 %v1592_v0  ;;  %1582 = vmatpush1.msra.mxu1 %v148_v14  ;;  %v45_v14 = vld [vmem:[%s3968_s0 + $0xe0] sm:$0xff] }
  0x1c   :  { %388 = vmatpush1.msra.mxu0 %v147_v15  ;;  %1564 = vmatprep.subr.mxu1 %v1592_v0 }
  0x1d   :  { %389 = vmatprep.subr.mxu0 %v1592_v0  ;;  %1583 = vmatpush1.msra.mxu1 %v147_v15  ;;  %v48_v15 = vld [vmem:[%s3968_s0 + $0xf8] sm:$0xff] }
  0x1e   :  { %390 = vmatpush1.msra.mxu0 %v146_v16  ;;  %1565 = vmatprep.subr.mxu1 %v1592_v0 }
  0x1f   :  { %391 = vmatprep.subr.mxu0 %v1592_v0  ;;  %1584 = vmatpush1.msra.mxu1 %v146_v16  ;;  %v109_v16 = vld [vmem:[%s3968_s0 + $0x2e0] sm:$0xff] }
  0x20   :  { %392 = vmatpush1.msra.mxu0 %v145_v17  ;;  %1566 = vmatprep.subr.mxu1 %v1592_v0 }
  0x21   :  { %419 = vmatprep.subr.mxu0 %v1592_v0  ;;  %1585 = vmatpush1.msra.mxu1 %v145_v17  ;;  %v112_v17 = vld [vmem:[%s3968_s0 + $0x2f8] sm:$0xff] }
  0x22   :  { %1484 = vmatpush2.msk.msra.mxu0 %vm357_vm1, %v163_v18  ;;  %1567 = vmatprep.subr.mxu1 %v1592_v0 }
  0x23   :  { %421 = vmatprep.subr.mxu0 %v1592_v0  ;;  %1586 = vmatpush2.msk.msra.mxu1 %vm357_vm1, %v163_v18  ;;  %v47_v18 = vld [vmem:[%s3968_s0 + $0xf0] sm:$0xff] }
  0x24   :  { %422 = vmatpush2.msra.mxu0 %v162_v19  ;;  %1568 = vmatprep.subr.mxu1 %v1592_v0 }
  0x25   :  { %423 = vmatprep.subr.mxu0 %v1592_v0  ;;  %1587 = vmatpush2.msra.mxu1 %v162_v19  ;;  %v50_v19 = vld [vmem:[%s3968_s0 + $0x108] sm:$0xff] }
  0x26   :  { %424 = vmatpush2.msra.mxu0 %v161_v20  ;;  %1569 = vmatprep.subr.mxu1 %v1592_v0  ;;  %v101_v0 = vld [vmem:[%s3968_s0 + $0x2a0] sm:$0xff] }
  0x27   :  { %426 = vmatmul.mubr.f32.vlgmr.msra.gmra.mxu0 %v17_v21  ;;  %1588 = vmatpush2.msra.mxu1 %v161_v20  ;;  %v111_v20 = vld [vmem:[%s3968_s0 + $0x2f0] sm:$0xff]  ;;  %v114_v21 = vld [vmem:[%s3968_s0 + $0x308] sm:$0xff] }
  0x28   :  { %1486 = vmatprep.mubr.msk.f32.mxu0 %vm164_vm0, %v20_v22  ;;  %1517 = vmatprep.mubr.msk.f32.mxu1 %vm164_vm0, %v82_v23  ;;  %v49_v22 = vld [vmem:[%s3968_s0 + $0x100] sm:$0xff]  ;;  %v52_v23 = vld [vmem:[%s3968_s0 + $0x118] sm:$0xff] }
  0x29   :  { %586 = vmatmul.mubr.f32.vlgmr.msra.gmra.mxu1 %v81_v24  ;;  %v113_v24 = vld [vmem:[%s3968_s0 + $0x300] sm:$0xff] }
  0x2a   :  { %1518 = vmatprep.mubr.msk.f32.mxu1 %vm164_vm0, %v84_v25  ;;  %v116_v25 = vld [vmem:[%s3968_s0 + $0x318] sm:$0xff] }
  0x2b   :  { %431 = vmatmul.mubr.f32.gmra.mxu0 %v19_v26  ;;  %v51_v26 = vld [vmem:[%s3968_s0 + $0x110] sm:$0xff] }
  0x2c   :  { %1487 = vmatprep.mubr.msk.f32.mxu0 %vm164_vm0, %v22_v27  ;;  %v54_v27 = vld [vmem:[%s3968_s0 + $0x128] sm:$0xff] }
  0x2d   :  { %591 = vmatmul.mubr.f32.gmra.mxu1 %v83_v28  ;;  %v115_v28 = vld [vmem:[%s3968_s0 + $0x310] sm:$0xff] }
  0x2e   :  { %1519 = vmatprep.mubr.msk.f32.mxu1 %vm164_vm0, %v86_v29  ;;  %v118_v29 = vld [vmem:[%s3968_s0 + $0x328] sm:$0xff] }
  0x2f   :  { %436 = vmatmul.mubr.f32.gmra.mxu0 %v21_v30  ;;  %v53_v30 = vld [vmem:[%s3968_s0 + $0x120] sm:$0xff] }
  0x30   :  { %1488 = vmatprep.mubr.msk.f32.mxu0 %vm164_vm0, %v24_v31  ;;  %v56_v31 = vld [vmem:[%s3968_s0 + $0x138] sm:$0xff] }
  0x31   :  { %596 = vmatmul.mubr.f32.gmra.mxu1 %v85_v32  ;;  %v117_v32 = vld [vmem:[%s3968_s0 + $0x320] sm:$0xff] }
  0x32   :  { %1520 = vmatprep.mubr.msk.f32.mxu1 %vm164_vm0, %v88_v33  ;;  %v120_v33 = vld [vmem:[%s3968_s0 + $0x338] sm:$0xff] }
  0x33   :  { %441 = vmatmul.mubr.f32.gmra.mxu0 %v23_v34  ;;  %v55_v34 = vld [vmem:[%s3968_s0 + $0x130] sm:$0xff] }
  0x34   :  { %1489 = vmatprep.mubr.msk.f32.mxu0 %vm164_vm0, %v26_v35  ;;  %v58_v35 = vld [vmem:[%s3968_s0 + $0x148] sm:$0xff] }
  0x35   :  { %601 = vmatmul.mubr.f32.gmra.mxu1 %v87_v36  ;;  %v119_v36 = vld [vmem:[%s3968_s0 + $0x330] sm:$0xff] }
  0x36   :  { %1521 = vmatprep.mubr.msk.f32.mxu1 %vm164_vm0, %v90_v37  ;;  %v122_v37 = vld [vmem:[%s3968_s0 + $0x348] sm:$0xff] }
  0x37   :  { %446 = vmatmul.mubr.f32.gmra.mxu0 %v25_v38  ;;  %v57_v38 = vld [vmem:[%s3968_s0 + $0x140] sm:$0xff] }
  0x38   :  { %1490 = vmatprep.mubr.msk.f32.mxu0 %vm164_vm0, %v28_v39  ;;  %v60_v39 = vld [vmem:[%s3968_s0 + $0x158] sm:$0xff] }
  0x39   :  { %606 = vmatmul.mubr.f32.gmra.mxu1 %v89_v40  ;;  %v121_v40 = vld [vmem:[%s3968_s0 + $0x340] sm:$0xff] }
  0x3a   :  { %1522 = vmatprep.mubr.msk.f32.mxu1 %vm164_vm0, %v92_v41  ;;  %v124_v41 = vld [vmem:[%s3968_s0 + $0x358] sm:$0xff] }
  0x3b   :  { %451 = vmatmul.mubr.f32.gmra.mxu0 %v27_v42  ;;  %v59_v42 = vld [vmem:[%s3968_s0 + $0x150] sm:$0xff] }
  0x3c   :  { %1491 = vmatprep.mubr.msk.f32.mxu0 %vm164_vm0, %v30_v43  ;;  %v62_v43 = vld [vmem:[%s3968_s0 + $0x168] sm:$0xff] }
  0x3d   :  { %611 = vmatmul.mubr.f32.gmra.mxu1 %v91_v44  ;;  %v123_v44 = vld [vmem:[%s3968_s0 + $0x350] sm:$0xff] }
  0x3e   :  { %1523 = vmatprep.mubr.msk.f32.mxu1 %vm164_vm0, %v94_v45  ;;  %v126_v45 = vld [vmem:[%s3968_s0 + $0x368] sm:$0xff] }
  0x3f   :  { %456 = vmatmul.mubr.f32.gmra.mxu0 %v29_v46  ;;  %v61_v46 = vld [vmem:[%s3968_s0 + $0x160] sm:$0xff] }
  0x40   :  { %1492 = vmatprep.mubr.msk.f32.mxu0 %vm164_vm0, %v32_v47  ;;  %v64_v47 = vld [vmem:[%s3968_s0 + $0x178] sm:$0xff] }
  0x41   :  { %616 = vmatmul.mubr.f32.gmra.mxu1 %v93_v48  ;;  %v125_v48 = vld [vmem:[%s3968_s0 + $0x360] sm:$0xff] }
  0x42   :  { %1524 = vmatprep.mubr.msk.f32.mxu1 %vm164_vm0, %v96_v49  ;;  %v128_v49 = vld [vmem:[%s3968_s0 + $0x378] sm:$0xff] }
  0x43   :  { %461 = vmatmul.mubr.f32.gmra.mxu0 %v31_v50  ;;  %v63_v50 = vld [vmem:[%s3968_s0 + $0x170] sm:$0xff] }
  0x44   :  { %1493 = vmatprep.mubr.msk.f32.mxu0 %vm164_vm0, %v34_v51  ;;  %v66_v51 = vld [vmem:[%s3968_s0 + $0x188] sm:$0xff] }
  0x45   :  { %621 = vmatmul.mubr.f32.gmra.mxu1 %v95_v52  ;;  %v127_v52 = vld [vmem:[%s3968_s0 + $0x370] sm:$0xff] }
  0x46   :  { %1525 = vmatprep.mubr.msk.f32.mxu1 %vm164_vm0, %v98_v53  ;;  %v130_v53 = vld [vmem:[%s3968_s0 + $0x388] sm:$0xff] }
  0x47   :  { %466 = vmatmul.mubr.f32.gmra.mxu0 %v33_v54  ;;  %v65_v54 = vld [vmem:[%s3968_s0 + $0x180] sm:$0xff] }
  0x48   :  { %1494 = vmatprep.mubr.msk.f32.mxu0 %vm164_vm0, %v36_v55  ;;  %v68_v55 = vld [vmem:[%s3968_s0 + $0x198] sm:$0xff] }
  0x49   :  { %626 = vmatmul.mubr.f32.gmra.mxu1 %v97_v56  ;;  %v129_v56 = vld [vmem:[%s3968_s0 + $0x380] sm:$0xff] }
  0x4a   :  { %1526 = vmatprep.mubr.msk.f32.mxu1 %vm164_vm0, %v100_v57  ;;  %v132_v57 = vld [vmem:[%s3968_s0 + $0x398] sm:$0xff] }
  0x4b   :  { %471 = vmatmul.mubr.f32.gmra.mxu0 %v35_v58  ;;  %v67_v58 = vld [vmem:[%s3968_s0 + $0x190] sm:$0xff] }
  0x4c   :  { %1495 = vmatprep.mubr.msk.f32.mxu0 %vm164_vm0, %v38_v59  ;;  %v70_v59 = vld [vmem:[%s3968_s0 + $0x1a8] sm:$0xff] }
  0x4d   :  { %631 = vmatmul.mubr.f32.gmra.mxu1 %v99_v60  ;;  %v131_v60 = vld [vmem:[%s3968_s0 + $0x390] sm:$0xff] }
  0x4e   :  { %1527 = vmatprep.mubr.msk.f32.mxu1 %vm164_vm0, %v102_v61  ;;  %v134_v61 = vld [vmem:[%s3968_s0 + $0x3a8] sm:$0xff] }
  0x4f   :  { %476 = vmatmul.mubr.f32.gmra.mxu0 %v37_v62  ;;  %v69_v62 = vld [vmem:[%s3968_s0 + $0x1a0] sm:$0xff] }
  0x50   :  { %1496 = vmatprep.mubr.msk.f32.mxu0 %vm164_vm0, %v40_v63  ;;  %v72_v63 = vld [vmem:[%s3968_s0 + $0x1b8] sm:$0xff] }
  0x51   :  { %636 = vmatmul.mubr.f32.gmra.mxu1 %v101_v0  ;;  %v133_v0 = vld [vmem:[%s3968_s0 + $0x3a0] sm:$0xff] }
  0x52   :  { %1528 = vmatprep.mubr.msk.f32.mxu1 %vm164_vm0, %v104_v1  ;;  %v136_v1 = vld [vmem:[%s3968_s0 + $0x3b8] sm:$0xff] }
  0x53   :  { %481 = vmatmul.mubr.f32.gmra.mxu0 %v39_v2  ;;  %v71_v2 = vld [vmem:[%s3968_s0 + $0x1b0] sm:$0xff] }
  0x54   :  { %1497 = vmatprep.mubr.msk.f32.mxu0 %vm164_vm0, %v42_v3  ;;  %v74_v3 = vld [vmem:[%s3968_s0 + $0x1c8] sm:$0xff] }
  0x55   :  { %641 = vmatmul.mubr.f32.gmra.mxu1 %v103_v4  ;;  %v135_v4 = vld [vmem:[%s3968_s0 + $0x3b0] sm:$0xff] }
  0x56   :  { %1529 = vmatprep.mubr.msk.f32.mxu1 %vm164_vm0, %v106_v5  ;;  %v138_v5 = vld [vmem:[%s3968_s0 + $0x3c8] sm:$0xff] }
  0x57   :  { %486 = vmatmul.mubr.f32.gmra.mxu0 %v41_v6  ;;  %v73_v6 = vld [vmem:[%s3968_s0 + $0x1c0] sm:$0xff] }
  0x58   :  { %1498 = vmatprep.mubr.msk.f32.mxu0 %vm164_vm0, %v44_v7  ;;  %v76_v7 = vld [vmem:[%s3968_s0 + $0x1d8] sm:$0xff] }
  0x59   :  { %646 = vmatmul.mubr.f32.gmra.mxu1 %v105_v8  ;;  %v137_v8 = vld [vmem:[%s3968_s0 + $0x3c0] sm:$0xff] }
  0x5a   :  { %1530 = vmatprep.mubr.msk.f32.mxu1 %vm164_vm0, %v108_v9  ;;  %v140_v9 = vld [vmem:[%s3968_s0 + $0x3d8] sm:$0xff] }
  0x5b   :  { %491 = vmatmul.mubr.f32.gmra.mxu0 %v43_v10  ;;  %v75_v10 = vld [vmem:[%s3968_s0 + $0x1d0] sm:$0xff] }
  0x5c   :  { %1499 = vmatprep.mubr.msk.f32.mxu0 %vm164_vm0, %v46_v11  ;;  %v78_v11 = vld [vmem:[%s3968_s0 + $0x1e8] sm:$0xff] }
  0x5d   :  { %651 = vmatmul.mubr.f32.gmra.mxu1 %v107_v12  ;;  %v139_v12 = vld [vmem:[%s3968_s0 + $0x3d0] sm:$0xff] }
  0x5e   :  { %1531 = vmatprep.mubr.msk.f32.mxu1 %vm164_vm0, %v110_v13  ;;  %v142_v13 = vld [vmem:[%s3968_s0 + $0x3e8] sm:$0xff] }
  0x5f   :  { %496 = vmatmul.mubr.f32.gmra.mxu0 %v45_v14  ;;  %v77_v14 = vld [vmem:[%s3968_s0 + $0x1e0] sm:$0xff] }
  0x60   :  { %1500 = vmatprep.mubr.msk.f32.mxu0 %vm164_vm0, %v48_v15  ;;  %v80_v15 = vld [vmem:[%s3968_s0 + $0x1f8] sm:$0xff] }
  0x61   :  { %656 = vmatmul.mubr.f32.gmra.mxu1 %v109_v16  ;;  %v141_v16 = vld [vmem:[%s3968_s0 + $0x3e0] sm:$0xff] }
  0x62   :  { %1532 = vmatprep.mubr.msk.f32.mxu1 %vm164_vm0, %v112_v17  ;;  %v144_v17 = vld [vmem:[%s3968_s0 + $0x3f8] sm:$0xff] }
  0x63   :  { %501 = vmatmul.mubr.f32.gmra.mxu0 %v47_v18  ;;  %v79_v18 = vld [vmem:[%s3968_s0 + $0x1f0] sm:$0xff] }
  0x64   :  { %1501 = vmatprep.mubr.msk.f32.mxu0 %vm164_vm0, %v50_v19  ;;  %v143_v19 = vld [vmem:[%s3968_s0 + $0x3f0] sm:$0xff] }
  0x65   :  { %661 = vmatmul.mubr.f32.gmra.mxu1 %v111_v20 }
  0x66   :  { %1533 = vmatprep.mubr.msk.f32.mxu1 %vm164_vm0, %v114_v21 }
  0x67   :  { %506 = vmatmul.mubr.f32.gmra.mxu0 %v49_v22 }
  0x68   :  { %1502 = vmatprep.mubr.msk.f32.mxu0 %vm164_vm0, %v52_v23 }
  0x69   :  { %666 = vmatmul.mubr.f32.gmra.mxu1 %v113_v24 }
  0x6a   :  { %1534 = vmatprep.mubr.msk.f32.mxu1 %vm164_vm0, %v116_v25 }
  0x6b   :  { %511 = vmatmul.mubr.f32.gmra.mxu0 %v51_v26 }
  0x6c   :  { %1503 = vmatprep.mubr.msk.f32.mxu0 %vm164_vm0, %v54_v27 }
  0x6d   :  { %671 = vmatmul.mubr.f32.gmra.mxu1 %v115_v28 }
  0x6e   :  { %1535 = vmatprep.mubr.msk.f32.mxu1 %vm164_vm0, %v118_v29 }
  0x6f   :  { %516 = vmatmul.mubr.f32.gmra.mxu0 %v53_v30 }
  0x70   :  { %1504 = vmatprep.mubr.msk.f32.mxu0 %vm164_vm0, %v56_v31 }
  0x71   :  { %676 = vmatmul.mubr.f32.gmra.mxu1 %v117_v32 }
  0x72   :  { %1536 = vmatprep.mubr.msk.f32.mxu1 %vm164_vm0, %v120_v33 }
  0x73   :  { %521 = vmatmul.mubr.f32.gmra.mxu0 %v55_v34 }
  0x74   :  { %1505 = vmatprep.mubr.msk.f32.mxu0 %vm164_vm0, %v58_v35 }
  0x75   :  { %681 = vmatmul.mubr.f32.gmra.mxu1 %v119_v36 }
  0x76   :  { %1537 = vmatprep.mubr.msk.f32.mxu1 %vm164_vm0, %v122_v37 }
  0x77   :  { %526 = vmatmul.mubr.f32.gmra.mxu0 %v57_v38 }
  0x78   :  { %1506 = vmatprep.mubr.msk.f32.mxu0 %vm164_vm0, %v60_v39 }
  0x79   :  { %686 = vmatmul.mubr.f32.gmra.mxu1 %v121_v40 }
  0x7a   :  { %1538 = vmatprep.mubr.msk.f32.mxu1 %vm164_vm0, %v124_v41 }
  0x7b   :  { %531 = vmatmul.mubr.f32.gmra.mxu0 %v59_v42 }
  0x7c   :  { %1507 = vmatprep.mubr.msk.f32.mxu0 %vm164_vm0, %v62_v43 }
  0x7d   :  { %691 = vmatmul.mubr.f32.gmra.mxu1 %v123_v44 }
  0x7e   :  { %1539 = vmatprep.mubr.msk.f32.mxu1 %vm164_vm0, %v126_v45 }
  0x7f   :  { %536 = vmatmul.mubr.f32.gmra.mxu0 %v61_v46 }
  0x80   :  { %1508 = vmatprep.mubr.msk.f32.mxu0 %vm164_vm0, %v64_v47 }
  0x81   :  { %696 = vmatmul.mubr.f32.gmra.mxu1 %v125_v48 }
  0x82   :  { %1540 = vmatprep.mubr.msk.f32.mxu1 %vm164_vm0, %v128_v49 }
  0x83   :  { %541 = vmatmul.mubr.f32.gmra.mxu0 %v63_v50 }
  0x84   :  { %1509 = vmatprep.mubr.msk.f32.mxu0 %vm164_vm0, %v66_v51 }
  0x85   :  { %701 = vmatmul.mubr.f32.gmra.mxu1 %v127_v52 }
  0x86   :  { %1541 = vmatprep.mubr.msk.f32.mxu1 %vm164_vm0, %v130_v53 }
  0x87   :  { %546 = vmatmul.mubr.f32.gmra.mxu0 %v65_v54 }
  0x88   :  { %1510 = vmatprep.mubr.msk.f32.mxu0 %vm164_vm0, %v68_v55 }
  0x89   :  { %706 = vmatmul.mubr.f32.gmra.mxu1 %v129_v56 }
  0x8a   :  { %1542 = vmatprep.mubr.msk.f32.mxu1 %vm164_vm0, %v132_v57 }
  0x8b   :  { %551 = vmatmul.mubr.f32.gmra.mxu0 %v67_v58 }
  0x8c   :  { %1511 = vmatprep.mubr.msk.f32.mxu0 %vm164_vm0, %v70_v59 }
  0x8d   :  { %711 = vmatmul.mubr.f32.gmra.mxu1 %v131_v60 }
  0x8e   :  { %1543 = vmatprep.mubr.msk.f32.mxu1 %vm164_vm0, %v134_v61 }
  0x8f   :  { %556 = vmatmul.mubr.f32.gmra.mxu0 %v69_v62 }
  0x90   :  { %1512 = vmatprep.mubr.msk.f32.mxu0 %vm164_vm0, %v72_v63 }
  0x91   :  { %716 = vmatmul.mubr.f32.gmra.mxu1 %v133_v0 }
  0x92   :  { %1544 = vmatprep.mubr.msk.f32.mxu1 %vm164_vm0, %v136_v1 }
  0x93   :  { %561 = vmatmul.mubr.f32.gmra.mxu0 %v71_v2 }
  0x94   :  { %1513 = vmatprep.mubr.msk.f32.mxu0 %vm164_vm0, %v74_v3 }
  0x95   :  { %721 = vmatmul.mubr.f32.gmra.mxu1 %v135_v4 }
  0x96   :  { %1545 = vmatprep.mubr.msk.f32.mxu1 %vm164_vm0, %v138_v5 }
  0x97   :  { %566 = vmatmul.mubr.f32.gmra.mxu0 %v73_v6 }
  0x98   :  { %1514 = vmatprep.mubr.msk.f32.mxu0 %vm164_vm0, %v76_v7 }
  0x99   :  { %726 = vmatmul.mubr.f32.gmra.mxu1 %v137_v8 }
  0x9a   :  { %1546 = vmatprep.mubr.msk.f32.mxu1 %vm164_vm0, %v140_v9 }
  0x9b   :  { %571 = vmatmul.mubr.f32.gmra.mxu0 %v75_v10 }
  0x9c   :  { %1515 = vmatprep.mubr.msk.f32.mxu0 %vm164_vm0, %v78_v11 }
  0x9d   :  { %731 = vmatmul.mubr.f32.gmra.mxu1 %v139_v12 }
  0x9e   :  { %1547 = vmatprep.mubr.msk.f32.mxu1 %vm164_vm0, %v142_v13 }
  0x9f   :  { %576 = vmatmul.mubr.f32.gmra.mxu0 %v77_v14 }
  0xa0   :  { %1516 = vmatprep.mubr.msk.f32.mxu0 %vm164_vm0, %v80_v15 }
  0xa1   :  { %736 = vmatmul.mubr.f32.gmra.mxu1 %v141_v16 }
  0xa2   :  { %1548 = vmatprep.mubr.msk.f32.mxu1 %vm164_vm0, %v144_v17 }
  0xa3   :  { %581 = vmatmul.mubr.f32.gmra.mxu0 %v79_v18 }
  0xa5   :  { %741 = vmatmul.mubr.f32.gmra.mxu1 %v143_v19 }
  0xe7   :  { %v2161_v20 = vpop.f32.mrf.mxu0 }
  0xe9   :  { %v429_v21 = vpop.f32.mrf.mxu0  ;;  %v2163_v22 = vpop.f32.mrf.mxu1 }
  0xeb   :  { %v2165_v23 = vpop.f32.mrf.mxu0  ;;  %v589_v24 = vpop.f32.mrf.mxu1 }
  0xec   :  { %v748_v19 = vsel %vm746_vm2, %v2165_v23, 0.0 }
  0xed   :  { %v434_v25 = vpop.f32.mrf.mxu0  ;;  %v2167_v26 = vpop.f32.mrf.mxu1 }
  0xee   :  { %v747_v25 = vsel %vm746_vm2, %v2161_v20, 0.0 }
  0xef   :  { %v2169_v27 = vpop.f32.mrf.mxu0  ;;  %v594_v28 = vpop.f32.mrf.mxu1 }
  0xf0   :  { %v750_v28 = vsel %vm746_vm2, %v2169_v27, 0.0 }
  0xf1   :  { %v439_v29 = vpop.f32.mrf.mxu0  ;;  %v2171_v30 = vpop.f32.mrf.mxu1 }
  0xf2   :  { %v749_v29 = vadd.f32 %v748_v19, %v747_v25 }
  0xf3   :  { %v2173_v31 = vpop.f32.mrf.mxu0  ;;  %v599_v32 = vpop.f32.mrf.mxu1 }
  0xf5   :  { %v444_v33 = vpop.f32.mrf.mxu0  ;;  %v2175_v34 = vpop.f32.mrf.mxu1 }
  0xf7   :  { %v2177_v35 = vpop.f32.mrf.mxu0  ;;  %v604_v36 = vpop.f32.mrf.mxu1 }
  0xf8   :  { %v752_v36 = vsel %vm746_vm2, %v2173_v31, 0.0 }
  0xf9   :  { %v449_v37 = vpop.f32.mrf.mxu0  ;;  %v2179_v38 = vpop.f32.mrf.mxu1 }
  0xfa   :  { %v751_v37 = vadd.f32 %v750_v28, %v749_v29 }
  0xfb   :  { %v2181_v39 = vpop.f32.mrf.mxu0  ;;  %v609_v40 = vpop.f32.mrf.mxu1 }
  0xfd   :  { %v454_v41 = vpop.f32.mrf.mxu0  ;;  %v2183_v42 = vpop.f32.mrf.mxu1 }
  0xff   :  { %v2185_v43 = vpop.f32.mrf.mxu0  ;;  %v614_v44 = vpop.f32.mrf.mxu1 }
 0x100   :  { %v754_v44 = vsel %vm746_vm2, %v2177_v35, 0.0 }
 0x101   :  { %v459_v45 = vpop.f32.mrf.mxu0  ;;  %v2187_v46 = vpop.f32.mrf.mxu1 }
 0x102   :  { %v753_v45 = vadd.f32 %v752_v36, %v751_v37 }
 0x103   :  { %v2189_v47 = vpop.f32.mrf.mxu0  ;;  %v619_v48 = vpop.f32.mrf.mxu1 }
 0x105   :  { %v464_v49 = vpop.f32.mrf.mxu0  ;;  %v2191_v50 = vpop.f32.mrf.mxu1 }
 0x107   :  { %v2193_v51 = vpop.f32.mrf.mxu0  ;;  %v624_v52 = vpop.f32.mrf.mxu1 }
 0x108   :  { %v756_v52 = vsel %vm746_vm2, %v2181_v39, 0.0 }
 0x109   :  { %v469_v53 = vpop.f32.mrf.mxu0  ;;  %v2195_v54 = vpop.f32.mrf.mxu1 }
 0x10a   :  { %v755_v53 = vadd.f32 %v754_v44, %v753_v45 }
 0x10b   :  { %v2197_v55 = vpop.f32.mrf.mxu0  ;;  %v629_v56 = vpop.f32.mrf.mxu1 }
 0x10c   :  { %v764_v19 = vsel %vm746_vm2, %v2197_v55, 0.0 }
 0x10d   :  { %v474_v57 = vpop.f32.mrf.mxu0  ;;  %v2199_v58 = vpop.f32.mrf.mxu1 }
 0x10f   :  { %v2201_v59 = vpop.f32.mrf.mxu0  ;;  %v634_v60 = vpop.f32.mrf.mxu1 }
 0x110   :  { %v758_v60 = vsel %vm746_vm2, %v2185_v43, 0.0  ;;  %v766_v29 = vsel %vm746_vm2, %v2201_v59, 0.0 }
 0x111   :  { %v479_v61 = vpop.f32.mrf.mxu0  ;;  %v2203_v62 = vpop.f32.mrf.mxu1 }
 0x112   :  { %v757_v61 = vadd.f32 %v756_v52, %v755_v53 }
 0x113   :  { %v2205_v63 = vpop.f32.mrf.mxu0  ;;  %v639_v0 = vpop.f32.mrf.mxu1 }
 0x115   :  { %v484_v1 = vpop.f32.mrf.mxu0  ;;  %v2207_v2 = vpop.f32.mrf.mxu1 }
 0x117   :  { %v2209_v3 = vpop.f32.mrf.mxu0  ;;  %v644_v4 = vpop.f32.mrf.mxu1 }
 0x118   :  { %v760_v4 = vsel %vm746_vm2, %v2189_v47, 0.0  ;;  %v770_v52 = vsel %vm746_vm2, %v2209_v3, 0.0 }
 0x119   :  { %v489_v5 = vpop.f32.mrf.mxu0  ;;  %v2211_v6 = vpop.f32.mrf.mxu1 }
 0x11a   :  { %v759_v5 = vadd.f32 %v758_v60, %v757_v61 }
 0x11b   :  { %v2213_v7 = vpop.f32.mrf.mxu0  ;;  %v649_v8 = vpop.f32.mrf.mxu1 }
 0x11c   :  { %v772_v61 = vsel %vm746_vm2, %v2213_v7, 0.0 }
 0x11d   :  { %v494_v9 = vpop.f32.mrf.mxu0  ;;  %v2215_v10 = vpop.f32.mrf.mxu1 }
 0x11f   :  { %v2217_v11 = vpop.f32.mrf.mxu0  ;;  %v654_v12 = vpop.f32.mrf.mxu1 }
 0x120   :  { %v762_v12 = vsel %vm746_vm2, %v2193_v51, 0.0 }
 0x121   :  { %v499_v13 = vpop.f32.mrf.mxu0  ;;  %v2219_v14 = vpop.f32.mrf.mxu1 }
 0x122   :  { %v761_v13 = vadd.f32 %v760_v4, %v759_v5 }
 0x123   :  { %v2221_v15 = vpop.f32.mrf.mxu0  ;;  %v659_v16 = vpop.f32.mrf.mxu1 }
 0x125   :  { %v504_v17 = vpop.f32.mrf.mxu0  ;;  %v2223_v18 = vpop.f32.mrf.mxu1 }
 0x127   :  { %v2227_v21 = vpop.f32.mrf.mxu0  ;;  %v664_v24 = vpop.f32.mrf.mxu1 }
 0x128   :  { %v763_v24 = vadd.f32 %v762_v12, %v761_v13 }
 0x129   :  { %v509_v32 = vpop.f32.mrf.mxu0  ;;  %v2233_v33 = vpop.f32.mrf.mxu1 }
 0x12a   :  { %v765_v32 = vadd.f32 %v764_v19, %v763_v24  ;;  %v776_v19 = vsel %vm746_vm2, %v2221_v15, 0.0 }
 0x12b   :  { %v2237_v40 = vpop.f32.mrf.mxu0  ;;  %v669_v41 = vpop.f32.mrf.mxu1 }
 0x12c   :  { %v768_v41 = vsel %vm746_vm2, %v2205_v63, 0.0  ;;  %v767_v44 = vadd.f32 %v766_v29, %v765_v32  ;;  %v778_v32 = vsel %vm746_vm2, %v2227_v21, 0.0 }
 0x12d   :  { %v514_v48 = vpop.f32.mrf.mxu0  ;;  %v2241_v49 = vpop.f32.mrf.mxu1 }
 0x12e   :  { %v769_v53 = vadd.f32 %v768_v41, %v767_v44 }
 0x12f   :  { %v2245_v56 = vpop.f32.mrf.mxu0  ;;  %v674_v57 = vpop.f32.mrf.mxu1 }
 0x130   :  { %4007 = vst [vmem:[#allocation2_spill] sm:$0xff] %v2245_v56 }
 0x131   :  { %v519_v0 = vpop.f32.mrf.mxu0  ;;  %v2249_v1 = vpop.f32.mrf.mxu1 }
 0x132   :  { %v771_v0 = vadd.f32 %v770_v52, %v769_v53 }
 0x133   :  { %v2253_v8 = vpop.f32.mrf.mxu0  ;;  %v679_v9 = vpop.f32.mrf.mxu1 }
 0x134   :  { %4008 = vst [vmem:[#allocation3_spill] sm:$0xff] %v2253_v8  ;;  %v774_v9 = vsel %vm746_vm2, %v2217_v11, 0.0  ;;  %v773_v12 = vadd.f32 %v772_v61, %v771_v0  ;;  %v782_v61 = vsel %vm746_vm2, %v2245_v56, 0.0 }
 0x135   :  { %v524_v16 = vpop.f32.mrf.mxu0  ;;  %v2257_v17 = vpop.f32.mrf.mxu1 }
 0x136   :  { %v775_v24 = vadd.f32 %v774_v9, %v773_v12  ;;  %v784_v12 = vsel %vm746_vm2, %v2253_v8, 0.0 }
 0x137   :  { %v2261_v25 = vpop.f32.mrf.mxu0  ;;  %v684_v28 = vpop.f32.mrf.mxu1 }
 0x138   :  { %4009 = vst [vmem:[#allocation4_spill] sm:$0xff] %v2261_v25 }
 0x139   :  { %v529_v36 = vpop.f32.mrf.mxu0  ;;  %v2265_v37 = vpop.f32.mrf.mxu1 }
 0x13a   :  { %v777_v36 = vadd.f32 %v776_v19, %v775_v24 }
 0x13b   :  { %v2269_v45 = vpop.f32.mrf.mxu0  ;;  %v689_v48 = vpop.f32.mrf.mxu1 }
 0x13c   :  { %4010 = vst [vmem:[#allocation5_spill] sm:$0xff] %v2269_v45  ;;  %v780_v48 = vsel %vm746_vm2, %v2237_v40, 0.0  ;;  %v779_v52 = vadd.f32 %v778_v32, %v777_v36 }
 0x13d   :  { %v534_v57 = vpop.f32.mrf.mxu0  ;;  %v2273_v60 = vpop.f32.mrf.mxu1 }
 0x13e   :  { %v781_v0 = vadd.f32 %v780_v48, %v779_v52  ;;  %v788_v48 = vsel %vm746_vm2, %v2269_v45, 0.0 }
 0x13f   :  { %v2277_v4 = vpop.f32.mrf.mxu0  ;;  %v694_v5 = vpop.f32.mrf.mxu1 }
 0x140   :  { %4011 = vst [vmem:[#allocation6_spill] sm:$0xff] %v2277_v4 }
 0x141   :  { %v539_v13 = vpop.f32.mrf.mxu0  ;;  %v2281_v16 = vpop.f32.mrf.mxu1 }
 0x142   :  { %v783_v13 = vadd.f32 %v782_v61, %v781_v0  ;;  %v790_v61 = vsel %vm746_vm2, %v2277_v4, 0.0 }
 0x143   :  { %v2285_v28 = vpop.f32.mrf.mxu0  ;;  %v699_v29 = vpop.f32.mrf.mxu1 }
 0x144   :  { %4012 = vst [vmem:[#allocation7_spill] sm:$0xff] %v2285_v28  ;;  %v786_v29 = vsel %vm746_vm2, %v2261_v25, 0.0  ;;  %v785_v32 = vadd.f32 %v784_v12, %v783_v13  ;;  %v792_v12 = vsel %vm746_vm2, %v2285_v28, 0.0 }
 0x145   :  { %v544_v41 = vpop.f32.mrf.mxu0  ;;  %v2289_v44 = vpop.f32.mrf.mxu1 }
 0x146   :  { %v787_v52 = vadd.f32 %v786_v29, %v785_v32 }
 0x147   :  { %v2293_v53 = vpop.f32.mrf.mxu0  ;;  %v704_v57 = vpop.f32.mrf.mxu1 }
 0x148   :  { %4013 = vst [vmem:[#allocation8_spill] sm:$0xff] %v2293_v53  ;;  %v789_v0 = vadd.f32 %v788_v48, %v787_v52  ;;  %v794_v29 = vsel %vm746_vm2, %v2293_v53, 0.0 }
 0x149   :  { %v549_v5 = vpop.f32.mrf.mxu0  ;;  %v2297_v9 = vpop.f32.mrf.mxu1 }
 0x14a   :  { %v791_v13 = vadd.f32 %v790_v61, %v789_v0 }
 0x14b   :  { %v2301_v19 = vpop.f32.mrf.mxu0  ;;  %v709_v24 = vpop.f32.mrf.mxu1 }
 0x14c   :  { %4014 = vst [vmem:[#allocation9_spill] sm:$0xff] %v2301_v19  ;;  %v793_v32 = vadd.f32 %v792_v12, %v791_v13  ;;  %v796_v48 = vsel %vm746_vm2, %v2301_v19, 0.0 }
 0x14d   :  { %v554_v36 = vpop.f32.mrf.mxu0  ;;  %v2305_v41 = vpop.f32.mrf.mxu1 }
 0x14f   :  { %v2309_v57 = vpop.f32.mrf.mxu0  ;;  %v714_v5 = vpop.f32.mrf.mxu1 }
 0x150   :  { %4015 = vst [vmem:[#allocation10_spill] sm:$0xff] %v2309_v57  ;;  %v798_v61 = vsel %vm746_vm2, %v2309_v57, 0.0 }
 0x151   :  { %v559_v8 = vpop.f32.mrf.mxu0  ;;  %v2313_v24 = vpop.f32.mrf.mxu1 }
 0x152   :  { %4016 = vst [vmem:[#allocation11_spill] sm:$0xff] %v2313_v24  ;;  %v795_v8 = vadd.f32 %v794_v29, %v793_v32 }
 0x153   :  { %v2317_v36 = vpop.f32.mrf.mxu0  ;;  %v719_v25 = vpop.f32.mrf.mxu1 }
 0x154   :  { %4017 = vst [vmem:[#allocation12_spill] sm:$0xff] %v2317_v36  ;;  %v797_v0 = vadd.f32 %v796_v48, %v795_v8  ;;  %v800_v12 = vsel %vm746_vm2, %v2317_v36, 0.0 }
 0x155   :  { %v564_v45 = vpop.f32.mrf.mxu0  ;;  %v2321_v5 = vpop.f32.mrf.mxu1 }
 0x156   :  { %4018 = vst [vmem:[#allocation13_spill] sm:$0xff] %v2321_v5  ;;  %v799_v45 = vadd.f32 %v798_v61, %v797_v0 }
 0x157   :  { %v2325_v52 = vpop.f32.mrf.mxu0  ;;  %v724_v4 = vpop.f32.mrf.mxu1 }
 0x158   :  { %4019 = vst [vmem:[#allocation14_spill] sm:$0xff] %v2325_v52  ;;  %v802_v29 = vsel %vm746_vm2, %v2325_v52, 0.0  ;;  %v801_v32 = vadd.f32 %v800_v12, %v799_v45 }
 0x159   :  { %v569_v28 = vpop.f32.mrf.mxu0  ;;  %v2329_v25 = vpop.f32.mrf.mxu1 }
 0x15a   :  { %4020 = vst [vmem:[#allocation15_spill] sm:$0xff] %v2329_v25  ;;  %v803_v28 = vadd.f32 %v802_v29, %v801_v32 }
 0x15b   :  { %v2333_v13 = vpop.f32.mrf.mxu0  ;;  %v729_v53 = vpop.f32.mrf.mxu1 }
 0x15c   :  { %4021 = vst [vmem:[#allocation16_spill] sm:$0xff] %v2333_v13  ;;  %v804_v48 = vsel %vm746_vm2, %v2333_v13, 0.0 }
 0x15d   :  { %v574_v19 = vpop.f32.mrf.mxu0  ;;  %v2337_v4 = vpop.f32.mrf.mxu1  ;;  %v805_v0 = vadd.f32 %v804_v48, %v803_v28  ;;  %v814_v28 = vsel %vm746_vm2, %v2171_v30, 0.0 }
 0x15f   :  { %v2341_v8 = vpop.f32.mrf.mxu0  ;;  %v734_v57 = vpop.f32.mrf.mxu1 }
 0x160   :  { %4022 = vst [vmem:[#allocation17_spill] sm:$0xff] %v2341_v8  ;;  %v806_v61 = vsel %vm746_vm2, %v2341_v8, 0.0  ;;  %v810_v57 = vsel %vm746_vm2, %v2163_v22, 0.0 }
 0x161   :  { %v579_v36 = vpop.f32.mrf.mxu0  ;;  %v2345_v53 = vpop.f32.mrf.mxu1  ;;  %v807_v56 = vadd.f32 %v806_v61, %v805_v0  ;;  %v816_v0 = vsel %vm746_vm2, %v2175_v34, 0.0 }
 0x162   :  { %v812_v36 = vsel %vm746_vm2, %v2167_v26, 0.0 }
 0x163   :  { %v2347_v52 = vpop.f32.mrf.mxu0  ;;  %v739_v19 = vpop.f32.mrf.mxu1 }
 0x164   :  { %v808_v12 = vsel %vm746_vm2, %v2347_v52, 0.0 }
 0x165   :  { %v809_v45 = vadd.f32 %v808_v12, %v807_v56  ;;  %v584_v13 = vpop.f32.mrf.mxu0  ;;  %v2351_v29 = vpop.f32.mrf.mxu1  ;;  %v820_v12 = vsel %vm746_vm2, %v2183_v42, 0.0 }
 0x166   :  { %v818_v13 = vsel %vm746_vm2, %v2179_v38, 0.0 }
 0x167   :  { %v811_v32 = vadd.f32 %v810_v57, %v809_v45  ;;  %v744_v8 = vpop.f32.mrf.mxu1  ;;  %v822_v45 = vsel %vm746_vm2, %v2187_v46, 0.0 }
 0x169   :  { %v813_v48 = vadd.f32 %v812_v36, %v811_v32  ;;  %v824_v32 = vsel %vm746_vm2, %v2191_v50, 0.0 }
 0x16b   :  { %v815_v61 = vadd.f32 %v814_v28, %v813_v48  ;;  %v826_v48 = vsel %vm746_vm2, %v2195_v54, 0.0 }
 0x16d   :  { %v817_v56 = vadd.f32 %v816_v0, %v815_v61  ;;  %v828_v61 = vsel %vm746_vm2, %v2199_v58, 0.0 }
 0x16f   :  { %v819_v19 = vadd.f32 %v818_v13, %v817_v56  ;;  %v830_v56 = vsel %vm746_vm2, %v2203_v62, 0.0 }
 0x171   :  { %v821_v8 = vadd.f32 %v820_v12, %v819_v19  ;;  %v832_v19 = vsel %vm746_vm2, %v2207_v2, 0.0 }
 0x173   :  { %v823_v57 = vadd.f32 %v822_v45, %v821_v8  ;;  %v834_v8 = vsel %vm746_vm2, %v2211_v6, 0.0 }
 0x175   :  { %v825_v36 = vadd.f32 %v824_v32, %v823_v57  ;;  %v836_v57 = vsel %vm746_vm2, %v2215_v10, 0.0 }
 0x177   :  { %v827_v28 = vadd.f32 %v826_v48, %v825_v36  ;;  %v838_v36 = vsel %vm746_vm2, %v2219_v14, 0.0 }
 0x179   :  { %v829_v0 = vadd.f32 %v828_v61, %v827_v28  ;;  %v840_v28 = vsel %vm746_vm2, %v2223_v18, 0.0 }
 0x17b   :  { %v831_v13 = vadd.f32 %v830_v56, %v829_v0  ;;  %v842_v0 = vsel %vm746_vm2, %v2233_v33, 0.0 }
 0x17d   :  { %v833_v12 = vadd.f32 %v832_v19, %v831_v13  ;;  %v844_v13 = vsel %vm746_vm2, %v2241_v49, 0.0 }
 0x17f   :  { %v835_v45 = vadd.f32 %v834_v8, %v833_v12  ;;  %v846_v12 = vsel %vm746_vm2, %v2249_v1, 0.0 }
 0x181   :  { %v837_v32 = vadd.f32 %v836_v57, %v835_v45  ;;  %v848_v45 = vsel %vm746_vm2, %v2257_v17, 0.0 }
 0x183   :  { %v839_v48 = vadd.f32 %v838_v36, %v837_v32  ;;  %v850_v32 = vsel %vm746_vm2, %v2265_v37, 0.0 }
 0x185   :  { %v841_v61 = vadd.f32 %v840_v28, %v839_v48  ;;  %v852_v48 = vsel %vm746_vm2, %v2273_v60, 0.0 }
 0x187   :  { %v843_v56 = vadd.f32 %v842_v0, %v841_v61  ;;  %v854_v61 = vsel %vm746_vm2, %v2281_v16, 0.0 }
 0x189   :  { %v845_v19 = vadd.f32 %v844_v13, %v843_v56  ;;  %v856_v56 = vsel %vm746_vm2, %v2289_v44, 0.0 }
 0x18b   :  { %v847_v8 = vadd.f32 %v846_v12, %v845_v19  ;;  %v858_v19 = vsel %vm746_vm2, %v2297_v9, 0.0 }
 0x18d   :  { %v849_v57 = vadd.f32 %v848_v45, %v847_v8  ;;  %v860_v8 = vsel %vm746_vm2, %v2305_v41, 0.0 }
 0x18f   :  { %v851_v36 = vadd.f32 %v850_v32, %v849_v57  ;;  %v862_v57 = vsel %vm746_vm2, %v2313_v24, 0.0 }
 0x191   :  { %v853_v28 = vadd.f32 %v852_v48, %v851_v36  ;;  %v864_v36 = vsel %vm746_vm2, %v2321_v5, 0.0 }
 0x193   :  { %v855_v0 = vadd.f32 %v854_v61, %v853_v28  ;;  %v866_v28 = vsel %vm746_vm2, %v2329_v25, 0.0 }
 0x195   :  { %v857_v13 = vadd.f32 %v856_v56, %v855_v0  ;;  %v868_v0 = vsel %vm746_vm2, %v2337_v4, 0.0 }
 0x197   :  { %v859_v12 = vadd.f32 %v858_v19, %v857_v13  ;;  %v870_v13 = vsel %vm746_vm2, %v2345_v53, 0.0 }
 0x199   :  { %v861_v45 = vadd.f32 %v860_v8, %v859_v12  ;;  %v872_v12 = vsel %vm746_vm2, %v2351_v29, 0.0 }
 0x19b   :  { %v863_v32 = vadd.f32 %v862_v57, %v861_v45 }
 0x19d   :  { %v865_v48 = vadd.f32 %v864_v36, %v863_v32 }
 0x19f   :  { %v867_v61 = vadd.f32 %v866_v28, %v865_v48 }
 0x1a1   :  { %v869_v56 = vadd.f32 %v868_v0, %v867_v61 }
 0x1a3   :  { %v871_v19 = vadd.f32 %v870_v13, %v869_v56 }
 0x1a5   :  { %v873_v8 = vadd.f32 %v872_v12, %v871_v19 }
 0x1a7   :  { %v874_v45 = vrot.slane %v873_v8, 4 }
 0x1a9   :  { %v875_v57 = vadd.f32 %v874_v45, %v873_v8 }
 0x1ab   :  { %v876_v5 = vrot.slane %v875_v57, 2 }
 0x1ad   :  { %v877_v32 = vadd.f32 %v876_v5, %v875_v57 }
 0x1af   :  { %v878_v36 = vrot.slane %v877_v32, 1 }
 0x1b1   :  { %v879_v24 = vadd.f32 %v878_v36, %v877_v32 }
 0x1b3   :  { %v2417_v25 = vmul.f32 0.001953125, %v879_v24 }
 0x1b5   :  { %v2421_v48 = vsub.f32 %v2161_v20, %v2417_v25  ;;  %v2425_v28 = vsub.f32 %v2165_v23, %v2417_v25  ;;  %v2429_v61 = vsub.f32 %v2169_v27, %v2417_v25  ;;  %v2433_v0 = vsub.f32 %v2173_v31, %v2417_v25 }
 0x1b6   :  { %v2441_v20 = vsub.f32 %v2177_v35, %v2417_v25  ;;  %v2447_v27 = vsub.f32 %v2181_v39, %v2417_v25  ;;  %v2455_v12 = vsub.f32 %v2185_v43, %v2417_v25  ;;  %v2462_v39 = vsub.f32 %v2189_v47, %v2417_v25 }
 0x1b7   :  { %v946_v24 = vmul.f32 %v2421_v48, %v2421_v48  ;;  %v947_v5 = vmul.f32 %v2425_v28, %v2425_v28  ;;  %v948_v23 = vmul.f32 %v2429_v61, %v2429_v61  ;;  %v949_v31 = vmul.f32 %v2433_v0, %v2433_v0 }
 0x1b8   :  { %v950_v35 = vmul.f32 %v2441_v20, %v2441_v20  ;;  %v951_v57 = vmul.f32 %v2447_v27, %v2447_v27  ;;  %v2469_v43 = vsub.f32 %v2193_v51, %v2417_v25  ;;  %v2476_v47 = vsub.f32 %v2197_v55, %v2417_v25 }
 0x1b9   :  { %v1010_v56 = vsel %vm746_vm2, %v946_v24, 0.0  ;;  %v1011_v13 = vsel %vm746_vm2, %v947_v5, 0.0  ;;  %v1013_v8 = vsel %vm746_vm2, %v948_v23, 0.0  ;;  %v1015_v32 = vsel %vm746_vm2, %v949_v31, 0.0 }
 0x1ba   :  { %v1012_v19 = vadd.f32 %v1011_v13, %v1010_v56  ;;  %v952_v24 = vmul.f32 %v2455_v12, %v2455_v12  ;;  %v1017_v5 = vsel %vm746_vm2, %v950_v35, 0.0  ;;  %v953_v56 = vmul.f32 %v2462_v39, %v2462_v39 }
 0x1bb   :  { %v1019_v31 = vsel %vm746_vm2, %v951_v57, 0.0  ;;  %v2483_v51 = vsub.f32 %v2201_v59, %v2417_v25  ;;  %v2490_v55 = vsub.f32 %v2205_v63, %v2417_v25  ;;  %v2497_v59 = vsub.f32 %v2209_v3, %v2417_v25 }
 0x1bc   :  { %v1014_v45 = vadd.f32 %v1013_v8, %v1012_v19  ;;  %v954_v19 = vmul.f32 %v2469_v43, %v2469_v43  ;;  %v1021_v35 = vsel %vm746_vm2, %v952_v24, 0.0  ;;  %v1023_v57 = vsel %vm746_vm2, %v953_v56, 0.0 }
 0x1bd   :  { %v2504_v63 = vsub.f32 %v2213_v7, %v2417_v25  ;;  %v2511_v3 = vsub.f32 %v2217_v11, %v2417_v25  ;;  %v2518_v7 = vsub.f32 %v2221_v15, %v2417_v25  ;;  %v2525_v11 = vsub.f32 %v2227_v21, %v2417_v25 }
 0x1be   :  { %v1016_v36 = vadd.f32 %v1015_v32, %v1014_v45  ;;  %v955_v45 = vmul.f32 %v2476_v47, %v2476_v47  ;;  %v1025_v24 = vsel %vm746_vm2, %v954_v19, 0.0  ;;  %v2532_v15 = vsub.f32 %v2237_v40, %v2417_v25 }
 0x1c0   :  { %v1018_v23 = vadd.f32 %v1017_v5, %v1016_v36  ;;  %v956_v36 = vmul.f32 %v2483_v51, %v2483_v51  ;;  %v1027_v56 = vsel %vm746_vm2, %v955_v45, 0.0  ;;  %4023 = vst [vmem:[#allocation18_spill] sm:$0xff] %v2532_v15 }
 0x1c2   :  { %v1020_v13 = vadd.f32 %v1019_v31, %v1018_v23  ;;  %v957_v23 = vmul.f32 %v2490_v55, %v2490_v55  ;;  %v1029_v19 = vsel %vm746_vm2, %v956_v36, 0.0 }
 0x1c4   :  { %v1022_v8 = vadd.f32 %v1021_v35, %v1020_v13  ;;  %v958_v13 = vmul.f32 %v2497_v59, %v2497_v59  ;;  %v1031_v45 = vsel %vm746_vm2, %v957_v23, 0.0 }
 0x1c6   :  { %v1024_v32 = vadd.f32 %v1023_v57, %v1022_v8  ;;  %v959_v8 = vmul.f32 %v2504_v63, %v2504_v63  ;;  %v1033_v36 = vsel %vm746_vm2, %v958_v13, 0.0 }
 0x1c8   :  { %v1026_v5 = vadd.f32 %v1025_v24, %v1024_v32  ;;  %v960_v32 = vmul.f32 %v2511_v3, %v2511_v3  ;;  %v1035_v23 = vsel %vm746_vm2, %v959_v8, 0.0 }
 0x1ca   :  { %v1028_v31 = vadd.f32 %v1027_v56, %v1026_v5  ;;  %v961_v5 = vmul.f32 %v2518_v7, %v2518_v7  ;;  %v1037_v13 = vsel %vm746_vm2, %v960_v32, 0.0 }
 0x1cc   :  { %v1030_v35 = vadd.f32 %v1029_v19, %v1028_v31  ;;  %v4024_v31 = vld [vmem:[#allocation2_spill] sm:$0xff]  ;;  %v962_v19 = vmul.f32 %v2525_v11, %v2525_v11  ;;  %v1039_v8 = vsel %vm746_vm2, %v961_v5, 0.0 }
 0x1cd   :  { %v2539_v21 = vsub.f32 %v4024_v31, %v2417_v25 }
 0x1ce   :  { %v1032_v57 = vadd.f32 %v1031_v45, %v1030_v35  ;;  %v4026_v45 = vld [vmem:[#allocation3_spill] sm:$0xff]  ;;  %v1041_v32 = vsel %vm746_vm2, %v962_v19, 0.0 }
 0x1cf   :  { %4025 = vst [vmem:[#allocation2_spill] sm:$0xff] %v2539_v21  ;;  %v2546_v40 = vsub.f32 %v4026_v45, %v2417_v25  ;;  %v964_v31 = vmul.f32 %v2539_v21, %v2539_v21 }
 0x1d0   :  { %v1034_v24 = vadd.f32 %v1033_v36, %v1032_v57  ;;  %v963_v57 = vmul.f32 %v2532_v15, %v2532_v15 }
 0x1d1   :  { %4027 = vst [vmem:[#allocation3_spill] sm:$0xff] %v2546_v40  ;;  %v965_v15 = vmul.f32 %v2546_v40, %v2546_v40  ;;  %v1045_v19 = vsel %vm746_vm2, %v964_v31, 0.0 }
 0x1d2   :  { %v1036_v56 = vadd.f32 %v1035_v23, %v1034_v24  ;;  %v4028_v24 = vld [vmem:[#allocation4_spill] sm:$0xff]  ;;  %v1043_v5 = vsel %vm746_vm2, %v963_v57, 0.0 }
 0x1d3   :  { %v2553_v23 = vsub.f32 %v4028_v24, %v2417_v25  ;;  %v1047_v57 = vsel %vm746_vm2, %v965_v15, 0.0 }
 0x1d4   :  { %v1038_v35 = vadd.f32 %v1037_v13, %v1036_v56  ;;  %v4030_v13 = vld [vmem:[#allocation5_spill] sm:$0xff] }
 0x1d5   :  { %4029 = vst [vmem:[#allocation4_spill] sm:$0xff] %v2553_v23  ;;  %v2560_v45 = vsub.f32 %v4030_v13, %v2417_v25  ;;  %v966_v21 = vmul.f32 %v2553_v23, %v2553_v23 }
 0x1d6   :  { %v1040_v36 = vadd.f32 %v1039_v8, %v1038_v35  ;;  %v4032_v8 = vld [vmem:[#allocation6_spill] sm:$0xff] }
 0x1d7   :  { %4031 = vst [vmem:[#allocation5_spill] sm:$0xff] %v2560_v45  ;;  %v2567_v24 = vsub.f32 %v4032_v8, %v2417_v25  ;;  %v967_v40 = vmul.f32 %v2560_v45, %v2560_v45  ;;  %v1049_v31 = vsel %vm746_vm2, %v966_v21, 0.0 }
 0x1d8   :  { %v1042_v56 = vadd.f32 %v1041_v32, %v1040_v36  ;;  %v4034_v32 = vld [vmem:[#allocation7_spill] sm:$0xff] }
 0x1d9   :  { %4033 = vst [vmem:[#allocation6_spill] sm:$0xff] %v2567_v24  ;;  %v2574_v13 = vsub.f32 %v4034_v32, %v2417_v25  ;;  %v968_v23 = vmul.f32 %v2567_v24, %v2567_v24  ;;  %v1051_v15 = vsel %vm746_vm2, %v967_v40, 0.0 }
 0x1da   :  { %v1044_v35 = vadd.f32 %v1043_v5, %v1042_v56  ;;  %v4036_v5 = vld [vmem:[#allocation8_spill] sm:$0xff] }
 0x1db   :  { %4035 = vst [vmem:[#allocation7_spill] sm:$0xff] %v2574_v13  ;;  %v2581_v8 = vsub.f32 %v4036_v5, %v2417_v25  ;;  %v969_v45 = vmul.f32 %v2574_v13, %v2574_v13  ;;  %v1053_v21 = vsel %vm746_vm2, %v968_v23, 0.0 }
 0x1dc   :  { %v1046_v36 = vadd.f32 %v1045_v19, %v1044_v35  ;;  %v4038_v19 = vld [vmem:[#allocation9_spill] sm:$0xff] }
 0x1dd   :  { %4037 = vst [vmem:[#allocation8_spill] sm:$0xff] %v2581_v8  ;;  %v2588_v32 = vsub.f32 %v4038_v19, %v2417_v25  ;;  %v970_v24 = vmul.f32 %v2581_v8, %v2581_v8  ;;  %v1055_v40 = vsel %vm746_vm2, %v969_v45, 0.0 }
 0x1de   :  { %v1048_v56 = vadd.f32 %v1047_v57, %v1046_v36  ;;  %v4040_v57 = vld [vmem:[#allocation10_spill] sm:$0xff] }
 0x1df   :  { %4039 = vst [vmem:[#allocation9_spill] sm:$0xff] %v2588_v32  ;;  %v2595_v5 = vsub.f32 %v4040_v57, %v2417_v25  ;;  %v971_v13 = vmul.f32 %v2588_v32, %v2588_v32  ;;  %v1057_v23 = vsel %vm746_vm2, %v970_v24, 0.0 }
 0x1e0   :  { %v1050_v35 = vadd.f32 %v1049_v31, %v1048_v56  ;;  %v4042_v31 = vld [vmem:[#allocation12_spill] sm:$0xff] }
 0x1e1   :  { %4041 = vst [vmem:[#allocation10_spill] sm:$0xff] %v2595_v5  ;;  %v2602_v19 = vsub.f32 %v4042_v31, %v2417_v25  ;;  %v972_v8 = vmul.f32 %v2595_v5, %v2595_v5  ;;  %v1059_v45 = vsel %vm746_vm2, %v971_v13, 0.0 }
 0x1e2   :  { %v1052_v36 = vadd.f32 %v1051_v15, %v1050_v35  ;;  %v4043_v15 = vld [vmem:[#allocation14_spill] sm:$0xff] }
 0x1e3   :  { %v2609_v57 = vsub.f32 %v4043_v15, %v2417_v25  ;;  %v973_v32 = vmul.f32 %v2602_v19, %v2602_v19  ;;  %v1061_v24 = vsel %vm746_vm2, %v972_v8, 0.0 }
 0x1e4   :  { %v1054_v56 = vadd.f32 %v1053_v21, %v1052_v36  ;;  %v4044_v21 = vld [vmem:[#allocation16_spill] sm:$0xff] }
 0x1e5   :  { %v2616_v31 = vsub.f32 %v4044_v21, %v2417_v25  ;;  %v974_v5 = vmul.f32 %v2609_v57, %v2609_v57  ;;  %v1063_v13 = vsel %vm746_vm2, %v973_v32, 0.0 }
 0x1e6   :  { %v1056_v35 = vadd.f32 %v1055_v40, %v1054_v56  ;;  %v4045_v40 = vld [vmem:[#allocation17_spill] sm:$0xff] }
 0x1e7   :  { %v2623_v15 = vsub.f32 %v4045_v40, %v2417_v25  ;;  %v975_v21 = vmul.f32 %v2616_v31, %v2616_v31  ;;  %v1065_v8 = vsel %vm746_vm2, %v974_v5, 0.0 }
 0x1e8   :  { %v1058_v36 = vadd.f32 %v1057_v23, %v1056_v35  ;;  %v2630_v23 = vsub.f32 %v2347_v52, %v2417_v25  ;;  %v2644_v52 = vsub.f32 %v2167_v26, %v2417_v25  ;;  %v2658_v26 = vsub.f32 %v2175_v34, %v2417_v25 }
 0x1e9   :  { %v976_v40 = vmul.f32 %v2623_v15, %v2623_v15  ;;  %v1067_v32 = vsel %vm746_vm2, %v975_v21, 0.0  ;;  %v2672_v34 = vsub.f32 %v2183_v42, %v2417_v25  ;;  %v2686_v42 = vsub.f32 %v2191_v50, %v2417_v25 }
 0x1ea   :  { %v1060_v56 = vadd.f32 %v1059_v45, %v1058_v36  ;;  %v2637_v45 = vsub.f32 %v2163_v22, %v2417_v25  ;;  %v2651_v22 = vsub.f32 %v2171_v30, %v2417_v25  ;;  %v2665_v30 = vsub.f32 %v2179_v38, %v2417_v25 }
 0x1eb   :  { %v1069_v5 = vsel %vm746_vm2, %v976_v40, 0.0  ;;  %v2679_v38 = vsub.f32 %v2187_v46, %v2417_v25  ;;  %v2693_v46 = vsub.f32 %v2195_v54, %v2417_v25  ;;  %v2700_v50 = vsub.f32 %v2199_v58, %v2417_v25 }
 0x1ec   :  { %v1062_v35 = vadd.f32 %v1061_v24, %v1060_v56  ;;  %v977_v24 = vmul.f32 %v2630_v23, %v2630_v23  ;;  %v2707_v54 = vsub.f32 %v2203_v62, %v2417_v25  ;;  %v2714_v58 = vsub.f32 %v2207_v2, %v2417_v25 }
 0x1ed   :  { %v2721_v62 = vsub.f32 %v2211_v6, %v2417_v25  ;;  %v2728_v2 = vsub.f32 %v2215_v10, %v2417_v25  ;;  %v2735_v6 = vsub.f32 %v2219_v14, %v2417_v25  ;;  %v2742_v10 = vsub.f32 %v2223_v18, %v2417_v25 }
 0x1ee   :  { %v1064_v36 = vadd.f32 %v1063_v13, %v1062_v35  ;;  %v978_v13 = vmul.f32 %v2637_v45, %v2637_v45  ;;  %v1071_v21 = vsel %vm746_vm2, %v977_v24, 0.0  ;;  %v2749_v14 = vsub.f32 %v2233_v33, %v2417_v25 }
 0x1ef   :  { %v2756_v18 = vsub.f32 %v2241_v49, %v2417_v25  ;;  %v2763_v33 = vsub.f32 %v2249_v1, %v2417_v25  ;;  %v2770_v49 = vsub.f32 %v2257_v17, %v2417_v25  ;;  %v2777_v1 = vsub.f32 %v2265_v37, %v2417_v25 }
 0x1f0   :  { %v1066_v56 = vadd.f32 %v1065_v8, %v1064_v36  ;;  %v979_v8 = vmul.f32 %v2644_v52, %v2644_v52  ;;  %v1073_v40 = vsel %vm746_vm2, %v978_v13, 0.0  ;;  %v2784_v17 = vsub.f32 %v2273_v60, %v2417_v25 }
 0x1f1   :  { %v2791_v37 = vsub.f32 %v2281_v16, %v2417_v25  ;;  %v2798_v60 = vsub.f32 %v2289_v44, %v2417_v25  ;;  %v2805_v16 = vsub.f32 %v2297_v9, %v2417_v25  ;;  %v2812_v44 = vsub.f32 %v2305_v41, %v2417_v25 }
 0x1f2   :  { %v1068_v35 = vadd.f32 %v1067_v32, %v1066_v56  ;;  %v980_v32 = vmul.f32 %v2651_v22, %v2651_v22  ;;  %v1075_v24 = vsel %vm746_vm2, %v979_v8, 0.0 }
 0x1f3   :  { %4046 = vst [vmem:[#allocation12_spill] sm:$0xff] %v2791_v37  ;;  %4047 = vst [vmem:[#allocation14_spill] sm:$0xff] %v2798_v60 }
 0x1f4   :  { %v1070_v36 = vadd.f32 %v1069_v5, %v1068_v35  ;;  %v981_v5 = vmul.f32 %v2658_v26, %v2658_v26  ;;  %v1077_v13 = vsel %vm746_vm2, %v980_v32, 0.0  ;;  %4048 = vst [vmem:[#allocation16_spill] sm:$0xff] %v2805_v16  ;;  %4049 = vst [vmem:[#allocation17_spill] sm:$0xff] %v2812_v44 }
 0x1f6   :  { %v1072_v56 = vadd.f32 %v1071_v21, %v1070_v36  ;;  %v982_v21 = vmul.f32 %v2665_v30, %v2665_v30  ;;  %v1079_v8 = vsel %vm746_vm2, %v981_v5, 0.0 }
 0x1f8   :  { %v1074_v35 = vadd.f32 %v1073_v40, %v1072_v56  ;;  %v983_v40 = vmul.f32 %v2672_v34, %v2672_v34  ;;  %v1081_v32 = vsel %vm746_vm2, %v982_v21, 0.0 }
 0x1fa   :  { %v1076_v36 = vadd.f32 %v1075_v24, %v1074_v35  ;;  %v984_v24 = vmul.f32 %v2679_v38, %v2679_v38  ;;  %v1083_v5 = vsel %vm746_vm2, %v983_v40, 0.0 }
 0x1fc   :  { %v1078_v56 = vadd.f32 %v1077_v13, %v1076_v36  ;;  %v985_v13 = vmul.f32 %v2686_v42, %v2686_v42  ;;  %v1085_v21 = vsel %vm746_vm2, %v984_v24, 0.0 }
 0x1fe   :  { %v1080_v35 = vadd.f32 %v1079_v8, %v1078_v56  ;;  %v986_v8 = vmul.f32 %v2693_v46, %v2693_v46  ;;  %v1087_v40 = vsel %vm746_vm2, %v985_v13, 0.0 }
 0x200   :  { %v1082_v36 = vadd.f32 %v1081_v32, %v1080_v35  ;;  %v987_v32 = vmul.f32 %v2700_v50, %v2700_v50  ;;  %v1089_v24 = vsel %vm746_vm2, %v986_v8, 0.0 }
 0x202   :  { %v1084_v56 = vadd.f32 %v1083_v5, %v1082_v36  ;;  %v988_v5 = vmul.f32 %v2707_v54, %v2707_v54  ;;  %v1091_v13 = vsel %vm746_vm2, %v987_v32, 0.0 }
 0x204   :  { %v1086_v35 = vadd.f32 %v1085_v21, %v1084_v56  ;;  %v989_v21 = vmul.f32 %v2714_v58, %v2714_v58  ;;  %v1093_v8 = vsel %vm746_vm2, %v988_v5, 0.0 }
 0x206   :  { %v1088_v36 = vadd.f32 %v1087_v40, %v1086_v35  ;;  %v990_v40 = vmul.f32 %v2721_v62, %v2721_v62  ;;  %v1095_v32 = vsel %vm746_vm2, %v989_v21, 0.0 }
 0x208   :  { %v1090_v56 = vadd.f32 %v1089_v24, %v1088_v36  ;;  %v991_v24 = vmul.f32 %v2728_v2, %v2728_v2  ;;  %v1097_v5 = vsel %vm746_vm2, %v990_v40, 0.0 }
 0x20a   :  { %v1092_v35 = vadd.f32 %v1091_v13, %v1090_v56  ;;  %v992_v13 = vmul.f32 %v2735_v6, %v2735_v6  ;;  %v1099_v21 = vsel %vm746_vm2, %v991_v24, 0.0 }
 0x20c   :  { %v1094_v36 = vadd.f32 %v1093_v8, %v1092_v35  ;;  %v993_v8 = vmul.f32 %v2742_v10, %v2742_v10  ;;  %v1101_v40 = vsel %vm746_vm2, %v992_v13, 0.0 }
 0x20e   :  { %v1096_v56 = vadd.f32 %v1095_v32, %v1094_v36  ;;  %v994_v32 = vmul.f32 %v2749_v14, %v2749_v14  ;;  %v1103_v24 = vsel %vm746_vm2, %v993_v8, 0.0 }
 0x210   :  { %v1098_v35 = vadd.f32 %v1097_v5, %v1096_v56  ;;  %v995_v5 = vmul.f32 %v2756_v18, %v2756_v18  ;;  %v1105_v13 = vsel %vm746_vm2, %v994_v32, 0.0 }
 0x212   :  { %v1100_v36 = vadd.f32 %v1099_v21, %v1098_v35  ;;  %v996_v21 = vmul.f32 %v2763_v33, %v2763_v33  ;;  %v1107_v8 = vsel %vm746_vm2, %v995_v5, 0.0 }
 0x214   :  { %v1102_v56 = vadd.f32 %v1101_v40, %v1100_v36  ;;  %v997_v40 = vmul.f32 %v2770_v49, %v2770_v49  ;;  %v1109_v32 = vsel %vm746_vm2, %v996_v21, 0.0 }
 0x216   :  { %v1104_v35 = vadd.f32 %v1103_v24, %v1102_v56  ;;  %v998_v24 = vmul.f32 %v2777_v1, %v2777_v1  ;;  %v1111_v5 = vsel %vm746_vm2, %v997_v40, 0.0 }
 0x218   :  { %v1106_v36 = vadd.f32 %v1105_v13, %v1104_v35  ;;  %v999_v13 = vmul.f32 %v2784_v17, %v2784_v17  ;;  %v1113_v21 = vsel %vm746_vm2, %v998_v24, 0.0 }
 0x21a   :  { %v1108_v56 = vadd.f32 %v1107_v8, %v1106_v36  ;;  %v1000_v8 = vmul.f32 %v2791_v37, %v2791_v37  ;;  %v1115_v40 = vsel %vm746_vm2, %v999_v13, 0.0  ;;  %v1002_v37 = vmul.f32 %v2805_v16, %v2805_v16 }
 0x21c   :  { %v1110_v35 = vadd.f32 %v1109_v32, %v1108_v56  ;;  %v1001_v32 = vmul.f32 %v2798_v60, %v2798_v60  ;;  %v1117_v24 = vsel %vm746_vm2, %v1000_v8, 0.0  ;;  %v1003_v60 = vmul.f32 %v2812_v44, %v2812_v44 }
 0x21d   :  { %v1121_v8 = vsel %vm746_vm2, %v1002_v37, 0.0 }
 0x21e   :  { %v1112_v36 = vadd.f32 %v1111_v5, %v1110_v35  ;;  %v4050_v5 = vld [vmem:[#allocation11_spill] sm:$0xff]  ;;  %v1119_v13 = vsel %vm746_vm2, %v1001_v32, 0.0  ;;  %v1123_v32 = vsel %vm746_vm2, %v1003_v60, 0.0 }
 0x21f   :  { %v2819_v9 = vsub.f32 %v4050_v5, %v2417_v25 }
 0x220   :  { %v1114_v56 = vadd.f32 %v1113_v21, %v1112_v36  ;;  %v4052_v21 = vld [vmem:[#allocation13_spill] sm:$0xff] }
 0x221   :  { %4051 = vst [vmem:[#allocation11_spill] sm:$0xff] %v2819_v9  ;;  %v2826_v41 = vsub.f32 %v4052_v21, %v2417_v25  ;;  %v1004_v16 = vmul.f32 %v2819_v9, %v2819_v9 }
 0x222   :  { %v1116_v35 = vadd.f32 %v1115_v40, %v1114_v56  ;;  %v4054_v40 = vld [vmem:[#allocation15_spill] sm:$0xff] }
 0x223   :  { %4053 = vst [vmem:[#allocation13_spill] sm:$0xff] %v2826_v41  ;;  %v2833_v5 = vsub.f32 %v4054_v40, %v2417_v25  ;;  %v1005_v21 = vmul.f32 %v2826_v41, %v2826_v41  ;;  %v1125_v37 = vsel %vm746_vm2, %v1004_v16, 0.0 }
 0x224   :  { %v1118_v36 = vadd.f32 %v1117_v24, %v1116_v35  ;;  %v2840_v24 = vsub.f32 %v2337_v4, %v2417_v25  ;;  %v2854_v4 = vsub.f32 %v2351_v29, %v2417_v25 }
 0x225   :  { %4055 = vst [vmem:[#allocation15_spill] sm:$0xff] %v2833_v5  ;;  %v1006_v40 = vmul.f32 %v2833_v5, %v2833_v5  ;;  %v1127_v60 = vsel %vm746_vm2, %v1005_v21, 0.0 }
 0x226   :  { %v1120_v56 = vadd.f32 %v1119_v13, %v1118_v36  ;;  %4056 = vst [vmem:[#allocation19_spill] sm:$0xff] %v2840_v24  ;;  %v2847_v13 = vsub.f32 %v2345_v53, %v2417_v25  ;;  %v1009_v16 = vmul.f32 %v2854_v4, %v2854_v4 }
 0x228   :  { %v1122_v35 = vadd.f32 %v1121_v8, %v1120_v56  ;;  %4057 = vst [vmem:[#allocation20_spill] sm:$0xff] %v2847_v13  ;;  %v1007_v8 = vmul.f32 %v2840_v24, %v2840_v24  ;;  %v1008_v53 = vmul.f32 %v2847_v13, %v2847_v13  ;;  %v1135_v24 = vsel %vm746_vm2, %v1009_v16, 0.0  ;;  %v4061_v16 = vld [vmem:[#allocation4_spill] sm:$0xff] }
 0x22a   :  { %v1124_v36 = vadd.f32 %v1123_v32, %v1122_v35  ;;  %v1129_v32 = vsel %vm746_vm2, %v1006_v40, 0.0  ;;  %v1133_v25 = vsel %vm746_vm2, %v1008_v53, 0.0  ;;  %v4060_v53 = vld [vmem:[#allocation3_spill] sm:$0xff] }
 0x22c   :  { %v1126_v56 = vadd.f32 %v1125_v37, %v1124_v36  ;;  %v1131_v36 = vsel %vm746_vm2, %v1007_v8, 0.0 }
 0x22e   :  { %v1128_v35 = vadd.f32 %v1127_v60, %v1126_v56 }
 0x230   :  { %v1130_v41 = vadd.f32 %v1129_v32, %v1128_v35 }
 0x232   :  { %v1132_v37 = vadd.f32 %v1131_v36, %v1130_v41  ;;  %v4062_v36 = vld [vmem:[#allocation5_spill] sm:$0xff] }
 0x234   :  { %v1134_v29 = vadd.f32 %v1133_v25, %v1132_v37  ;;  %v4063_v37 = vld [vmem:[#allocation6_spill] sm:$0xff] }
 0x236   :  { %v1136_v5 = vadd.f32 %v1135_v24, %v1134_v29  ;;  %v4058_v24 = vld [vmem:[#allocation18_spill] sm:$0xff]  ;;  %v4064_v29 = vld [vmem:[#allocation7_spill] sm:$0xff] }
 0x238   :  { %v1137_v21 = vrot.slane %v1136_v5, 4 }
 0x23a   :  { %v1138_v56 = vadd.f32 %v1137_v21, %v1136_v5 }
 0x23c   :  { %v1139_v60 = vrot.slane %v1138_v56, 2 }
 0x23e   :  { %v1140_v9 = vadd.f32 %v1139_v60, %v1138_v56  ;;  %v4065_v56 = vld [vmem:[#allocation8_spill] sm:$0xff] }
 0x240   :  { %v1141_v13 = vrot.slane %v1140_v9, 1 }
 0x242   :  { %v1142_v44 = vadd.f32 %v1141_v13, %v1140_v9  ;;  %v4059_v13 = vld [vmem:[#allocation2_spill] sm:$0xff] }
 0x244   :  { %v1143_v40 = vmul.f32 0.001953125, %v1142_v44 }
 0x246   :  { %v1144_v35 = vadd.f32 1e-05, %v1143_v40  ;;  %v4066_v40 = vld [vmem:[#allocation9_spill] sm:$0xff] }
 0x248   :  { %1590 = vrsqrt.f32 %v1144_v35 }
 0x255   :  { %v2867_v32 = vpop.eup %1590 }
 0x256   :  { %v2871_v41 = vmul.f32 %v2867_v32, %v2421_v48  ;;  %v2875_v8 = vmul.f32 %v2867_v32, %v2425_v28  ;;  %v2879_v5 = vmul.f32 %v2867_v32, %v2429_v61  ;;  %v2883_v9 = vmul.f32 %v2867_v32, %v2433_v0 }
 0x257   :  { %v2887_v44 = vmul.f32 %v2867_v32, %v2441_v20  ;;  %v2891_v48 = vmul.f32 %v2867_v32, %v2447_v27  ;;  %v2895_v28 = vmul.f32 %v2867_v32, %v2455_v12  ;;  %v2899_v61 = vmul.f32 %v2867_v32, %v2462_v39 }
 0x258   :  { %v2903_v0 = vmul.f32 %v2867_v32, %v2469_v43  ;;  %v2907_v20 = vmul.f32 %v2867_v32, %v2476_v47  ;;  %v2911_v27 = vmul.f32 %v2867_v32, %v2483_v51  ;;  %v2915_v12 = vmul.f32 %v2867_v32, %v2490_v55 }
 0x259   :  { %v2919_v39 = vmul.f32 %v2867_v32, %v2497_v59  ;;  %v2923_v43 = vmul.f32 %v2867_v32, %v2504_v63  ;;  %v2927_v47 = vmul.f32 %v2867_v32, %v2511_v3  ;;  %v2931_v51 = vmul.f32 %v2867_v32, %v2518_v7 }
 0x25a   :  { %v2935_v55 = vmul.f32 %v2867_v32, %v2525_v11  ;;  %v2939_v59 = vmul.f32 %v2867_v32, %v4058_v24  ;;  %v2943_v63 = vmul.f32 %v2867_v32, %v4059_v13  ;;  %v2947_v3 = vmul.f32 %v2867_v32, %v4060_v53  ;;  %v4067_v24 = vld [vmem:[#allocation10_spill] sm:$0xff] }
 0x25b   :  { %v2951_v7 = vmul.f32 %v2867_v32, %v4061_v16  ;;  %v2955_v11 = vmul.f32 %v2867_v32, %v4062_v36  ;;  %v2959_v25 = vmul.f32 %v2867_v32, %v4063_v37  ;;  %v2963_v21 = vmul.f32 %v2867_v32, %v4064_v29 }
 0x25c   :  { %v2967_v60 = vmul.f32 %v2867_v32, %v4065_v56  ;;  %v2971_v35 = vmul.f32 %v2867_v32, %v4066_v40  ;;  %v2975_v13 = vmul.f32 %v2867_v32, %v4067_v24  ;;  %v2979_v53 = vmul.f32 %v2867_v32, %v2602_v19  ;;  %v4072_v56 = vld [vmem:[#allocation12_spill] sm:$0xff]  ;;  %v4074_v40 = vld [vmem:[#allocation14_spill] sm:$0xff] }
 0x25d   :  { %v2983_v16 = vmul.f32 %v2867_v32, %v2609_v57  ;;  %v2987_v36 = vmul.f32 %v2867_v32, %v2616_v31  ;;  %v2991_v37 = vmul.f32 %v2867_v32, %v2623_v15  ;;  %v2995_v29 = vmul.f32 %v2867_v32, %v2630_v23  ;;  %v4076_v24 = vld [vmem:[#allocation16_spill] sm:$0xff] }
 0x25e   :  { %v2999_v19 = vmul.f32 %v2867_v32, %v2637_v45  ;;  %v3003_v57 = vmul.f32 %v2867_v32, %v2644_v52  ;;  %v3007_v31 = vmul.f32 %v2867_v32, %v2651_v22  ;;  %v3011_v15 = vmul.f32 %v2867_v32, %v2658_v26 }
 0x25f   :  { %v3015_v23 = vmul.f32 %v2867_v32, %v2665_v30  ;;  %v3019_v45 = vmul.f32 %v2867_v32, %v2672_v34  ;;  %v3023_v52 = vmul.f32 %v2867_v32, %v2679_v38  ;;  %v3027_v22 = vmul.f32 %v2867_v32, %v2686_v42 }
 0x260   :  { %v3031_v26 = vmul.f32 %v2867_v32, %v2693_v46  ;;  %v3035_v30 = vmul.f32 %v2867_v32, %v2700_v50  ;;  %v3039_v34 = vmul.f32 %v2867_v32, %v2707_v54  ;;  %v3043_v38 = vmul.f32 %v2867_v32, %v2714_v58 }
 0x261   :  { %v3047_v42 = vmul.f32 %v2867_v32, %v2721_v62  ;;  %v3051_v46 = vmul.f32 %v2867_v32, %v2728_v2  ;;  %v3055_v50 = vmul.f32 %v2867_v32, %v2735_v6  ;;  %v3059_v54 = vmul.f32 %v2867_v32, %v2742_v10 }
 0x262   :  { %v3063_v58 = vmul.f32 %v2867_v32, %v2749_v14  ;;  %v3067_v62 = vmul.f32 %v2867_v32, %v2756_v18  ;;  %v3071_v2 = vmul.f32 %v2867_v32, %v2763_v33  ;;  %v3075_v6 = vmul.f32 %v2867_v32, %v2770_v49  ;;  %v3096_v49 = vld [vmem:[%s3969_s2] ss:$0 sm:$0xff] }
 0x263   :  { %v3079_v10 = vmul.f32 %v2867_v32, %v2777_v1  ;;  %v3083_v14 = vmul.f32 %v2867_v32, %v2784_v17  ;;  %v3087_v18 = vmul.f32 %v2867_v32, %v4072_v56  ;;  %v3091_v33 = vmul.f32 %v2867_v32, %v4074_v40 }
 0x264   :  { %4068 = vst [vmem:[#allocation18_spill] sm:$0xff] %v3071_v2  ;;  %4069 = vst [vmem:[#allocation2_spill] sm:$0xff] %v3075_v6  ;;  %v3100_v1 = vmul.f32 %v2867_v32, %v4076_v24  ;;  %v4082_v2 = vld [vmem:[#allocation19_spill] sm:$0xff] }
 0x265   :  { %4070 = vst [vmem:[#allocation3_spill] sm:$0xff] %v3079_v10  ;;  %4071 = vst [vmem:[#allocation4_spill] sm:$0xff] %v3083_v14  ;;  %v4078_v10 = vld [vmem:[#allocation17_spill] sm:$0xff]  ;;  %v4079_v14 = vld [vmem:[#allocation11_spill] sm:$0xff]  ;;  %v3120_v24 = vmul.f32 %v2867_v32, %v4082_v2  ;;  %v3140_v2 = vmul.f32 %v3096_v49, %v2879_v5  ;;  %v3164_v5 = vmul.f32 %v3096_v49, %v2903_v0 }
 0x266   :  { %4073 = vst [vmem:[#allocation5_spill] sm:$0xff] %v3087_v18  ;;  %4075 = vst [vmem:[#allocation6_spill] sm:$0xff] %v3091_v33  ;;  %v3104_v17 = vmul.f32 %v2867_v32, %v4078_v10  ;;  %v3108_v56 = vmul.f32 %v2867_v32, %v4079_v14  ;;  %v4080_v18 = vld [vmem:[#allocation13_spill] sm:$0xff]  ;;  %v4081_v33 = vld [vmem:[#allocation15_spill] sm:$0xff]  ;;  %v3128_v14 = vmul.f32 %v2867_v32, %v2854_v4 }
 0x267   :  { %4077 = vst [vmem:[#allocation7_spill] sm:$0xff] %v3100_v1  ;;  %v3112_v40 = vmul.f32 %v2867_v32, %v4080_v18  ;;  %v3116_v6 = vmul.f32 %v2867_v32, %v4081_v33  ;;  %v4083_v1 = vld [vmem:[#allocation20_spill] sm:$0xff]  ;;  %v3132_v18 = vmul.f32 %v3096_v49, %v2871_v41  ;;  %v3136_v33 = vmul.f32 %v3096_v49, %v2875_v8 }
 0x268   :  { %v3124_v10 = vmul.f32 %v2867_v32, %v4083_v1  ;;  %v3144_v1 = vmul.f32 %v3096_v49, %v2883_v9  ;;  %v3148_v4 = vmul.f32 %v3096_v49, %v2887_v44  ;;  %v3152_v32 = vmul.f32 %v3096_v49, %v2891_v48 }
 0x269   :  { %v3156_v41 = vmul.f32 %v3096_v49, %v2895_v28  ;;  %v3160_v8 = vmul.f32 %v3096_v49, %v2899_v61  ;;  %v3168_v9 = vmul.f32 %v3096_v49, %v2907_v20  ;;  %v3172_v44 = vmul.f32 %v3096_v49, %v2911_v27 }
 0x26a   :  { %v3176_v48 = vmul.f32 %v3096_v49, %v2915_v12  ;;  %v3180_v28 = vmul.f32 %v3096_v49, %v2919_v39  ;;  %v3184_v61 = vmul.f32 %v3096_v49, %v2923_v43  ;;  %v3188_v0 = vmul.f32 %v3096_v49, %v2927_v47 }
 0x26b   :  { %v3192_v20 = vmul.f32 %v3096_v49, %v2931_v51  ;;  %v3196_v27 = vmul.f32 %v3096_v49, %v2935_v55  ;;  %v3200_v12 = vmul.f32 %v3096_v49, %v2939_v59  ;;  %v3204_v39 = vmul.f32 %v3096_v49, %v2943_v63 }
 0x26c   :  { %v3208_v43 = vmul.f32 %v3096_v49, %v2947_v3  ;;  %v3212_v47 = vmul.f32 %v3096_v49, %v2951_v7  ;;  %v3216_v51 = vmul.f32 %v3096_v49, %v2955_v11  ;;  %v3220_v55 = vmul.f32 %v3096_v49, %v2959_v25 }
 0x26d   :  { %v3224_v59 = vmul.f32 %v3096_v49, %v2963_v21  ;;  %v3228_v63 = vmul.f32 %v3096_v49, %v2967_v60  ;;  %v3232_v3 = vmul.f32 %v3096_v49, %v2971_v35  ;;  %v3236_v7 = vmul.f32 %v3096_v49, %v2975_v13 }
 0x26e   :  { %v3240_v11 = vmul.f32 %v3096_v49, %v2979_v53  ;;  %v3244_v25 = vmul.f32 %v3096_v49, %v2983_v16  ;;  %v3248_v21 = vmul.f32 %v3096_v49, %v2987_v36  ;;  %v3252_v60 = vmul.f32 %v3096_v49, %v2991_v37 }
 0x26f   :  { %v3256_v35 = vmul.f32 %v3096_v49, %v2995_v29  ;;  %v3260_v13 = vmul.f32 %v3096_v49, %v2999_v19  ;;  %v3264_v53 = vmul.f32 %v3096_v49, %v3003_v57  ;;  %v3268_v16 = vmul.f32 %v3096_v49, %v3007_v31 }
 0x270   :  { %v3272_v36 = vmul.f32 %v3096_v49, %v3011_v15  ;;  %v3276_v37 = vmul.f32 %v3096_v49, %v3015_v23  ;;  %v3280_v29 = vmul.f32 %v3096_v49, %v3019_v45  ;;  %v3284_v19 = vmul.f32 %v3096_v49, %v3023_v52 }
 0x271   :  { %v3288_v57 = vmul.f32 %v3096_v49, %v3027_v22  ;;  %v3292_v31 = vmul.f32 %v3096_v49, %v3031_v26  ;;  %v3296_v15 = vmul.f32 %v3096_v49, %v3035_v30  ;;  %v3300_v23 = vmul.f32 %v3096_v49, %v3039_v34 }
 0x272   :  { %v3304_v45 = vmul.f32 %v3096_v49, %v3043_v38  ;;  %v3308_v52 = vmul.f32 %v3096_v49, %v3047_v42  ;;  %v3312_v22 = vmul.f32 %v3096_v49, %v3051_v46  ;;  %v3316_v26 = vmul.f32 %v3096_v49, %v3055_v50  ;;  %v4089_v42 = vld [vmem:[#allocation18_spill] sm:$0xff] }
 0x273   :  { %v3320_v30 = vmul.f32 %v3096_v49, %v3059_v54  ;;  %v3324_v34 = vmul.f32 %v3096_v49, %v3063_v58  ;;  %v3328_v38 = vmul.f32 %v3096_v49, %v3067_v62  ;;  %v3332_v46 = vmul.f32 %v3096_v49, %v4089_v42 }
 0x274   :  { %4084 = vst [vmem:[#allocation8_spill] sm:$0xff] %v3312_v22  ;;  %4085 = vst [vmem:[#allocation9_spill] sm:$0xff] %v3316_v26  ;;  %v4090_v22 = vld [vmem:[#allocation2_spill] sm:$0xff]  ;;  %v4092_v26 = vld [vmem:[#allocation3_spill] sm:$0xff] }
 0x275   :  { %4086 = vst [vmem:[#allocation10_spill] sm:$0xff] %v3320_v30  ;;  %4087 = vst [vmem:[#allocation12_spill] sm:$0xff] %v3324_v34  ;;  %v3336_v50 = vmul.f32 %v3096_v49, %v4090_v22  ;;  %v3340_v54 = vmul.f32 %v3096_v49, %v4092_v26  ;;  %v4093_v30 = vld [vmem:[#allocation4_spill] sm:$0xff]  ;;  %v4094_v34 = vld [vmem:[#allocation5_spill] sm:$0xff] }
 0x276   :  { %4088 = vst [vmem:[#allocation14_spill] sm:$0xff] %v3328_v38  ;;  %v3344_v58 = vmul.f32 %v3096_v49, %v4093_v30  ;;  %v3348_v62 = vmul.f32 %v3096_v49, %v4094_v34  ;;  %v4095_v38 = vld [vmem:[#allocation6_spill] sm:$0xff]  ;;  %v3365_v30 = vmul.f32 %v3096_v49, %v3104_v17  ;;  %v3369_v34 = vmul.f32 %v3096_v49, %v3108_v56 }
 0x277   :  { %4091 = vst [vmem:[#allocation16_spill] sm:$0xff] %v3336_v50  ;;  %v3352_v42 = vmul.f32 %v3096_v49, %v4095_v38  ;;  %v3357_v22 = vld [vmem:[%s3970_s3] ss:$0 sm:$0xff]  ;;  %v4097_v50 = vld [vmem:[#allocation7_spill] sm:$0xff]  ;;  %v3373_v38 = vmul.f32 %v3096_v49, %v3112_v40  ;;  %v3385_v17 = vmul.f32 %v3096_v49, %v3124_v10  ;;  %v3389_v56 = vmul.f32 %v3096_v49, %v3128_v14 }
 0x278   :  { %v3361_v26 = vmul.f32 %v3096_v49, %v4097_v50  ;;  %v3381_v50 = vmul.f32 %v3096_v49, %v3120_v24  ;;  %v3393_v40 = vadd.f32 %v3357_v22, %v3132_v18  ;;  %v3401_v24 = vadd.f32 %v3357_v22, %v3140_v2 }
 0x279   :  { %4096 = vst [vmem:[#allocation17_spill] sm:$0xff] %v3352_v42  ;;  %v3377_v42 = vmul.f32 %v3096_v49, %v3116_v6  ;;  %v3397_v6 = vadd.f32 %v3357_v22, %v3136_v33  ;;  %v3405_v10 = vadd.f32 %v3357_v22, %v3144_v1  ;;  %v3409_v49 = vadd.f32 %v3357_v22, %v3148_v4 }
 0x27a   :  { %v3413_v14 = vadd.f32 %v3357_v22, %v3152_v32  ;;  %v3417_v18 = vadd.f32 %v3357_v22, %v3156_v41  ;;  %v3421_v33 = vadd.f32 %v3357_v22, %v3160_v8  ;;  %v3425_v2 = vadd.f32 %v3357_v22, %v3164_v5 }
 0x27b   :  { %v3429_v1 = vadd.f32 %v3357_v22, %v3168_v9  ;;  %v3433_v4 = vadd.f32 %v3357_v22, %v3172_v44  ;;  %v3437_v32 = vadd.f32 %v3357_v22, %v3176_v48  ;;  %v3441_v41 = vadd.f32 %v3357_v22, %v3180_v28 }
 0x27c   :  { %v3445_v8 = vadd.f32 %v3357_v22, %v3184_v61  ;;  %v3449_v5 = vadd.f32 %v3357_v22, %v3188_v0  ;;  %v3453_v9 = vadd.f32 %v3357_v22, %v3192_v20  ;;  %v3457_v44 = vadd.f32 %v3357_v22, %v3196_v27 }
 0x27d   :  { %v3461_v48 = vadd.f32 %v3357_v22, %v3200_v12  ;;  %v3465_v28 = vadd.f32 %v3357_v22, %v3204_v39  ;;  %v3469_v61 = vadd.f32 %v3357_v22, %v3208_v43  ;;  %v3473_v0 = vadd.f32 %v3357_v22, %v3212_v47 }
 0x27e   :  { %v3477_v20 = vadd.f32 %v3357_v22, %v3216_v51  ;;  %v3481_v27 = vadd.f32 %v3357_v22, %v3220_v55  ;;  %v3485_v12 = vadd.f32 %v3357_v22, %v3224_v59  ;;  %v3489_v39 = vadd.f32 %v3357_v22, %v3228_v63 }
 0x27f   :  { %v3493_v43 = vadd.f32 %v3357_v22, %v3232_v3  ;;  %v3497_v47 = vadd.f32 %v3357_v22, %v3236_v7  ;;  %v3501_v51 = vadd.f32 %v3357_v22, %v3240_v11  ;;  %v3505_v55 = vadd.f32 %v3357_v22, %v3244_v25 }
 0x280   :  { %v3509_v59 = vadd.f32 %v3357_v22, %v3248_v21  ;;  %v3513_v63 = vadd.f32 %v3357_v22, %v3252_v60  ;;  %v3517_v3 = vadd.f32 %v3357_v22, %v3256_v35  ;;  %v3521_v7 = vadd.f32 %v3357_v22, %v3260_v13 }
 0x281   :  { %v3525_v11 = vadd.f32 %v3357_v22, %v3264_v53  ;;  %v3529_v25 = vadd.f32 %v3357_v22, %v3268_v16  ;;  %v3533_v21 = vadd.f32 %v3357_v22, %v3272_v36  ;;  %v3537_v60 = vadd.f32 %v3357_v22, %v3276_v37 }
 0x282   :  { %v3541_v35 = vadd.f32 %v3357_v22, %v3280_v29  ;;  %v3545_v13 = vadd.f32 %v3357_v22, %v3284_v19  ;;  %v3549_v53 = vadd.f32 %v3357_v22, %v3288_v57  ;;  %v3553_v16 = vadd.f32 %v3357_v22, %v3292_v31  ;;  %v4102_v57 = vld [vmem:[#allocation8_spill] sm:$0xff] }
 0x283   :  { %v3557_v36 = vadd.f32 %v3357_v22, %v3296_v15  ;;  %v3561_v37 = vadd.f32 %v3357_v22, %v3300_v23  ;;  %v3565_v29 = vadd.f32 %v3357_v22, %v3304_v45  ;;  %v3569_v19 = vadd.f32 %v3357_v22, %v3308_v52 }
 0x284   :  { %4098 = vst [vmem:[#allocation11_spill] sm:$0xff] %v3553_v16  ;;  %v3573_v31 = vadd.f32 %v3357_v22, %v4102_v57  ;;  %v4104_v16 = vld [vmem:[#allocation9_spill] sm:$0xff]  ;;  %v3593_v57 = vadd.f32 %v3357_v22, %v3332_v46 }
 0x285   :  { %4099 = vst [vmem:[#allocation13_spill] sm:$0xff] %v3557_v36  ;;  %4100 = vst [vmem:[#allocation15_spill] sm:$0xff] %v3561_v37  ;;  %v3577_v15 = vadd.f32 %v3357_v22, %v4104_v16  ;;  %v4105_v36 = vld [vmem:[#allocation10_spill] sm:$0xff]  ;;  %v4106_v37 = vld [vmem:[#allocation12_spill] sm:$0xff] }
 0x286   :  { %4101 = vst [vmem:[#allocation19_spill] sm:$0xff] %v3565_v29  ;;  %4103 = vst [vmem:[#allocation20_spill] sm:$0xff] %v3573_v31  ;;  %v3581_v23 = vadd.f32 %v3357_v22, %v4105_v36  ;;  %v3585_v45 = vadd.f32 %v3357_v22, %v4106_v37  ;;  %v4107_v29 = vld [vmem:[#allocation14_spill] sm:$0xff]  ;;  %v4109_v31 = vld [vmem:[#allocation16_spill] sm:$0xff]  ;;  %v3601_v36 = vadd.f32 %v3357_v22, %v3340_v54 }
 0x287   :  { %v3589_v52 = vadd.f32 %v3357_v22, %v4107_v29  ;;  %v3597_v16 = vadd.f32 %v3357_v22, %v4109_v31  ;;  %v3605_v37 = vadd.f32 %v3357_v22, %v3344_v58  ;;  %v3609_v29 = vadd.f32 %v3357_v22, %v3348_v62 }
 0x288   :  { %v3617_v31 = vadd.f32 %v3357_v22, %v3361_v26  ;;  %v3621_v54 = vadd.f32 %v3357_v22, %v3365_v30  ;;  %v3625_v58 = vadd.f32 %v3357_v22, %v3369_v34  ;;  %v3629_v62 = vadd.f32 %v3357_v22, %v3373_v38 }
 0x289   :  { %4108 = vst [vmem:[#allocation18_spill] sm:$0xff] %v3589_v52  ;;  %v4110_v52 = vld [vmem:[#allocation17_spill] sm:$0xff]  ;;  %v3637_v26 = vadd.f32 %v3357_v22, %v3381_v50  ;;  %v3641_v30 = vadd.f32 %v3357_v22, %v3385_v17  ;;  %v3645_v34 = vadd.f32 %v3357_v22, %v3389_v56  ;;  %v1353_v38 = vmax.f32 %v3397_v6, 0.0 }
 0x28a   :  { %v3613_v46 = vadd.f32 %v3357_v22, %v4110_v52  ;;  %4111 = vst [vmem:[#allocation2_spill] sm:$0xff] %v3625_v58  ;;  %4112 = vst [vmem:[#allocation3_spill] sm:$0xff] %v3629_v62  ;;  %v3633_v52 = vadd.f32 %v3357_v22, %v3377_v42  ;;  %v1352_v58 = vmax.f32 %v3393_v40, 0.0  ;;  %v1354_v62 = vmax.f32 %v3401_v24, 0.0 }
 0x28b   :  { %4114 = vst [vmem:[#allocation5_spill] sm:$0xff] %v3637_v26  ;;  %4115 = vst [vmem:[#allocation6_spill] sm:$0xff] %v3641_v30  ;;  %v1355_v42 = vmax.f32 %v3405_v10, 0.0  ;;  %v1357_v50 = vmax.f32 %v3413_v14, 0.0  ;;  %v1358_v26 = vmax.f32 %v3417_v18, 0.0  ;;  %v1359_v17 = vmax.f32 %v3421_v33, 0.0 }
 0x28c   :  { %4113 = vst [vmem:[#allocation4_spill] sm:$0xff] %v3633_v52  ;;  %v1356_v52 = vmax.f32 %v3409_v49, 0.0  ;;  %v1360_v30 = vmax.f32 %v3425_v2, 0.0  ;;  %v1361_v22 = vmax.f32 %v3429_v1, 0.0  ;;  %v1362_v56 = vmax.f32 %v3433_v4, 0.0  ;;  %1416 = vst.msk [vmem:[%s3971_s4] sm:$0xff] %vm746_vm2, %v1352_v58 }
 0x28d   :  { %v1363_v40 = vmax.f32 %v3437_v32, 0.0  ;;  %1417 = vst.msk [vmem:[%s3971_s4 + $0x8] sm:$0xff] %vm746_vm2, %v1353_v38  ;;  %1418 = vst.msk [vmem:[%s3971_s4 + $0x10] sm:$0xff] %vm746_vm2, %v1354_v62  ;;  %v1364_v6 = vmax.f32 %v3441_v41, 0.0  ;;  %v1365_v24 = vmax.f32 %v3445_v8, 0.0  ;;  %v1366_v10 = vmax.f32 %v3449_v5, 0.0 }
 0x28e   :  { %1419 = vst.msk [vmem:[%s3971_s4 + $0x18] sm:$0xff] %vm746_vm2, %v1355_v42  ;;  %v1367_v49 = vmax.f32 %v3453_v9, 0.0  ;;  %1420 = vst.msk [vmem:[%s3971_s4 + $0x20] sm:$0xff] %vm746_vm2, %v1356_v52  ;;  %v1368_v14 = vmax.f32 %v3457_v44, 0.0  ;;  %v1369_v18 = vmax.f32 %v3461_v48, 0.0  ;;  %v1370_v33 = vmax.f32 %v3465_v28, 0.0 }
 0x28f   :  { %1421 = vst.msk [vmem:[%s3971_s4 + $0x28] sm:$0xff] %vm746_vm2, %v1357_v50  ;;  %1422 = vst.msk [vmem:[%s3971_s4 + $0x30] sm:$0xff] %vm746_vm2, %v1358_v26  ;;  %v1371_v2 = vmax.f32 %v3469_v61, 0.0  ;;  %v1372_v1 = vmax.f32 %v3473_v0, 0.0  ;;  %v1373_v4 = vmax.f32 %v3477_v20, 0.0  ;;  %v1374_v32 = vmax.f32 %v3481_v27, 0.0 }
 0x290   :  { %1423 = vst.msk [vmem:[%s3971_s4 + $0x38] sm:$0xff] %vm746_vm2, %v1359_v17  ;;  %1424 = vst.msk [vmem:[%s3971_s4 + $0x40] sm:$0xff] %vm746_vm2, %v1360_v30  ;;  %v1375_v41 = vmax.f32 %v3485_v12, 0.0  ;;  %v1376_v8 = vmax.f32 %v3489_v39, 0.0  ;;  %v1377_v5 = vmax.f32 %v3493_v43, 0.0  ;;  %v1378_v9 = vmax.f32 %v3497_v47, 0.0 }
 0x291   :  { %1425 = vst.msk [vmem:[%s3971_s4 + $0x48] sm:$0xff] %vm746_vm2, %v1361_v22  ;;  %1426 = vst.msk [vmem:[%s3971_s4 + $0x50] sm:$0xff] %vm746_vm2, %v1362_v56  ;;  %v1379_v44 = vmax.f32 %v3501_v51, 0.0  ;;  %v1380_v48 = vmax.f32 %v3505_v55, 0.0  ;;  %v1381_v28 = vmax.f32 %v3509_v59, 0.0  ;;  %v1382_v61 = vmax.f32 %v3513_v63, 0.0 }
 0x292   :  { %1427 = vst.msk [vmem:[%s3971_s4 + $0x58] sm:$0xff] %vm746_vm2, %v1363_v40  ;;  %1428 = vst.msk [vmem:[%s3971_s4 + $0x60] sm:$0xff] %vm746_vm2, %v1364_v6  ;;  %v1383_v0 = vmax.f32 %v3517_v3, 0.0  ;;  %v1384_v20 = vmax.f32 %v3521_v7, 0.0  ;;  %v1385_v27 = vmax.f32 %v3525_v11, 0.0  ;;  %v1386_v12 = vmax.f32 %v3529_v25, 0.0 }
 0x293   :  { %1429 = vst.msk [vmem:[%s3971_s4 + $0x68] sm:$0xff] %vm746_vm2, %v1365_v24  ;;  %1430 = vst.msk [vmem:[%s3971_s4 + $0x70] sm:$0xff] %vm746_vm2, %v1366_v10  ;;  %v1387_v39 = vmax.f32 %v3533_v21, 0.0  ;;  %v1388_v43 = vmax.f32 %v3537_v60, 0.0  ;;  %v1389_v47 = vmax.f32 %v3541_v35, 0.0  ;;  %v1390_v51 = vmax.f32 %v3545_v13, 0.0 }
 0x294   :  { %1431 = vst.msk [vmem:[%s3971_s4 + $0x78] sm:$0xff] %vm746_vm2, %v1367_v49  ;;  %1432 = vst.msk [vmem:[%s3971_s4 + $0x80] sm:$0xff] %vm746_vm2, %v1368_v14  ;;  %v1391_v55 = vmax.f32 %v3549_v53, 0.0  ;;  %v4116_v59 = vld [vmem:[#allocation11_spill] sm:$0xff]  ;;  %v4117_v3 = vld [vmem:[#allocation13_spill] sm:$0xff]  ;;  %v1396_v35 = vmax.f32 %v3569_v19, 0.0 }
 0x295   :  { %1433 = vst.msk [vmem:[%s3971_s4 + $0x88] sm:$0xff] %vm746_vm2, %v1369_v18  ;;  %1434 = vst.msk [vmem:[%s3971_s4 + $0x90] sm:$0xff] %vm746_vm2, %v1370_v33  ;;  %v1392_v63 = vmax.f32 %v4116_v59, 0.0  ;;  %v1393_v7 = vmax.f32 %v4117_v3, 0.0  ;;  %v4118_v11 = vld [vmem:[#allocation15_spill] sm:$0xff]  ;;  %v4120_v13 = vld [vmem:[#allocation20_spill] sm:$0xff] }
 0x296   :  { %1435 = vst.msk [vmem:[%s3971_s4 + $0x98] sm:$0xff] %vm746_vm2, %v1371_v2  ;;  %1436 = vst.msk [vmem:[%s3971_s4 + $0xa0] sm:$0xff] %vm746_vm2, %v1372_v1  ;;  %v1394_v25 = vmax.f32 %v4118_v11, 0.0  ;;  %v4119_v21 = vld [vmem:[#allocation19_spill] sm:$0xff]  ;;  %v1397_v53 = vmax.f32 %v4120_v13, 0.0  ;;  %v1398_v58 = vmax.f32 %v3577_v15, 0.0 }
 0x297   :  { %1437 = vst.msk [vmem:[%s3971_s4 + $0xa8] sm:$0xff] %vm746_vm2, %v1373_v4  ;;  %1438 = vst.msk [vmem:[%s3971_s4 + $0xb0] sm:$0xff] %vm746_vm2, %v1374_v32  ;;  %v1395_v60 = vmax.f32 %v4119_v21, 0.0  ;;  %v1399_v62 = vmax.f32 %v3581_v23, 0.0  ;;  %v1400_v19 = vmax.f32 %v3585_v45, 0.0  ;;  %v4121_v15 = vld [vmem:[#allocation18_spill] sm:$0xff] }
 0x298   :  { %1439 = vst.msk [vmem:[%s3971_s4 + $0xb8] sm:$0xff] %vm746_vm2, %v1375_v41  ;;  %1440 = vst.msk [vmem:[%s3971_s4 + $0xc0] sm:$0xff] %vm746_vm2, %v1376_v8  ;;  %v1401_v23 = vmax.f32 %v4121_v15, 0.0  ;;  %v1402_v52 = vmax.f32 %v3593_v57, 0.0  ;;  %v1403_v26 = vmax.f32 %v3597_v16, 0.0  ;;  %v1404_v45 = vmax.f32 %v3601_v36, 0.0 }
 0x299   :  { %1441 = vst.msk [vmem:[%s3971_s4 + $0xc8] sm:$0xff] %vm746_vm2, %v1377_v5  ;;  %1442 = vst.msk [vmem:[%s3971_s4 + $0xd0] sm:$0xff] %vm746_vm2, %v1378_v9  ;;  %v1405_v57 = vmax.f32 %v3605_v37, 0.0  ;;  %v1406_v16 = vmax.f32 %v3609_v29, 0.0  ;;  %v1407_v30 = vmax.f32 %v3613_v46, 0.0  ;;  %v1408_v36 = vmax.f32 %v3617_v31, 0.0 }
 0x29a   :  { %1443 = vst.msk [vmem:[%s3971_s4 + $0xd8] sm:$0xff] %vm746_vm2, %v1379_v44  ;;  %1444 = vst.msk [vmem:[%s3971_s4 + $0xe0] sm:$0xff] %vm746_vm2, %v1380_v48  ;;  %v1409_v37 = vmax.f32 %v3621_v54, 0.0  ;;  %v4122_v29 = vld [vmem:[#allocation2_spill] sm:$0xff]  ;;  %v4123_v38 = vld [vmem:[#allocation3_spill] sm:$0xff]  ;;  %v1415_v40 = vmax.f32 %v3645_v34, 0.0 }
 0x29b   :  { %1445 = vst.msk [vmem:[%s3971_s4 + $0xe8] sm:$0xff] %vm746_vm2, %v1381_v28  ;;  %1446 = vst.msk [vmem:[%s3971_s4 + $0xf0] sm:$0xff] %vm746_vm2, %v1382_v61  ;;  %v1410_v46 = vmax.f32 %v4122_v29, 0.0  ;;  %v1411_v42 = vmax.f32 %v4123_v38, 0.0  ;;  %v4124_v31 = vld [vmem:[#allocation4_spill] sm:$0xff]  ;;  %v4125_v50 = vld [vmem:[#allocation5_spill] sm:$0xff] }
 0x29c   :  { %1447 = vst.msk [vmem:[%s3971_s4 + $0xf8] sm:$0xff] %vm746_vm2, %v1383_v0  ;;  %1448 = vst.msk [vmem:[%s3971_s4 + $0x100] sm:$0xff] %vm746_vm2, %v1384_v20  ;;  %v1412_v54 = vmax.f32 %v4124_v31, 0.0  ;;  %v1413_v17 = vmax.f32 %v4125_v50, 0.0  ;;  %v4126_v22 = vld [vmem:[#allocation6_spill] sm:$0xff] }
 0x29d   :  { %1449 = vst.msk [vmem:[%s3971_s4 + $0x108] sm:$0xff] %vm746_vm2, %v1385_v27  ;;  %1450 = vst.msk [vmem:[%s3971_s4 + $0x110] sm:$0xff] %vm746_vm2, %v1386_v12  ;;  %v1414_v56 = vmax.f32 %v4126_v22, 0.0 }
 0x29e   :  { %1451 = vst.msk [vmem:[%s3971_s4 + $0x118] sm:$0xff] %vm746_vm2, %v1387_v39  ;;  %1452 = vst.msk [vmem:[%s3971_s4 + $0x120] sm:$0xff] %vm746_vm2, %v1388_v43 }
 0x29f   :  { %1453 = vst.msk [vmem:[%s3971_s4 + $0x128] sm:$0xff] %vm746_vm2, %v1389_v47  ;;  %1454 = vst.msk [vmem:[%s3971_s4 + $0x130] sm:$0xff] %vm746_vm2, %v1390_v51 }
 0x2a0   :  { %1455 = vst.msk [vmem:[%s3971_s4 + $0x138] sm:$0xff] %vm746_vm2, %v1391_v55  ;;  %1456 = vst.msk [vmem:[%s3971_s4 + $0x140] sm:$0xff] %vm746_vm2, %v1392_v63 }
 0x2a1   :  { %1457 = vst.msk [vmem:[%s3971_s4 + $0x148] sm:$0xff] %vm746_vm2, %v1393_v7  ;;  %1458 = vst.msk [vmem:[%s3971_s4 + $0x150] sm:$0xff] %vm746_vm2, %v1394_v25 }
 0x2a2   :  { %1459 = vst.msk [vmem:[%s3971_s4 + $0x158] sm:$0xff] %vm746_vm2, %v1395_v60  ;;  %1460 = vst.msk [vmem:[%s3971_s4 + $0x160] sm:$0xff] %vm746_vm2, %v1396_v35 }
 0x2a3   :  { %1461 = vst.msk [vmem:[%s3971_s4 + $0x168] sm:$0xff] %vm746_vm2, %v1397_v53  ;;  %1462 = vst.msk [vmem:[%s3971_s4 + $0x170] sm:$0xff] %vm746_vm2, %v1398_v58 }
 0x2a4   :  { %1463 = vst.msk [vmem:[%s3971_s4 + $0x178] sm:$0xff] %vm746_vm2, %v1399_v62  ;;  %1464 = vst.msk [vmem:[%s3971_s4 + $0x180] sm:$0xff] %vm746_vm2, %v1400_v19 }
 0x2a5   :  { %1465 = vst.msk [vmem:[%s3971_s4 + $0x188] sm:$0xff] %vm746_vm2, %v1401_v23  ;;  %1466 = vst.msk [vmem:[%s3971_s4 + $0x190] sm:$0xff] %vm746_vm2, %v1402_v52 }
 0x2a6   :  { %1467 = vst.msk [vmem:[%s3971_s4 + $0x198] sm:$0xff] %vm746_vm2, %v1403_v26  ;;  %1468 = vst.msk [vmem:[%s3971_s4 + $0x1a0] sm:$0xff] %vm746_vm2, %v1404_v45 }
 0x2a7   :  { %1469 = vst.msk [vmem:[%s3971_s4 + $0x1a8] sm:$0xff] %vm746_vm2, %v1405_v57  ;;  %1470 = vst.msk [vmem:[%s3971_s4 + $0x1b0] sm:$0xff] %vm746_vm2, %v1406_v16 }
 0x2a8   :  { %1471 = vst.msk [vmem:[%s3971_s4 + $0x1b8] sm:$0xff] %vm746_vm2, %v1407_v30  ;;  %1472 = vst.msk [vmem:[%s3971_s4 + $0x1c0] sm:$0xff] %vm746_vm2, %v1408_v36 }
 0x2a9   :  { %1473 = vst.msk [vmem:[%s3971_s4 + $0x1c8] sm:$0xff] %vm746_vm2, %v1409_v37  ;;  %1474 = vst.msk [vmem:[%s3971_s4 + $0x1d0] sm:$0xff] %vm746_vm2, %v1410_v46 }
 0x2aa   :  { %1475 = vst.msk [vmem:[%s3971_s4 + $0x1d8] sm:$0xff] %vm746_vm2, %v1411_v42  ;;  %1476 = vst.msk [vmem:[%s3971_s4 + $0x1e0] sm:$0xff] %vm746_vm2, %v1412_v54 }
 0x2ab   :  { %1477 = vst.msk [vmem:[%s3971_s4 + $0x1e8] sm:$0xff] %vm746_vm2, %v1413_v17  ;;  %1478 = vst.msk [vmem:[%s3971_s4 + $0x1f0] sm:$0xff] %vm746_vm2, %v1414_v56 }
 0x2ac   :  { %1479 = vst.msk [vmem:[%s3971_s4 + $0x1f8] sm:$0xff] %vm746_vm2, %v1415_v40 }

// kernel: densenet_forward.38
= control target key start
LH: loop header
LB: loop body
LE: loop exit
PB: predicated region body
PF: predicated region fallthrough
CT: control target
= control target key end

     0   :  { %v329_v0 = vmov 0.0   ;;  %vm61_vm0 = vcmask 130048   ;;  %vm255_vm1 = vcmask 64512   ;;  %s611_s1 = inlined_call_operand.vmem [shape: f32[144,8], index: 1, kind: input, shape index: {}]   ;;  %s612_s0 = inlined_call_operand.vmem [shape: f32[128,144], index: 0, kind: input, shape index: {}]   ;;  %s613_s2 = inlined_call_operand.vmem [shape: f32[128,8], index: 2, kind: output, shape index: {}]  }
   0x1   :  { %110 = vmatprep.subr.mxu0 %v329_v0  ;;  %292 = vmatprep.subr.mxu1 %v329_v0  ;;  %v58_v1 = vld [vmem:[%s611_s1 + $0x78] sm:$0xff]  ;;  %v57_v2 = vld [vmem:[%s611_s1 + $0x70] sm:$0xff]  ;;  %v56_v3 = vld [vmem:[%s611_s1 + $0x68] sm:$0xff] }
   0x2   :  { %111 = vmatpush1.msra.mxu0 %v58_v1  ;;  %310 = vmatpush1.msra.mxu1 %v58_v1  ;;  %v55_v4 = vld [vmem:[%s611_s1 + $0x60] sm:$0xff]  ;;  %v54_v5 = vld [vmem:[%s611_s1 + $0x58] sm:$0xff]  ;;  %v53_v6 = vld [vmem:[%s611_s1 + $0x50] sm:$0xff] }
   0x3   :  { %112 = vmatprep.subr.mxu0 %v329_v0  ;;  %293 = vmatprep.subr.mxu1 %v329_v0  ;;  %v52_v7 = vld [vmem:[%s611_s1 + $0x48] sm:$0xff]  ;;  %v51_v8 = vld [vmem:[%s611_s1 + $0x40] sm:$0xff]  ;;  %v50_v9 = vld [vmem:[%s611_s1 + $0x38] sm:$0xff] }
   0x4   :  { %113 = vmatpush1.msra.mxu0 %v57_v2  ;;  %311 = vmatpush1.msra.mxu1 %v57_v2  ;;  %v49_v10 = vld [vmem:[%s611_s1 + $0x30] sm:$0xff]  ;;  %v48_v11 = vld [vmem:[%s611_s1 + $0x28] sm:$0xff]  ;;  %v47_v12 = vld [vmem:[%s611_s1 + $0x20] sm:$0xff] }
   0x5   :  { %114 = vmatprep.subr.mxu0 %v329_v0  ;;  %294 = vmatprep.subr.mxu1 %v329_v0  ;;  %v46_v13 = vld [vmem:[%s611_s1 + $0x18] sm:$0xff]  ;;  %v45_v14 = vld [vmem:[%s611_s1 + $0x10] sm:$0xff]  ;;  %v44_v15 = vld [vmem:[%s611_s1 + $0x8] sm:$0xff] }
   0x6   :  { %115 = vmatpush1.msra.mxu0 %v56_v3  ;;  %312 = vmatpush1.msra.mxu1 %v56_v3  ;;  %v43_v16 = vld [vmem:[%s611_s1] sm:$0xff]  ;;  %v60_v17 = vld [vmem:[%s611_s1 + $0x88] sm:$0xff]  ;;  %v14_v23 = vld [vmem:[%s612_s0 + $0x18] sm:$0xff] }
   0x7   :  { %116 = vmatprep.subr.mxu0 %v329_v0  ;;  %295 = vmatprep.subr.mxu1 %v329_v0  ;;  %v59_v18 = vld [vmem:[%s611_s1 + $0x80] sm:$0xff]  ;;  %v12_v19 = vld [vmem:[%s612_s0 + $0x8] sm:$0xff]  ;;  %v30_v24 = vld [vmem:[%s612_s0 + $0x98] sm:$0xff] }
   0x8   :  { %117 = vmatpush1.msra.mxu0 %v55_v4  ;;  %313 = vmatpush1.msra.mxu1 %v55_v4  ;;  %v28_v20 = vld [vmem:[%s612_s0 + $0x88] sm:$0xff]  ;;  %v11_v21 = vld [vmem:[%s612_s0] sm:$0xff]  ;;  %v13_v25 = vld [vmem:[%s612_s0 + $0x10] sm:$0xff] }
   0x9   :  { %118 = vmatprep.subr.mxu0 %v329_v0  ;;  %296 = vmatprep.subr.mxu1 %v329_v0  ;;  %v27_v22 = vld [vmem:[%s612_s0 + $0x80] sm:$0xff]  ;;  %v29_v26 = vld [vmem:[%s612_s0 + $0x90] sm:$0xff]  ;;  %v16_v27 = vld [vmem:[%s612_s0 + $0x28] sm:$0xff] }
   0xa   :  { %119 = vmatpush1.msra.mxu0 %v54_v5  ;;  %314 = vmatpush1.msra.mxu1 %v54_v5  ;;  %v32_v28 = vld [vmem:[%s612_s0 + $0xa8] sm:$0xff]  ;;  %v15_v29 = vld [vmem:[%s612_s0 + $0x20] sm:$0xff]  ;;  %v18_v31 = vld [vmem:[%s612_s0 + $0x38] sm:$0xff] }
   0xb   :  { %120 = vmatprep.subr.mxu0 %v329_v0  ;;  %297 = vmatprep.subr.mxu1 %v329_v0  ;;  %v31_v30 = vld [vmem:[%s612_s0 + $0xa0] sm:$0xff]  ;;  %v34_v32 = vld [vmem:[%s612_s0 + $0xb8] sm:$0xff]  ;;  %v17_v33 = vld [vmem:[%s612_s0 + $0x30] sm:$0xff] }
   0xc   :  { %121 = vmatpush1.msra.mxu0 %v53_v6  ;;  %315 = vmatpush1.msra.mxu1 %v53_v6  ;;  %v33_v34 = vld [vmem:[%s612_s0 + $0xb0] sm:$0xff]  ;;  %v20_v35 = vld [vmem:[%s612_s0 + $0x48] sm:$0xff]  ;;  %v19_v37 = vld [vmem:[%s612_s0 + $0x40] sm:$0xff] }
   0xd   :  { %122 = vmatprep.subr.mxu0 %v329_v0  ;;  %298 = vmatprep.subr.mxu1 %v329_v0  ;;  %v36_v36 = vld [vmem:[%s612_s0 + $0xc8] sm:$0xff]  ;;  %v35_v38 = vld [vmem:[%s612_s0 + $0xc0] sm:$0xff]  ;;  %v22_v39 = vld [vmem:[%s612_s0 + $0x58] sm:$0xff] }
   0xe   :  { %123 = vmatpush1.msra.mxu0 %v52_v7  ;;  %316 = vmatpush1.msra.mxu1 %v52_v7  ;;  %v38_v40 = vld [vmem:[%s612_s0 + $0xd8] sm:$0xff]  ;;  %v21_v41 = vld [vmem:[%s612_s0 + $0x50] sm:$0xff]  ;;  %v24_v43 = vld [vmem:[%s612_s0 + $0x68] sm:$0xff] }
   0xf   :  { %124 = vmatprep.subr.mxu0 %v329_v0  ;;  %299 = vmatprep.subr.mxu1 %v329_v0  ;;  %v37_v42 = vld [vmem:[%s612_s0 + $0xd0] sm:$0xff]  ;;  %v40_v44 = vld [vmem:[%s612_s0 + $0xe8] sm:$0xff]  ;;  %v23_v45 = vld [vmem:[%s612_s0 + $0x60] sm:$0xff] }
  0x10   :  { %125 = vmatpush1.msra.mxu0 %v51_v8  ;;  %317 = vmatpush1.msra.mxu1 %v51_v8  ;;  %v39_v46 = vld [vmem:[%s612_s0 + $0xe0] sm:$0xff]  ;;  %v26_v47 = vld [vmem:[%s612_s0 + $0x78] sm:$0xff]  ;;  %v25_v49 = vld [vmem:[%s612_s0 + $0x70] sm:$0xff] }
  0x11   :  { %126 = vmatprep.subr.mxu0 %v329_v0  ;;  %300 = vmatprep.subr.mxu1 %v329_v0  ;;  %v42_v48 = vld [vmem:[%s612_s0 + $0xf8] sm:$0xff]  ;;  %v41_v50 = vld [vmem:[%s612_s0 + $0xf0] sm:$0xff] }
  0x12   :  { %127 = vmatpush1.msra.mxu0 %v50_v9  ;;  %318 = vmatpush1.msra.mxu1 %v50_v9 }
  0x13   :  { %128 = vmatprep.subr.mxu0 %v329_v0  ;;  %301 = vmatprep.subr.mxu1 %v329_v0 }
  0x14   :  { %129 = vmatpush1.msra.mxu0 %v49_v10  ;;  %319 = vmatpush1.msra.mxu1 %v49_v10 }
  0x15   :  { %130 = vmatprep.subr.mxu0 %v329_v0  ;;  %302 = vmatprep.subr.mxu1 %v329_v0 }
  0x16   :  { %131 = vmatpush1.msra.mxu0 %v48_v11  ;;  %320 = vmatpush1.msra.mxu1 %v48_v11 }
  0x17   :  { %132 = vmatprep.subr.mxu0 %v329_v0  ;;  %303 = vmatprep.subr.mxu1 %v329_v0 }
  0x18   :  { %133 = vmatpush1.msra.mxu0 %v47_v12  ;;  %321 = vmatpush1.msra.mxu1 %v47_v12 }
  0x19   :  { %134 = vmatprep.subr.mxu0 %v329_v0  ;;  %304 = vmatprep.subr.mxu1 %v329_v0 }
  0x1a   :  { %135 = vmatpush1.msra.mxu0 %v46_v13  ;;  %322 = vmatpush1.msra.mxu1 %v46_v13 }
  0x1b   :  { %136 = vmatprep.subr.mxu0 %v329_v0  ;;  %305 = vmatprep.subr.mxu1 %v329_v0 }
  0x1c   :  { %137 = vmatpush1.msra.mxu0 %v45_v14  ;;  %323 = vmatpush1.msra.mxu1 %v45_v14 }
  0x1d   :  { %138 = vmatprep.subr.mxu0 %v329_v0  ;;  %306 = vmatprep.subr.mxu1 %v329_v0 }
  0x1e   :  { %139 = vmatpush1.msra.mxu0 %v44_v15  ;;  %324 = vmatpush1.msra.mxu1 %v44_v15 }
  0x1f   :  { %140 = vmatprep.subr.mxu0 %v329_v0  ;;  %307 = vmatprep.subr.mxu1 %v329_v0 }
  0x20   :  { %141 = vmatpush1.msra.mxu0 %v43_v16  ;;  %325 = vmatpush1.msra.mxu1 %v43_v16 }
  0x21   :  { %170 = vmatprep.subr.mxu0 %v329_v0  ;;  %308 = vmatprep.subr.mxu1 %v329_v0 }
  0x22   :  { %171 = vmatpush2.msra.mxu0 %v60_v17  ;;  %326 = vmatpush2.msra.mxu1 %v60_v17 }
  0x23   :  { %172 = vmatprep.subr.mxu0 %v329_v0  ;;  %309 = vmatprep.subr.mxu1 %v329_v0 }
  0x24   :  { %173 = vmatpush2.msra.mxu0 %v59_v18  ;;  %327 = vmatpush2.msra.mxu1 %v59_v18 }
  0x25   :  { %276 = vmatprep.mubr.msk.f32.mxu0 %vm61_vm0, %v12_v19  ;;  %284 = vmatprep.mubr.msk.f32.mxu1 %vm61_vm0, %v28_v20 }
  0x26   :  { %175 = vmatmul.mubr.f32.vlgmr.msra.gmra.mxu0 %v11_v21  ;;  %215 = vmatmul.mubr.f32.vlgmr.msra.gmra.mxu1 %v27_v22 }
  0x27   :  { %277 = vmatprep.mubr.msk.f32.mxu0 %vm61_vm0, %v14_v23  ;;  %285 = vmatprep.mubr.msk.f32.mxu1 %vm61_vm0, %v30_v24 }
  0x2a   :  { %180 = vmatmul.mubr.f32.gmra.mxu0 %v13_v25  ;;  %220 = vmatmul.mubr.f32.gmra.mxu1 %v29_v26 }
  0x2b   :  { %278 = vmatprep.mubr.msk.f32.mxu0 %vm61_vm0, %v16_v27  ;;  %286 = vmatprep.mubr.msk.f32.mxu1 %vm61_vm0, %v32_v28 }
  0x2e   :  { %185 = vmatmul.mubr.f32.gmra.mxu0 %v15_v29  ;;  %225 = vmatmul.mubr.f32.gmra.mxu1 %v31_v30 }
  0x2f   :  { %279 = vmatprep.mubr.msk.f32.mxu0 %vm61_vm0, %v18_v31  ;;  %287 = vmatprep.mubr.msk.f32.mxu1 %vm61_vm0, %v34_v32 }
  0x32   :  { %190 = vmatmul.mubr.f32.gmra.mxu0 %v17_v33  ;;  %230 = vmatmul.mubr.f32.gmra.mxu1 %v33_v34 }
  0x33   :  { %280 = vmatprep.mubr.msk.f32.mxu0 %vm61_vm0, %v20_v35  ;;  %288 = vmatprep.mubr.msk.f32.mxu1 %vm61_vm0, %v36_v36 }
  0x36   :  { %195 = vmatmul.mubr.f32.gmra.mxu0 %v19_v37  ;;  %235 = vmatmul.mubr.f32.gmra.mxu1 %v35_v38 }
  0x37   :  { %281 = vmatprep.mubr.msk.f32.mxu0 %vm61_vm0, %v22_v39  ;;  %289 = vmatprep.mubr.msk.f32.mxu1 %vm61_vm0, %v38_v40 }
  0x3a   :  { %200 = vmatmul.mubr.f32.gmra.mxu0 %v21_v41  ;;  %240 = vmatmul.mubr.f32.gmra.mxu1 %v37_v42 }
  0x3b   :  { %282 = vmatprep.mubr.msk.f32.mxu0 %vm61_vm0, %v24_v43  ;;  %290 = vmatprep.mubr.msk.f32.mxu1 %vm61_vm0, %v40_v44 }
  0x3e   :  { %205 = vmatmul.mubr.f32.gmra.mxu0 %v23_v45  ;;  %245 = vmatmul.mubr.f32.gmra.mxu1 %v39_v46 }
  0x3f   :  { %283 = vmatprep.mubr.msk.f32.mxu0 %vm61_vm0, %v26_v47  ;;  %291 = vmatprep.mubr.msk.f32.mxu1 %vm61_vm0, %v42_v48 }
  0x42   :  { %210 = vmatmul.mubr.f32.gmra.mxu0 %v25_v49  ;;  %250 = vmatmul.mubr.f32.gmra.mxu1 %v41_v50 }
  0xe6   :  { %v176_v51 = vpop.f32.mrf.mxu0  ;;  %v216_v52 = vpop.f32.mrf.mxu1 }
  0xe7   :  { %256 = vst.msk [vmem:[%s613_s2] sm:$0xff] %vm255_vm1, %v176_v51  ;;  %264 = vst.msk [vmem:[%s613_s2 + $0x40] sm:$0xff] %vm255_vm1, %v216_v52 }
  0xe8   :  { %v178_v53 = vpop.f32.mrf.mxu0  ;;  %v218_v54 = vpop.f32.mrf.mxu1 }
  0xea   :  { %v181_v55 = vpop.f32.mrf.mxu0  ;;  %v221_v56 = vpop.f32.mrf.mxu1 }
  0xeb   :  { %257 = vst.msk [vmem:[%s613_s2 + $0x8] sm:$0xff] %vm255_vm1, %v181_v55  ;;  %265 = vst.msk [vmem:[%s613_s2 + $0x48] sm:$0xff] %vm255_vm1, %v221_v56 }
  0xec   :  { %v183_v57 = vpop.f32.mrf.mxu0  ;;  %v223_v58 = vpop.f32.mrf.mxu1 }
  0xee   :  { %v186_v59 = vpop.f32.mrf.mxu0  ;;  %v226_v60 = vpop.f32.mrf.mxu1 }
  0xef   :  { %258 = vst.msk [vmem:[%s613_s2 + $0x10] sm:$0xff] %vm255_vm1, %v186_v59  ;;  %266 = vst.msk [vmem:[%s613_s2 + $0x50] sm:$0xff] %vm255_vm1, %v226_v60 }
  0xf0   :  { %v188_v61 = vpop.f32.mrf.mxu0  ;;  %v228_v62 = vpop.f32.mrf.mxu1 }
  0xf2   :  { %v191_v63 = vpop.f32.mrf.mxu0  ;;  %v231_v0 = vpop.f32.mrf.mxu1 }
  0xf3   :  { %259 = vst.msk [vmem:[%s613_s2 + $0x18] sm:$0xff] %vm255_vm1, %v191_v63  ;;  %267 = vst.msk [vmem:[%s613_s2 + $0x58] sm:$0xff] %vm255_vm1, %v231_v0 }
  0xf4   :  { %v193_v1 = vpop.f32.mrf.mxu0  ;;  %v233_v2 = vpop.f32.mrf.mxu1 }
  0xf6   :  { %v196_v3 = vpop.f32.mrf.mxu0  ;;  %v236_v4 = vpop.f32.mrf.mxu1 }
  0xf7   :  { %260 = vst.msk [vmem:[%s613_s2 + $0x20] sm:$0xff] %vm255_vm1, %v196_v3  ;;  %268 = vst.msk [vmem:[%s613_s2 + $0x60] sm:$0xff] %vm255_vm1, %v236_v4 }
  0xf8   :  { %v198_v5 = vpop.f32.mrf.mxu0  ;;  %v238_v6 = vpop.f32.mrf.mxu1 }
  0xfa   :  { %v201_v7 = vpop.f32.mrf.mxu0  ;;  %v241_v8 = vpop.f32.mrf.mxu1 }
  0xfb   :  { %261 = vst.msk [vmem:[%s613_s2 + $0x28] sm:$0xff] %vm255_vm1, %v201_v7  ;;  %269 = vst.msk [vmem:[%s613_s2 + $0x68] sm:$0xff] %vm255_vm1, %v241_v8 }
  0xfc   :  { %v203_v9 = vpop.f32.mrf.mxu0  ;;  %v243_v10 = vpop.f32.mrf.mxu1 }
  0xfe   :  { %v206_v11 = vpop.f32.mrf.mxu0  ;;  %v246_v12 = vpop.f32.mrf.mxu1 }
  0xff   :  { %262 = vst.msk [vmem:[%s613_s2 + $0x30] sm:$0xff] %vm255_vm1, %v206_v11  ;;  %270 = vst.msk [vmem:[%s613_s2 + $0x70] sm:$0xff] %vm255_vm1, %v246_v12 }
 0x100   :  { %v208_v13 = vpop.f32.mrf.mxu0  ;;  %v248_v14 = vpop.f32.mrf.mxu1 }
 0x102   :  { %v211_v15 = vpop.f32.mrf.mxu0  ;;  %v251_v16 = vpop.f32.mrf.mxu1 }
 0x103   :  { %263 = vst.msk [vmem:[%s613_s2 + $0x38] sm:$0xff] %vm255_vm1, %v211_v15  ;;  %271 = vst.msk [vmem:[%s613_s2 + $0x78] sm:$0xff] %vm255_vm1, %v251_v16 }
 0x104   :  { %v213_v17 = vpop.f32.mrf.mxu0  ;;  %v253_v18 = vpop.f32.mrf.mxu1 }

// kernel: densenet_forward.40
= control target key start
LH: loop header
LB: loop body
LE: loop exit
PB: predicated region body
PF: predicated region fallthrough
CT: control target
= control target key end

     0   :  { %v122_v0 = vmov 0.0   ;;  %vm123_vm0 = vmmov 0   ;;  %vm25_vm1 = vcmask 195584   ;;  %vm99_vm2 = vcmask 58368   ;;  %s162_s1 = inlined_call_operand.vmem [shape: f32[24,8], index: 1, kind: input, shape index: {}]   ;;  %s163_s0 = inlined_call_operand.vmem [shape: f32[2,24], index: 0, kind: input, shape index: {}]   ;;  %s164_s2 = inlined_call_operand.vmem [shape: f32[1,8], index: 2, kind: input, shape index: {}]   ;;  %s165_s3 = inlined_call_operand.vmem [shape: f32[2,8], index: 3, kind: output, shape index: {}]  }
   0x1   :  { %111 = vmatprep.subr.mxu0 %v122_v0  ;;  %v17_v1 = vld [vmem:[%s162_s1 + $0x10] sm:$0xff]  ;;  %v16_v2 = vld [vmem:[%s162_s1 + $0x8] sm:$0xff]  ;;  %117 = vmatprep.mubr.msk.f32.mxu0 %vm123_vm0, %v122_v0  ;;  %v15_v3 = vld [vmem:[%s162_s1] sm:$0xff] }
   0x2   :  { %112 = vmatpush3.msra.mxu0 %v17_v1  ;;  %v14_v4 = vld [vmem:[%s163_s0] sm:$0x3] }
   0x3   :  { %113 = vmatprep.subr.mxu0 %v122_v0  ;;  %v105_v5 = vld [vmem:[%s164_s2] ss:$0 sm:$0xff] }
   0x4   :  { %114 = vmatpush3.msra.mxu0 %v16_v2 }
   0x5   :  { %115 = vmatprep.subr.mxu0 %v122_v0 }
   0x6   :  { %116 = vmatpush3.msra.mxu0 %v15_v3 }
   0x7   :  { %118 = vmatmul.mubr.msk.f32.vlgmr.msra.gmra.mxu0 %vm25_vm1, %v14_v4 }
  0xc7   :  { %v95_v6 = vpop.f32.mrf.mxu0 }
  0xc8   :  { %v96_v7 = vadd.f32 %v105_v5, %v95_v6 }
  0xc9   :  { %v119_v8 = vpop.f32.mrf.mxu0 }
  0xca   :  { %100 = vst.msk [vmem:[%s165_s3] sm:$0x3] %vm99_vm2, %v96_v7 }

// kernel: densenet_forward.39
= control target key start
LH: loop header
LB: loop body
LE: loop exit
PB: predicated region body
PF: predicated region fallthrough
CT: control target
= control target key end

     0   :  { %v291_v0 = vmov 0.0   ;;  %vm52_vm0 = vcmask 719872   ;;  %vm150_vm1 = vcmask 195584   ;;  %s510_s1 = inlined_call_operand.vmem [shape: f32[216,24], index: 1, kind: input, shape index: {}]   ;;  %s511_s0 = inlined_call_operand.vmem [shape: f32[32,216], index: 0, kind: input, shape index: {}]   ;;  %s512_s2 = inlined_call_operand.vmem [shape: f32[1,24], index: 2, kind: input, shape index: {}]   ;;  %s513_s3 = inlined_call_operand.vmem [shape: f32[1,24], index: 3, kind: input, shape index: {}]   ;;  %s514_s4 = inlined_call_operand.vmem [shape: f32[32,24], index: 4, kind: output, shape index: {}]  }
   0x1   :  { %65 = vmatprep.subr.mxu0 %v291_v0  ;;  %v40_v1 = vld [vmem:[%s510_s1 + $0x78] sm:$0xff]  ;;  %234 = vmatprep.subr.mxu1 %v291_v0  ;;  %v39_v2 = vld [vmem:[%s510_s1 + $0x70] sm:$0xff]  ;;  %v38_v3 = vld [vmem:[%s510_s1 + $0x68] sm:$0xff] }
   0x2   :  { %66 = vmatpush1.msra.mxu0 %v40_v1  ;;  %261 = vmatpush1.msra.mxu1 %v40_v1  ;;  %v37_v4 = vld [vmem:[%s510_s1 + $0x60] sm:$0xff]  ;;  %v36_v5 = vld [vmem:[%s510_s1 + $0x58] sm:$0xff]  ;;  %v35_v6 = vld [vmem:[%s510_s1 + $0x50] sm:$0xff] }
   0x3   :  { %67 = vmatprep.subr.mxu0 %v291_v0  ;;  %235 = vmatprep.subr.mxu1 %v291_v0  ;;  %v34_v7 = vld [vmem:[%s510_s1 + $0x48] sm:$0xff]  ;;  %v33_v8 = vld [vmem:[%s510_s1 + $0x40] sm:$0xff]  ;;  %v32_v9 = vld [vmem:[%s510_s1 + $0x38] sm:$0xff] }
   0x4   :  { %68 = vmatpush1.msra.mxu0 %v39_v2  ;;  %262 = vmatpush1.msra.mxu1 %v39_v2  ;;  %v31_v10 = vld [vmem:[%s510_s1 + $0x30] sm:$0xff]  ;;  %v30_v11 = vld [vmem:[%s510_s1 + $0x28] sm:$0xff]  ;;  %v29_v12 = vld [vmem:[%s510_s1 + $0x20] sm:$0xff] }
   0x5   :  { %69 = vmatprep.subr.mxu0 %v291_v0  ;;  %236 = vmatprep.subr.mxu1 %v291_v0  ;;  %v28_v13 = vld [vmem:[%s510_s1 + $0x18] sm:$0xff]  ;;  %v27_v14 = vld [vmem:[%s510_s1 + $0x10] sm:$0xff]  ;;  %v26_v15 = vld [vmem:[%s510_s1 + $0x8] sm:$0xff] }
   0x6   :  { %70 = vmatpush1.msra.mxu0 %v38_v3  ;;  %263 = vmatpush1.msra.mxu1 %v38_v3  ;;  %v25_v16 = vld [vmem:[%s510_s1] sm:$0xff]  ;;  %v51_v17 = vld [vmem:[%s510_s1 + $0xd0] sm:$0xff]  ;;  %v50_v18 = vld [vmem:[%s510_s1 + $0xc8] sm:$0xff] }
   0x7   :  { %71 = vmatprep.subr.mxu0 %v291_v0  ;;  %237 = vmatprep.subr.mxu1 %v291_v0  ;;  %v49_v19 = vld [vmem:[%s510_s1 + $0xc0] sm:$0xff]  ;;  %v48_v20 = vld [vmem:[%s510_s1 + $0xb8] sm:$0xff]  ;;  %v47_v21 = vld [vmem:[%s510_s1 + $0xb0] sm:$0xff] }
   0x8   :  { %72 = vmatpush1.msra.mxu0 %v37_v4  ;;  %264 = vmatpush1.msra.mxu1 %v37_v4  ;;  %v46_v22 = vld [vmem:[%s510_s1 + $0xa8] sm:$0xff]  ;;  %v45_v23 = vld [vmem:[%s510_s1 + $0xa0] sm:$0xff]  ;;  %v44_v24 = vld [vmem:[%s510_s1 + $0x98] sm:$0xff] }
   0x9   :  { %73 = vmatprep.subr.mxu0 %v291_v0  ;;  %238 = vmatprep.subr.mxu1 %v291_v0  ;;  %v43_v25 = vld [vmem:[%s510_s1 + $0x90] sm:$0xff]  ;;  %v42_v26 = vld [vmem:[%s510_s1 + $0x88] sm:$0xff]  ;;  %v41_v28 = vld [vmem:[%s510_s1 + $0x80] sm:$0xff] }
   0xa   :  { %74 = vmatpush1.msra.mxu0 %v36_v5  ;;  %265 = vmatpush1.msra.mxu1 %v36_v5  ;;  %v18_v27 = vld [vmem:[%s511_s0 + $0x8] sm:$0xff]  ;;  %v17_v29 = vld [vmem:[%s511_s0] sm:$0xff]  ;;  %v20_v31 = vld [vmem:[%s511_s0 + $0x18] sm:$0xff] }
   0xb   :  { %75 = vmatprep.subr.mxu0 %v291_v0  ;;  %239 = vmatprep.subr.mxu1 %v291_v0  ;;  %v22_v30 = vld [vmem:[%s511_s0 + $0x28] sm:$0xff]  ;;  %v21_v32 = vld [vmem:[%s511_s0 + $0x20] sm:$0xff]  ;;  %v24_v33 = vld [vmem:[%s511_s0 + $0x38] sm:$0xff] }
   0xc   :  { %76 = vmatpush1.msra.mxu0 %v35_v6  ;;  %266 = vmatpush1.msra.mxu1 %v35_v6  ;;  %v19_v34 = vld [vmem:[%s511_s0 + $0x10] sm:$0xff] }
   0xd   :  { %77 = vmatprep.subr.mxu0 %v291_v0  ;;  %240 = vmatprep.subr.mxu1 %v291_v0  ;;  %v23_v35 = vld [vmem:[%s511_s0 + $0x30] sm:$0xff] }
   0xe   :  { %78 = vmatpush1.msra.mxu0 %v34_v7  ;;  %267 = vmatpush1.msra.mxu1 %v34_v7 }
   0xf   :  { %79 = vmatprep.subr.mxu0 %v291_v0  ;;  %241 = vmatprep.subr.mxu1 %v291_v0 }
  0x10   :  { %80 = vmatpush1.msra.mxu0 %v33_v8  ;;  %268 = vmatpush1.msra.mxu1 %v33_v8 }
  0x11   :  { %81 = vmatprep.subr.mxu0 %v291_v0  ;;  %242 = vmatprep.subr.mxu1 %v291_v0 }
  0x12   :  { %82 = vmatpush1.msra.mxu0 %v32_v9  ;;  %269 = vmatpush1.msra.mxu1 %v32_v9 }
  0x13   :  { %83 = vmatprep.subr.mxu0 %v291_v0  ;;  %243 = vmatprep.subr.mxu1 %v291_v0 }
  0x14   :  { %84 = vmatpush1.msra.mxu0 %v31_v10  ;;  %270 = vmatpush1.msra.mxu1 %v31_v10 }
  0x15   :  { %85 = vmatprep.subr.mxu0 %v291_v0  ;;  %244 = vmatprep.subr.mxu1 %v291_v0 }
  0x16   :  { %86 = vmatpush1.msra.mxu0 %v30_v11  ;;  %271 = vmatpush1.msra.mxu1 %v30_v11 }
  0x17   :  { %87 = vmatprep.subr.mxu0 %v291_v0  ;;  %245 = vmatprep.subr.mxu1 %v291_v0 }
  0x18   :  { %88 = vmatpush1.msra.mxu0 %v29_v12  ;;  %272 = vmatpush1.msra.mxu1 %v29_v12 }
  0x19   :  { %89 = vmatprep.subr.mxu0 %v291_v0  ;;  %246 = vmatprep.subr.mxu1 %v291_v0 }
  0x1a   :  { %90 = vmatpush1.msra.mxu0 %v28_v13  ;;  %273 = vmatpush1.msra.mxu1 %v28_v13 }
  0x1b   :  { %91 = vmatprep.subr.mxu0 %v291_v0  ;;  %247 = vmatprep.subr.mxu1 %v291_v0 }
  0x1c   :  { %92 = vmatpush1.msra.mxu0 %v27_v14  ;;  %274 = vmatpush1.msra.mxu1 %v27_v14 }
  0x1d   :  { %93 = vmatprep.subr.mxu0 %v291_v0  ;;  %248 = vmatprep.subr.mxu1 %v291_v0 }
  0x1e   :  { %94 = vmatpush1.msra.mxu0 %v26_v15  ;;  %275 = vmatpush1.msra.mxu1 %v26_v15 }
  0x1f   :  { %95 = vmatprep.subr.mxu0 %v291_v0  ;;  %249 = vmatprep.subr.mxu1 %v291_v0 }
  0x20   :  { %96 = vmatpush1.msra.mxu0 %v25_v16  ;;  %276 = vmatpush1.msra.mxu1 %v25_v16 }
  0x21   :  { %107 = vmatprep.subr.mxu0 %v291_v0  ;;  %250 = vmatprep.subr.mxu1 %v291_v0 }
  0x22   :  { %108 = vmatpush2.msra.mxu0 %v51_v17  ;;  %277 = vmatpush2.msra.mxu1 %v51_v17 }
  0x23   :  { %109 = vmatprep.subr.mxu0 %v291_v0  ;;  %251 = vmatprep.subr.mxu1 %v291_v0 }
  0x24   :  { %110 = vmatpush2.msra.mxu0 %v50_v18  ;;  %278 = vmatpush2.msra.mxu1 %v50_v18  ;;  %v232_v18 = vld [vmem:[%s512_s2] ss:$0 sm:$0xff] }
  0x25   :  { %111 = vmatprep.subr.mxu0 %v291_v0  ;;  %252 = vmatprep.subr.mxu1 %v291_v0 }
  0x26   :  { %112 = vmatpush2.msra.mxu0 %v49_v19  ;;  %279 = vmatpush2.msra.mxu1 %v49_v19 }
  0x27   :  { %113 = vmatprep.subr.mxu0 %v291_v0  ;;  %253 = vmatprep.subr.mxu1 %v291_v0 }
  0x28   :  { %114 = vmatpush2.msra.mxu0 %v48_v20  ;;  %280 = vmatpush2.msra.mxu1 %v48_v20 }
  0x29   :  { %115 = vmatprep.subr.mxu0 %v291_v0  ;;  %254 = vmatprep.subr.mxu1 %v291_v0 }
  0x2a   :  { %116 = vmatpush2.msra.mxu0 %v47_v21  ;;  %281 = vmatpush2.msra.mxu1 %v47_v21 }
  0x2b   :  { %117 = vmatprep.subr.mxu0 %v291_v0  ;;  %255 = vmatprep.subr.mxu1 %v291_v0 }
  0x2c   :  { %118 = vmatpush2.msra.mxu0 %v46_v22  ;;  %282 = vmatpush2.msra.mxu1 %v46_v22 }
  0x2d   :  { %119 = vmatprep.subr.mxu0 %v291_v0  ;;  %256 = vmatprep.subr.mxu1 %v291_v0 }
  0x2e   :  { %120 = vmatpush2.msra.mxu0 %v45_v23  ;;  %283 = vmatpush2.msra.mxu1 %v45_v23  ;;  %v233_v23 = vld [vmem:[%s513_s3] ss:$0 sm:$0xff] }
  0x2f   :  { %121 = vmatprep.subr.mxu0 %v291_v0  ;;  %257 = vmatprep.subr.mxu1 %v291_v0 }
  0x30   :  { %122 = vmatpush2.msra.mxu0 %v44_v24  ;;  %284 = vmatpush2.msra.mxu1 %v44_v24 }
  0x31   :  { %123 = vmatprep.subr.mxu0 %v291_v0  ;;  %258 = vmatprep.subr.mxu1 %v291_v0 }
  0x32   :  { %124 = vmatpush2.msra.mxu0 %v43_v25  ;;  %285 = vmatpush2.msra.mxu1 %v43_v25 }
  0x33   :  { %125 = vmatprep.subr.mxu0 %v291_v0  ;;  %259 = vmatprep.subr.mxu1 %v291_v0 }
  0x34   :  { %126 = vmatpush2.msra.mxu0 %v42_v26  ;;  %286 = vmatpush2.msra.mxu1 %v42_v26 }
  0x35   :  { %127 = vmatprep.subr.mxu0 %v291_v0  ;;  %228 = vmatprep.mubr.msk.f32.mxu0 %vm52_vm0, %v18_v27 }
  0x36   :  { %128 = vmatpush2.msra.mxu0 %v41_v28  ;;  %260 = vmatprep.subr.mxu1 %v291_v0 }
  0x37   :  { %130 = vmatmul.mubr.f32.vlgmr.msra.gmra.mxu0 %v17_v29  ;;  %287 = vmatpush2.msra.mxu1 %v41_v28 }
  0x38   :  { %230 = vmatprep.mubr.msk.f32.mxu1 %vm52_vm0, %v22_v30  ;;  %229 = vmatprep.mubr.msk.f32.mxu0 %vm52_vm0, %v20_v31 }
  0x39   :  { %140 = vmatmul.mubr.f32.vlgmr.msra.gmra.mxu1 %v21_v32 }
  0x3a   :  { %231 = vmatprep.mubr.msk.f32.mxu1 %vm52_vm0, %v24_v33 }
  0x3b   :  { %135 = vmatmul.mubr.f32.gmra.mxu0 %v19_v34 }
  0x3d   :  { %145 = vmatmul.mubr.f32.gmra.mxu1 %v23_v35 }
  0xf7   :  { %v131_v36 = vpop.f32.mrf.mxu0 }
  0xf8   :  { %v151_v41 = vsel %vm150_vm1, %v131_v36, 0.0 }
  0xf9   :  { %v133_v37 = vpop.f32.mrf.mxu0  ;;  %v141_v38 = vpop.f32.mrf.mxu1 }
  0xfa   :  { %v154_v46 = vsel %vm150_vm1, %v141_v38, 0.0 }
  0xfb   :  { %v136_v39 = vpop.f32.mrf.mxu0  ;;  %v143_v40 = vpop.f32.mrf.mxu1 }
  0xfc   :  { %v152_v42 = vsel %vm150_vm1, %v136_v39, 0.0 }
  0xfd   :  { %v153_v43 = vadd.f32 %v152_v42, %v151_v41  ;;  %v138_v44 = vpop.f32.mrf.mxu0  ;;  %v146_v45 = vpop.f32.mrf.mxu1 }
  0xfe   :  { %v156_v47 = vsel %vm150_vm1, %v146_v45, 0.0 }
  0xff   :  { %v155_v48 = vadd.f32 %v154_v46, %v153_v43  ;;  %v148_v49 = vpop.f32.mrf.mxu1 }
 0x101   :  { %v157_v50 = vadd.f32 %v156_v47, %v155_v48 }
 0x103   :  { %v158_v51 = vrot.slane %v157_v50, 4 }
 0x105   :  { %v159_v52 = vadd.f32 %v158_v51, %v157_v50 }
 0x107   :  { %v160_v53 = vrot.slane %v159_v52, 2 }
 0x109   :  { %v161_v54 = vadd.f32 %v160_v53, %v159_v52 }
 0x10b   :  { %v162_v55 = vrot.slane %v161_v54, 1 }
 0x10d   :  { %v163_v56 = vadd.f32 %v162_v55, %v161_v54 }
 0x10f   :  { %v165_v57 = vmul.f32 0.03125, %v163_v56 }
 0x111   :  { %v166_v58 = vsub.f32 %v131_v36, %v165_v57  ;;  %v167_v59 = vsub.f32 %v136_v39, %v165_v57  ;;  %v168_v60 = vsub.f32 %v141_v38, %v165_v57  ;;  %v169_v61 = vsub.f32 %v146_v45, %v165_v57 }
 0x113   :  { %v170_v62 = vmul.f32 %v166_v58, %v166_v58  ;;  %v171_v63 = vmul.f32 %v167_v59, %v167_v59  ;;  %v172_v0 = vmul.f32 %v168_v60, %v168_v60  ;;  %v173_v1 = vmul.f32 %v169_v61, %v169_v61 }
 0x115   :  { %v174_v2 = vsel %vm150_vm1, %v170_v62, 0.0  ;;  %v175_v3 = vsel %vm150_vm1, %v171_v63, 0.0  ;;  %v177_v5 = vsel %vm150_vm1, %v172_v0, 0.0  ;;  %v179_v7 = vsel %vm150_vm1, %v173_v1, 0.0 }
 0x116   :  { %v176_v4 = vadd.f32 %v175_v3, %v174_v2 }
 0x118   :  { %v178_v6 = vadd.f32 %v177_v5, %v176_v4 }
 0x11a   :  { %v180_v8 = vadd.f32 %v179_v7, %v178_v6 }
 0x11c   :  { %v181_v9 = vrot.slane %v180_v8, 4 }
 0x11e   :  { %v182_v10 = vadd.f32 %v181_v9, %v180_v8 }
 0x120   :  { %v183_v11 = vrot.slane %v182_v10, 2 }
 0x122   :  { %v184_v12 = vadd.f32 %v183_v11, %v182_v10 }
 0x124   :  { %v185_v13 = vrot.slane %v184_v12, 1 }
 0x126   :  { %v186_v14 = vadd.f32 %v185_v13, %v184_v12 }
 0x128   :  { %v187_v15 = vmul.f32 0.03125, %v186_v14 }
 0x12a   :  { %v188_v16 = vadd.f32 1e-05, %v187_v15 }
 0x12c   :  { %289 = vrsqrt.f32 %v188_v16 }
 0x139   :  { %v290_v17 = vpop.eup %289 }
 0x13a   :  { %v190_v19 = vmul.f32 %v290_v17, %v166_v58  ;;  %v191_v20 = vmul.f32 %v290_v17, %v167_v59  ;;  %v192_v21 = vmul.f32 %v290_v17, %v168_v60  ;;  %v193_v22 = vmul.f32 %v290_v17, %v169_v61 }
 0x13c   :  { %v201_v24 = vmul.f32 %v232_v18, %v190_v19  ;;  %v202_v25 = vmul.f32 %v232_v18, %v191_v20  ;;  %v203_v26 = vmul.f32 %v232_v18, %v192_v21  ;;  %v204_v27 = vmul.f32 %v232_v18, %v193_v22 }
 0x13e   :  { %v212_v28 = vadd.f32 %v233_v23, %v201_v24  ;;  %v213_v29 = vadd.f32 %v233_v23, %v202_v25  ;;  %v214_v30 = vadd.f32 %v233_v23, %v203_v26  ;;  %v215_v31 = vadd.f32 %v233_v23, %v204_v27 }
 0x140   :  { %v216_v32 = vmax.f32 %v212_v28, 0.0  ;;  %v217_v33 = vmax.f32 %v213_v29, 0.0  ;;  %v218_v34 = vmax.f32 %v214_v30, 0.0  ;;  %v219_v35 = vmax.f32 %v215_v31, 0.0 }
 0x142   :  { %220 = vst.msk [vmem:[%s514_s4] sm:$0xff] %vm150_vm1, %v216_v32  ;;  %221 = vst.msk [vmem:[%s514_s4 + $0x8] sm:$0xff] %vm150_vm1, %v217_v33 }
 0x143   :  { %222 = vst.msk [vmem:[%s514_s4 + $0x10] sm:$0xff] %vm150_vm1, %v218_v34  ;;  %223 = vst.msk [vmem:[%s514_s4 + $0x18] sm:$0xff] %vm150_vm1, %v219_v35 }

// kernel: densenet_forward.41
= control target key start
LH: loop header
LB: loop body
LE: loop exit
PB: predicated region body
PF: predicated region fallthrough
CT: control target
= control target key end

     0   :  { %vm39_vm0 = vcmask 195584   ;;  %vm425_vm1 = vcmask 130048   ;;  %s1154_s1 = inlined_call_operand.vmem [shape: f32[24,16], index: 1, kind: input, shape index: {}]   ;;  %s1155_s0 = inlined_call_operand.vmem [shape: f32[128,24], index: 0, kind: input, shape index: {}]   ;;  %s1156_s2 = inlined_call_operand.vmem [shape: f32[1,24], index: 2, kind: input, shape index: {}]   ;;  %s1157_s3 = inlined_call_operand.vmem [shape: f32[1,24], index: 3, kind: input, shape index: {}]   ;;  %s1158_s4 = inlined_call_operand.vmem [shape: f32[1,16], index: 4, kind: input, shape index: {}]   ;;  %s1159_s5 = inlined_call_operand.vmem [shape: f32[1,16], index: 5, kind: input, shape index: {}]   ;;  %s1160_s6 = inlined_call_operand.vmem [shape: f32[128,16], index: 6, kind: output, shape index: {}]  }
   0x1   :  { %v231_v0 = vld [vmem:[%s1154_s1 + $0x10] sm:$0xff]  ;;  %v230_v1 = vld [vmem:[%s1154_s1 + $0x8] sm:$0xff]  ;;  %v757_v2 = vld [vmem:[%s1155_s0] sm:$0xff] }
   0x2   :  { %673 = vmatprep.subr.mxu0 %v231_v0  ;;  %v762_v3 = vld [vmem:[%s1155_s0 + $0x8] sm:$0xff]  ;;  %v767_v4 = vld [vmem:[%s1155_s0 + $0x10] sm:$0xff]  ;;  %703 = vmatprep.subr.mxu1 %v231_v0  ;;  %v229_v5 = vld [vmem:[%s1154_s1] sm:$0xff]  ;;  %v40_v7 = vsel %vm39_vm0, %v757_v2, 0.0 }
   0x3   :  { %674 = vmatpush3.msra.mxu0 %v231_v0  ;;  %v775_v6 = vld [vmem:[%s1155_s0 + $0x18] sm:$0xff]  ;;  %v41_v8 = vsel %vm39_vm0, %v762_v3, 0.0  ;;  %v43_v9 = vsel %vm39_vm0, %v767_v4, 0.0  ;;  %706 = vmatpush3.msra.mxu1 %v231_v0  ;;  %v27_v10 = vld [vmem:[%s1155_s0 + $0x20] sm:$0xff]  ;;  %v28_v13 = vld [vmem:[%s1155_s0 + $0x28] sm:$0xff] }
   0x4   :  { %675 = vmatprep.subr.mxu0 %v230_v1  ;;  %v42_v11 = vadd.f32 %v41_v8, %v40_v7  ;;  %704 = vmatprep.subr.mxu1 %v230_v1  ;;  %v45_v12 = vsel %vm39_vm0, %v775_v6, 0.0  ;;  %v47_v15 = vsel %vm39_vm0, %v27_v10, 0.0  ;;  %v29_v16 = vld [vmem:[%s1155_s0 + $0x30] sm:$0xff]  ;;  %v49_v18 = vsel %vm39_vm0, %v28_v13, 0.0  ;;  %v30_v19 = vld [vmem:[%s1155_s0 + $0x38] sm:$0xff]  ;;  %v31_v22 = vld [vmem:[%s1155_s0 + $0x40] sm:$0xff] }
   0x5   :  { %676 = vmatpush3.msra.mxu0 %v230_v1  ;;  %707 = vmatpush3.msra.mxu1 %v230_v1  ;;  %v51_v21 = vsel %vm39_vm0, %v29_v16, 0.0  ;;  %v53_v24 = vsel %vm39_vm0, %v30_v19, 0.0  ;;  %v32_v25 = vld [vmem:[%s1155_s0 + $0x48] sm:$0xff]  ;;  %v55_v27 = vsel %vm39_vm0, %v31_v22, 0.0  ;;  %v33_v28 = vld [vmem:[%s1155_s0 + $0x50] sm:$0xff]  ;;  %v34_v31 = vld [vmem:[%s1155_s0 + $0x58] sm:$0xff] }
   0x6   :  { %677 = vmatprep.subr.mxu0 %v229_v5  ;;  %v44_v14 = vadd.f32 %v43_v9, %v42_v11  ;;  %705 = vmatprep.subr.mxu1 %v229_v5  ;;  %v57_v30 = vsel %vm39_vm0, %v32_v25, 0.0  ;;  %v59_v33 = vsel %vm39_vm0, %v33_v28, 0.0  ;;  %v35_v34 = vld [vmem:[%s1155_s0 + $0x60] sm:$0xff]  ;;  %v61_v36 = vsel %vm39_vm0, %v34_v31, 0.0  ;;  %v36_v37 = vld [vmem:[%s1155_s0 + $0x68] sm:$0xff]  ;;  %v37_v40 = vld [vmem:[%s1155_s0 + $0x70] sm:$0xff] }
   0x7   :  { %678 = vmatpush3.msra.mxu0 %v229_v5  ;;  %708 = vmatpush3.msra.mxu1 %v229_v5  ;;  %v63_v39 = vsel %vm39_vm0, %v35_v34, 0.0  ;;  %v65_v42 = vsel %vm39_vm0, %v36_v37, 0.0  ;;  %v38_v43 = vld [vmem:[%s1155_s0 + $0x78] sm:$0xff]  ;;  %v67_v45 = vsel %vm39_vm0, %v37_v40, 0.0 }
   0x8   :  { %v46_v17 = vadd.f32 %v45_v12, %v44_v14  ;;  %v69_v47 = vsel %vm39_vm0, %v38_v43, 0.0 }
   0xa   :  { %v48_v20 = vadd.f32 %v47_v15, %v46_v17 }
   0xc   :  { %v50_v23 = vadd.f32 %v49_v18, %v48_v20 }
   0xe   :  { %v52_v26 = vadd.f32 %v51_v21, %v50_v23 }
  0x10   :  { %v54_v29 = vadd.f32 %v53_v24, %v52_v26 }
  0x12   :  { %v56_v32 = vadd.f32 %v55_v27, %v54_v29 }
  0x14   :  { %v58_v35 = vadd.f32 %v57_v30, %v56_v32 }
  0x16   :  { %v60_v38 = vadd.f32 %v59_v33, %v58_v35 }
  0x18   :  { %v62_v41 = vadd.f32 %v61_v36, %v60_v38 }
  0x1a   :  { %v64_v44 = vadd.f32 %v63_v39, %v62_v41 }
  0x1c   :  { %v66_v46 = vadd.f32 %v65_v42, %v64_v44 }
  0x1e   :  { %v68_v48 = vadd.f32 %v67_v45, %v66_v46 }
  0x20   :  { %v70_v49 = vadd.f32 %v69_v47, %v68_v48 }
  0x22   :  { %v71_v50 = vrot.slane %v70_v49, 4 }
  0x24   :  { %v72_v51 = vadd.f32 %v71_v50, %v70_v49 }
  0x26   :  { %v73_v52 = vrot.slane %v72_v51, 2 }
  0x28   :  { %v74_v53 = vadd.f32 %v73_v52, %v72_v51 }
  0x2a   :  { %v75_v54 = vrot.slane %v74_v53, 1 }
  0x2c   :  { %v76_v55 = vadd.f32 %v75_v54, %v74_v53 }
  0x2e   :  { %v78_v56 = vmul.f32 0.0078125, %v76_v55 }
  0x30   :  { %v834_v57 = vsub.f32 %v757_v2, %v78_v56  ;;  %v837_v58 = vsub.f32 %v762_v3, %v78_v56  ;;  %v840_v59 = vsub.f32 %v767_v4, %v78_v56  ;;  %v843_v60 = vsub.f32 %v775_v6, %v78_v56 }
  0x31   :  { %v845_v61 = vsub.f32 %v27_v10, %v78_v56  ;;  %v853_v1 = vsub.f32 %v28_v13, %v78_v56  ;;  %v857_v3 = vsub.f32 %v29_v16, %v78_v56  ;;  %v864_v9 = vsub.f32 %v30_v19, %v78_v56 }
  0x32   :  { %v95_v62 = vmul.f32 %v834_v57, %v834_v57  ;;  %v96_v63 = vmul.f32 %v837_v58, %v837_v58  ;;  %v97_v0 = vmul.f32 %v840_v59, %v840_v59  ;;  %v98_v2 = vmul.f32 %v843_v60, %v843_v60 }
  0x33   :  { %v99_v4 = vmul.f32 %v845_v61, %v845_v61  ;;  %v100_v10 = vmul.f32 %v853_v1, %v853_v1  ;;  %v869_v13 = vsub.f32 %v31_v22, %v78_v56  ;;  %v101_v14 = vmul.f32 %v857_v3, %v857_v3 }
  0x34   :  { %v111_v5 = vsel %vm39_vm0, %v95_v62, 0.0  ;;  %v112_v6 = vsel %vm39_vm0, %v96_v63, 0.0  ;;  %v114_v7 = vsel %vm39_vm0, %v97_v0, 0.0  ;;  %v116_v11 = vsel %vm39_vm0, %v98_v2, 0.0 }
  0x35   :  { %v113_v8 = vadd.f32 %v112_v6, %v111_v5  ;;  %v118_v15 = vsel %vm39_vm0, %v99_v4, 0.0  ;;  %v874_v17 = vsub.f32 %v32_v25, %v78_v56  ;;  %v102_v18 = vmul.f32 %v864_v9, %v864_v9 }
  0x36   :  { %v120_v19 = vsel %vm39_vm0, %v100_v10, 0.0  ;;  %v879_v21 = vsub.f32 %v33_v28, %v78_v56  ;;  %v103_v22 = vmul.f32 %v869_v13, %v869_v13  ;;  %v122_v23 = vsel %vm39_vm0, %v101_v14, 0.0 }
  0x37   :  { %v115_v12 = vadd.f32 %v114_v7, %v113_v8  ;;  %v884_v26 = vsub.f32 %v34_v31, %v78_v56  ;;  %v104_v25 = vmul.f32 %v874_v17, %v874_v17  ;;  %v124_v27 = vsel %vm39_vm0, %v102_v18, 0.0  ;;  %v920_v8 = vld [vmem:[%s1156_s2] ss:$0 sm:$0xff] }
  0x38   :  { %v889_v30 = vsub.f32 %v35_v34, %v78_v56  ;;  %v105_v28 = vmul.f32 %v879_v21, %v879_v21  ;;  %v126_v32 = vsel %vm39_vm0, %v103_v22, 0.0  ;;  %v894_v35 = vsub.f32 %v36_v37, %v78_v56 }
  0x39   :  { %v117_v16 = vadd.f32 %v116_v11, %v115_v12  ;;  %v106_v31 = vmul.f32 %v884_v26, %v884_v26  ;;  %v128_v36 = vsel %vm39_vm0, %v104_v25, 0.0  ;;  %v899_v39 = vsub.f32 %v37_v40, %v78_v56 }
  0x3a   :  { %v107_v34 = vmul.f32 %v889_v30, %v889_v30  ;;  %v130_v41 = vsel %vm39_vm0, %v105_v28, 0.0  ;;  %v904_v44 = vsub.f32 %v38_v43, %v78_v56  ;;  %v108_v37 = vmul.f32 %v894_v35, %v894_v35 }
  0x3b   :  { %v119_v20 = vadd.f32 %v118_v15, %v117_v16  ;;  %v132_v45 = vsel %vm39_vm0, %v106_v31, 0.0  ;;  %v109_v47 = vmul.f32 %v899_v39, %v899_v39  ;;  %v929_v15 = vld [vmem:[%s1157_s3] ss:$0 sm:$0xff] }
  0x3c   :  { %v134_v40 = vsel %vm39_vm0, %v107_v34, 0.0  ;;  %v110_v49 = vmul.f32 %v904_v44, %v904_v44  ;;  %v136_v50 = vsel %vm39_vm0, %v108_v37, 0.0 }
  0x3d   :  { %v121_v24 = vadd.f32 %v120_v19, %v119_v20  ;;  %v138_v43 = vsel %vm39_vm0, %v109_v47, 0.0 }
  0x3e   :  { %v140_v53 = vsel %vm39_vm0, %v110_v49, 0.0 }
  0x3f   :  { %v123_v29 = vadd.f32 %v122_v23, %v121_v24 }
  0x41   :  { %v125_v33 = vadd.f32 %v124_v27, %v123_v29 }
  0x43   :  { %v127_v38 = vadd.f32 %v126_v32, %v125_v33 }
  0x45   :  { %v129_v42 = vadd.f32 %v128_v36, %v127_v38 }
  0x47   :  { %v131_v46 = vadd.f32 %v130_v41, %v129_v42 }
  0x49   :  { %v133_v48 = vadd.f32 %v132_v45, %v131_v46 }
  0x4b   :  { %v135_v51 = vadd.f32 %v134_v40, %v133_v48 }
  0x4d   :  { %v137_v52 = vadd.f32 %v136_v50, %v135_v51 }
  0x4f   :  { %v139_v54 = vadd.f32 %v138_v43, %v137_v52 }
  0x51   :  { %v141_v55 = vadd.f32 %v140_v53, %v139_v54 }
  0x53   :  { %v142_v56 = vrot.slane %v141_v55, 4 }
  0x55   :  { %v143_v62 = vadd.f32 %v142_v56, %v141_v55 }
  0x57   :  { %v144_v63 = vrot.slane %v143_v62, 2 }
  0x59   :  { %v145_v0 = vadd.f32 %v144_v63, %v143_v62 }
  0x5b   :  { %v146_v2 = vrot.slane %v145_v0, 1 }
  0x5d   :  { %v147_v4 = vadd.f32 %v146_v2, %v145_v0 }
  0x5f   :  { %v148_v5 = vmul.f32 0.0078125, %v147_v4 }
  0x61   :  { %v149_v6 = vadd.f32 1e-05, %v148_v5 }
  0x63   :  { %709 = vrsqrt.f32 %v149_v6 }
  0x70   :  { %v710_v7 = vpop.eup %709 }
  0x71   :  { %v151_v10 = vmul.f32 %v710_v7, %v834_v57  ;;  %v152_v11 = vmul.f32 %v710_v7, %v837_v58  ;;  %v153_v12 = vmul.f32 %v710_v7, %v840_v59  ;;  %v154_v14 = vmul.f32 %v710_v7, %v843_v60 }
  0x72   :  { %v155_v16 = vmul.f32 %v710_v7, %v845_v61  ;;  %v156_v18 = vmul.f32 %v710_v7, %v853_v1  ;;  %v157_v19 = vmul.f32 %v710_v7, %v857_v3  ;;  %v158_v61 = vmul.f32 %v710_v7, %v864_v9 }
  0x73   :  { %v174_v20 = vmul.f32 %v920_v8, %v151_v10  ;;  %v175_v57 = vmul.f32 %v920_v8, %v152_v11  ;;  %v176_v58 = vmul.f32 %v920_v8, %v153_v12  ;;  %v177_v59 = vmul.f32 %v920_v8, %v154_v14 }
  0x74   :  { %v178_v60 = vmul.f32 %v920_v8, %v155_v16  ;;  %v179_v22 = vmul.f32 %v920_v8, %v156_v18  ;;  %v180_v23 = vmul.f32 %v920_v8, %v157_v19  ;;  %v181_v9 = vmul.f32 %v920_v8, %v158_v61 }
  0x75   :  { %v197_v1 = vadd.f32 %v929_v15, %v174_v20  ;;  %v198_v3 = vadd.f32 %v929_v15, %v175_v57  ;;  %v199_v24 = vadd.f32 %v929_v15, %v176_v58  ;;  %v200_v25 = vadd.f32 %v929_v15, %v177_v59 }
  0x76   :  { %v201_v27 = vadd.f32 %v929_v15, %v178_v60  ;;  %v202_v31 = vadd.f32 %v929_v15, %v179_v22  ;;  %v203_v36 = vadd.f32 %v929_v15, %v180_v23  ;;  %v159_v38 = vmul.f32 %v710_v7, %v869_v13 }
  0x77   :  { %v213_v29 = vmax.f32 %v197_v1, 0.0  ;;  %v214_v28 = vmax.f32 %v198_v3, 0.0  ;;  %v215_v32 = vmax.f32 %v199_v24, 0.0  ;;  %v216_v33 = vmax.f32 %v200_v25, 0.0 }
  0x78   :  { %v160_v34 = vmul.f32 %v710_v7, %v874_v17  ;;  %v161_v41 = vmul.f32 %v710_v7, %v879_v21  ;;  %v162_v42 = vmul.f32 %v710_v7, %v884_v26  ;;  %v217_v37 = vmax.f32 %v201_v27, 0.0 }
  0x79   :  { %679 = vmatprep.mubr.msk.f32.mxu0 %vm39_vm0, %v213_v29  ;;  %v163_v45 = vmul.f32 %v710_v7, %v889_v30  ;;  %v164_v46 = vmul.f32 %v710_v7, %v894_v35  ;;  %v165_v47 = vmul.f32 %v710_v7, %v899_v39  ;;  %v182_v40 = vmul.f32 %v920_v8, %v159_v38 }
  0x7a   :  { %680 = vmatmul.mubr.msk.f32.vlgmr.msra.gmra.mxu0 %vm39_vm0, %v214_v28  ;;  %v183_v13 = vmul.f32 %v920_v8, %v160_v34  ;;  %v184_v17 = vmul.f32 %v920_v8, %v161_v41  ;;  %v185_v21 = vmul.f32 %v920_v8, %v162_v42  ;;  %v218_v26 = vmax.f32 %v202_v31, 0.0 }
  0x7b   :  { %682 = vmatprep.mubr.msk.f32.mxu0 %vm39_vm0, %v215_v32  ;;  %v204_v48 = vadd.f32 %v929_v15, %v181_v9  ;;  %v186_v49 = vmul.f32 %v920_v8, %v163_v45  ;;  %v219_v30 = vmax.f32 %v203_v36, 0.0  ;;  %v205_v35 = vadd.f32 %v929_v15, %v182_v40 }
  0x7c   :  { %v206_v39 = vadd.f32 %v929_v15, %v183_v13  ;;  %v207_v50 = vadd.f32 %v929_v15, %v184_v17  ;;  %v208_v51 = vadd.f32 %v929_v15, %v185_v21  ;;  %v187_v43 = vmul.f32 %v920_v8, %v164_v46 }
  0x7d   :  { %v188_v52 = vmul.f32 %v920_v8, %v165_v47  ;;  %v166_v53 = vmul.f32 %v710_v7, %v904_v44  ;;  %v221_v54 = vmax.f32 %v205_v35, 0.0  ;;  %v209_v62 = vadd.f32 %v929_v15, %v186_v49 }
  0x7e   :  { %683 = vmatmul.mubr.msk.f32.gmra.mxu0 %vm39_vm0, %v216_v33  ;;  %v222_v55 = vmax.f32 %v206_v39, 0.0  ;;  %v223_v56 = vmax.f32 %v207_v50, 0.0  ;;  %v220_v63 = vmax.f32 %v204_v48, 0.0  ;;  %v224_v0 = vmax.f32 %v208_v51, 0.0 }
  0x7f   :  { %685 = vmatprep.mubr.msk.f32.mxu0 %vm39_vm0, %v217_v37  ;;  %691 = vmatprep.mubr.msk.f32.mxu1 %vm39_vm0, %v221_v54  ;;  %v210_v2 = vadd.f32 %v929_v15, %v187_v43  ;;  %v189_v4 = vmul.f32 %v920_v8, %v166_v53  ;;  %v225_v44 = vmax.f32 %v209_v62, 0.0  ;;  %v211_v5 = vadd.f32 %v929_v15, %v188_v52 }
  0x80   :  { %692 = vmatmul.mubr.msk.f32.vlgmr.msra.gmra.mxu1 %vm39_vm0, %v222_v55 }
  0x81   :  { %694 = vmatprep.mubr.msk.f32.mxu1 %vm39_vm0, %v223_v56  ;;  %v226_v6 = vmax.f32 %v210_v2, 0.0  ;;  %v212_v7 = vadd.f32 %v929_v15, %v189_v4  ;;  %v227_v10 = vmax.f32 %v211_v5, 0.0 }
  0x82   :  { %686 = vmatmul.mubr.msk.f32.gmra.mxu0 %vm39_vm0, %v218_v26 }
  0x83   :  { %688 = vmatprep.mubr.msk.f32.mxu0 %vm39_vm0, %v219_v30  ;;  %v228_v8 = vmax.f32 %v212_v7, 0.0 }
  0x84   :  { %695 = vmatmul.mubr.msk.f32.gmra.mxu1 %vm39_vm0, %v224_v0 }
  0x85   :  { %697 = vmatprep.mubr.msk.f32.mxu1 %vm39_vm0, %v225_v44 }
  0x86   :  { %689 = vmatmul.mubr.msk.f32.gmra.mxu0 %vm39_vm0, %v220_v63 }
  0x88   :  { %698 = vmatmul.mubr.msk.f32.gmra.mxu1 %vm39_vm0, %v226_v6 }
  0x89   :  { %700 = vmatprep.mubr.msk.f32.mxu1 %vm39_vm0, %v227_v10 }
  0x8c   :  { %701 = vmatmul.mubr.msk.f32.gmra.mxu1 %vm39_vm0, %v228_v8 }
 0x13a   :  { %v681_v11 = vpop.f32.mrf.mxu0 }
 0x13b   :  { %v427_v18 = vsel %vm425_vm1, %v681_v11, 0.0 }
 0x13c   :  { %v346_v12 = vpop.f32.mrf.mxu0 }
 0x13d   :  { %v426_v14 = vsel %vm425_vm1, %v346_v12, 0.0 }
 0x13e   :  { %v684_v16 = vpop.f32.mrf.mxu0  ;;  %v428_v19 = vadd.f32 %v427_v18, %v426_v14 }
 0x13f   :  { %v431_v60 = vsel %vm425_vm1, %v684_v16, 0.0 }
 0x140   :  { %v356_v15 = vpop.f32.mrf.mxu0  ;;  %v994_v59 = vpop.f32.mrf.mxu1 }
 0x141   :  { %v429_v20 = vsel %vm425_vm1, %v356_v15, 0.0  ;;  %v443_v37 = vsel %vm425_vm1, %v994_v59, 0.0 }
 0x142   :  { %v430_v57 = vadd.f32 %v429_v20, %v428_v19  ;;  %v687_v58 = vpop.f32.mrf.mxu0  ;;  %v386_v61 = vpop.f32.mrf.mxu1 }
 0x143   :  { %v435_v27 = vsel %vm425_vm1, %v687_v58, 0.0  ;;  %v441_v34 = vsel %vm425_vm1, %v386_v61, 0.0 }
 0x144   :  { %v366_v22 = vpop.f32.mrf.mxu0  ;;  %v432_v23 = vadd.f32 %v431_v60, %v430_v57  ;;  %v998_v25 = vpop.f32.mrf.mxu1 }
 0x145   :  { %v433_v1 = vsel %vm425_vm1, %v366_v22, 0.0  ;;  %v447_v13 = vsel %vm425_vm1, %v998_v25, 0.0 }
 0x146   :  { %v434_v3 = vadd.f32 %v433_v1, %v432_v23  ;;  %v690_v24 = vpop.f32.mrf.mxu0  ;;  %v396_v32 = vpop.f32.mrf.mxu1 }
 0x147   :  { %v439_v9 = vsel %vm425_vm1, %v690_v24, 0.0  ;;  %v445_v46 = vsel %vm425_vm1, %v396_v32, 0.0 }
 0x148   :  { %v376_v29 = vpop.f32.mrf.mxu0  ;;  %v436_v28 = vadd.f32 %v435_v27, %v434_v3  ;;  %v1002_v36 = vpop.f32.mrf.mxu1 }
 0x149   :  { %v437_v33 = vsel %vm425_vm1, %v376_v29, 0.0  ;;  %v451_v49 = vsel %vm425_vm1, %v1002_v36, 0.0 }
 0x14a   :  { %v438_v31 = vadd.f32 %v437_v33, %v436_v28  ;;  %v406_v42 = vpop.f32.mrf.mxu1 }
 0x14b   :  { %v449_v21 = vsel %vm425_vm1, %v406_v42, 0.0 }
 0x14c   :  { %v440_v38 = vadd.f32 %v439_v9, %v438_v31  ;;  %v1009_v40 = vpop.f32.mrf.mxu1 }
 0x14d   :  { %v455_v50 = vsel %vm425_vm1, %v1009_v40, 0.0 }
 0x14e   :  { %v442_v41 = vadd.f32 %v441_v34, %v440_v38  ;;  %v416_v48 = vpop.f32.mrf.mxu1 }
 0x14f   :  { %v453_v35 = vsel %vm425_vm1, %v416_v48, 0.0 }
 0x150   :  { %v444_v45 = vadd.f32 %v443_v37, %v442_v41 }
 0x152   :  { %v446_v47 = vadd.f32 %v445_v46, %v444_v45 }
 0x154   :  { %v448_v17 = vadd.f32 %v447_v13, %v446_v47 }
 0x156   :  { %v450_v26 = vadd.f32 %v449_v21, %v448_v17 }
 0x158   :  { %v452_v30 = vadd.f32 %v451_v49, %v450_v26 }
 0x15a   :  { %v454_v39 = vadd.f32 %v453_v35, %v452_v30 }
 0x15c   :  { %v456_v51 = vadd.f32 %v455_v50, %v454_v39 }
 0x15e   :  { %v457_v43 = vrot.slane %v456_v51, 4 }
 0x160   :  { %v458_v52 = vadd.f32 %v457_v43, %v456_v51 }
 0x162   :  { %v459_v53 = vrot.slane %v458_v52, 2 }
 0x164   :  { %v460_v54 = vadd.f32 %v459_v53, %v458_v52 }
 0x166   :  { %v461_v55 = vrot.slane %v460_v54, 1 }
 0x168   :  { %v462_v56 = vadd.f32 %v461_v55, %v460_v54 }
 0x16a   :  { %v463_v62 = vmul.f32 0.0078125, %v462_v56 }
 0x16c   :  { %v1019_v63 = vsub.f32 %v346_v12, %v463_v62  ;;  %v1021_v0 = vsub.f32 %v681_v11, %v463_v62  ;;  %v1023_v2 = vsub.f32 %v356_v15, %v463_v62  ;;  %v1025_v4 = vsub.f32 %v684_v16, %v463_v62 }
 0x16d   :  { %v1031_v6 = vsub.f32 %v366_v22, %v463_v62  ;;  %v1035_v10 = vsub.f32 %v687_v58, %v463_v62  ;;  %v1041_v16 = vsub.f32 %v376_v29, %v463_v62  ;;  %v1046_v20 = vsub.f32 %v690_v24, %v463_v62 }
 0x16e   :  { %v480_v44 = vmul.f32 %v1019_v63, %v1019_v63  ;;  %v481_v5 = vmul.f32 %v1021_v0, %v1021_v0  ;;  %v482_v7 = vmul.f32 %v1023_v2, %v1023_v2  ;;  %v483_v8 = vmul.f32 %v1025_v4, %v1025_v4 }
 0x16f   :  { %v484_v18 = vmul.f32 %v1031_v6, %v1031_v6  ;;  %v485_v57 = vmul.f32 %v1035_v10, %v1035_v10  ;;  %v1051_v22 = vsub.f32 %v386_v61, %v463_v62  ;;  %v486_v23 = vmul.f32 %v1041_v16, %v1041_v16 }
 0x170   :  { %v496_v11 = vsel %vm425_vm1, %v480_v44, 0.0  ;;  %v497_v12 = vsel %vm425_vm1, %v481_v5, 0.0  ;;  %v499_v19 = vsel %vm425_vm1, %v482_v7, 0.0  ;;  %v501_v58 = vsel %vm425_vm1, %v483_v8, 0.0 }
 0x171   :  { %v498_v14 = vadd.f32 %v497_v12, %v496_v11  ;;  %v503_v1 = vsel %vm425_vm1, %v484_v18, 0.0  ;;  %v473_v27 = vsub.f32 %v994_v59, %v463_v62  ;;  %v487_v24 = vmul.f32 %v1046_v20, %v1046_v20 }
 0x172   :  { %v505_v29 = vsel %vm425_vm1, %v485_v57, 0.0  ;;  %v474_v33 = vsub.f32 %v396_v32, %v463_v62  ;;  %v488_v31 = vmul.f32 %v1051_v22, %v1051_v22  ;;  %v507_v61 = vsel %vm425_vm1, %v486_v23, 0.0 }
 0x173   :  { %v500_v15 = vadd.f32 %v499_v19, %v498_v14  ;;  %v475_v38 = vsub.f32 %v998_v25, %v463_v62  ;;  %v489_v34 = vmul.f32 %v473_v27, %v473_v27  ;;  %v509_v41 = vsel %vm425_vm1, %v487_v24, 0.0  ;;  %v652_v24 = vld [vmem:[%s1158_s4] ss:$0 sm:$0xff] }
 0x174   :  { %v476_v59 = vsub.f32 %v406_v42, %v463_v62  ;;  %v490_v45 = vmul.f32 %v474_v33, %v474_v33  ;;  %v511_v46 = vsel %vm425_vm1, %v488_v31, 0.0  ;;  %v477_v13 = vsub.f32 %v1002_v36, %v463_v62 }
 0x175   :  { %v502_v60 = vadd.f32 %v501_v58, %v500_v15  ;;  %v491_v32 = vmul.f32 %v475_v38, %v475_v38  ;;  %v513_v17 = vsel %vm425_vm1, %v489_v34, 0.0  ;;  %v478_v26 = vsub.f32 %v416_v48, %v463_v62 }
 0x176   :  { %v492_v49 = vmul.f32 %v476_v59, %v476_v59  ;;  %v515_v30 = vsel %vm425_vm1, %v490_v45, 0.0  ;;  %v479_v35 = vsub.f32 %v1009_v40, %v463_v62  ;;  %v493_v39 = vmul.f32 %v477_v13, %v477_v13  ;;  %v653_v45 = vld [vmem:[%s1159_s5] ss:$0 sm:$0xff] }
 0x177   :  { %v504_v3 = vadd.f32 %v503_v1, %v502_v60  ;;  %v517_v42 = vsel %vm425_vm1, %v491_v32, 0.0  ;;  %v494_v51 = vmul.f32 %v478_v26, %v478_v26 }
 0x178   :  { %v519_v43 = vsel %vm425_vm1, %v492_v49, 0.0  ;;  %v495_v36 = vmul.f32 %v479_v35, %v479_v35  ;;  %v521_v53 = vsel %vm425_vm1, %v493_v39, 0.0 }
 0x179   :  { %v506_v28 = vadd.f32 %v505_v29, %v504_v3  ;;  %v523_v48 = vsel %vm425_vm1, %v494_v51, 0.0 }
 0x17a   :  { %v525_v56 = vsel %vm425_vm1, %v495_v36, 0.0 }
 0x17b   :  { %v508_v9 = vadd.f32 %v507_v61, %v506_v28 }
 0x17d   :  { %v510_v37 = vadd.f32 %v509_v41, %v508_v9 }
 0x17f   :  { %v512_v47 = vadd.f32 %v511_v46, %v510_v37 }
 0x181   :  { %v514_v21 = vadd.f32 %v513_v17, %v512_v47 }
 0x183   :  { %v516_v25 = vadd.f32 %v515_v30, %v514_v21 }
 0x185   :  { %v518_v50 = vadd.f32 %v517_v42, %v516_v25 }
 0x187   :  { %v520_v52 = vadd.f32 %v519_v43, %v518_v50 }
 0x189   :  { %v522_v54 = vadd.f32 %v521_v53, %v520_v52 }
 0x18b   :  { %v524_v55 = vadd.f32 %v523_v48, %v522_v54 }
 0x18d   :  { %v526_v44 = vadd.f32 %v525_v56, %v524_v55 }
 0x18f   :  { %v527_v5 = vrot.slane %v526_v44, 4 }
 0x191   :  { %v528_v40 = vadd.f32 %v527_v5, %v526_v44 }
 0x193   :  { %v529_v62 = vrot.slane %v528_v40, 2 }
 0x195   :  { %v530_v7 = vadd.f32 %v529_v62, %v528_v40 }
 0x197   :  { %v531_v8 = vrot.slane %v530_v7, 1 }
 0x199   :  { %v532_v11 = vadd.f32 %v531_v8, %v530_v7 }
 0x19b   :  { %v533_v12 = vmul.f32 0.0078125, %v532_v11 }
 0x19d   :  { %v534_v14 = vadd.f32 1e-05, %v533_v12 }
 0x19f   :  { %711 = vrsqrt.f32 %v534_v14 }
 0x1ac   :  { %v712_v18 = vpop.eup %711 }
 0x1ad   :  { %v536_v19 = vmul.f32 %v712_v18, %v1019_v63  ;;  %v537_v15 = vmul.f32 %v712_v18, %v1021_v0  ;;  %v538_v57 = vmul.f32 %v712_v18, %v1023_v2  ;;  %v539_v58 = vmul.f32 %v712_v18, %v1025_v4 }
 0x1ae   :  { %v540_v60 = vmul.f32 %v712_v18, %v1031_v6  ;;  %v541_v23 = vmul.f32 %v712_v18, %v1035_v10  ;;  %v542_v1 = vmul.f32 %v712_v18, %v1041_v16  ;;  %v543_v3 = vmul.f32 %v712_v18, %v1046_v20 }
 0x1af   :  { %v544_v63 = vmul.f32 %v712_v18, %v1051_v22  ;;  %v545_v29 = vmul.f32 %v712_v18, %v473_v27  ;;  %v546_v0 = vmul.f32 %v712_v18, %v474_v33  ;;  %v547_v28 = vmul.f32 %v712_v18, %v475_v38 }
 0x1b0   :  { %v548_v2 = vmul.f32 %v712_v18, %v476_v59  ;;  %v549_v31 = vmul.f32 %v712_v18, %v477_v13  ;;  %v550_v4 = vmul.f32 %v712_v18, %v478_v26  ;;  %v551_v61 = vmul.f32 %v712_v18, %v479_v35 }
 0x1b1   :  { %v559_v6 = vmul.f32 %v652_v24, %v536_v19  ;;  %v560_v9 = vmul.f32 %v652_v24, %v537_v15  ;;  %v561_v10 = vmul.f32 %v652_v24, %v538_v57  ;;  %v562_v34 = vmul.f32 %v652_v24, %v539_v58 }
 0x1b2   :  { %v563_v16 = vmul.f32 %v652_v24, %v540_v60  ;;  %v564_v41 = vmul.f32 %v652_v24, %v541_v23  ;;  %v565_v20 = vmul.f32 %v652_v24, %v542_v1  ;;  %v566_v37 = vmul.f32 %v652_v24, %v543_v3 }
 0x1b3   :  { %v567_v22 = vmul.f32 %v652_v24, %v544_v63  ;;  %v568_v27 = vmul.f32 %v652_v24, %v545_v29  ;;  %v569_v33 = vmul.f32 %v652_v24, %v546_v0  ;;  %v570_v38 = vmul.f32 %v652_v24, %v547_v28 }
 0x1b4   :  { %v571_v59 = vmul.f32 %v652_v24, %v548_v2  ;;  %v572_v46 = vmul.f32 %v652_v24, %v549_v31  ;;  %v573_v47 = vmul.f32 %v652_v24, %v550_v4  ;;  %v574_v13 = vmul.f32 %v652_v24, %v551_v61 }
 0x1b5   :  { %v582_v32 = vadd.f32 %v653_v45, %v559_v6  ;;  %v583_v17 = vadd.f32 %v653_v45, %v560_v9  ;;  %v584_v21 = vadd.f32 %v653_v45, %v561_v10  ;;  %v585_v26 = vadd.f32 %v653_v45, %v562_v34 }
 0x1b6   :  { %v586_v49 = vadd.f32 %v653_v45, %v563_v16  ;;  %v587_v30 = vadd.f32 %v653_v45, %v564_v41  ;;  %v588_v25 = vadd.f32 %v653_v45, %v565_v20  ;;  %v589_v35 = vadd.f32 %v653_v45, %v566_v37 }
 0x1b7   :  { %v590_v39 = vadd.f32 %v653_v45, %v567_v22  ;;  %v591_v42 = vadd.f32 %v653_v45, %v568_v27  ;;  %v592_v50 = vadd.f32 %v653_v45, %v569_v33  ;;  %v593_v51 = vadd.f32 %v653_v45, %v570_v38 }
 0x1b8   :  { %v594_v43 = vadd.f32 %v653_v45, %v571_v59  ;;  %v595_v52 = vadd.f32 %v653_v45, %v572_v46  ;;  %v596_v36 = vadd.f32 %v653_v45, %v573_v47  ;;  %v597_v53 = vadd.f32 %v653_v45, %v574_v13 }
 0x1b9   :  { %v598_v54 = vmax.f32 %v582_v32, 0.0  ;;  %v599_v48 = vmax.f32 %v583_v17, 0.0  ;;  %v600_v55 = vmax.f32 %v584_v21, 0.0  ;;  %v601_v56 = vmax.f32 %v585_v26, 0.0 }
 0x1ba   :  { %v602_v44 = vmax.f32 %v586_v49, 0.0  ;;  %v603_v5 = vmax.f32 %v587_v30, 0.0  ;;  %v604_v40 = vmax.f32 %v588_v25, 0.0  ;;  %v605_v62 = vmax.f32 %v589_v35, 0.0 }
 0x1bb   :  { %v606_v7 = vmax.f32 %v590_v39, 0.0  ;;  %v607_v8 = vmax.f32 %v591_v42, 0.0  ;;  %v608_v11 = vmax.f32 %v592_v50, 0.0  ;;  %v609_v12 = vmax.f32 %v593_v51, 0.0  ;;  %614 = vst.msk [vmem:[%s1160_s6] sm:$0xff] %vm425_vm1, %v598_v54  ;;  %615 = vst.msk [vmem:[%s1160_s6 + $0x8] sm:$0xff] %vm425_vm1, %v599_v48 }
 0x1bc   :  { %616 = vst.msk [vmem:[%s1160_s6 + $0x10] sm:$0xff] %vm425_vm1, %v600_v55  ;;  %617 = vst.msk [vmem:[%s1160_s6 + $0x18] sm:$0xff] %vm425_vm1, %v601_v56  ;;  %v610_v14 = vmax.f32 %v594_v43, 0.0  ;;  %v611_v18 = vmax.f32 %v595_v52, 0.0  ;;  %v612_v19 = vmax.f32 %v596_v36, 0.0  ;;  %v613_v15 = vmax.f32 %v597_v53, 0.0 }
 0x1bd   :  { %618 = vst.msk [vmem:[%s1160_s6 + $0x20] sm:$0xff] %vm425_vm1, %v602_v44  ;;  %619 = vst.msk [vmem:[%s1160_s6 + $0x28] sm:$0xff] %vm425_vm1, %v603_v5 }
 0x1be   :  { %620 = vst.msk [vmem:[%s1160_s6 + $0x30] sm:$0xff] %vm425_vm1, %v604_v40  ;;  %621 = vst.msk [vmem:[%s1160_s6 + $0x38] sm:$0xff] %vm425_vm1, %v605_v62 }
 0x1bf   :  { %622 = vst.msk [vmem:[%s1160_s6 + $0x40] sm:$0xff] %vm425_vm1, %v606_v7  ;;  %623 = vst.msk [vmem:[%s1160_s6 + $0x48] sm:$0xff] %vm425_vm1, %v607_v8 }
 0x1c0   :  { %624 = vst.msk [vmem:[%s1160_s6 + $0x50] sm:$0xff] %vm425_vm1, %v608_v11  ;;  %625 = vst.msk [vmem:[%s1160_s6 + $0x58] sm:$0xff] %vm425_vm1, %v609_v12 }
 0x1c1   :  { %626 = vst.msk [vmem:[%s1160_s6 + $0x60] sm:$0xff] %vm425_vm1, %v610_v14  ;;  %627 = vst.msk [vmem:[%s1160_s6 + $0x68] sm:$0xff] %vm425_vm1, %v611_v18 }
 0x1c2   :  { %628 = vst.msk [vmem:[%s1160_s6 + $0x70] sm:$0xff] %vm425_vm1, %v612_v19  ;;  %629 = vst.msk [vmem:[%s1160_s6 + $0x78] sm:$0xff] %vm425_vm1, %v613_v15 }

// kernel: mul.2
= control target key start
LH: loop header
LB: loop body
LE: loop exit
PB: predicated region body
PF: predicated region fallthrough
CT: control target
= control target key end

     0   :  { %s364_s0 = inlined_call_operand.vmem [shape: f32[128,8], index: 0, kind: input, shape index: {}]   ;;  %s365_s1 = inlined_call_operand.vmem [shape: f32[128,8], index: 1, kind: input, shape index: {}]   ;;  %s366_s2 = inlined_call_operand.vmem [shape: f32[128,8], index: 2, kind: output, shape index: {}]  }
   0x1   :  { %v3_v0 = vld [vmem:[%s364_s0] sm:$0xff]  ;;  %v160_v2 = vld [vmem:[%s364_s0 + $0x8] sm:$0xff]  ;;  %v163_v5 = vld [vmem:[%s364_s0 + $0x10] sm:$0xff] }
   0x2   :  { %v4_v1 = vld [vmem:[%s365_s1] sm:$0xff]  ;;  %v161_v4 = vld [vmem:[%s365_s1 + $0x8] sm:$0xff]  ;;  %v164_v6 = vld [vmem:[%s365_s1 + $0x10] sm:$0xff] }
   0x3   :  { %v7_v3 = vmul.f32 %v4_v1, %v3_v0  ;;  %v16_v7 = vmul.f32 %v161_v4, %v160_v2  ;;  %v26_v8 = vmul.f32 %v164_v6, %v163_v5  ;;  %v166_v9 = vld [vmem:[%s364_s0 + $0x18] sm:$0xff]  ;;  %v169_v11 = vld [vmem:[%s364_s0 + $0x20] sm:$0xff]  ;;  %v172_v14 = vld [vmem:[%s364_s0 + $0x28] sm:$0xff] }
   0x4   :  { %v167_v10 = vld [vmem:[%s365_s1 + $0x18] sm:$0xff]  ;;  %v170_v13 = vld [vmem:[%s365_s1 + $0x20] sm:$0xff]  ;;  %v173_v15 = vld [vmem:[%s365_s1 + $0x28] sm:$0xff] }
   0x5   :  { %9 = vst [vmem:[%s366_s2] sm:$0xff] %v7_v3  ;;  %v36_v12 = vmul.f32 %v167_v10, %v166_v9  ;;  %162 = vst [vmem:[%s366_s2 + $0x8] sm:$0xff] %v16_v7  ;;  %v46_v16 = vmul.f32 %v170_v13, %v169_v11  ;;  %v56_v17 = vmul.f32 %v173_v15, %v172_v14  ;;  %v175_v18 = vld [vmem:[%s364_s0 + $0x30] sm:$0xff]  ;;  %v178_v20 = vld [vmem:[%s364_s0 + $0x38] sm:$0xff] }
   0x6   :  { %165 = vst [vmem:[%s366_s2 + $0x10] sm:$0xff] %v26_v8  ;;  %v176_v19 = vld [vmem:[%s365_s1 + $0x30] sm:$0xff]  ;;  %v179_v22 = vld [vmem:[%s365_s1 + $0x38] sm:$0xff]  ;;  %v181_v23 = vld [vmem:[%s364_s0 + $0x40] sm:$0xff] }
   0x7   :  { %168 = vst [vmem:[%s366_s2 + $0x18] sm:$0xff] %v36_v12  ;;  %v66_v21 = vmul.f32 %v176_v19, %v175_v18  ;;  %v182_v24 = vld [vmem:[%s365_s1 + $0x40] sm:$0xff]  ;;  %171 = vst [vmem:[%s366_s2 + $0x20] sm:$0xff] %v46_v16  ;;  %v76_v25 = vmul.f32 %v179_v22, %v178_v20  ;;  %v184_v27 = vld [vmem:[%s364_s0 + $0x48] sm:$0xff] }
   0x8   :  { %174 = vst [vmem:[%s366_s2 + $0x28] sm:$0xff] %v56_v17  ;;  %v86_v26 = vmul.f32 %v182_v24, %v181_v23  ;;  %v185_v28 = vld [vmem:[%s365_s1 + $0x48] sm:$0xff]  ;;  %v187_v29 = vld [vmem:[%s364_s0 + $0x50] sm:$0xff]  ;;  %v190_v32 = vld [vmem:[%s364_s0 + $0x58] sm:$0xff] }
   0x9   :  { %177 = vst [vmem:[%s366_s2 + $0x30] sm:$0xff] %v66_v21  ;;  %v96_v30 = vmul.f32 %v185_v28, %v184_v27  ;;  %v188_v31 = vld [vmem:[%s365_s1 + $0x50] sm:$0xff]  ;;  %v191_v33 = vld [vmem:[%s365_s1 + $0x58] sm:$0xff]  ;;  %180 = vst [vmem:[%s366_s2 + $0x38] sm:$0xff] %v76_v25 }
   0xa   :  { %183 = vst [vmem:[%s366_s2 + $0x40] sm:$0xff] %v86_v26  ;;  %v106_v34 = vmul.f32 %v188_v31, %v187_v29  ;;  %v116_v35 = vmul.f32 %v191_v33, %v190_v32  ;;  %v193_v36 = vld [vmem:[%s364_s0 + $0x60] sm:$0xff]  ;;  %v196_v38 = vld [vmem:[%s364_s0 + $0x68] sm:$0xff]  ;;  %v199_v41 = vld [vmem:[%s364_s0 + $0x70] sm:$0xff] }
   0xb   :  { %v194_v37 = vld [vmem:[%s365_s1 + $0x60] sm:$0xff]  ;;  %186 = vst [vmem:[%s366_s2 + $0x48] sm:$0xff] %v96_v30  ;;  %v197_v40 = vld [vmem:[%s365_s1 + $0x68] sm:$0xff]  ;;  %v200_v42 = vld [vmem:[%s365_s1 + $0x70] sm:$0xff] }
   0xc   :  { %v126_v39 = vmul.f32 %v194_v37, %v193_v36  ;;  %189 = vst [vmem:[%s366_s2 + $0x50] sm:$0xff] %v106_v34  ;;  %192 = vst [vmem:[%s366_s2 + $0x58] sm:$0xff] %v116_v35  ;;  %v136_v43 = vmul.f32 %v197_v40, %v196_v38  ;;  %v146_v44 = vmul.f32 %v200_v42, %v199_v41  ;;  %v202_v45 = vld [vmem:[%s364_s0 + $0x78] sm:$0xff] }
   0xd   :  { %v203_v46 = vld [vmem:[%s365_s1 + $0x78] sm:$0xff] }
   0xe   :  { %195 = vst [vmem:[%s366_s2 + $0x60] sm:$0xff] %v126_v39  ;;  %v156_v47 = vmul.f32 %v203_v46, %v202_v45  ;;  %198 = vst [vmem:[%s366_s2 + $0x68] sm:$0xff] %v136_v43 }
   0xf   :  { %201 = vst [vmem:[%s366_s2 + $0x70] sm:$0xff] %v146_v44 }
  0x10   :  { %204 = vst [vmem:[%s366_s2 + $0x78] sm:$0xff] %v156_v47 }

// kernel: densenet_forward.44
= control target key start
LH: loop header
LB: loop body
LE: loop exit
PB: predicated region body
PF: predicated region fallthrough
CT: control target
= control target key end

     0   :  { %v126_v0 = vmov 0.0   ;;  %vm127_vm0 = vmmov 0   ;;  %vm26_vm1 = vcmask 261120   ;;  %vm100_vm2 = vcmask 58368   ;;  %s169_s1 = inlined_call_operand.vmem [shape: f32[32,8], index: 1, kind: input, shape index: {}]   ;;  %s170_s0 = inlined_call_operand.vmem [shape: f32[2,32], index: 0, kind: input, shape index: {}]   ;;  %s171_s2 = inlined_call_operand.vmem [shape: f32[1,8], index: 2, kind: input, shape index: {}]   ;;  %s172_s3 = inlined_call_operand.vmem [shape: f32[2,8], index: 3, kind: output, shape index: {}]  }
   0x1   :  { %113 = vmatprep.subr.mxu0 %v126_v0  ;;  %v18_v1 = vld [vmem:[%s169_s1 + $0x18] sm:$0xff]  ;;  %v17_v2 = vld [vmem:[%s169_s1 + $0x10] sm:$0xff]  ;;  %121 = vmatprep.mubr.msk.f32.mxu0 %vm127_vm0, %v126_v0  ;;  %v16_v3 = vld [vmem:[%s169_s1 + $0x8] sm:$0xff] }
   0x2   :  { %114 = vmatpush3.msra.mxu0 %v18_v1  ;;  %v15_v4 = vld [vmem:[%s169_s1] sm:$0xff] }
   0x3   :  { %115 = vmatprep.subr.mxu0 %v126_v0  ;;  %v14_v5 = vld [vmem:[%s170_s0] sm:$0x3] }
   0x4   :  { %116 = vmatpush3.msra.mxu0 %v17_v2  ;;  %v106_v6 = vld [vmem:[%s171_s2] ss:$0 sm:$0xff] }
   0x5   :  { %117 = vmatprep.subr.mxu0 %v126_v0 }
   0x6   :  { %118 = vmatpush3.msra.mxu0 %v16_v3 }
   0x7   :  { %119 = vmatprep.subr.mxu0 %v126_v0 }
   0x8   :  { %120 = vmatpush3.msra.mxu0 %v15_v4 }
   0x9   :  { %122 = vmatmul.mubr.msk.f32.vlgmr.msra.gmra.mxu0 %vm26_vm1, %v14_v5 }
  0xc9   :  { %v96_v7 = vpop.f32.mrf.mxu0 }
  0xca   :  { %v97_v8 = vadd.f32 %v106_v6, %v96_v7 }
  0xcb   :  { %v123_v9 = vpop.f32.mrf.mxu0 }
  0xcc   :  { %101 = vst.msk [vmem:[%s172_s3] sm:$0x3] %vm100_vm2, %v97_v8 }

// kernel: densenet_forward.43
= control target key start
LH: loop header
LB: loop body
LE: loop exit
PB: predicated region body
PF: predicated region fallthrough
CT: control target
= control target key end

     0   :  { %vm65_vm0 = vcmask 261120   ;;  %s602_s1 = inlined_call_operand.vmem [shape: f32[288,32], index: 1, kind: input, shape index: {}]   ;;  %s603_s0 = inlined_call_operand.vmem [shape: f32[32,288], index: 0, kind: input, shape index: {}]   ;;  %s604_s2 = inlined_call_operand.vmem [shape: f32[1,32], index: 2, kind: input, shape index: {}]   ;;  %s605_s3 = inlined_call_operand.vmem [shape: f32[1,32], index: 3, kind: input, shape index: {}]   ;;  %s606_s4 = inlined_call_operand.vmem [shape: f32[32,32], index: 4, kind: output, shape index: {}]  }
   0x1   :  { %v60_v0 = vld [vmem:[%s602_s1 + $0xf8] sm:$0xff]  ;;  %v59_v2 = vld [vmem:[%s602_s1 + $0xf0] sm:$0xff]  ;;  %v58_v4 = vld [vmem:[%s602_s1 + $0xe8] sm:$0xff] }
   0x2   :  { %v44_v1 = vld [vmem:[%s602_s1 + $0x78] sm:$0xff]  ;;  %331 = vmatprep.subr.mxu0 %v60_v0  ;;  %v43_v3 = vld [vmem:[%s602_s1 + $0x70] sm:$0xff]  ;;  %v42_v5 = vld [vmem:[%s602_s1 + $0x68] sm:$0xff] }
   0x3   :  { %332 = vmatpush3.msra.mxu0 %v44_v1  ;;  %v57_v6 = vld [vmem:[%s602_s1 + $0xe0] sm:$0xff]  ;;  %v56_v8 = vld [vmem:[%s602_s1 + $0xd8] sm:$0xff]  ;;  %v55_v10 = vld [vmem:[%s602_s1 + $0xd0] sm:$0xff] }
   0x4   :  { %333 = vmatprep.subr.mxu0 %v59_v2  ;;  %v41_v7 = vld [vmem:[%s602_s1 + $0x60] sm:$0xff]  ;;  %v40_v9 = vld [vmem:[%s602_s1 + $0x58] sm:$0xff]  ;;  %v39_v11 = vld [vmem:[%s602_s1 + $0x50] sm:$0xff] }
   0x5   :  { %334 = vmatpush3.msra.mxu0 %v43_v3  ;;  %v64_v12 = vld [vmem:[%s602_s1 + $0x118] sm:$0xff]  ;;  %v54_v13 = vld [vmem:[%s602_s1 + $0xc8] sm:$0xff]  ;;  %v63_v14 = vld [vmem:[%s602_s1 + $0x110] sm:$0xff] }
   0x6   :  { %335 = vmatprep.subr.mxu0 %v58_v4  ;;  %383 = vmatprep.subr.mxu1 %v64_v12  ;;  %v38_v15 = vld [vmem:[%s602_s1 + $0x48] sm:$0xff]  ;;  %v53_v17 = vld [vmem:[%s602_s1 + $0xc0] sm:$0xff]  ;;  %v52_v20 = vld [vmem:[%s602_s1 + $0xb8] sm:$0xff] }
   0x7   :  { %336 = vmatpush3.msra.mxu0 %v42_v5  ;;  %384 = vmatpush3.msra.mxu1 %v64_v12  ;;  %v62_v16 = vld [vmem:[%s602_s1 + $0x108] sm:$0xff]  ;;  %v37_v19 = vld [vmem:[%s602_s1 + $0x40] sm:$0xff]  ;;  %v36_v22 = vld [vmem:[%s602_s1 + $0x38] sm:$0xff] }
   0x8   :  { %337 = vmatprep.subr.mxu0 %v57_v6  ;;  %385 = vmatprep.subr.mxu1 %v63_v14  ;;  %v18_v18 = vld [vmem:[%s603_s0 + $0x8] sm:$0xff]  ;;  %v61_v21 = vld [vmem:[%s602_s1 + $0x100] sm:$0xff]  ;;  %v51_v23 = vld [vmem:[%s602_s1 + $0xb0] sm:$0xff] }
   0x9   :  { %338 = vmatpush3.msra.mxu0 %v41_v7  ;;  %386 = vmatpush3.msra.mxu1 %v63_v14  ;;  %v19_v24 = vld [vmem:[%s603_s0 + $0x10] sm:$0xff]  ;;  %v22_v26 = vld [vmem:[%s603_s0 + $0x28] sm:$0xff]  ;;  %v25_v28 = vld [vmem:[%s603_s0 + $0x40] sm:$0xff] }
   0xa   :  { %339 = vmatprep.subr.mxu0 %v56_v8  ;;  %387 = vmatprep.subr.mxu1 %v62_v16  ;;  %v35_v25 = vld [vmem:[%s602_s1 + $0x30] sm:$0xff]  ;;  %v50_v27 = vld [vmem:[%s602_s1 + $0xa8] sm:$0xff]  ;;  %v49_v30 = vld [vmem:[%s602_s1 + $0xa0] sm:$0xff] }
   0xb   :  { %340 = vmatpush3.msra.mxu0 %v40_v9  ;;  %142 = vmatprep.mubr.f32.mxu0 %v18_v18  ;;  %v34_v29 = vld [vmem:[%s602_s1 + $0x28] sm:$0xff]  ;;  %v33_v31 = vld [vmem:[%s602_s1 + $0x20] sm:$0xff]  ;;  %v28_v32 = vld [vmem:[%s603_s0 + $0x58] sm:$0xff] }
   0xc   :  { %341 = vmatprep.subr.mxu0 %v55_v10  ;;  %388 = vmatpush3.msra.mxu1 %v62_v16  ;;  %v48_v33 = vld [vmem:[%s602_s1 + $0x98] sm:$0xff]  ;;  %v47_v35 = vld [vmem:[%s602_s1 + $0x90] sm:$0xff]  ;;  %v46_v37 = vld [vmem:[%s602_s1 + $0x88] sm:$0xff] }
   0xd   :  { %342 = vmatpush3.msra.mxu0 %v39_v11  ;;  %389 = vmatprep.subr.mxu1 %v61_v21  ;;  %v32_v34 = vld [vmem:[%s602_s1 + $0x18] sm:$0xff]  ;;  %v31_v36 = vld [vmem:[%s602_s1 + $0x10] sm:$0xff]  ;;  %v30_v38 = vld [vmem:[%s602_s1 + $0x8] sm:$0xff] }
   0xe   :  { %343 = vmatprep.subr.mxu0 %v54_v13  ;;  %390 = vmatpush3.msra.mxu1 %v61_v21  ;;  %v45_v39 = vld [vmem:[%s602_s1 + $0x80] sm:$0xff]  ;;  %v20_v43 = vld [vmem:[%s603_s0 + $0x18] sm:$0xff]  ;;  %v23_v45 = vld [vmem:[%s603_s0 + $0x30] sm:$0xff] }
   0xf   :  { %344 = vmatpush3.msra.mxu0 %v38_v15  ;;  %391 = vmatprep.mubr.msk.f32.mxu1 %vm65_vm0, %v19_v24  ;;  %v29_v40 = vld [vmem:[%s602_s1] sm:$0xff]  ;;  %v24_v44 = vld [vmem:[%s603_s0 + $0x38] sm:$0xff]  ;;  %v27_v46 = vld [vmem:[%s603_s0 + $0x50] sm:$0xff] }
  0x10   :  { %345 = vmatprep.subr.mxu0 %v53_v17  ;;  %392 = vmatmul.mubr.msk.f32.vlgmr.msra.gmra.mxu1 %vm65_vm0, %v22_v26  ;;  %v17_v41 = vld [vmem:[%s603_s0] sm:$0xff]  ;;  %v26_v47 = vld [vmem:[%s603_s0 + $0x48] sm:$0xff] }
  0x11   :  { %346 = vmatpush3.msra.mxu0 %v37_v19  ;;  %394 = vmatprep.mubr.msk.f32.mxu1 %vm65_vm0, %v25_v28  ;;  %v21_v42 = vld [vmem:[%s603_s0 + $0x20] sm:$0xff] }
  0x12   :  { %347 = vmatprep.subr.mxu0 %v52_v20 }
  0x13   :  { %348 = vmatpush3.msra.mxu0 %v36_v22 }
  0x14   :  { %349 = vmatprep.subr.mxu0 %v51_v23  ;;  %395 = vmatmul.mubr.msk.f32.gmra.mxu1 %vm65_vm0, %v28_v32 }
  0x15   :  { %350 = vmatpush3.msra.mxu0 %v35_v25 }
  0x16   :  { %351 = vmatprep.subr.mxu0 %v50_v27 }
  0x17   :  { %352 = vmatpush3.msra.mxu0 %v34_v29 }
  0x18   :  { %353 = vmatprep.subr.mxu0 %v49_v30 }
  0x19   :  { %354 = vmatpush3.msra.mxu0 %v33_v31 }
  0x1a   :  { %355 = vmatprep.subr.mxu0 %v48_v33 }
  0x1b   :  { %356 = vmatpush3.msra.mxu0 %v32_v34 }
  0x1c   :  { %357 = vmatprep.subr.mxu0 %v47_v35 }
  0x1d   :  { %358 = vmatpush3.msra.mxu0 %v31_v36 }
  0x1e   :  { %359 = vmatprep.subr.mxu0 %v46_v37 }
  0x1f   :  { %360 = vmatpush3.msra.mxu0 %v30_v38 }
  0x20   :  { %361 = vmatprep.subr.mxu0 %v45_v39 }
  0x21   :  { %362 = vmatpush3.msra.mxu0 %v29_v40 }
  0x22   :  { %143 = vmatmul.mubr.f32.vlgmr.msra.gmra.mxu0 %v17_v41 }
  0x23   :  { %147 = vmatprep.mubr.f32.mxu0 %v21_v42  ;;  %v329_v42 = vld [vmem:[%s604_s2] ss:$0 sm:$0xff] }
  0x26   :  { %148 = vmatmul.mubr.f32.gmra.mxu0 %v20_v43 }
  0x27   :  { %152 = vmatprep.mubr.f32.mxu0 %v24_v44 }
  0x2a   :  { %153 = vmatmul.mubr.f32.gmra.mxu0 %v23_v45 }
  0x2b   :  { %157 = vmatprep.mubr.f32.mxu0 %v27_v46 }
  0x2e   :  { %158 = vmatmul.mubr.f32.gmra.mxu0 %v26_v47  ;;  %v330_v47 = vld [vmem:[%s605_s3] ss:$0 sm:$0xff] }
  0xd0   :  { %v393_v49 = vpop.f32.mrf.mxu1 }
  0xd2   :  { %v229_v52 = vpop.f32.mrf.mxu1 }
  0xd4   :  { %v396_v54 = vpop.f32.mrf.mxu1 }
  0xd6   :  { %v239_v60 = vpop.f32.mrf.mxu1 }
  0xe2   :  { %v363_v48 = vpop.f32.mrf.mxu0 }
  0xe4   :  { %v364_v50 = vpop.f32.mrf.mxu0 }
  0xe5   :  { %v365_v55 = vadd.f32 %v364_v50, %v363_v48 }
  0xe6   :  { %v366_v51 = vpop.f32.mrf.mxu0 }
  0xe7   :  { %v230_v61 = vadd.f32 %v365_v55, %v229_v52 }
  0xe8   :  { %v367_v53 = vpop.f32.mrf.mxu0 }
  0xe9   :  { %v368_v56 = vadd.f32 %v367_v53, %v366_v51  ;;  %v248_v3 = vsel %vm65_vm0, %v230_v61, 0.0 }
  0xea   :  { %v369_v57 = vpop.f32.mrf.mxu0 }
  0xeb   :  { %v235_v58 = vadd.f32 %v393_v49, %v368_v56 }
  0xec   :  { %v370_v59 = vpop.f32.mrf.mxu0 }
  0xed   :  { %v371_v62 = vadd.f32 %v370_v59, %v369_v57  ;;  %v249_v0 = vsel %vm65_vm0, %v235_v58, 0.0 }
  0xee   :  { %v372_v63 = vpop.f32.mrf.mxu0  ;;  %v250_v6 = vadd.f32 %v249_v0, %v248_v3 }
  0xef   :  { %v240_v1 = vadd.f32 %v371_v62, %v239_v60 }
  0xf0   :  { %v373_v2 = vpop.f32.mrf.mxu0 }
  0xf1   :  { %v251_v4 = vsel %vm65_vm0, %v240_v1, 0.0  ;;  %v374_v5 = vadd.f32 %v373_v2, %v372_v63 }
  0xf2   :  { %v252_v8 = vadd.f32 %v251_v4, %v250_v6 }
  0xf3   :  { %v245_v7 = vadd.f32 %v396_v54, %v374_v5 }
  0xf5   :  { %v253_v9 = vsel %vm65_vm0, %v245_v7, 0.0 }
  0xf6   :  { %v254_v10 = vadd.f32 %v253_v9, %v252_v8 }
  0xf8   :  { %v255_v11 = vrot.slane %v254_v10, 4 }
  0xfa   :  { %v256_v12 = vadd.f32 %v255_v11, %v254_v10 }
  0xfc   :  { %v257_v13 = vrot.slane %v256_v12, 2 }
  0xfe   :  { %v258_v14 = vadd.f32 %v257_v13, %v256_v12 }
 0x100   :  { %v259_v15 = vrot.slane %v258_v14, 1 }
 0x102   :  { %v260_v16 = vadd.f32 %v259_v15, %v258_v14 }
 0x104   :  { %v262_v17 = vmul.f32 0.03125, %v260_v16 }
 0x106   :  { %v263_v18 = vsub.f32 %v230_v61, %v262_v17  ;;  %v264_v19 = vsub.f32 %v235_v58, %v262_v17  ;;  %v265_v20 = vsub.f32 %v240_v1, %v262_v17  ;;  %v266_v21 = vsub.f32 %v245_v7, %v262_v17 }
 0x108   :  { %v267_v22 = vmul.f32 %v263_v18, %v263_v18  ;;  %v268_v23 = vmul.f32 %v264_v19, %v264_v19  ;;  %v269_v24 = vmul.f32 %v265_v20, %v265_v20  ;;  %v270_v25 = vmul.f32 %v266_v21, %v266_v21 }
 0x10a   :  { %v271_v26 = vsel %vm65_vm0, %v267_v22, 0.0  ;;  %v272_v27 = vsel %vm65_vm0, %v268_v23, 0.0  ;;  %v274_v29 = vsel %vm65_vm0, %v269_v24, 0.0  ;;  %v276_v31 = vsel %vm65_vm0, %v270_v25, 0.0 }
 0x10b   :  { %v273_v28 = vadd.f32 %v272_v27, %v271_v26 }
 0x10d   :  { %v275_v30 = vadd.f32 %v274_v29, %v273_v28 }
 0x10f   :  { %v277_v32 = vadd.f32 %v276_v31, %v275_v30 }
 0x111   :  { %v278_v33 = vrot.slane %v277_v32, 4 }
 0x113   :  { %v279_v34 = vadd.f32 %v278_v33, %v277_v32 }
 0x115   :  { %v280_v35 = vrot.slane %v279_v34, 2 }
 0x117   :  { %v281_v36 = vadd.f32 %v280_v35, %v279_v34 }
 0x119   :  { %v282_v37 = vrot.slane %v281_v36, 1 }
 0x11b   :  { %v283_v38 = vadd.f32 %v282_v37, %v281_v36 }
 0x11d   :  { %v284_v39 = vmul.f32 0.03125, %v283_v38 }
 0x11f   :  { %v285_v40 = vadd.f32 1e-05, %v284_v39 }
 0x121   :  { %397 = vrsqrt.f32 %v285_v40 }
 0x12e   :  { %v398_v41 = vpop.eup %397 }
 0x12f   :  { %v287_v43 = vmul.f32 %v398_v41, %v263_v18  ;;  %v288_v44 = vmul.f32 %v398_v41, %v264_v19  ;;  %v289_v45 = vmul.f32 %v398_v41, %v265_v20  ;;  %v290_v46 = vmul.f32 %v398_v41, %v266_v21 }
 0x131   :  { %v298_v48 = vmul.f32 %v329_v42, %v287_v43  ;;  %v299_v49 = vmul.f32 %v329_v42, %v288_v44  ;;  %v300_v50 = vmul.f32 %v329_v42, %v289_v45  ;;  %v301_v51 = vmul.f32 %v329_v42, %v290_v46 }
 0x133   :  { %v309_v52 = vadd.f32 %v330_v47, %v298_v48  ;;  %v310_v53 = vadd.f32 %v330_v47, %v299_v49  ;;  %v311_v54 = vadd.f32 %v330_v47, %v300_v50  ;;  %v312_v55 = vadd.f32 %v330_v47, %v301_v51 }
 0x135   :  { %v313_v56 = vmax.f32 %v309_v52, 0.0  ;;  %v314_v57 = vmax.f32 %v310_v53, 0.0  ;;  %v315_v58 = vmax.f32 %v311_v54, 0.0  ;;  %v316_v59 = vmax.f32 %v312_v55, 0.0 }
 0x137   :  { %317 = vst.msk [vmem:[%s606_s4] sm:$0xff] %vm65_vm0, %v313_v56  ;;  %318 = vst.msk [vmem:[%s606_s4 + $0x8] sm:$0xff] %vm65_vm0, %v314_v57 }
 0x138   :  { %319 = vst.msk [vmem:[%s606_s4 + $0x10] sm:$0xff] %vm65_vm0, %v315_v58  ;;  %320 = vst.msk [vmem:[%s606_s4 + $0x18] sm:$0xff] %vm65_vm0, %v316_v59 }

// kernel: densenet_forward.45
= control target key start
LH: loop header
LB: loop body
LE: loop exit
PB: predicated region body
PF: predicated region fallthrough
CT: control target
= control target key end

     0   :  { %vm33_vm0 = vcmask 261120   ;;  %vm420_vm1 = vcmask 130048   ;;  %s840_s1 = inlined_call_operand.vmem [shape: f32[32,16], index: 1, kind: input, shape index: {}]   ;;  %s841_s0 = inlined_call_operand.vmem [shape: f32[128,32], index: 0, kind: input, shape index: {}]   ;;  %s842_s2 = inlined_call_operand.vmem [shape: f32[1,32], index: 2, kind: input, shape index: {}]   ;;  %s843_s3 = inlined_call_operand.vmem [shape: f32[1,32], index: 3, kind: input, shape index: {}]   ;;  %s844_s4 = inlined_call_operand.vmem [shape: f32[128,16], index: 4, kind: output, shape index: {}]  }
   0x1   :  { %v226_v0 = vld [vmem:[%s840_s1 + $0x18] sm:$0xff]  ;;  %v225_v1 = vld [vmem:[%s840_s1 + $0x10] sm:$0xff]  ;;  %v555_v2 = vld [vmem:[%s841_s0] sm:$0xff] }
   0x2   :  { %479 = vmatprep.subr.mxu0 %v226_v0  ;;  %511 = vmatprep.subr.mxu1 %v226_v0  ;;  %v560_v3 = vld [vmem:[%s841_s0 + $0x8] sm:$0xff]  ;;  %v568_v5 = vld [vmem:[%s841_s0 + $0x10] sm:$0xff]  ;;  %v573_v6 = vld [vmem:[%s841_s0 + $0x18] sm:$0xff]  ;;  %v34_v7 = vsel %vm33_vm0, %v555_v2, 0.0 }
   0x3   :  { %480 = vmatpush3.msra.mxu0 %v226_v0  ;;  %515 = vmatpush3.msra.mxu1 %v226_v0  ;;  %v224_v4 = vld [vmem:[%s840_s1 + $0x8] sm:$0xff]  ;;  %v35_v8 = vsel %vm33_vm0, %v560_v3, 0.0  ;;  %v582_v9 = vld [vmem:[%s841_s0 + $0x20] sm:$0xff]  ;;  %v37_v11 = vsel %vm33_vm0, %v568_v5, 0.0  ;;  %v39_v13 = vsel %vm33_vm0, %v573_v6, 0.0  ;;  %v23_v17 = vld [vmem:[%s841_s0 + $0x30] sm:$0xff] }
   0x4   :  { %481 = vmatprep.subr.mxu0 %v225_v1  ;;  %512 = vmatprep.subr.mxu1 %v225_v1  ;;  %v36_v10 = vadd.f32 %v35_v8, %v34_v7  ;;  %v223_v12 = vld [vmem:[%s840_s1] sm:$0xff]  ;;  %v22_v14 = vld [vmem:[%s841_s0 + $0x28] sm:$0xff]  ;;  %v41_v16 = vsel %vm33_vm0, %v582_v9, 0.0  ;;  %v24_v20 = vld [vmem:[%s841_s0 + $0x38] sm:$0xff]  ;;  %v45_v22 = vsel %vm33_vm0, %v23_v17, 0.0 }
   0x5   :  { %482 = vmatpush3.msra.mxu0 %v225_v1  ;;  %516 = vmatpush3.msra.mxu1 %v225_v1  ;;  %v43_v19 = vsel %vm33_vm0, %v22_v14, 0.0  ;;  %v25_v23 = vld [vmem:[%s841_s0 + $0x40] sm:$0xff]  ;;  %v47_v25 = vsel %vm33_vm0, %v24_v20, 0.0  ;;  %v26_v26 = vld [vmem:[%s841_s0 + $0x48] sm:$0xff]  ;;  %v27_v29 = vld [vmem:[%s841_s0 + $0x50] sm:$0xff] }
   0x6   :  { %483 = vmatprep.subr.mxu0 %v224_v4  ;;  %513 = vmatprep.subr.mxu1 %v224_v4  ;;  %v38_v15 = vadd.f32 %v37_v11, %v36_v10  ;;  %v49_v28 = vsel %vm33_vm0, %v25_v23, 0.0  ;;  %v51_v31 = vsel %vm33_vm0, %v26_v26, 0.0  ;;  %v28_v32 = vld [vmem:[%s841_s0 + $0x58] sm:$0xff]  ;;  %v53_v34 = vsel %vm33_vm0, %v27_v29, 0.0  ;;  %v29_v35 = vld [vmem:[%s841_s0 + $0x60] sm:$0xff]  ;;  %v30_v38 = vld [vmem:[%s841_s0 + $0x68] sm:$0xff] }
   0x7   :  { %484 = vmatpush3.msra.mxu0 %v224_v4  ;;  %517 = vmatpush3.msra.mxu1 %v224_v4  ;;  %v55_v37 = vsel %vm33_vm0, %v28_v32, 0.0  ;;  %v57_v40 = vsel %vm33_vm0, %v29_v35, 0.0  ;;  %v31_v41 = vld [vmem:[%s841_s0 + $0x70] sm:$0xff]  ;;  %v59_v43 = vsel %vm33_vm0, %v30_v38, 0.0  ;;  %v32_v44 = vld [vmem:[%s841_s0 + $0x78] sm:$0xff] }
   0x8   :  { %485 = vmatprep.subr.mxu0 %v223_v12  ;;  %514 = vmatprep.subr.mxu1 %v223_v12  ;;  %v40_v18 = vadd.f32 %v39_v13, %v38_v15  ;;  %v61_v46 = vsel %vm33_vm0, %v31_v41, 0.0  ;;  %v63_v48 = vsel %vm33_vm0, %v32_v44, 0.0 }
   0x9   :  { %486 = vmatpush3.msra.mxu0 %v223_v12  ;;  %518 = vmatpush3.msra.mxu1 %v223_v12 }
   0xa   :  { %v42_v21 = vadd.f32 %v41_v16, %v40_v18 }
   0xc   :  { %v44_v24 = vadd.f32 %v43_v19, %v42_v21 }
   0xe   :  { %v46_v27 = vadd.f32 %v45_v22, %v44_v24 }
  0x10   :  { %v48_v30 = vadd.f32 %v47_v25, %v46_v27 }
  0x12   :  { %v50_v33 = vadd.f32 %v49_v28, %v48_v30 }
  0x14   :  { %v52_v36 = vadd.f32 %v51_v31, %v50_v33 }
  0x16   :  { %v54_v39 = vadd.f32 %v53_v34, %v52_v36 }
  0x18   :  { %v56_v42 = vadd.f32 %v55_v37, %v54_v39 }
  0x1a   :  { %v58_v45 = vadd.f32 %v57_v40, %v56_v42 }
  0x1c   :  { %v60_v47 = vadd.f32 %v59_v43, %v58_v45 }
  0x1e   :  { %v62_v49 = vadd.f32 %v61_v46, %v60_v47 }
  0x20   :  { %v64_v50 = vadd.f32 %v63_v48, %v62_v49 }
  0x22   :  { %v65_v51 = vrot.slane %v64_v50, 4 }
  0x24   :  { %v66_v52 = vadd.f32 %v65_v51, %v64_v50 }
  0x26   :  { %v67_v53 = vrot.slane %v66_v52, 2 }
  0x28   :  { %v68_v54 = vadd.f32 %v67_v53, %v66_v52 }
  0x2a   :  { %v69_v55 = vrot.slane %v68_v54, 1 }
  0x2c   :  { %v70_v56 = vadd.f32 %v69_v55, %v68_v54 }
  0x2e   :  { %v72_v57 = vmul.f32 0.0078125, %v70_v56 }
  0x30   :  { %v638_v58 = vsub.f32 %v555_v2, %v72_v57  ;;  %v641_v59 = vsub.f32 %v560_v3, %v72_v57  ;;  %v644_v60 = vsub.f32 %v568_v5, %v72_v57  ;;  %v647_v61 = vsub.f32 %v573_v6, %v72_v57 }
  0x31   :  { %v650_v62 = vsub.f32 %v582_v9, %v72_v57  ;;  %v658_v2 = vsub.f32 %v22_v14, %v72_v57  ;;  %v662_v4 = vsub.f32 %v23_v17, %v72_v57  ;;  %v669_v10 = vsub.f32 %v24_v20, %v72_v57 }
  0x32   :  { %v89_v63 = vmul.f32 %v638_v58, %v638_v58  ;;  %v90_v0 = vmul.f32 %v641_v59, %v641_v59  ;;  %v91_v1 = vmul.f32 %v644_v60, %v644_v60  ;;  %v92_v3 = vmul.f32 %v647_v61, %v647_v61 }
  0x33   :  { %v93_v5 = vmul.f32 %v650_v62, %v650_v62  ;;  %v94_v11 = vmul.f32 %v658_v2, %v658_v2  ;;  %v81_v14 = vsub.f32 %v25_v23, %v72_v57  ;;  %v95_v15 = vmul.f32 %v662_v4, %v662_v4 }
  0x34   :  { %v105_v6 = vsel %vm33_vm0, %v89_v63, 0.0  ;;  %v106_v7 = vsel %vm33_vm0, %v90_v0, 0.0  ;;  %v108_v8 = vsel %vm33_vm0, %v91_v1, 0.0  ;;  %v110_v12 = vsel %vm33_vm0, %v92_v3, 0.0 }
  0x35   :  { %v107_v9 = vadd.f32 %v106_v7, %v105_v6  ;;  %v112_v16 = vsel %vm33_vm0, %v93_v5, 0.0  ;;  %v82_v18 = vsub.f32 %v26_v26, %v72_v57  ;;  %v96_v19 = vmul.f32 %v669_v10, %v669_v10 }
  0x36   :  { %v114_v20 = vsel %vm33_vm0, %v94_v11, 0.0  ;;  %v83_v22 = vsub.f32 %v27_v29, %v72_v57  ;;  %v97_v24 = vmul.f32 %v81_v14, %v81_v14  ;;  %v116_v25 = vsel %vm33_vm0, %v95_v15, 0.0 }
  0x37   :  { %v109_v13 = vadd.f32 %v108_v8, %v107_v9  ;;  %v84_v28 = vsub.f32 %v28_v32, %v72_v57  ;;  %v98_v23 = vmul.f32 %v82_v18, %v82_v18  ;;  %v118_v30 = vsel %vm33_vm0, %v96_v19, 0.0  ;;  %v709_v9 = vld [vmem:[%s842_s2] ss:$0 sm:$0xff] }
  0x38   :  { %v682_v33 = vsub.f32 %v29_v35, %v72_v57  ;;  %v99_v34 = vmul.f32 %v83_v22, %v83_v22  ;;  %v120_v26 = vsel %vm33_vm0, %v97_v24, 0.0  ;;  %v685_v37 = vsub.f32 %v30_v38, %v72_v57 }
  0x39   :  { %v111_v17 = vadd.f32 %v110_v12, %v109_v13  ;;  %v100_v39 = vmul.f32 %v84_v28, %v84_v28  ;;  %v122_v29 = vsel %vm33_vm0, %v98_v23, 0.0  ;;  %v688_v42 = vsub.f32 %v31_v41, %v72_v57 }
  0x3a   :  { %v101_v32 = vmul.f32 %v682_v33, %v682_v33  ;;  %v124_v43 = vsel %vm33_vm0, %v99_v34, 0.0  ;;  %v693_v35 = vsub.f32 %v32_v44, %v72_v57  ;;  %v102_v46 = vmul.f32 %v685_v37, %v685_v37 }
  0x3b   :  { %v113_v21 = vadd.f32 %v112_v16, %v111_v17  ;;  %v126_v38 = vsel %vm33_vm0, %v100_v39, 0.0  ;;  %v103_v48 = vmul.f32 %v688_v42, %v688_v42  ;;  %v716_v16 = vld [vmem:[%s843_s3] ss:$0 sm:$0xff] }
  0x3c   :  { %v128_v41 = vsel %vm33_vm0, %v101_v32, 0.0  ;;  %v104_v50 = vmul.f32 %v693_v35, %v693_v35  ;;  %v130_v51 = vsel %vm33_vm0, %v102_v46, 0.0 }
  0x3d   :  { %v115_v27 = vadd.f32 %v114_v20, %v113_v21  ;;  %v132_v44 = vsel %vm33_vm0, %v103_v48, 0.0 }
  0x3e   :  { %v134_v54 = vsel %vm33_vm0, %v104_v50, 0.0 }
  0x3f   :  { %v117_v31 = vadd.f32 %v116_v25, %v115_v27 }
  0x41   :  { %v119_v36 = vadd.f32 %v118_v30, %v117_v31 }
  0x43   :  { %v121_v40 = vadd.f32 %v120_v26, %v119_v36 }
  0x45   :  { %v123_v45 = vadd.f32 %v122_v29, %v121_v40 }
  0x47   :  { %v125_v47 = vadd.f32 %v124_v43, %v123_v45 }
  0x49   :  { %v127_v49 = vadd.f32 %v126_v38, %v125_v47 }
  0x4b   :  { %v129_v52 = vadd.f32 %v128_v41, %v127_v49 }
  0x4d   :  { %v131_v53 = vadd.f32 %v130_v51, %v129_v52 }
  0x4f   :  { %v133_v55 = vadd.f32 %v132_v44, %v131_v53 }
  0x51   :  { %v135_v56 = vadd.f32 %v134_v54, %v133_v55 }
  0x53   :  { %v136_v57 = vrot.slane %v135_v56, 4 }
  0x55   :  { %v137_v63 = vadd.f32 %v136_v57, %v135_v56 }
  0x57   :  { %v138_v0 = vrot.slane %v137_v63, 2 }
  0x59   :  { %v139_v1 = vadd.f32 %v138_v0, %v137_v63 }
  0x5b   :  { %v140_v3 = vrot.slane %v139_v1, 1 }
  0x5d   :  { %v141_v5 = vadd.f32 %v140_v3, %v139_v1 }
  0x5f   :  { %v142_v6 = vmul.f32 0.0078125, %v141_v5 }
  0x61   :  { %v143_v7 = vadd.f32 1e-05, %v142_v6 }
  0x63   :  { %519 = vrsqrt.f32 %v143_v7 }
  0x70   :  { %v520_v8 = vpop.eup %519 }
  0x71   :  { %v145_v11 = vmul.f32 %v520_v8, %v638_v58  ;;  %v153_v12 = vmul.f32 %v520_v8, %v81_v14  ;;  %v146_v13 = vmul.f32 %v520_v8, %v641_v59  ;;  %v154_v15 = vmul.f32 %v520_v8, %v82_v18 }
  0x72   :  { %v147_v17 = vmul.f32 %v520_v8, %v644_v60  ;;  %v155_v19 = vmul.f32 %v520_v8, %v83_v22  ;;  %v148_v20 = vmul.f32 %v520_v8, %v647_v61  ;;  %v156_v21 = vmul.f32 %v520_v8, %v84_v28 }
  0x73   :  { %v168_v24 = vmul.f32 %v709_v9, %v145_v11  ;;  %v176_v25 = vmul.f32 %v709_v9, %v153_v12  ;;  %v169_v58 = vmul.f32 %v709_v9, %v146_v13  ;;  %v177_v59 = vmul.f32 %v709_v9, %v154_v15 }
  0x74   :  { %v170_v14 = vmul.f32 %v709_v9, %v147_v17  ;;  %v178_v18 = vmul.f32 %v709_v9, %v155_v19  ;;  %v171_v27 = vmul.f32 %v709_v9, %v148_v20  ;;  %v179_v60 = vmul.f32 %v709_v9, %v156_v21 }
  0x75   :  { %v191_v22 = vadd.f32 %v716_v16, %v168_v24  ;;  %v199_v61 = vadd.f32 %v716_v16, %v176_v25  ;;  %v192_v28 = vadd.f32 %v716_v16, %v169_v58  ;;  %v200_v23 = vadd.f32 %v716_v16, %v177_v59 }
  0x76   :  { %v193_v30 = vadd.f32 %v716_v16, %v170_v14  ;;  %v201_v31 = vadd.f32 %v716_v16, %v178_v18  ;;  %v194_v34 = vadd.f32 %v716_v16, %v171_v27  ;;  %v202_v26 = vadd.f32 %v716_v16, %v179_v60 }
  0x77   :  { %v207_v36 = vmax.f32 %v191_v22, 0.0  ;;  %v215_v39 = vmax.f32 %v199_v61, 0.0  ;;  %v208_v29 = vmax.f32 %v192_v28, 0.0  ;;  %v216_v40 = vmax.f32 %v200_v23, 0.0 }
  0x78   :  { %v209_v32 = vmax.f32 %v193_v30, 0.0  ;;  %v217_v43 = vmax.f32 %v201_v31, 0.0  ;;  %v210_v45 = vmax.f32 %v194_v34, 0.0  ;;  %v149_v46 = vmul.f32 %v520_v8, %v650_v62 }
  0x79   :  { %487 = vmatprep.mubr.msk.f32.mxu0 %vm33_vm0, %v207_v36  ;;  %499 = vmatprep.mubr.msk.f32.mxu1 %vm33_vm0, %v215_v39  ;;  %v157_v38 = vmul.f32 %v520_v8, %v682_v33  ;;  %v150_v47 = vmul.f32 %v520_v8, %v658_v2  ;;  %v218_v48 = vmax.f32 %v202_v26, 0.0  ;;  %v158_v41 = vmul.f32 %v520_v8, %v685_v37 }
  0x7a   :  { %488 = vmatmul.mubr.msk.f32.vlgmr.msra.gmra.mxu0 %vm33_vm0, %v208_v29  ;;  %500 = vmatmul.mubr.msk.f32.vlgmr.msra.gmra.mxu1 %vm33_vm0, %v216_v40  ;;  %v151_v49 = vmul.f32 %v520_v8, %v662_v4  ;;  %v159_v50 = vmul.f32 %v520_v8, %v688_v42  ;;  %v172_v62 = vmul.f32 %v709_v9, %v149_v46 }
  0x7b   :  { %490 = vmatprep.mubr.msk.f32.mxu0 %vm33_vm0, %v209_v32  ;;  %502 = vmatprep.mubr.msk.f32.mxu1 %vm33_vm0, %v217_v43  ;;  %v180_v33 = vmul.f32 %v709_v9, %v157_v38  ;;  %v173_v2 = vmul.f32 %v709_v9, %v150_v47  ;;  %v181_v51 = vmul.f32 %v709_v9, %v158_v41 }
  0x7c   :  { %v174_v52 = vmul.f32 %v709_v9, %v151_v49  ;;  %v182_v37 = vmul.f32 %v709_v9, %v159_v50  ;;  %v152_v4 = vmul.f32 %v520_v8, %v669_v10  ;;  %v195_v42 = vadd.f32 %v716_v16, %v172_v62 }
  0x7d   :  { %v203_v44 = vadd.f32 %v716_v16, %v180_v33  ;;  %v196_v53 = vadd.f32 %v716_v16, %v173_v2  ;;  %v160_v54 = vmul.f32 %v520_v8, %v693_v35  ;;  %v204_v55 = vadd.f32 %v716_v16, %v181_v51 }
  0x7e   :  { %491 = vmatmul.mubr.msk.f32.gmra.mxu0 %vm33_vm0, %v210_v45  ;;  %503 = vmatmul.mubr.msk.f32.gmra.mxu1 %vm33_vm0, %v218_v48  ;;  %v197_v56 = vadd.f32 %v716_v16, %v174_v52  ;;  %v205_v57 = vadd.f32 %v716_v16, %v182_v37  ;;  %v211_v63 = vmax.f32 %v195_v42, 0.0  ;;  %v175_v1 = vmul.f32 %v709_v9, %v152_v4 }
  0x7f   :  { %v219_v10 = vmax.f32 %v203_v44, 0.0  ;;  %v212_v0 = vmax.f32 %v196_v53, 0.0  ;;  %v220_v3 = vmax.f32 %v204_v55, 0.0  ;;  %v183_v35 = vmul.f32 %v709_v9, %v160_v54 }
  0x80   :  { %v213_v5 = vmax.f32 %v197_v56, 0.0  ;;  %v221_v6 = vmax.f32 %v205_v57, 0.0  ;;  %493 = vmatprep.mubr.msk.f32.mxu0 %vm33_vm0, %v211_v63  ;;  %v198_v7 = vadd.f32 %v716_v16, %v175_v1 }
  0x81   :  { %505 = vmatprep.mubr.msk.f32.mxu1 %vm33_vm0, %v219_v10  ;;  %v206_v8 = vadd.f32 %v716_v16, %v183_v35 }
  0x82   :  { %494 = vmatmul.mubr.msk.f32.gmra.mxu0 %vm33_vm0, %v212_v0  ;;  %506 = vmatmul.mubr.msk.f32.gmra.mxu1 %vm33_vm0, %v220_v3  ;;  %v214_v11 = vmax.f32 %v198_v7, 0.0 }
  0x83   :  { %496 = vmatprep.mubr.msk.f32.mxu0 %vm33_vm0, %v213_v5  ;;  %508 = vmatprep.mubr.msk.f32.mxu1 %vm33_vm0, %v221_v6  ;;  %v222_v12 = vmax.f32 %v206_v8, 0.0 }
  0x86   :  { %497 = vmatmul.mubr.msk.f32.gmra.mxu0 %vm33_vm0, %v214_v11  ;;  %509 = vmatmul.mubr.msk.f32.gmra.mxu1 %vm33_vm0, %v222_v12 }
 0x13a   :  { %v489_v9 = vpop.f32.mrf.mxu0  ;;  %v501_v13 = vpop.f32.mrf.mxu1 }
 0x13b   :  { %422 = vst.msk [vmem:[%s844_s4 + $0x8] sm:$0xff] %vm420_vm1, %v489_v9  ;;  %430 = vst.msk [vmem:[%s844_s4 + $0x48] sm:$0xff] %vm420_vm1, %v501_v13 }
 0x13c   :  { %v341_v15 = vpop.f32.mrf.mxu0  ;;  %v381_v16 = vpop.f32.mrf.mxu1 }
 0x13d   :  { %421 = vst.msk [vmem:[%s844_s4] sm:$0xff] %vm420_vm1, %v341_v15  ;;  %429 = vst.msk [vmem:[%s844_s4 + $0x40] sm:$0xff] %vm420_vm1, %v381_v16 }
 0x13e   :  { %v492_v17 = vpop.f32.mrf.mxu0  ;;  %v504_v19 = vpop.f32.mrf.mxu1 }
 0x13f   :  { %424 = vst.msk [vmem:[%s844_s4 + $0x18] sm:$0xff] %vm420_vm1, %v492_v17  ;;  %432 = vst.msk [vmem:[%s844_s4 + $0x58] sm:$0xff] %vm420_vm1, %v504_v19 }
 0x140   :  { %v351_v20 = vpop.f32.mrf.mxu0  ;;  %v391_v21 = vpop.f32.mrf.mxu1 }
 0x141   :  { %423 = vst.msk [vmem:[%s844_s4 + $0x10] sm:$0xff] %vm420_vm1, %v351_v20  ;;  %431 = vst.msk [vmem:[%s844_s4 + $0x50] sm:$0xff] %vm420_vm1, %v391_v21 }
 0x142   :  { %v495_v24 = vpop.f32.mrf.mxu0  ;;  %v507_v25 = vpop.f32.mrf.mxu1 }
 0x143   :  { %426 = vst.msk [vmem:[%s844_s4 + $0x28] sm:$0xff] %vm420_vm1, %v495_v24  ;;  %434 = vst.msk [vmem:[%s844_s4 + $0x68] sm:$0xff] %vm420_vm1, %v507_v25 }
 0x144   :  { %v361_v58 = vpop.f32.mrf.mxu0  ;;  %v401_v59 = vpop.f32.mrf.mxu1 }
 0x145   :  { %425 = vst.msk [vmem:[%s844_s4 + $0x20] sm:$0xff] %vm420_vm1, %v361_v58  ;;  %433 = vst.msk [vmem:[%s844_s4 + $0x60] sm:$0xff] %vm420_vm1, %v401_v59 }
 0x146   :  { %v498_v14 = vpop.f32.mrf.mxu0  ;;  %v510_v18 = vpop.f32.mrf.mxu1 }
 0x147   :  { %428 = vst.msk [vmem:[%s844_s4 + $0x38] sm:$0xff] %vm420_vm1, %v498_v14  ;;  %436 = vst.msk [vmem:[%s844_s4 + $0x78] sm:$0xff] %vm420_vm1, %v510_v18 }
 0x148   :  { %v371_v27 = vpop.f32.mrf.mxu0  ;;  %v411_v60 = vpop.f32.mrf.mxu1 }
 0x149   :  { %427 = vst.msk [vmem:[%s844_s4 + $0x30] sm:$0xff] %vm420_vm1, %v371_v27  ;;  %435 = vst.msk [vmem:[%s844_s4 + $0x70] sm:$0xff] %vm420_vm1, %v411_v60 }

// kernel: densenet_forward.46
= control target key start
LH: loop header
LB: loop body
LE: loop exit
PB: predicated region body
PF: predicated region fallthrough
CT: control target
= control target key end

     0   :  { %vm27_vm0 = vcmask 130048   ;;  %s405_s1 = inlined_call_operand.vmem [shape: f32[16,16], index: 1, kind: input, shape index: {}]   ;;  %s406_s0 = inlined_call_operand.vmem [shape: f32[32,16], index: 0, kind: input, shape index: {}]   ;;  %s407_s2 = inlined_call_operand.vmem [shape: f32[1,16], index: 2, kind: input, shape index: {}]   ;;  %s408_s3 = inlined_call_operand.vmem [shape: f32[1,16], index: 3, kind: input, shape index: {}]   ;;  %s409_s4 = inlined_call_operand.vmem [shape: f32[1,16], index: 4, kind: input, shape index: {}]   ;;  %s410_s5 = inlined_call_operand.vmem [shape: f32[1,16], index: 5, kind: input, shape index: {}]   ;;  %s411_s6 = inlined_call_operand.vmem [shape: f32[32,16], index: 6, kind: output, shape index: {}]  }
   0x1   :  { %v98_v0 = vld [vmem:[%s405_s1 + $0x8] sm:$0xff]  ;;  %v97_v1 = vld [vmem:[%s405_s1] sm:$0xff]  ;;  %v25_v4 = vld [vmem:[%s406_s0 + $0x10] sm:$0xff] }
   0x2   :  { %v23_v2 = vld [vmem:[%s406_s0] sm:$0xff]  ;;  %286 = vmatprep.subr.mxu0 %v98_v0  ;;  %296 = vmatprep.subr.mxu1 %v98_v0  ;;  %v24_v3 = vld [vmem:[%s406_s0 + $0x8] sm:$0xff]  ;;  %v26_v5 = vld [vmem:[%s406_s0 + $0x18] sm:$0xff]  ;;  %v31_v8 = vsel %vm27_vm0, %v25_v4, 0.0 }
   0x3   :  { %v28_v6 = vsel %vm27_vm0, %v23_v2, 0.0  ;;  %287 = vmatpush3.msra.mxu0 %v98_v0  ;;  %298 = vmatpush3.msra.mxu1 %v98_v0  ;;  %v29_v7 = vsel %vm27_vm0, %v24_v3, 0.0  ;;  %v33_v10 = vsel %vm27_vm0, %v26_v5, 0.0  ;;  %v272_v44 = vld [vmem:[%s407_s2] ss:$0 sm:$0xff] }
   0x4   :  { %288 = vmatprep.subr.mxu0 %v97_v1  ;;  %297 = vmatprep.subr.mxu1 %v97_v1  ;;  %v30_v9 = vadd.f32 %v29_v7, %v28_v6  ;;  %v273_v49 = vld [vmem:[%s408_s3] ss:$0 sm:$0xff] }
   0x5   :  { %289 = vmatpush3.msra.mxu0 %v97_v1  ;;  %299 = vmatpush3.msra.mxu1 %v97_v1 }
   0x6   :  { %v32_v11 = vadd.f32 %v31_v8, %v30_v9 }
   0x8   :  { %v34_v12 = vadd.f32 %v33_v10, %v32_v11 }
   0xa   :  { %v35_v13 = vrot.slane %v34_v12, 4 }
   0xc   :  { %v36_v14 = vadd.f32 %v35_v13, %v34_v12 }
   0xe   :  { %v37_v15 = vrot.slane %v36_v14, 2 }
  0x10   :  { %v38_v16 = vadd.f32 %v37_v15, %v36_v14 }
  0x12   :  { %v39_v17 = vrot.slane %v38_v16, 1 }
  0x14   :  { %v40_v18 = vadd.f32 %v39_v17, %v38_v16 }
  0x16   :  { %v42_v19 = vmul.f32 0.03125, %v40_v18 }
  0x18   :  { %v43_v20 = vsub.f32 %v23_v2, %v42_v19  ;;  %v44_v21 = vsub.f32 %v24_v3, %v42_v19  ;;  %v45_v22 = vsub.f32 %v25_v4, %v42_v19  ;;  %v46_v23 = vsub.f32 %v26_v5, %v42_v19 }
  0x1a   :  { %v47_v24 = vmul.f32 %v43_v20, %v43_v20  ;;  %v48_v25 = vmul.f32 %v44_v21, %v44_v21  ;;  %v49_v26 = vmul.f32 %v45_v22, %v45_v22  ;;  %v50_v27 = vmul.f32 %v46_v23, %v46_v23 }
  0x1c   :  { %v51_v28 = vsel %vm27_vm0, %v47_v24, 0.0  ;;  %v52_v29 = vsel %vm27_vm0, %v48_v25, 0.0  ;;  %v54_v30 = vsel %vm27_vm0, %v49_v26, 0.0  ;;  %v56_v32 = vsel %vm27_vm0, %v50_v27, 0.0 }
  0x1d   :  { %v53_v31 = vadd.f32 %v52_v29, %v51_v28 }
  0x1f   :  { %v55_v33 = vadd.f32 %v54_v30, %v53_v31 }
  0x21   :  { %v57_v34 = vadd.f32 %v56_v32, %v55_v33 }
  0x23   :  { %v58_v35 = vrot.slane %v57_v34, 4 }
  0x25   :  { %v59_v36 = vadd.f32 %v58_v35, %v57_v34 }
  0x27   :  { %v60_v37 = vrot.slane %v59_v36, 2 }
  0x29   :  { %v61_v38 = vadd.f32 %v60_v37, %v59_v36 }
  0x2b   :  { %v62_v39 = vrot.slane %v61_v38, 1 }
  0x2d   :  { %v63_v40 = vadd.f32 %v62_v39, %v61_v38 }
  0x2f   :  { %v64_v41 = vmul.f32 0.03125, %v63_v40  ;;  %v278_v40 = vld [vmem:[%s409_s4] ss:$0 sm:$0xff] }
  0x31   :  { %v65_v42 = vadd.f32 1e-05, %v64_v41 }
  0x33   :  { %300 = vrsqrt.f32 %v65_v42 }
  0x40   :  { %v301_v43 = vpop.eup %300 }
  0x41   :  { %v67_v45 = vmul.f32 %v301_v43, %v43_v20  ;;  %v69_v46 = vmul.f32 %v301_v43, %v45_v22  ;;  %v68_v47 = vmul.f32 %v301_v43, %v44_v21  ;;  %v70_v48 = vmul.f32 %v301_v43, %v46_v23 }
  0x43   :  { %v78_v50 = vmul.f32 %v272_v44, %v67_v45  ;;  %v80_v51 = vmul.f32 %v272_v44, %v69_v46  ;;  %v79_v52 = vmul.f32 %v272_v44, %v68_v47  ;;  %v81_v53 = vmul.f32 %v272_v44, %v70_v48  ;;  %v279_v45 = vld [vmem:[%s410_s5] ss:$0 sm:$0xff] }
  0x45   :  { %v89_v54 = vadd.f32 %v273_v49, %v78_v50  ;;  %v91_v55 = vadd.f32 %v273_v49, %v80_v51  ;;  %v90_v56 = vadd.f32 %v273_v49, %v79_v52  ;;  %v92_v57 = vadd.f32 %v273_v49, %v81_v53 }
  0x47   :  { %v93_v58 = vmax.f32 %v89_v54, 0.0  ;;  %v95_v59 = vmax.f32 %v91_v55, 0.0  ;;  %v94_v60 = vmax.f32 %v90_v56, 0.0  ;;  %v96_v61 = vmax.f32 %v92_v57, 0.0 }
  0x49   :  { %290 = vmatprep.mubr.msk.f32.mxu0 %vm27_vm0, %v93_v58  ;;  %293 = vmatprep.mubr.msk.f32.mxu1 %vm27_vm0, %v95_v59 }
  0x4a   :  { %291 = vmatmul.mubr.msk.f32.vlgmr.msra.gmra.mxu0 %vm27_vm0, %v94_v60  ;;  %294 = vmatmul.mubr.msk.f32.vlgmr.msra.gmra.mxu1 %vm27_vm0, %v96_v61 }
 0x10a   :  { %v292_v62 = vpop.f32.mrf.mxu0  ;;  %v295_v63 = vpop.f32.mrf.mxu1 }
 0x10b   :  { %v197_v2 = vsel %vm27_vm0, %v292_v62, 0.0  ;;  %v201_v7 = vsel %vm27_vm0, %v295_v63, 0.0 }
 0x10c   :  { %v177_v0 = vpop.f32.mrf.mxu0  ;;  %v187_v1 = vpop.f32.mrf.mxu1 }
 0x10d   :  { %v196_v3 = vsel %vm27_vm0, %v177_v0, 0.0  ;;  %v199_v5 = vsel %vm27_vm0, %v187_v1, 0.0 }
 0x10e   :  { %v198_v4 = vadd.f32 %v197_v2, %v196_v3 }
 0x110   :  { %v200_v6 = vadd.f32 %v199_v5, %v198_v4 }
 0x112   :  { %v202_v8 = vadd.f32 %v201_v7, %v200_v6 }
 0x114   :  { %v203_v9 = vrot.slane %v202_v8, 4 }
 0x116   :  { %v204_v10 = vadd.f32 %v203_v9, %v202_v8 }
 0x118   :  { %v205_v11 = vrot.slane %v204_v10, 2 }
 0x11a   :  { %v206_v12 = vadd.f32 %v205_v11, %v204_v10 }
 0x11c   :  { %v207_v13 = vrot.slane %v206_v12, 1 }
 0x11e   :  { %v208_v14 = vadd.f32 %v207_v13, %v206_v12 }
 0x120   :  { %v209_v15 = vmul.f32 0.03125, %v208_v14 }
 0x122   :  { %v210_v16 = vsub.f32 %v177_v0, %v209_v15  ;;  %v211_v17 = vsub.f32 %v292_v62, %v209_v15  ;;  %v212_v18 = vsub.f32 %v187_v1, %v209_v15  ;;  %v213_v19 = vsub.f32 %v295_v63, %v209_v15 }
 0x124   :  { %v214_v20 = vmul.f32 %v210_v16, %v210_v16  ;;  %v215_v21 = vmul.f32 %v211_v17, %v211_v17  ;;  %v216_v22 = vmul.f32 %v212_v18, %v212_v18  ;;  %v217_v23 = vmul.f32 %v213_v19, %v213_v19 }
 0x126   :  { %v218_v24 = vsel %vm27_vm0, %v214_v20, 0.0  ;;  %v219_v25 = vsel %vm27_vm0, %v215_v21, 0.0  ;;  %v221_v27 = vsel %vm27_vm0, %v216_v22, 0.0  ;;  %v223_v29 = vsel %vm27_vm0, %v217_v23, 0.0 }
 0x127   :  { %v220_v26 = vadd.f32 %v219_v25, %v218_v24 }
 0x129   :  { %v222_v28 = vadd.f32 %v221_v27, %v220_v26 }
 0x12b   :  { %v224_v30 = vadd.f32 %v223_v29, %v222_v28 }
 0x12d   :  { %v225_v31 = vrot.slane %v224_v30, 4 }
 0x12f   :  { %v226_v32 = vadd.f32 %v225_v31, %v224_v30 }
 0x131   :  { %v227_v33 = vrot.slane %v226_v32, 2 }
 0x133   :  { %v228_v34 = vadd.f32 %v227_v33, %v226_v32 }
 0x135   :  { %v229_v35 = vrot.slane %v228_v34, 1 }
 0x137   :  { %v230_v36 = vadd.f32 %v229_v35, %v228_v34 }
 0x139   :  { %v231_v37 = vmul.f32 0.03125, %v230_v36 }
 0x13b   :  { %v232_v38 = vadd.f32 1e-05, %v231_v37 }
 0x13d   :  { %302 = vrsqrt.f32 %v232_v38 }
 0x14a   :  { %v303_v39 = vpop.eup %302 }
 0x14b   :  { %v234_v41 = vmul.f32 %v303_v39, %v210_v16  ;;  %v235_v42 = vmul.f32 %v303_v39, %v211_v17  ;;  %v236_v43 = vmul.f32 %v303_v39, %v212_v18  ;;  %v237_v44 = vmul.f32 %v303_v39, %v213_v19 }
 0x14d   :  { %v245_v46 = vmul.f32 %v278_v40, %v234_v41  ;;  %v246_v47 = vmul.f32 %v278_v40, %v235_v42  ;;  %v247_v48 = vmul.f32 %v278_v40, %v236_v43  ;;  %v248_v49 = vmul.f32 %v278_v40, %v237_v44 }
 0x14f   :  { %v256_v50 = vadd.f32 %v279_v45, %v245_v46  ;;  %v257_v51 = vadd.f32 %v279_v45, %v246_v47  ;;  %v258_v52 = vadd.f32 %v279_v45, %v247_v48  ;;  %v259_v53 = vadd.f32 %v279_v45, %v248_v49 }
 0x151   :  { %v260_v54 = vmax.f32 %v256_v50, 0.0  ;;  %v261_v55 = vmax.f32 %v257_v51, 0.0  ;;  %v262_v56 = vmax.f32 %v258_v52, 0.0  ;;  %v263_v57 = vmax.f32 %v259_v53, 0.0 }
 0x153   :  { %264 = vst.msk [vmem:[%s411_s6] sm:$0xff] %vm27_vm0, %v260_v54  ;;  %265 = vst.msk [vmem:[%s411_s6 + $0x8] sm:$0xff] %vm27_vm0, %v261_v55 }
 0x154   :  { %266 = vst.msk [vmem:[%s411_s6 + $0x10] sm:$0xff] %vm27_vm0, %v262_v56  ;;  %267 = vst.msk [vmem:[%s411_s6 + $0x18] sm:$0xff] %vm27_vm0, %v263_v57 }

// kernel: densenet_forward.47
= control target key start
LH: loop header
LB: loop body
LE: loop exit
PB: predicated region body
PF: predicated region fallthrough
CT: control target
= control target key end

     0   :  { %v185_v0 = vmov 0.0   ;;  %vm37_vm0 = vcmask 130048   ;;  %vm135_vm1 = vcmask 64512   ;;  %s327_s1 = inlined_call_operand.vmem [shape: f32[144,8], index: 1, kind: input, shape index: {}]   ;;  %s328_s0 = inlined_call_operand.vmem [shape: f32[32,144], index: 0, kind: input, shape index: {}]   ;;  %s329_s2 = inlined_call_operand.vmem [shape: f32[32,8], index: 2, kind: output, shape index: {}]  }
   0x1   :  { %50 = vmatprep.subr.mxu0 %v185_v0  ;;  %148 = vmatprep.subr.mxu1 %v185_v0  ;;  %v34_v1 = vld [vmem:[%s327_s1 + $0x78] sm:$0xff]  ;;  %v33_v2 = vld [vmem:[%s327_s1 + $0x70] sm:$0xff]  ;;  %v32_v3 = vld [vmem:[%s327_s1 + $0x68] sm:$0xff] }
   0x2   :  { %51 = vmatpush1.msra.mxu0 %v34_v1  ;;  %166 = vmatpush1.msra.mxu1 %v34_v1  ;;  %v31_v4 = vld [vmem:[%s327_s1 + $0x60] sm:$0xff]  ;;  %v30_v5 = vld [vmem:[%s327_s1 + $0x58] sm:$0xff]  ;;  %v29_v6 = vld [vmem:[%s327_s1 + $0x50] sm:$0xff] }
   0x3   :  { %52 = vmatprep.subr.mxu0 %v185_v0  ;;  %149 = vmatprep.subr.mxu1 %v185_v0  ;;  %v28_v7 = vld [vmem:[%s327_s1 + $0x48] sm:$0xff]  ;;  %v27_v8 = vld [vmem:[%s327_s1 + $0x40] sm:$0xff]  ;;  %v26_v9 = vld [vmem:[%s327_s1 + $0x38] sm:$0xff] }
   0x4   :  { %53 = vmatpush1.msra.mxu0 %v33_v2  ;;  %167 = vmatpush1.msra.mxu1 %v33_v2  ;;  %v25_v10 = vld [vmem:[%s327_s1 + $0x30] sm:$0xff]  ;;  %v24_v11 = vld [vmem:[%s327_s1 + $0x28] sm:$0xff]  ;;  %v23_v12 = vld [vmem:[%s327_s1 + $0x20] sm:$0xff] }
   0x5   :  { %54 = vmatprep.subr.mxu0 %v185_v0  ;;  %150 = vmatprep.subr.mxu1 %v185_v0  ;;  %v22_v13 = vld [vmem:[%s327_s1 + $0x18] sm:$0xff]  ;;  %v21_v14 = vld [vmem:[%s327_s1 + $0x10] sm:$0xff]  ;;  %v20_v15 = vld [vmem:[%s327_s1 + $0x8] sm:$0xff] }
   0x6   :  { %55 = vmatpush1.msra.mxu0 %v32_v3  ;;  %168 = vmatpush1.msra.mxu1 %v32_v3  ;;  %v19_v16 = vld [vmem:[%s327_s1] sm:$0xff]  ;;  %v36_v17 = vld [vmem:[%s327_s1 + $0x88] sm:$0xff]  ;;  %v14_v23 = vld [vmem:[%s328_s0 + $0x18] sm:$0xff] }
   0x7   :  { %56 = vmatprep.subr.mxu0 %v185_v0  ;;  %151 = vmatprep.subr.mxu1 %v185_v0  ;;  %v35_v18 = vld [vmem:[%s327_s1 + $0x80] sm:$0xff]  ;;  %v12_v19 = vld [vmem:[%s328_s0 + $0x8] sm:$0xff]  ;;  %v18_v24 = vld [vmem:[%s328_s0 + $0x38] sm:$0xff] }
   0x8   :  { %57 = vmatpush1.msra.mxu0 %v31_v4  ;;  %169 = vmatpush1.msra.mxu1 %v31_v4  ;;  %v16_v20 = vld [vmem:[%s328_s0 + $0x28] sm:$0xff]  ;;  %v11_v21 = vld [vmem:[%s328_s0] sm:$0xff]  ;;  %v13_v25 = vld [vmem:[%s328_s0 + $0x10] sm:$0xff] }
   0x9   :  { %58 = vmatprep.subr.mxu0 %v185_v0  ;;  %152 = vmatprep.subr.mxu1 %v185_v0  ;;  %v15_v22 = vld [vmem:[%s328_s0 + $0x20] sm:$0xff]  ;;  %v17_v26 = vld [vmem:[%s328_s0 + $0x30] sm:$0xff] }
   0xa   :  { %59 = vmatpush1.msra.mxu0 %v30_v5  ;;  %170 = vmatpush1.msra.mxu1 %v30_v5 }
   0xb   :  { %60 = vmatprep.subr.mxu0 %v185_v0  ;;  %153 = vmatprep.subr.mxu1 %v185_v0 }
   0xc   :  { %61 = vmatpush1.msra.mxu0 %v29_v6  ;;  %171 = vmatpush1.msra.mxu1 %v29_v6 }
   0xd   :  { %62 = vmatprep.subr.mxu0 %v185_v0  ;;  %154 = vmatprep.subr.mxu1 %v185_v0 }
   0xe   :  { %63 = vmatpush1.msra.mxu0 %v28_v7  ;;  %172 = vmatpush1.msra.mxu1 %v28_v7 }
   0xf   :  { %64 = vmatprep.subr.mxu0 %v185_v0  ;;  %155 = vmatprep.subr.mxu1 %v185_v0 }
  0x10   :  { %65 = vmatpush1.msra.mxu0 %v27_v8  ;;  %173 = vmatpush1.msra.mxu1 %v27_v8 }
  0x11   :  { %66 = vmatprep.subr.mxu0 %v185_v0  ;;  %156 = vmatprep.subr.mxu1 %v185_v0 }
  0x12   :  { %67 = vmatpush1.msra.mxu0 %v26_v9  ;;  %174 = vmatpush1.msra.mxu1 %v26_v9 }
  0x13   :  { %68 = vmatprep.subr.mxu0 %v185_v0  ;;  %157 = vmatprep.subr.mxu1 %v185_v0 }
  0x14   :  { %69 = vmatpush1.msra.mxu0 %v25_v10  ;;  %175 = vmatpush1.msra.mxu1 %v25_v10 }
  0x15   :  { %70 = vmatprep.subr.mxu0 %v185_v0  ;;  %158 = vmatprep.subr.mxu1 %v185_v0 }
  0x16   :  { %71 = vmatpush1.msra.mxu0 %v24_v11  ;;  %176 = vmatpush1.msra.mxu1 %v24_v11 }
  0x17   :  { %72 = vmatprep.subr.mxu0 %v185_v0  ;;  %159 = vmatprep.subr.mxu1 %v185_v0 }
  0x18   :  { %73 = vmatpush1.msra.mxu0 %v23_v12  ;;  %177 = vmatpush1.msra.mxu1 %v23_v12 }
  0x19   :  { %74 = vmatprep.subr.mxu0 %v185_v0  ;;  %160 = vmatprep.subr.mxu1 %v185_v0 }
  0x1a   :  { %75 = vmatpush1.msra.mxu0 %v22_v13  ;;  %178 = vmatpush1.msra.mxu1 %v22_v13 }
  0x1b   :  { %76 = vmatprep.subr.mxu0 %v185_v0  ;;  %161 = vmatprep.subr.mxu1 %v185_v0 }
  0x1c   :  { %77 = vmatpush1.msra.mxu0 %v21_v14  ;;  %179 = vmatpush1.msra.mxu1 %v21_v14 }
  0x1d   :  { %78 = vmatprep.subr.mxu0 %v185_v0  ;;  %162 = vmatprep.subr.mxu1 %v185_v0 }
  0x1e   :  { %79 = vmatpush1.msra.mxu0 %v20_v15  ;;  %180 = vmatpush1.msra.mxu1 %v20_v15 }
  0x1f   :  { %80 = vmatprep.subr.mxu0 %v185_v0  ;;  %163 = vmatprep.subr.mxu1 %v185_v0 }
  0x20   :  { %81 = vmatpush1.msra.mxu0 %v19_v16  ;;  %181 = vmatpush1.msra.mxu1 %v19_v16 }
  0x21   :  { %110 = vmatprep.subr.mxu0 %v185_v0  ;;  %164 = vmatprep.subr.mxu1 %v185_v0 }
  0x22   :  { %111 = vmatpush2.msra.mxu0 %v36_v17  ;;  %182 = vmatpush2.msra.mxu1 %v36_v17 }
  0x23   :  { %112 = vmatprep.subr.mxu0 %v185_v0  ;;  %165 = vmatprep.subr.mxu1 %v185_v0 }
  0x24   :  { %113 = vmatpush2.msra.mxu0 %v35_v18  ;;  %183 = vmatpush2.msra.mxu1 %v35_v18 }
  0x25   :  { %144 = vmatprep.mubr.msk.f32.mxu0 %vm37_vm0, %v12_v19  ;;  %146 = vmatprep.mubr.msk.f32.mxu1 %vm37_vm0, %v16_v20 }
  0x26   :  { %115 = vmatmul.mubr.f32.vlgmr.msra.gmra.mxu0 %v11_v21  ;;  %125 = vmatmul.mubr.f32.vlgmr.msra.gmra.mxu1 %v15_v22 }
  0x27   :  { %145 = vmatprep.mubr.msk.f32.mxu0 %vm37_vm0, %v14_v23  ;;  %147 = vmatprep.mubr.msk.f32.mxu1 %vm37_vm0, %v18_v24 }
  0x2a   :  { %120 = vmatmul.mubr.f32.gmra.mxu0 %v13_v25  ;;  %130 = vmatmul.mubr.f32.gmra.mxu1 %v17_v26 }
  0xe6   :  { %v116_v27 = vpop.f32.mrf.mxu0  ;;  %v126_v28 = vpop.f32.mrf.mxu1 }
  0xe7   :  { %136 = vst.msk [vmem:[%s329_s2] sm:$0xff] %vm135_vm1, %v116_v27  ;;  %138 = vst.msk [vmem:[%s329_s2 + $0x10] sm:$0xff] %vm135_vm1, %v126_v28 }
  0xe8   :  { %v118_v29 = vpop.f32.mrf.mxu0  ;;  %v128_v30 = vpop.f32.mrf.mxu1 }
  0xea   :  { %v121_v31 = vpop.f32.mrf.mxu0  ;;  %v131_v32 = vpop.f32.mrf.mxu1 }
  0xeb   :  { %137 = vst.msk [vmem:[%s329_s2 + $0x8] sm:$0xff] %vm135_vm1, %v121_v31  ;;  %139 = vst.msk [vmem:[%s329_s2 + $0x18] sm:$0xff] %vm135_vm1, %v131_v32 }
  0xec   :  { %v123_v33 = vpop.f32.mrf.mxu0  ;;  %v133_v34 = vpop.f32.mrf.mxu1 }

// kernel: mul.3
= control target key start
LH: loop header
LB: loop body
LE: loop exit
PB: predicated region body
PF: predicated region fallthrough
CT: control target
= control target key end

     0   :  { %s100_s0 = inlined_call_operand.vmem [shape: f32[32,8], index: 0, kind: input, shape index: {}]   ;;  %s101_s1 = inlined_call_operand.vmem [shape: f32[32,8], index: 1, kind: input, shape index: {}]   ;;  %s102_s2 = inlined_call_operand.vmem [shape: f32[32,8], index: 2, kind: output, shape index: {}]  }
   0x1   :  { %v3_v0 = vld [vmem:[%s100_s0] sm:$0xff]  ;;  %v40_v2 = vld [vmem:[%s100_s0 + $0x8] sm:$0xff]  ;;  %v43_v5 = vld [vmem:[%s100_s0 + $0x10] sm:$0xff] }
   0x2   :  { %v4_v1 = vld [vmem:[%s101_s1] sm:$0xff]  ;;  %v41_v4 = vld [vmem:[%s101_s1 + $0x8] sm:$0xff]  ;;  %v44_v6 = vld [vmem:[%s101_s1 + $0x10] sm:$0xff] }
   0x3   :  { %v7_v3 = vmul.f32 %v4_v1, %v3_v0  ;;  %v16_v7 = vmul.f32 %v41_v4, %v40_v2  ;;  %v26_v8 = vmul.f32 %v44_v6, %v43_v5  ;;  %v46_v9 = vld [vmem:[%s100_s0 + $0x18] sm:$0xff] }
   0x4   :  { %v47_v10 = vld [vmem:[%s101_s1 + $0x18] sm:$0xff] }
   0x5   :  { %9 = vst [vmem:[%s102_s2] sm:$0xff] %v7_v3  ;;  %v36_v11 = vmul.f32 %v47_v10, %v46_v9  ;;  %42 = vst [vmem:[%s102_s2 + $0x8] sm:$0xff] %v16_v7 }
   0x6   :  { %45 = vst [vmem:[%s102_s2 + $0x10] sm:$0xff] %v26_v8 }
   0x7   :  { %48 = vst [vmem:[%s102_s2 + $0x18] sm:$0xff] %v36_v11 }

// kernel: densenet_forward.48
= control target key start
LH: loop header
LB: loop body
LE: loop exit
PB: predicated region body
PF: predicated region fallthrough
CT: control target
= control target key end

     0   :  { %v171_v0 = vmov 0.0   ;;  %vm46_vm0 = vcmask 719872   ;;  %vm120_vm1 = vcmask 195584   ;;  %s323_s1 = inlined_call_operand.vmem [shape: f32[216,24], index: 1, kind: input, shape index: {}]   ;;  %s324_s0 = inlined_call_operand.vmem [shape: f32[8,216], index: 0, kind: input, shape index: {}]   ;;  %s325_s2 = inlined_call_operand.vmem [shape: f32[1,24], index: 2, kind: input, shape index: {}]   ;;  %s326_s3 = inlined_call_operand.vmem [shape: f32[1,24], index: 3, kind: input, shape index: {}]   ;;  %s327_s4 = inlined_call_operand.vmem [shape: f32[8,24], index: 4, kind: output, shape index: {}]  }
   0x1   :  { %50 = vmatprep.subr.mxu0 %v171_v0  ;;  %v34_v1 = vld [vmem:[%s323_s1 + $0x78] sm:$0xff]  ;;  %v33_v2 = vld [vmem:[%s323_s1 + $0x70] sm:$0xff]  ;;  %v32_v3 = vld [vmem:[%s323_s1 + $0x68] sm:$0xff] }
   0x2   :  { %51 = vmatpush1.msra.mxu0 %v34_v1  ;;  %v31_v4 = vld [vmem:[%s323_s1 + $0x60] sm:$0xff]  ;;  %v30_v5 = vld [vmem:[%s323_s1 + $0x58] sm:$0xff]  ;;  %v29_v6 = vld [vmem:[%s323_s1 + $0x50] sm:$0xff] }
   0x3   :  { %52 = vmatprep.subr.mxu0 %v171_v0  ;;  %v18_v7 = vld [vmem:[%s324_s0 + $0x8] sm:$0xff]  ;;  %v27_v9 = vld [vmem:[%s323_s1 + $0x40] sm:$0xff]  ;;  %v26_v10 = vld [vmem:[%s323_s1 + $0x38] sm:$0xff] }
   0x4   :  { %53 = vmatpush1.msra.mxu0 %v33_v2  ;;  %v28_v8 = vld [vmem:[%s323_s1 + $0x48] sm:$0xff]  ;;  %165 = vmatprep.mubr.msk.f32.mxu0 %vm46_vm0, %v18_v7  ;;  %v25_v11 = vld [vmem:[%s323_s1 + $0x30] sm:$0xff]  ;;  %v23_v13 = vld [vmem:[%s323_s1 + $0x20] sm:$0xff] }
   0x5   :  { %54 = vmatprep.subr.mxu0 %v171_v0  ;;  %v24_v12 = vld [vmem:[%s323_s1 + $0x28] sm:$0xff]  ;;  %v22_v14 = vld [vmem:[%s323_s1 + $0x18] sm:$0xff]  ;;  %v21_v15 = vld [vmem:[%s323_s1 + $0x10] sm:$0xff] }
   0x6   :  { %55 = vmatpush1.msra.mxu0 %v32_v3  ;;  %v20_v16 = vld [vmem:[%s323_s1 + $0x8] sm:$0xff]  ;;  %v19_v17 = vld [vmem:[%s323_s1] sm:$0xff]  ;;  %v45_v18 = vld [vmem:[%s323_s1 + $0xd0] sm:$0xff] }
   0x7   :  { %56 = vmatprep.subr.mxu0 %v171_v0  ;;  %v44_v19 = vld [vmem:[%s323_s1 + $0xc8] sm:$0xff]  ;;  %v43_v20 = vld [vmem:[%s323_s1 + $0xc0] sm:$0xff]  ;;  %v42_v21 = vld [vmem:[%s323_s1 + $0xb8] sm:$0xff] }
   0x8   :  { %57 = vmatpush1.msra.mxu0 %v31_v4  ;;  %v41_v22 = vld [vmem:[%s323_s1 + $0xb0] sm:$0xff]  ;;  %v40_v23 = vld [vmem:[%s323_s1 + $0xa8] sm:$0xff]  ;;  %v39_v24 = vld [vmem:[%s323_s1 + $0xa0] sm:$0xff] }
   0x9   :  { %58 = vmatprep.subr.mxu0 %v171_v0  ;;  %v38_v25 = vld [vmem:[%s323_s1 + $0x98] sm:$0xff]  ;;  %v37_v26 = vld [vmem:[%s323_s1 + $0x90] sm:$0xff]  ;;  %v36_v27 = vld [vmem:[%s323_s1 + $0x88] sm:$0xff] }
   0xa   :  { %59 = vmatpush1.msra.mxu0 %v30_v5  ;;  %v35_v28 = vld [vmem:[%s323_s1 + $0x80] sm:$0xff] }
   0xb   :  { %60 = vmatprep.subr.mxu0 %v171_v0  ;;  %v17_v29 = vld [vmem:[%s324_s0] sm:$0xff] }
   0xc   :  { %61 = vmatpush1.msra.mxu0 %v29_v6  ;;  %v166_v52 = vld [vmem:[%s325_s2] ss:$0 sm:$0xff] }
   0xd   :  { %62 = vmatprep.subr.mxu0 %v171_v0  ;;  %v167_v54 = vld [vmem:[%s326_s3] ss:$0 sm:$0xff] }
   0xe   :  { %63 = vmatpush1.msra.mxu0 %v28_v8 }
   0xf   :  { %64 = vmatprep.subr.mxu0 %v171_v0 }
  0x10   :  { %65 = vmatpush1.msra.mxu0 %v27_v9 }
  0x11   :  { %66 = vmatprep.subr.mxu0 %v171_v0 }
  0x12   :  { %67 = vmatpush1.msra.mxu0 %v26_v10 }
  0x13   :  { %68 = vmatprep.subr.mxu0 %v171_v0 }
  0x14   :  { %69 = vmatpush1.msra.mxu0 %v25_v11 }
  0x15   :  { %70 = vmatprep.subr.mxu0 %v171_v0 }
  0x16   :  { %71 = vmatpush1.msra.mxu0 %v24_v12 }
  0x17   :  { %72 = vmatprep.subr.mxu0 %v171_v0 }
  0x18   :  { %73 = vmatpush1.msra.mxu0 %v23_v13 }
  0x19   :  { %74 = vmatprep.subr.mxu0 %v171_v0 }
  0x1a   :  { %75 = vmatpush1.msra.mxu0 %v22_v14 }
  0x1b   :  { %76 = vmatprep.subr.mxu0 %v171_v0 }
  0x1c   :  { %77 = vmatpush1.msra.mxu0 %v21_v15 }
  0x1d   :  { %78 = vmatprep.subr.mxu0 %v171_v0 }
  0x1e   :  { %79 = vmatpush1.msra.mxu0 %v20_v16 }
  0x1f   :  { %80 = vmatprep.subr.mxu0 %v171_v0 }
  0x20   :  { %81 = vmatpush1.msra.mxu0 %v19_v17 }
  0x21   :  { %92 = vmatprep.subr.mxu0 %v171_v0 }
  0x22   :  { %93 = vmatpush2.msra.mxu0 %v45_v18 }
  0x23   :  { %94 = vmatprep.subr.mxu0 %v171_v0 }
  0x24   :  { %95 = vmatpush2.msra.mxu0 %v44_v19 }
  0x25   :  { %96 = vmatprep.subr.mxu0 %v171_v0 }
  0x26   :  { %97 = vmatpush2.msra.mxu0 %v43_v20 }
  0x27   :  { %98 = vmatprep.subr.mxu0 %v171_v0 }
  0x28   :  { %99 = vmatpush2.msra.mxu0 %v42_v21 }
  0x29   :  { %100 = vmatprep.subr.mxu0 %v171_v0 }
  0x2a   :  { %101 = vmatpush2.msra.mxu0 %v41_v22 }
  0x2b   :  { %102 = vmatprep.subr.mxu0 %v171_v0 }
  0x2c   :  { %103 = vmatpush2.msra.mxu0 %v40_v23 }
  0x2d   :  { %104 = vmatprep.subr.mxu0 %v171_v0 }
  0x2e   :  { %105 = vmatpush2.msra.mxu0 %v39_v24 }
  0x2f   :  { %106 = vmatprep.subr.mxu0 %v171_v0 }
  0x30   :  { %107 = vmatpush2.msra.mxu0 %v38_v25 }
  0x31   :  { %108 = vmatprep.subr.mxu0 %v171_v0 }
  0x32   :  { %109 = vmatpush2.msra.mxu0 %v37_v26 }
  0x33   :  { %110 = vmatprep.subr.mxu0 %v171_v0 }
  0x34   :  { %111 = vmatpush2.msra.mxu0 %v36_v27 }
  0x35   :  { %112 = vmatprep.subr.mxu0 %v171_v0 }
  0x36   :  { %113 = vmatpush2.msra.mxu0 %v35_v28 }
  0x37   :  { %115 = vmatmul.mubr.f32.vlgmr.msra.gmra.mxu0 %v17_v29 }
  0xf7   :  { %v116_v30 = vpop.f32.mrf.mxu0 }
  0xf8   :  { %v121_v31 = vsel %vm120_vm1, %v116_v30, 0.0 }
  0xf9   :  { %v122_v32 = vrot.slane %v121_v31, 4  ;;  %v118_v33 = vpop.f32.mrf.mxu0 }
  0xfb   :  { %v123_v34 = vadd.f32 %v122_v32, %v121_v31 }
  0xfd   :  { %v124_v35 = vrot.slane %v123_v34, 2 }
  0xff   :  { %v125_v36 = vadd.f32 %v124_v35, %v123_v34 }
 0x101   :  { %v126_v37 = vrot.slane %v125_v36, 1 }
 0x103   :  { %v127_v38 = vadd.f32 %v126_v37, %v125_v36 }
 0x105   :  { %v129_v39 = vmul.f32 0.125, %v127_v38 }
 0x107   :  { %v130_v40 = vsub.f32 %v116_v30, %v129_v39 }
 0x109   :  { %v131_v41 = vmul.f32 %v130_v40, %v130_v40 }
 0x10b   :  { %v132_v42 = vsel %vm120_vm1, %v131_v41, 0.0 }
 0x10c   :  { %v133_v43 = vrot.slane %v132_v42, 4 }
 0x10e   :  { %v134_v44 = vadd.f32 %v133_v43, %v132_v42 }
 0x110   :  { %v135_v45 = vrot.slane %v134_v44, 2 }
 0x112   :  { %v136_v46 = vadd.f32 %v135_v45, %v134_v44 }
 0x114   :  { %v137_v47 = vrot.slane %v136_v46, 1 }
 0x116   :  { %v138_v48 = vadd.f32 %v137_v47, %v136_v46 }
 0x118   :  { %v139_v49 = vmul.f32 0.125, %v138_v48 }
 0x11a   :  { %v140_v50 = vadd.f32 1e-05, %v139_v49 }
 0x11c   :  { %169 = vrsqrt.f32 %v140_v50 }
 0x129   :  { %v170_v51 = vpop.eup %169 }
 0x12a   :  { %v142_v53 = vmul.f32 %v170_v51, %v130_v40 }
 0x12c   :  { %v150_v55 = vmul.f32 %v166_v52, %v142_v53 }
 0x12e   :  { %v158_v56 = vadd.f32 %v167_v54, %v150_v55 }
 0x130   :  { %v159_v57 = vmax.f32 %v158_v56, 0.0 }
 0x132   :  { %160 = vst.msk [vmem:[%s327_s4] sm:$0xff] %vm120_vm1, %v159_v57 }

// kernel: densenet_forward.50
= control target key start
LH: loop header
LB: loop body
LE: loop exit
PB: predicated region body
PF: predicated region fallthrough
CT: control target
= control target key end

     0   :  { %11 = vsyncpa [#allocation3], 0  ;;  %s559_s0 = inlined_call_operand.vmem [shape: f32[32,24], index: 0, kind: input, shape index: {}]   ;;  %s560_s1 = inlined_call_operand.vmem [shape: f32[24,16], index: 1, kind: input, shape index: {}]   ;;  %s561_s2 = inlined_call_operand.hbm [shape: f32[1,24], index: 2, kind: input, shape index: {}]   ;;  %s562_s3 = inlined_call_operand.hbm [shape: f32[1,24], index: 3, kind: input, shape index: {}]   ;;  %s563_s4 = inlined_call_operand.hbm [shape: f32[1,16], index: 4, kind: input, shape index: {}]   ;;  %s564_s5 = inlined_call_operand.hbm [shape: f32[1,16], index: 5, kind: input, shape index: {}]   ;;  %s565_s6 = inlined_call_operand.vmem [shape: f32[32,16], index: 6, kind: output, shape index: {}]  }
   0x1   :  { %12 = vsyncpa [#allocation5], 0 }
   0x2   :  { %13 = vsyncpa [#allocation8], 0  ;;  %s451_s21 = smov [#allocation4]   ;;  %s452_s23 = smov [#allocation2]  }
   0x3   :  { %s34_s22 = sshll.u32 %s451_s21, 4  ;;  %s24_s24 = sshll.u32 %s452_s23, 4  ;;  %s35_s22 = int_to_ptr.vmem [resolvable:$true] %s34_s22  ;;  %s25_s24 = int_to_ptr.vmem [resolvable:$true] %s24_s24 }
   0x4   :  { %s373_s25 = scalar_lea.vmem %s35_s22, 16  ;;  %s377_s26 = scalar_lea.vmem %s35_s22, 32 }
   0x5   :  { %p374_p0 = scmp.ne.s32.totalorder %s35_s22, %s373_s25  ;;  %p378_p1 = scmp.lt.s32.totalorder %s35_s22, %s35_s22 }
   0x6   :  { %p379_p2 = scmp.lt.s32.totalorder %s377_s26, %s373_s25 }
   0x8   :  { %p380_p3 = por %p379_p2, %p378_p1 }
   0xa   :  { %p381_p4 = pnand %p380_p3, %p374_p0 }
   0xc   :  { %384 = shalt.err (!%p381_p4)
}
   0xd   :  { %37 = dma.hbm_to_vmem [thread:$0]  %s562_s3, 16, %s35_s22, [#allocation5]  }
   0xe   :  { %s393_s29 = scalar_lea.vmem %s25_s24, 16  ;;  %s397_s30 = scalar_lea.vmem %s25_s24, 32 }
   0xf   :  { %p394_p5 = scmp.ne.s32.totalorder %s25_s24, %s393_s29  ;;  %p398_p6 = scmp.lt.s32.totalorder %s25_s24, %s25_s24 }
  0x10   :  { %p399_p7 = scmp.lt.s32.totalorder %s397_s30, %s393_s29 }
  0x12   :  { %p400_p8 = por %p399_p7, %p398_p6 }
  0x14   :  { %p401_p9 = pnand %p400_p8, %p394_p5 }
  0x16   :  { %404 = shalt.err (!%p401_p9)
}
  0x17   :  { %27 = dma.hbm_to_vmem [thread:$0]  %s561_s2, 16, %s25_s24, [#allocation3]  }
  0x18   :  { %s453_s9 = smov [#allocation6]   ;;  %s454_s11 = smov [#allocation7]  }
  0x19   :  { %s44_s10 = sshll.u32 %s453_s9, 4  ;;  %s54_s12 = sshll.u32 %s454_s11, 4  ;;  %s45_s10 = int_to_ptr.vmem [resolvable:$true] %s44_s10  ;;  %s55_s12 = int_to_ptr.vmem [resolvable:$true] %s54_s12 }
  0x1a   :  { %s413_s13 = scalar_lea.vmem %s45_s10, 16  ;;  %s417_s3 = scalar_lea.vmem %s45_s10, 32 }
  0x1b   :  { %p414_p10 = scmp.ne.s32.totalorder %s45_s10, %s413_s13  ;;  %p418_p11 = scmp.lt.s32.totalorder %s45_s10, %s45_s10 }
  0x1c   :  { %p419_p12 = scmp.lt.s32.totalorder %s417_s3, %s413_s13 }
  0x1e   :  { %p420_p13 = por %p419_p12, %p418_p11 }
  0x20   :  { %p421_p0 = pnand %p420_p13, %p414_p10 }
  0x22   :  { %424 = shalt.err (!%p421_p0)
}
  0x23   :  { %47 = dma.hbm_to_vmem [thread:$0]  %s563_s4, 16, %s45_s10, [#allocation5]  }
  0x24   :  { %s433_s16 = scalar_lea.vmem %s55_s12, 16  ;;  %s437_s2 = scalar_lea.vmem %s55_s12, 32 }
  0x25   :  { %p434_p1 = scmp.ne.s32.totalorder %s55_s12, %s433_s16  ;;  %p438_p2 = scmp.lt.s32.totalorder %s55_s12, %s55_s12 }
  0x26   :  { %p439_p3 = scmp.lt.s32.totalorder %s437_s2, %s433_s16 }
  0x28   :  { %p440_p4 = por %p439_p3, %p438_p2 }
  0x2a   :  { %p441_p5 = pnand %p440_p4, %p434_p1 }
  0x2c   :  { %444 = shalt.err (!%p441_p5)
}
  0x2d   :  { %57 = dma.hbm_to_vmem [thread:$0]  %s564_s5, 16, %s55_s12, [#allocation8]  }
  0x2e   :  { %445 = dma.done.wait [#allocation3], 16  }
  0x2f   :  { %446 = vsyncadd [#allocation3], 4294967280 }
  0x30   :  { %447 = dma.done.wait [#allocation5], 32  }
  0x31   :  { %448 = vsyncadd [#allocation5], 4294967264 }
  0x32   :  { %449 = dma.done.wait [#allocation8], 16  }
  0x33   :  { %450 = vsyncadd [#allocation8], 4294967280  ;;  %vm74_vm0 = vcmask 195584   ;;  %v146_v0 = vld [vmem:[%s560_s1 + $0x10] sm:$0xff]  ;;  %v145_v1 = vld [vmem:[%s560_s1 + $0x8] sm:$0xff]  ;;  %vm244_vm1 = vcmask 130048  }
  0x34   :  { %339 = vmatprep.subr.mxu0 %v146_v0  ;;  %351 = vmatprep.subr.mxu1 %v146_v0  ;;  %v70_v2 = vld [vmem:[%s559_s0] sm:$0xff]  ;;  %v71_v3 = vld [vmem:[%s559_s0 + $0x8] sm:$0xff]  ;;  %v72_v4 = vld [vmem:[%s559_s0 + $0x10] sm:$0xff] }
  0x35   :  { %340 = vmatpush3.msra.mxu0 %v146_v0  ;;  %354 = vmatpush3.msra.mxu1 %v146_v0  ;;  %v144_v5 = vld [vmem:[%s560_s1] sm:$0xff]  ;;  %v73_v6 = vld [vmem:[%s559_s0 + $0x18] sm:$0xff]  ;;  %v75_v7 = vsel %vm74_vm0, %v70_v2, 0.0  ;;  %v76_v8 = vsel %vm74_vm0, %v71_v3, 0.0  ;;  %v78_v9 = vsel %vm74_vm0, %v72_v4, 0.0 }
  0x36   :  { %341 = vmatprep.subr.mxu0 %v145_v1  ;;  %352 = vmatprep.subr.mxu1 %v145_v1  ;;  %v77_v10 = vadd.f32 %v76_v8, %v75_v7  ;;  %v80_v11 = vsel %vm74_vm0, %v73_v6, 0.0  ;;  %v324_v45 = vld [vmem:[#allocation2] ss:$0 sm:$0xff]  ;;  %v325_v50 = vld [vmem:[#allocation4] ss:$0 sm:$0xff] }
  0x37   :  { %342 = vmatpush3.msra.mxu0 %v145_v1  ;;  %355 = vmatpush3.msra.mxu1 %v145_v1 }
  0x38   :  { %343 = vmatprep.subr.mxu0 %v144_v5  ;;  %353 = vmatprep.subr.mxu1 %v144_v5  ;;  %v79_v12 = vadd.f32 %v78_v9, %v77_v10 }
  0x39   :  { %344 = vmatpush3.msra.mxu0 %v144_v5  ;;  %356 = vmatpush3.msra.mxu1 %v144_v5 }
  0x3a   :  { %v81_v13 = vadd.f32 %v80_v11, %v79_v12 }
  0x3c   :  { %v82_v14 = vrot.slane %v81_v13, 4 }
  0x3e   :  { %v83_v15 = vadd.f32 %v82_v14, %v81_v13 }
  0x40   :  { %v84_v16 = vrot.slane %v83_v15, 2 }
  0x42   :  { %v85_v17 = vadd.f32 %v84_v16, %v83_v15 }
  0x44   :  { %v86_v18 = vrot.slane %v85_v17, 1 }
  0x46   :  { %v87_v19 = vadd.f32 %v86_v18, %v85_v17 }
  0x48   :  { %v89_v20 = vmul.f32 0.03125, %v87_v19 }
  0x4a   :  { %v90_v21 = vsub.f32 %v70_v2, %v89_v20  ;;  %v91_v22 = vsub.f32 %v71_v3, %v89_v20  ;;  %v92_v23 = vsub.f32 %v72_v4, %v89_v20  ;;  %v93_v24 = vsub.f32 %v73_v6, %v89_v20 }
  0x4c   :  { %v94_v25 = vmul.f32 %v90_v21, %v90_v21  ;;  %v95_v26 = vmul.f32 %v91_v22, %v91_v22  ;;  %v96_v27 = vmul.f32 %v92_v23, %v92_v23  ;;  %v97_v28 = vmul.f32 %v93_v24, %v93_v24 }
  0x4e   :  { %v98_v29 = vsel %vm74_vm0, %v94_v25, 0.0  ;;  %v99_v30 = vsel %vm74_vm0, %v95_v26, 0.0  ;;  %v101_v31 = vsel %vm74_vm0, %v96_v27, 0.0  ;;  %v103_v33 = vsel %vm74_vm0, %v97_v28, 0.0 }
  0x4f   :  { %v100_v32 = vadd.f32 %v99_v30, %v98_v29 }
  0x51   :  { %v102_v34 = vadd.f32 %v101_v31, %v100_v32 }
  0x53   :  { %v104_v35 = vadd.f32 %v103_v33, %v102_v34 }
  0x55   :  { %v105_v36 = vrot.slane %v104_v35, 4 }
  0x57   :  { %v106_v37 = vadd.f32 %v105_v36, %v104_v35 }
  0x59   :  { %v107_v38 = vrot.slane %v106_v37, 2 }
  0x5b   :  { %v108_v39 = vadd.f32 %v107_v38, %v106_v37 }
  0x5d   :  { %v109_v40 = vrot.slane %v108_v39, 1 }
  0x5f   :  { %v110_v41 = vadd.f32 %v109_v40, %v108_v39 }
  0x61   :  { %v111_v42 = vmul.f32 0.03125, %v110_v41  ;;  %v330_v41 = vld [vmem:[#allocation6] ss:$0 sm:$0xff] }
  0x63   :  { %v112_v43 = vadd.f32 1e-05, %v111_v42 }
  0x65   :  { %361 = vrsqrt.f32 %v112_v43 }
  0x72   :  { %v362_v44 = vpop.eup %361 }
  0x73   :  { %v114_v46 = vmul.f32 %v362_v44, %v90_v21  ;;  %v116_v47 = vmul.f32 %v362_v44, %v92_v23  ;;  %v115_v48 = vmul.f32 %v362_v44, %v91_v22  ;;  %v117_v49 = vmul.f32 %v362_v44, %v93_v24 }
  0x75   :  { %v125_v51 = vmul.f32 %v324_v45, %v114_v46  ;;  %v127_v52 = vmul.f32 %v324_v45, %v116_v47  ;;  %v126_v53 = vmul.f32 %v324_v45, %v115_v48  ;;  %v128_v54 = vmul.f32 %v324_v45, %v117_v49  ;;  %v331_v46 = vld [vmem:[#allocation7] ss:$0 sm:$0xff] }
  0x77   :  { %v136_v55 = vadd.f32 %v325_v50, %v125_v51  ;;  %v138_v56 = vadd.f32 %v325_v50, %v127_v52  ;;  %v137_v57 = vadd.f32 %v325_v50, %v126_v53  ;;  %v139_v58 = vadd.f32 %v325_v50, %v128_v54 }
  0x79   :  { %v140_v59 = vmax.f32 %v136_v55, 0.0  ;;  %v142_v60 = vmax.f32 %v138_v56, 0.0  ;;  %v141_v61 = vmax.f32 %v137_v57, 0.0  ;;  %v143_v62 = vmax.f32 %v139_v58, 0.0 }
  0x7b   :  { %345 = vmatprep.mubr.msk.f32.mxu0 %vm74_vm0, %v140_v59  ;;  %348 = vmatprep.mubr.msk.f32.mxu1 %vm74_vm0, %v142_v60 }
  0x7c   :  { %346 = vmatmul.mubr.msk.f32.vlgmr.msra.gmra.mxu0 %vm74_vm0, %v141_v61  ;;  %349 = vmatmul.mubr.msk.f32.vlgmr.msra.gmra.mxu1 %vm74_vm0, %v143_v62 }
 0x13c   :  { %v347_v63 = vpop.f32.mrf.mxu0  ;;  %v350_v0 = vpop.f32.mrf.mxu1 }
 0x13d   :  { %v246_v3 = vsel %vm244_vm1, %v347_v63, 0.0  ;;  %v250_v8 = vsel %vm244_vm1, %v350_v0, 0.0 }
 0x13e   :  { %v225_v1 = vpop.f32.mrf.mxu0  ;;  %v235_v2 = vpop.f32.mrf.mxu1 }
 0x13f   :  { %v245_v4 = vsel %vm244_vm1, %v225_v1, 0.0  ;;  %v248_v6 = vsel %vm244_vm1, %v235_v2, 0.0 }
 0x140   :  { %v247_v5 = vadd.f32 %v246_v3, %v245_v4 }
 0x142   :  { %v249_v7 = vadd.f32 %v248_v6, %v247_v5 }
 0x144   :  { %v251_v9 = vadd.f32 %v250_v8, %v249_v7 }
 0x146   :  { %v252_v10 = vrot.slane %v251_v9, 4 }
 0x148   :  { %v253_v11 = vadd.f32 %v252_v10, %v251_v9 }
 0x14a   :  { %v254_v12 = vrot.slane %v253_v11, 2 }
 0x14c   :  { %v255_v13 = vadd.f32 %v254_v12, %v253_v11 }
 0x14e   :  { %v256_v14 = vrot.slane %v255_v13, 1 }
 0x150   :  { %v257_v15 = vadd.f32 %v256_v14, %v255_v13 }
 0x152   :  { %v258_v16 = vmul.f32 0.03125, %v257_v15 }
 0x154   :  { %v259_v17 = vsub.f32 %v225_v1, %v258_v16  ;;  %v260_v18 = vsub.f32 %v347_v63, %v258_v16  ;;  %v261_v19 = vsub.f32 %v235_v2, %v258_v16  ;;  %v262_v20 = vsub.f32 %v350_v0, %v258_v16 }
 0x156   :  { %v263_v21 = vmul.f32 %v259_v17, %v259_v17  ;;  %v264_v22 = vmul.f32 %v260_v18, %v260_v18  ;;  %v265_v23 = vmul.f32 %v261_v19, %v261_v19  ;;  %v266_v24 = vmul.f32 %v262_v20, %v262_v20 }
 0x158   :  { %v267_v25 = vsel %vm244_vm1, %v263_v21, 0.0  ;;  %v268_v26 = vsel %vm244_vm1, %v264_v22, 0.0  ;;  %v270_v28 = vsel %vm244_vm1, %v265_v23, 0.0  ;;  %v272_v30 = vsel %vm244_vm1, %v266_v24, 0.0 }
 0x159   :  { %v269_v27 = vadd.f32 %v268_v26, %v267_v25 }
 0x15b   :  { %v271_v29 = vadd.f32 %v270_v28, %v269_v27 }
 0x15d   :  { %v273_v31 = vadd.f32 %v272_v30, %v271_v29 }
 0x15f   :  { %v274_v32 = vrot.slane %v273_v31, 4 }
 0x161   :  { %v275_v33 = vadd.f32 %v274_v32, %v273_v31 }
 0x163   :  { %v276_v34 = vrot.slane %v275_v33, 2 }
 0x165   :  { %v277_v35 = vadd.f32 %v276_v34, %v275_v33 }
 0x167   :  { %v278_v36 = vrot.slane %v277_v35, 1 }
 0x169   :  { %v279_v37 = vadd.f32 %v278_v36, %v277_v35 }
 0x16b   :  { %v280_v38 = vmul.f32 0.03125, %v279_v37 }
 0x16d   :  { %v281_v39 = vadd.f32 1e-05, %v280_v38 }
 0x16f   :  { %363 = vrsqrt.f32 %v281_v39 }
 0x17c   :  { %v364_v40 = vpop.eup %363 }
 0x17d   :  { %v283_v42 = vmul.f32 %v364_v40, %v259_v17  ;;  %v284_v43 = vmul.f32 %v364_v40, %v260_v18  ;;  %v285_v44 = vmul.f32 %v364_v40, %v261_v19  ;;  %v286_v45 = vmul.f32 %v364_v40, %v262_v20 }
 0x17f   :  { %v294_v47 = vmul.f32 %v330_v41, %v283_v42  ;;  %v295_v48 = vmul.f32 %v330_v41, %v284_v43  ;;  %v296_v49 = vmul.f32 %v330_v41, %v285_v44  ;;  %v297_v50 = vmul.f32 %v330_v41, %v286_v45 }
 0x181   :  { %v305_v51 = vadd.f32 %v331_v46, %v294_v47  ;;  %v306_v52 = vadd.f32 %v331_v46, %v295_v48  ;;  %v307_v53 = vadd.f32 %v331_v46, %v296_v49  ;;  %v308_v54 = vadd.f32 %v331_v46, %v297_v50 }
 0x183   :  { %v309_v55 = vmax.f32 %v305_v51, 0.0  ;;  %v310_v56 = vmax.f32 %v306_v52, 0.0  ;;  %v311_v57 = vmax.f32 %v307_v53, 0.0  ;;  %v312_v58 = vmax.f32 %v308_v54, 0.0 }
 0x185   :  { %313 = vst.msk [vmem:[%s565_s6] sm:$0xff] %vm244_vm1, %v309_v55  ;;  %314 = vst.msk [vmem:[%s565_s6 + $0x8] sm:$0xff] %vm244_vm1, %v310_v56 }
 0x186   :  { %315 = vst.msk [vmem:[%s565_s6 + $0x10] sm:$0xff] %vm244_vm1, %v311_v57  ;;  %316 = vst.msk [vmem:[%s565_s6 + $0x18] sm:$0xff] %vm244_vm1, %v312_v58 }
 0x187   :  { %321 = vsyncpa [#allocation3], 1 }
 0x188   :  { %322 = vsyncpa [#allocation5], 1 }
 0x189   :  { %323 = vsyncpa [#allocation8], 1 }

// kernel: densenet_forward.52
= control target key start
LH: loop header
LB: loop body
LE: loop exit
PB: predicated region body
PF: predicated region fallthrough
CT: control target
= control target key end

     0   :  { %9 = vsyncpa [#allocation3], 0  ;;  %s533_s0 = inlined_call_operand.vmem [shape: f32[8,288], index: 0, kind: input, shape index: {}]   ;;  %s534_s1 = inlined_call_operand.vmem [shape: f32[288,32], index: 1, kind: input, shape index: {}]   ;;  %s535_s2 = inlined_call_operand.hbm [shape: f32[1,32], index: 2, kind: input, shape index: {}]   ;;  %s536_s3 = inlined_call_operand.hbm [shape: f32[1,32], index: 3, kind: input, shape index: {}]   ;;  %s537_s4 = inlined_call_operand.vmem [shape: f32[8,32], index: 4, kind: output, shape index: {}]  }
   0x1   :  { %10 = vsyncpa [#allocation5], 0  ;;  %s374_s15 = smov [#allocation2]   ;;  %s375_s17 = smov [#allocation4]  }
   0x2   :  { %s21_s16 = sshll.u32 %s374_s15, 4  ;;  %s31_s18 = sshll.u32 %s375_s17, 4  ;;  %s22_s16 = int_to_ptr.vmem [resolvable:$true] %s21_s16  ;;  %s32_s18 = int_to_ptr.vmem [resolvable:$true] %s31_s18 }
   0x3   :  { %s338_s19 = scalar_lea.vmem %s22_s16, 16  ;;  %s342_s20 = scalar_lea.vmem %s22_s16, 32 }
   0x4   :  { %p339_p0 = scmp.ne.s32.totalorder %s22_s16, %s338_s19  ;;  %p343_p1 = scmp.lt.s32.totalorder %s22_s16, %s22_s16 }
   0x5   :  { %p344_p2 = scmp.lt.s32.totalorder %s342_s20, %s338_s19 }
   0x7   :  { %p345_p3 = por %p344_p2, %p343_p1 }
   0x9   :  { %p346_p4 = pnand %p345_p3, %p339_p0 }
   0xb   :  { %349 = shalt.err (!%p346_p4)
}
   0xc   :  { %24 = dma.hbm_to_vmem [thread:$0]  %s535_s2, 16, %s22_s16, [#allocation3]  }
   0xd   :  { %s358_s23 = scalar_lea.vmem %s32_s18, 16  ;;  %s362_s24 = scalar_lea.vmem %s32_s18, 32 }
   0xe   :  { %p359_p5 = scmp.ne.s32.totalorder %s32_s18, %s358_s23  ;;  %p363_p6 = scmp.lt.s32.totalorder %s32_s18, %s32_s18 }
   0xf   :  { %p364_p7 = scmp.lt.s32.totalorder %s362_s24, %s358_s23 }
  0x11   :  { %p365_p8 = por %p364_p7, %p363_p6 }
  0x13   :  { %p366_p9 = pnand %p365_p8, %p359_p5 }
  0x15   :  { %369 = shalt.err (!%p366_p9)
}
  0x16   :  { %34 = dma.hbm_to_vmem [thread:$0]  %s536_s3, 16, %s32_s18, [#allocation5]  }
  0x17   :  { %370 = dma.done.wait [#allocation3], 16  }
  0x18   :  { %371 = vsyncadd [#allocation3], 4294967280 }
  0x19   :  { %372 = dma.done.wait [#allocation5], 16  }
  0x1a   :  { %373 = vsyncadd [#allocation5], 4294967280  ;;  %v376_v0 = vmov 0.0   ;;  %vm377_vm0 = vmmov 0   ;;  %v75_v1 = vld [vmem:[%s534_s1 + $0xf8] sm:$0xff]  ;;  %v74_v3 = vld [vmem:[%s534_s1 + $0xf0] sm:$0xff] }
  0x1b   :  { %313 = vmatprep.subr.mxu1 %v376_v0  ;;  %321 = vmatprep.mubr.msk.f32.mxu1 %vm377_vm0, %v376_v0  ;;  %v59_v2 = vld [vmem:[%s534_s1 + $0x78] sm:$0xff]  ;;  %v58_v4 = vld [vmem:[%s534_s1 + $0x70] sm:$0xff]  ;;  %v73_v5 = vld [vmem:[%s534_s1 + $0xe8] sm:$0xff]  ;;  %vm80_vm1 = vcmask 261120  }
  0x1c   :  { %273 = vmatprep.subr.mxu0 %v75_v1  ;;  %v57_v6 = vld [vmem:[%s534_s1 + $0x68] sm:$0xff]  ;;  %v72_v7 = vld [vmem:[%s534_s1 + $0xe0] sm:$0xff]  ;;  %v71_v9 = vld [vmem:[%s534_s1 + $0xd8] sm:$0xff] }
  0x1d   :  { %274 = vmatpush3.msra.mxu0 %v59_v2  ;;  %v56_v8 = vld [vmem:[%s534_s1 + $0x60] sm:$0xff]  ;;  %v55_v10 = vld [vmem:[%s534_s1 + $0x58] sm:$0xff]  ;;  %v70_v11 = vld [vmem:[%s534_s1 + $0xd0] sm:$0xff] }
  0x1e   :  { %275 = vmatprep.subr.mxu0 %v74_v3  ;;  %v54_v12 = vld [vmem:[%s534_s1 + $0x50] sm:$0xff]  ;;  %v79_v13 = vld [vmem:[%s534_s1 + $0x118] sm:$0xff]  ;;  %v69_v14 = vld [vmem:[%s534_s1 + $0xc8] sm:$0xff] }
  0x1f   :  { %276 = vmatpush3.msra.mxu0 %v58_v4  ;;  %314 = vmatpush3.msra.mxu1 %v79_v13  ;;  %v78_v15 = vld [vmem:[%s534_s1 + $0x110] sm:$0xff]  ;;  %v53_v16 = vld [vmem:[%s534_s1 + $0x48] sm:$0xff]  ;;  %v68_v18 = vld [vmem:[%s534_s1 + $0xc0] sm:$0xff] }
  0x20   :  { %277 = vmatprep.subr.mxu0 %v73_v5  ;;  %315 = vmatprep.subr.mxu1 %v376_v0  ;;  %v42_v17 = vld [vmem:[%s533_s0 + $0x8] sm:$0xff]  ;;  %v52_v20 = vld [vmem:[%s534_s1 + $0x40] sm:$0xff]  ;;  %v67_v21 = vld [vmem:[%s534_s1 + $0xb8] sm:$0xff] }
  0x21   :  { %278 = vmatpush3.msra.mxu0 %v57_v6  ;;  %316 = vmatpush3.msra.mxu1 %v78_v15  ;;  %v77_v19 = vld [vmem:[%s534_s1 + $0x108] sm:$0xff]  ;;  %v76_v22 = vld [vmem:[%s534_s1 + $0x100] sm:$0xff]  ;;  %v51_v23 = vld [vmem:[%s534_s1 + $0x38] sm:$0xff] }
  0x22   :  { %279 = vmatprep.subr.mxu0 %v72_v7  ;;  %317 = vmatprep.subr.mxu1 %v376_v0  ;;  %v43_v24 = vld [vmem:[%s533_s0 + $0x10] sm:$0xff]  ;;  %v65_v27 = vld [vmem:[%s534_s1 + $0xa8] sm:$0xff]  ;;  %v64_v29 = vld [vmem:[%s534_s1 + $0xa0] sm:$0xff] }
  0x23   :  { %280 = vmatpush3.msra.mxu0 %v56_v8  ;;  %148 = vmatprep.mubr.f32.mxu0 %v42_v17  ;;  %v66_v25 = vld [vmem:[%s534_s1 + $0xb0] sm:$0xff]  ;;  %v49_v28 = vld [vmem:[%s534_s1 + $0x28] sm:$0xff]  ;;  %v48_v30 = vld [vmem:[%s534_s1 + $0x20] sm:$0xff] }
  0x24   :  { %281 = vmatprep.subr.mxu0 %v71_v9  ;;  %318 = vmatpush3.msra.mxu1 %v77_v19  ;;  %v50_v26 = vld [vmem:[%s534_s1 + $0x30] sm:$0xff]  ;;  %v63_v31 = vld [vmem:[%s534_s1 + $0x98] sm:$0xff]  ;;  %v61_v35 = vld [vmem:[%s534_s1 + $0x88] sm:$0xff] }
  0x25   :  { %282 = vmatpush3.msra.mxu0 %v55_v10  ;;  %319 = vmatprep.subr.mxu1 %v376_v0  ;;  %v47_v32 = vld [vmem:[%s534_s1 + $0x18] sm:$0xff]  ;;  %v62_v33 = vld [vmem:[%s534_s1 + $0x90] sm:$0xff]  ;;  %v45_v36 = vld [vmem:[%s534_s1 + $0x8] sm:$0xff] }
  0x26   :  { %283 = vmatprep.subr.mxu0 %v70_v11  ;;  %320 = vmatpush3.msra.mxu1 %v76_v22  ;;  %v46_v34 = vld [vmem:[%s534_s1 + $0x10] sm:$0xff]  ;;  %v60_v37 = vld [vmem:[%s534_s1 + $0x80] sm:$0xff] }
  0x27   :  { %284 = vmatpush3.msra.mxu0 %v54_v12  ;;  %322 = vmatmul.mubr.msk.f32.vlgmr.msra.gmra.mxu1 %vm80_vm1, %v43_v24  ;;  %v44_v38 = vld [vmem:[%s534_s1] sm:$0xff] }
  0x28   :  { %285 = vmatprep.subr.mxu0 %v69_v14  ;;  %v41_v39 = vld [vmem:[%s533_s0] sm:$0xff] }
  0x29   :  { %286 = vmatpush3.msra.mxu0 %v53_v16  ;;  %v271_v2 = vld [vmem:[#allocation2] ss:$0 sm:$0xff]  ;;  %v272_v4 = vld [vmem:[#allocation4] ss:$0 sm:$0xff] }
  0x2a   :  { %287 = vmatprep.subr.mxu0 %v68_v18 }
  0x2b   :  { %288 = vmatpush3.msra.mxu0 %v52_v20 }
  0x2c   :  { %289 = vmatprep.subr.mxu0 %v67_v21 }
  0x2d   :  { %290 = vmatpush3.msra.mxu0 %v51_v23 }
  0x2e   :  { %291 = vmatprep.subr.mxu0 %v66_v25 }
  0x2f   :  { %292 = vmatpush3.msra.mxu0 %v50_v26 }
  0x30   :  { %293 = vmatprep.subr.mxu0 %v65_v27 }
  0x31   :  { %294 = vmatpush3.msra.mxu0 %v49_v28 }
  0x32   :  { %295 = vmatprep.subr.mxu0 %v64_v29 }
  0x33   :  { %296 = vmatpush3.msra.mxu0 %v48_v30 }
  0x34   :  { %297 = vmatprep.subr.mxu0 %v63_v31 }
  0x35   :  { %298 = vmatpush3.msra.mxu0 %v47_v32 }
  0x36   :  { %299 = vmatprep.subr.mxu0 %v62_v33 }
  0x37   :  { %300 = vmatpush3.msra.mxu0 %v46_v34 }
  0x38   :  { %301 = vmatprep.subr.mxu0 %v61_v35 }
  0x39   :  { %302 = vmatpush3.msra.mxu0 %v45_v36 }
  0x3a   :  { %303 = vmatprep.subr.mxu0 %v60_v37 }
  0x3b   :  { %304 = vmatpush3.msra.mxu0 %v44_v38 }
  0x3c   :  { %149 = vmatmul.mubr.f32.vlgmr.msra.gmra.mxu0 %v41_v39 }
  0xe7   :  { %v220_v40 = vpop.f32.mrf.mxu1 }
  0xe9   :  { %v323_v41 = vpop.f32.mrf.mxu1 }
  0xfc   :  { %v305_v42 = vpop.f32.mrf.mxu0 }
  0xfe   :  { %v306_v43 = vpop.f32.mrf.mxu0 }
  0xff   :  { %v307_v44 = vadd.f32 %v306_v43, %v305_v42 }
 0x101   :  { %v221_v45 = vadd.f32 %v307_v44, %v220_v40 }
 0x103   :  { %v224_v46 = vsel %vm80_vm1, %v221_v45, 0.0 }
 0x104   :  { %v225_v47 = vrot.slane %v224_v46, 4 }
 0x106   :  { %v226_v48 = vadd.f32 %v225_v47, %v224_v46 }
 0x108   :  { %v227_v49 = vrot.slane %v226_v48, 2 }
 0x10a   :  { %v228_v50 = vadd.f32 %v227_v49, %v226_v48 }
 0x10c   :  { %v229_v51 = vrot.slane %v228_v50, 1 }
 0x10e   :  { %v230_v52 = vadd.f32 %v229_v51, %v228_v50 }
 0x110   :  { %v232_v53 = vmul.f32 0.125, %v230_v52 }
 0x112   :  { %v233_v54 = vsub.f32 %v221_v45, %v232_v53 }
 0x114   :  { %v234_v55 = vmul.f32 %v233_v54, %v233_v54 }
 0x116   :  { %v235_v56 = vsel %vm80_vm1, %v234_v55, 0.0 }
 0x117   :  { %v236_v57 = vrot.slane %v235_v56, 4 }
 0x119   :  { %v237_v58 = vadd.f32 %v236_v57, %v235_v56 }
 0x11b   :  { %v238_v59 = vrot.slane %v237_v58, 2 }
 0x11d   :  { %v239_v60 = vadd.f32 %v238_v59, %v237_v58 }
 0x11f   :  { %v240_v61 = vrot.slane %v239_v60, 1 }
 0x121   :  { %v241_v62 = vadd.f32 %v240_v61, %v239_v60 }
 0x123   :  { %v242_v63 = vmul.f32 0.125, %v241_v62 }
 0x125   :  { %v243_v0 = vadd.f32 1e-05, %v242_v63 }
 0x127   :  { %328 = vrsqrt.f32 %v243_v0 }
 0x134   :  { %v329_v1 = vpop.eup %328 }
 0x135   :  { %v245_v3 = vmul.f32 %v329_v1, %v233_v54 }
 0x137   :  { %v253_v5 = vmul.f32 %v271_v2, %v245_v3 }
 0x139   :  { %v261_v6 = vadd.f32 %v272_v4, %v253_v5 }
 0x13b   :  { %v262_v7 = vmax.f32 %v261_v6, 0.0 }
 0x13d   :  { %263 = vst.msk [vmem:[%s537_s4] sm:$0xff] %vm80_vm1, %v262_v7 }
 0x13e   :  { %268 = vsyncpa [#allocation3], 1 }
 0x13f   :  { %269 = vsyncpa [#allocation5], 1 }

// kernel: densenet_forward.54
= control target key start
LH: loop header
LB: loop body
LE: loop exit
PB: predicated region body
PF: predicated region fallthrough
CT: control target
= control target key end

     0   :  { %9 = vsyncpa [#allocation3], 0  ;;  %s392_s0 = inlined_call_operand.vmem [shape: f32[32,32], index: 0, kind: input, shape index: {}]   ;;  %s393_s1 = inlined_call_operand.vmem [shape: f32[32,16], index: 1, kind: input, shape index: {}]   ;;  %s394_s2 = inlined_call_operand.hbm [shape: f32[1,32], index: 2, kind: input, shape index: {}]   ;;  %s395_s3 = inlined_call_operand.hbm [shape: f32[1,32], index: 3, kind: input, shape index: {}]   ;;  %s396_s4 = inlined_call_operand.vmem [shape: f32[32,16], index: 4, kind: output, shape index: {}]  }
   0x1   :  { %10 = vsyncpa [#allocation5], 0  ;;  %s311_s15 = smov [#allocation2]   ;;  %s312_s17 = smov [#allocation4]  }
   0x2   :  { %s21_s16 = sshll.u32 %s311_s15, 4  ;;  %s31_s18 = sshll.u32 %s312_s17, 4  ;;  %s22_s16 = int_to_ptr.vmem [resolvable:$true] %s21_s16  ;;  %s32_s18 = int_to_ptr.vmem [resolvable:$true] %s31_s18 }
   0x3   :  { %s275_s19 = scalar_lea.vmem %s22_s16, 16  ;;  %s279_s20 = scalar_lea.vmem %s22_s16, 32 }
   0x4   :  { %p276_p0 = scmp.ne.s32.totalorder %s22_s16, %s275_s19  ;;  %p280_p1 = scmp.lt.s32.totalorder %s22_s16, %s22_s16 }
   0x5   :  { %p281_p2 = scmp.lt.s32.totalorder %s279_s20, %s275_s19 }
   0x7   :  { %p282_p3 = por %p281_p2, %p280_p1 }
   0x9   :  { %p283_p4 = pnand %p282_p3, %p276_p0 }
   0xb   :  { %286 = shalt.err (!%p283_p4)
}
   0xc   :  { %24 = dma.hbm_to_vmem [thread:$0]  %s394_s2, 16, %s22_s16, [#allocation3]  }
   0xd   :  { %s295_s23 = scalar_lea.vmem %s32_s18, 16  ;;  %s299_s24 = scalar_lea.vmem %s32_s18, 32 }
   0xe   :  { %p296_p5 = scmp.ne.s32.totalorder %s32_s18, %s295_s23  ;;  %p300_p6 = scmp.lt.s32.totalorder %s32_s18, %s32_s18 }
   0xf   :  { %p301_p7 = scmp.lt.s32.totalorder %s299_s24, %s295_s23 }
  0x11   :  { %p302_p8 = por %p301_p7, %p300_p6 }
  0x13   :  { %p303_p9 = pnand %p302_p8, %p296_p5 }
  0x15   :  { %306 = shalt.err (!%p303_p9)
}
  0x16   :  { %34 = dma.hbm_to_vmem [thread:$0]  %s395_s3, 16, %s32_s18, [#allocation5]  }
  0x17   :  { %307 = dma.done.wait [#allocation3], 16  }
  0x18   :  { %308 = vsyncadd [#allocation3], 4294967280 }
  0x19   :  { %309 = dma.done.wait [#allocation5], 16  }
  0x1a   :  { %310 = vsyncadd [#allocation5], 4294967280  ;;  %vm45_vm0 = vcmask 261120   ;;  %v118_v0 = vld [vmem:[%s393_s1 + $0x18] sm:$0xff]  ;;  %v117_v1 = vld [vmem:[%s393_s1 + $0x10] sm:$0xff]  ;;  %vm216_vm1 = vcmask 130048  }
  0x1b   :  { %241 = vmatprep.subr.mxu0 %v118_v0  ;;  %255 = vmatprep.subr.mxu1 %v118_v0  ;;  %v41_v2 = vld [vmem:[%s392_s0] sm:$0xff]  ;;  %v42_v3 = vld [vmem:[%s392_s0 + $0x8] sm:$0xff]  ;;  %v43_v5 = vld [vmem:[%s392_s0 + $0x10] sm:$0xff] }
  0x1c   :  { %242 = vmatpush3.msra.mxu0 %v118_v0  ;;  %259 = vmatpush3.msra.mxu1 %v118_v0  ;;  %v116_v4 = vld [vmem:[%s393_s1 + $0x8] sm:$0xff]  ;;  %v44_v6 = vld [vmem:[%s392_s0 + $0x18] sm:$0xff]  ;;  %v46_v7 = vsel %vm45_vm0, %v41_v2, 0.0  ;;  %v47_v8 = vsel %vm45_vm0, %v42_v3, 0.0  ;;  %v49_v10 = vsel %vm45_vm0, %v43_v5, 0.0  ;;  %v115_v11 = vld [vmem:[%s393_s1] sm:$0xff] }
  0x1d   :  { %243 = vmatprep.subr.mxu0 %v117_v1  ;;  %256 = vmatprep.subr.mxu1 %v117_v1  ;;  %v48_v9 = vadd.f32 %v47_v8, %v46_v7  ;;  %v51_v12 = vsel %vm45_vm0, %v44_v6, 0.0  ;;  %v227_v46 = vld [vmem:[#allocation2] ss:$0 sm:$0xff]  ;;  %v228_v51 = vld [vmem:[#allocation4] ss:$0 sm:$0xff] }
  0x1e   :  { %244 = vmatpush3.msra.mxu0 %v117_v1  ;;  %260 = vmatpush3.msra.mxu1 %v117_v1 }
  0x1f   :  { %245 = vmatprep.subr.mxu0 %v116_v4  ;;  %257 = vmatprep.subr.mxu1 %v116_v4  ;;  %v50_v13 = vadd.f32 %v49_v10, %v48_v9 }
  0x20   :  { %246 = vmatpush3.msra.mxu0 %v116_v4  ;;  %261 = vmatpush3.msra.mxu1 %v116_v4 }
  0x21   :  { %247 = vmatprep.subr.mxu0 %v115_v11  ;;  %258 = vmatprep.subr.mxu1 %v115_v11  ;;  %v52_v14 = vadd.f32 %v51_v12, %v50_v13 }
  0x22   :  { %248 = vmatpush3.msra.mxu0 %v115_v11  ;;  %262 = vmatpush3.msra.mxu1 %v115_v11 }
  0x23   :  { %v53_v15 = vrot.slane %v52_v14, 4 }
  0x25   :  { %v54_v16 = vadd.f32 %v53_v15, %v52_v14 }
  0x27   :  { %v55_v17 = vrot.slane %v54_v16, 2 }
  0x29   :  { %v56_v18 = vadd.f32 %v55_v17, %v54_v16 }
  0x2b   :  { %v57_v19 = vrot.slane %v56_v18, 1 }
  0x2d   :  { %v58_v20 = vadd.f32 %v57_v19, %v56_v18 }
  0x2f   :  { %v60_v21 = vmul.f32 0.03125, %v58_v20 }
  0x31   :  { %v61_v22 = vsub.f32 %v41_v2, %v60_v21  ;;  %v62_v23 = vsub.f32 %v42_v3, %v60_v21  ;;  %v63_v24 = vsub.f32 %v43_v5, %v60_v21  ;;  %v64_v25 = vsub.f32 %v44_v6, %v60_v21 }
  0x33   :  { %v65_v26 = vmul.f32 %v61_v22, %v61_v22  ;;  %v66_v27 = vmul.f32 %v62_v23, %v62_v23  ;;  %v67_v28 = vmul.f32 %v63_v24, %v63_v24  ;;  %v68_v29 = vmul.f32 %v64_v25, %v64_v25 }
  0x35   :  { %v69_v30 = vsel %vm45_vm0, %v65_v26, 0.0  ;;  %v70_v31 = vsel %vm45_vm0, %v66_v27, 0.0  ;;  %v72_v32 = vsel %vm45_vm0, %v67_v28, 0.0  ;;  %v74_v34 = vsel %vm45_vm0, %v68_v29, 0.0 }
  0x36   :  { %v71_v33 = vadd.f32 %v70_v31, %v69_v30 }
  0x38   :  { %v73_v35 = vadd.f32 %v72_v32, %v71_v33 }
  0x3a   :  { %v75_v36 = vadd.f32 %v74_v34, %v73_v35 }
  0x3c   :  { %v76_v37 = vrot.slane %v75_v36, 4 }
  0x3e   :  { %v77_v38 = vadd.f32 %v76_v37, %v75_v36 }
  0x40   :  { %v78_v39 = vrot.slane %v77_v38, 2 }
  0x42   :  { %v79_v40 = vadd.f32 %v78_v39, %v77_v38 }
  0x44   :  { %v80_v41 = vrot.slane %v79_v40, 1 }
  0x46   :  { %v81_v42 = vadd.f32 %v80_v41, %v79_v40 }
  0x48   :  { %v82_v43 = vmul.f32 0.03125, %v81_v42 }
  0x4a   :  { %v83_v44 = vadd.f32 1e-05, %v82_v43 }
  0x4c   :  { %265 = vrsqrt.f32 %v83_v44 }
  0x59   :  { %v266_v45 = vpop.eup %265 }
  0x5a   :  { %v85_v47 = vmul.f32 %v266_v45, %v61_v22  ;;  %v87_v48 = vmul.f32 %v266_v45, %v63_v24  ;;  %v86_v49 = vmul.f32 %v266_v45, %v62_v23  ;;  %v88_v50 = vmul.f32 %v266_v45, %v64_v25 }
  0x5c   :  { %v96_v52 = vmul.f32 %v227_v46, %v85_v47  ;;  %v98_v53 = vmul.f32 %v227_v46, %v87_v48  ;;  %v97_v54 = vmul.f32 %v227_v46, %v86_v49  ;;  %v99_v55 = vmul.f32 %v227_v46, %v88_v50 }
  0x5e   :  { %v107_v56 = vadd.f32 %v228_v51, %v96_v52  ;;  %v109_v57 = vadd.f32 %v228_v51, %v98_v53  ;;  %v108_v58 = vadd.f32 %v228_v51, %v97_v54  ;;  %v110_v59 = vadd.f32 %v228_v51, %v99_v55 }
  0x60   :  { %v111_v60 = vmax.f32 %v107_v56, 0.0  ;;  %v113_v61 = vmax.f32 %v109_v57, 0.0  ;;  %v112_v62 = vmax.f32 %v108_v58, 0.0  ;;  %v114_v63 = vmax.f32 %v110_v59, 0.0 }
  0x62   :  { %249 = vmatprep.mubr.msk.f32.mxu0 %vm45_vm0, %v111_v60  ;;  %252 = vmatprep.mubr.msk.f32.mxu1 %vm45_vm0, %v113_v61 }
  0x63   :  { %250 = vmatmul.mubr.msk.f32.vlgmr.msra.gmra.mxu0 %vm45_vm0, %v112_v62  ;;  %253 = vmatmul.mubr.msk.f32.vlgmr.msra.gmra.mxu1 %vm45_vm0, %v114_v63 }
 0x123   :  { %v251_v0 = vpop.f32.mrf.mxu0  ;;  %v254_v1 = vpop.f32.mrf.mxu1 }
 0x124   :  { %218 = vst.msk [vmem:[%s396_s4 + $0x8] sm:$0xff] %vm216_vm1, %v251_v0  ;;  %220 = vst.msk [vmem:[%s396_s4 + $0x18] sm:$0xff] %vm216_vm1, %v254_v1 }
 0x125   :  { %v197_v2 = vpop.f32.mrf.mxu0  ;;  %v207_v3 = vpop.f32.mrf.mxu1 }
 0x126   :  { %217 = vst.msk [vmem:[%s396_s4] sm:$0xff] %vm216_vm1, %v197_v2  ;;  %219 = vst.msk [vmem:[%s396_s4 + $0x10] sm:$0xff] %vm216_vm1, %v207_v3 }
 0x127   :  { %225 = vsyncpa [#allocation3], 1 }
 0x128   :  { %226 = vsyncpa [#allocation5], 1 }

// kernel: mul.6
= control target key start
LH: loop header
LB: loop body
LE: loop exit
PB: predicated region body
PF: predicated region fallthrough
CT: control target
= control target key end

     0   :  { %s34_s0 = inlined_call_operand.vmem [shape: f32[8,8], index: 0, kind: input, shape index: {}]   ;;  %s35_s1 = inlined_call_operand.vmem [shape: f32[8,8], index: 1, kind: input, shape index: {}]   ;;  %s36_s2 = inlined_call_operand.vmem [shape: f32[8,8], index: 2, kind: output, shape index: {}]  }
   0x1   :  { %v3_v0 = vld [vmem:[%s34_s0] sm:$0xff] }
   0x2   :  { %v4_v1 = vld [vmem:[%s35_s1] sm:$0xff] }
   0x3   :  { %v7_v2 = vmul.f32 %v4_v1, %v3_v0 }
   0x5   :  { %9 = vst [vmem:[%s36_s2] sm:$0xff] %v7_v2 }

// kernel: densenet_forward.55
= control target key start
LH: loop header
LB: loop body
LE: loop exit
PB: predicated region body
PF: predicated region fallthrough
CT: control target
= control target key end

     0   :  { %vm24_vm0 = vcmask 130048   ;;  %v203_v0 = vmov 0.0   ;;  %vm204_vm1 = vmmov 0   ;;  %s270_s1 = inlined_call_operand.vmem [shape: f32[16,16], index: 1, kind: input, shape index: {}]   ;;  %s271_s0 = inlined_call_operand.vmem [shape: f32[8,16], index: 0, kind: input, shape index: {}]   ;;  %s272_s2 = inlined_call_operand.vmem [shape: f32[1,16], index: 2, kind: input, shape index: {}]   ;;  %s273_s3 = inlined_call_operand.vmem [shape: f32[1,16], index: 3, kind: input, shape index: {}]   ;;  %s274_s4 = inlined_call_operand.vmem [shape: f32[1,16], index: 4, kind: input, shape index: {}]   ;;  %s275_s5 = inlined_call_operand.vmem [shape: f32[1,16], index: 5, kind: input, shape index: {}]   ;;  %s276_s6 = inlined_call_operand.vmem [shape: f32[8,16], index: 6, kind: output, shape index: {}]  }
   0x1   :  { %190 = vmatprep.subr.mxu0 %v203_v0  ;;  %v65_v1 = vld [vmem:[%s270_s1 + $0x8] sm:$0xff]  ;;  %v64_v2 = vld [vmem:[%s270_s1] sm:$0xff]  ;;  %194 = vmatprep.mubr.msk.f32.mxu0 %vm204_vm1, %v203_v0 }
   0x2   :  { %v23_v3 = vld [vmem:[%s271_s0] sm:$0xff]  ;;  %191 = vmatpush3.msra.mxu0 %v65_v1 }
   0x3   :  { %v25_v4 = vsel %vm24_vm0, %v23_v3, 0.0  ;;  %192 = vmatprep.subr.mxu0 %v203_v0  ;;  %v182_v24 = vld [vmem:[%s272_s2] ss:$0 sm:$0xff] }
   0x4   :  { %v26_v5 = vrot.slane %v25_v4, 4  ;;  %193 = vmatpush3.msra.mxu0 %v64_v2  ;;  %v183_v26 = vld [vmem:[%s273_s3] ss:$0 sm:$0xff] }
   0x5   :  { %v185_v52 = vld [vmem:[%s274_s4] ss:$0 sm:$0xff] }
   0x6   :  { %v27_v6 = vadd.f32 %v26_v5, %v25_v4  ;;  %v186_v54 = vld [vmem:[%s275_s5] ss:$0 sm:$0xff] }
   0x8   :  { %v28_v7 = vrot.slane %v27_v6, 2 }
   0xa   :  { %v29_v8 = vadd.f32 %v28_v7, %v27_v6 }
   0xc   :  { %v30_v9 = vrot.slane %v29_v8, 1 }
   0xe   :  { %v31_v10 = vadd.f32 %v30_v9, %v29_v8 }
  0x10   :  { %v33_v11 = vmul.f32 0.125, %v31_v10 }
  0x12   :  { %v34_v12 = vsub.f32 %v23_v3, %v33_v11 }
  0x14   :  { %v35_v13 = vmul.f32 %v34_v12, %v34_v12 }
  0x16   :  { %v36_v14 = vsel %vm24_vm0, %v35_v13, 0.0 }
  0x17   :  { %v37_v15 = vrot.slane %v36_v14, 4 }
  0x19   :  { %v38_v16 = vadd.f32 %v37_v15, %v36_v14 }
  0x1b   :  { %v39_v17 = vrot.slane %v38_v16, 2 }
  0x1d   :  { %v40_v18 = vadd.f32 %v39_v17, %v38_v16 }
  0x1f   :  { %v41_v19 = vrot.slane %v40_v18, 1 }
  0x21   :  { %v42_v20 = vadd.f32 %v41_v19, %v40_v18 }
  0x23   :  { %v43_v21 = vmul.f32 0.125, %v42_v20 }
  0x25   :  { %v44_v22 = vadd.f32 1e-05, %v43_v21 }
  0x27   :  { %199 = vrsqrt.f32 %v44_v22 }
  0x34   :  { %v200_v23 = vpop.eup %199 }
  0x35   :  { %v46_v25 = vmul.f32 %v200_v23, %v34_v12 }
  0x37   :  { %v54_v27 = vmul.f32 %v182_v24, %v46_v25 }
  0x39   :  { %v62_v28 = vadd.f32 %v183_v26, %v54_v27 }
  0x3b   :  { %v63_v29 = vmax.f32 %v62_v28, 0.0 }
  0x3d   :  { %195 = vmatmul.mubr.msk.f32.vlgmr.msra.gmra.mxu0 %vm24_vm0, %v63_v29 }
  0xfd   :  { %v135_v30 = vpop.f32.mrf.mxu0 }
  0xfe   :  { %v139_v31 = vsel %vm24_vm0, %v135_v30, 0.0 }
  0xff   :  { %v140_v32 = vrot.slane %v139_v31, 4  ;;  %v196_v33 = vpop.f32.mrf.mxu0 }
 0x101   :  { %v141_v34 = vadd.f32 %v140_v32, %v139_v31 }
 0x103   :  { %v142_v35 = vrot.slane %v141_v34, 2 }
 0x105   :  { %v143_v36 = vadd.f32 %v142_v35, %v141_v34 }
 0x107   :  { %v144_v37 = vrot.slane %v143_v36, 1 }
 0x109   :  { %v145_v38 = vadd.f32 %v144_v37, %v143_v36 }
 0x10b   :  { %v146_v39 = vmul.f32 0.125, %v145_v38 }
 0x10d   :  { %v147_v40 = vsub.f32 %v135_v30, %v146_v39 }
 0x10f   :  { %v148_v41 = vmul.f32 %v147_v40, %v147_v40 }
 0x111   :  { %v149_v42 = vsel %vm24_vm0, %v148_v41, 0.0 }
 0x112   :  { %v150_v43 = vrot.slane %v149_v42, 4 }
 0x114   :  { %v151_v44 = vadd.f32 %v150_v43, %v149_v42 }
 0x116   :  { %v152_v45 = vrot.slane %v151_v44, 2 }
 0x118   :  { %v153_v46 = vadd.f32 %v152_v45, %v151_v44 }
 0x11a   :  { %v154_v47 = vrot.slane %v153_v46, 1 }
 0x11c   :  { %v155_v48 = vadd.f32 %v154_v47, %v153_v46 }
 0x11e   :  { %v156_v49 = vmul.f32 0.125, %v155_v48 }
 0x120   :  { %v157_v50 = vadd.f32 1e-05, %v156_v49 }
 0x122   :  { %201 = vrsqrt.f32 %v157_v50 }
 0x12f   :  { %v202_v51 = vpop.eup %201 }
 0x130   :  { %v159_v53 = vmul.f32 %v202_v51, %v147_v40 }
 0x132   :  { %v167_v55 = vmul.f32 %v185_v52, %v159_v53 }
 0x134   :  { %v175_v56 = vadd.f32 %v186_v54, %v167_v55 }
 0x136   :  { %v176_v57 = vmax.f32 %v175_v56, 0.0 }
 0x138   :  { %177 = vst.msk [vmem:[%s276_s6] sm:$0xff] %vm24_vm0, %v176_v57 }

// kernel: densenet_forward.56
= control target key start
LH: loop header
LB: loop body
LE: loop exit
PB: predicated region body
PF: predicated region fallthrough
CT: control target
= control target key end

     0   :  { %v113_v0 = vmov 0.0   ;;  %vm31_vm0 = vcmask 130048   ;;  %vm105_vm1 = vcmask 64512   ;;  %s192_s1 = inlined_call_operand.vmem [shape: f32[144,8], index: 1, kind: input, shape index: {}]   ;;  %s193_s0 = inlined_call_operand.vmem [shape: f32[8,144], index: 0, kind: input, shape index: {}]   ;;  %s194_s2 = inlined_call_operand.vmem [shape: f32[8,8], index: 2, kind: output, shape index: {}]  }
   0x1   :  { %35 = vmatprep.subr.mxu0 %v113_v0  ;;  %v28_v1 = vld [vmem:[%s192_s1 + $0x78] sm:$0xff]  ;;  %v27_v2 = vld [vmem:[%s192_s1 + $0x70] sm:$0xff]  ;;  %v26_v3 = vld [vmem:[%s192_s1 + $0x68] sm:$0xff] }
   0x2   :  { %36 = vmatpush1.msra.mxu0 %v28_v1  ;;  %v25_v4 = vld [vmem:[%s192_s1 + $0x60] sm:$0xff]  ;;  %v24_v5 = vld [vmem:[%s192_s1 + $0x58] sm:$0xff]  ;;  %v12_v6 = vld [vmem:[%s193_s0 + $0x8] sm:$0xff] }
   0x3   :  { %37 = vmatprep.subr.mxu0 %v113_v0  ;;  %111 = vmatprep.mubr.msk.f32.mxu0 %vm31_vm0, %v12_v6  ;;  %v23_v7 = vld [vmem:[%s192_s1 + $0x50] sm:$0xff]  ;;  %v22_v8 = vld [vmem:[%s192_s1 + $0x48] sm:$0xff]  ;;  %v21_v9 = vld [vmem:[%s192_s1 + $0x40] sm:$0xff] }
   0x4   :  { %38 = vmatpush1.msra.mxu0 %v27_v2  ;;  %v20_v10 = vld [vmem:[%s192_s1 + $0x38] sm:$0xff]  ;;  %v19_v11 = vld [vmem:[%s192_s1 + $0x30] sm:$0xff]  ;;  %v18_v12 = vld [vmem:[%s192_s1 + $0x28] sm:$0xff] }
   0x5   :  { %39 = vmatprep.subr.mxu0 %v113_v0  ;;  %v17_v13 = vld [vmem:[%s192_s1 + $0x20] sm:$0xff]  ;;  %v16_v14 = vld [vmem:[%s192_s1 + $0x18] sm:$0xff]  ;;  %v15_v15 = vld [vmem:[%s192_s1 + $0x10] sm:$0xff] }
   0x6   :  { %40 = vmatpush1.msra.mxu0 %v26_v3  ;;  %v14_v16 = vld [vmem:[%s192_s1 + $0x8] sm:$0xff]  ;;  %v13_v17 = vld [vmem:[%s192_s1] sm:$0xff] }
   0x7   :  { %41 = vmatprep.subr.mxu0 %v113_v0  ;;  %v30_v18 = vld [vmem:[%s192_s1 + $0x88] sm:$0xff]  ;;  %v29_v19 = vld [vmem:[%s192_s1 + $0x80] sm:$0xff] }
   0x8   :  { %42 = vmatpush1.msra.mxu0 %v25_v4  ;;  %v11_v20 = vld [vmem:[%s193_s0] sm:$0xff] }
   0x9   :  { %43 = vmatprep.subr.mxu0 %v113_v0 }
   0xa   :  { %44 = vmatpush1.msra.mxu0 %v24_v5 }
   0xb   :  { %45 = vmatprep.subr.mxu0 %v113_v0 }
   0xc   :  { %46 = vmatpush1.msra.mxu0 %v23_v7 }
   0xd   :  { %47 = vmatprep.subr.mxu0 %v113_v0 }
   0xe   :  { %48 = vmatpush1.msra.mxu0 %v22_v8 }
   0xf   :  { %49 = vmatprep.subr.mxu0 %v113_v0 }
  0x10   :  { %50 = vmatpush1.msra.mxu0 %v21_v9 }
  0x11   :  { %51 = vmatprep.subr.mxu0 %v113_v0 }
  0x12   :  { %52 = vmatpush1.msra.mxu0 %v20_v10 }
  0x13   :  { %53 = vmatprep.subr.mxu0 %v113_v0 }
  0x14   :  { %54 = vmatpush1.msra.mxu0 %v19_v11 }
  0x15   :  { %55 = vmatprep.subr.mxu0 %v113_v0 }
  0x16   :  { %56 = vmatpush1.msra.mxu0 %v18_v12 }
  0x17   :  { %57 = vmatprep.subr.mxu0 %v113_v0 }
  0x18   :  { %58 = vmatpush1.msra.mxu0 %v17_v13 }
  0x19   :  { %59 = vmatprep.subr.mxu0 %v113_v0 }
  0x1a   :  { %60 = vmatpush1.msra.mxu0 %v16_v14 }
  0x1b   :  { %61 = vmatprep.subr.mxu0 %v113_v0 }
  0x1c   :  { %62 = vmatpush1.msra.mxu0 %v15_v15 }
  0x1d   :  { %63 = vmatprep.subr.mxu0 %v113_v0 }
  0x1e   :  { %64 = vmatpush1.msra.mxu0 %v14_v16 }
  0x1f   :  { %65 = vmatprep.subr.mxu0 %v113_v0 }
  0x20   :  { %66 = vmatpush1.msra.mxu0 %v13_v17 }
  0x21   :  { %95 = vmatprep.subr.mxu0 %v113_v0 }
  0x22   :  { %96 = vmatpush2.msra.mxu0 %v30_v18 }
  0x23   :  { %97 = vmatprep.subr.mxu0 %v113_v0 }
  0x24   :  { %98 = vmatpush2.msra.mxu0 %v29_v19 }
  0x25   :  { %100 = vmatmul.mubr.f32.vlgmr.msra.gmra.mxu0 %v11_v20 }
  0xe5   :  { %v101_v21 = vpop.f32.mrf.mxu0 }
  0xe6   :  { %106 = vst.msk [vmem:[%s194_s2] sm:$0xff] %vm105_vm1, %v101_v21 }
  0xe7   :  { %v103_v22 = vpop.f32.mrf.mxu0 }

// kernel: densenet_forward.57
= control target key start
LH: loop header
LB: loop body
LE: loop exit
PB: predicated region body
PF: predicated region fallthrough
CT: control target
= control target key end

     0   :  { %9 = vsyncpa [#allocation3], 0  ;;  %s408_s0 = inlined_call_operand.vmem [shape: f32[2,216], index: 0, kind: input, shape index: {}]   ;;  %s409_s1 = inlined_call_operand.vmem [shape: f32[216,24], index: 1, kind: input, shape index: {}]   ;;  %s410_s2 = inlined_call_operand.hbm [shape: f32[1,24], index: 2, kind: input, shape index: {}]   ;;  %s411_s3 = inlined_call_operand.hbm [shape: f32[1,24], index: 3, kind: input, shape index: {}]   ;;  %s412_s4 = inlined_call_operand.vmem [shape: f32[2,24], index: 4, kind: output, shape index: {}]  }
   0x1   :  { %10 = vsyncpa [#allocation5], 0  ;;  %s252_s15 = smov [#allocation2]   ;;  %s253_s17 = smov [#allocation4]  }
   0x2   :  { %s21_s16 = sshll.u32 %s252_s15, 4  ;;  %s31_s18 = sshll.u32 %s253_s17, 4  ;;  %s22_s16 = int_to_ptr.vmem [resolvable:$true] %s21_s16  ;;  %s32_s18 = int_to_ptr.vmem [resolvable:$true] %s31_s18 }
   0x3   :  { %s216_s19 = scalar_lea.vmem %s22_s16, 16  ;;  %s220_s20 = scalar_lea.vmem %s22_s16, 32 }
   0x4   :  { %p217_p0 = scmp.ne.s32.totalorder %s22_s16, %s216_s19  ;;  %p221_p1 = scmp.lt.s32.totalorder %s22_s16, %s22_s16 }
   0x5   :  { %p222_p2 = scmp.lt.s32.totalorder %s220_s20, %s216_s19 }
   0x7   :  { %p223_p3 = por %p222_p2, %p221_p1 }
   0x9   :  { %p224_p4 = pnand %p223_p3, %p217_p0 }
   0xb   :  { %227 = shalt.err (!%p224_p4)
}
   0xc   :  { %24 = dma.hbm_to_vmem [thread:$0]  %s410_s2, 16, %s22_s16, [#allocation3]  }
   0xd   :  { %s236_s23 = scalar_lea.vmem %s32_s18, 16  ;;  %s240_s24 = scalar_lea.vmem %s32_s18, 32 }
   0xe   :  { %p237_p5 = scmp.ne.s32.totalorder %s32_s18, %s236_s23  ;;  %p241_p6 = scmp.lt.s32.totalorder %s32_s18, %s32_s18 }
   0xf   :  { %p242_p7 = scmp.lt.s32.totalorder %s240_s24, %s236_s23 }
  0x11   :  { %p243_p8 = por %p242_p7, %p241_p6 }
  0x13   :  { %p244_p9 = pnand %p243_p8, %p237_p5 }
  0x15   :  { %247 = shalt.err (!%p244_p9)
}
  0x16   :  { %34 = dma.hbm_to_vmem [thread:$0]  %s411_s3, 16, %s32_s18, [#allocation5]  }
  0x17   :  { %248 = dma.done.wait [#allocation3], 16  }
  0x18   :  { %249 = vsyncadd [#allocation3], 4294967280 }
  0x19   :  { %250 = dma.done.wait [#allocation5], 16  }
  0x1a   :  { %251 = vsyncadd [#allocation5], 4294967280  ;;  %v254_v0 = vmov 0.0   ;;  %v57_v1 = vld [vmem:[%s409_s1 + $0x78] sm:$0xff]  ;;  %v56_v2 = vld [vmem:[%s409_s1 + $0x70] sm:$0xff]  ;;  %vm79_vm0 = vcmask 719872  }
  0x1b   :  { %82 = vmatprep.subr.mxu0 %v254_v0  ;;  %v55_v3 = vld [vmem:[%s409_s1 + $0x68] sm:$0xff]  ;;  %v54_v4 = vld [vmem:[%s409_s1 + $0x60] sm:$0xff]  ;;  %v53_v5 = vld [vmem:[%s409_s1 + $0x58] sm:$0xff]  ;;  %vm152_vm1 = vcmask 189440  }
  0x1c   :  { %83 = vmatpush1.msra.mxu0 %v57_v1  ;;  %v52_v6 = vld [vmem:[%s409_s1 + $0x50] sm:$0xff]  ;;  %v312_v7 = vld.sshfl [vmem:[%s408_s0] sm:$0x33 pattern:$0x76325410]  ;;  %v51_v8 = vld [vmem:[%s409_s1 + $0x48] sm:$0xff] }
  0x1d   :  { %84 = vmatprep.subr.mxu0 %v254_v0  ;;  %v77_v9 = vcombine.high %v312_v7, %v312_v7  ;;  %v50_v10 = vld [vmem:[%s409_s1 + $0x40] sm:$0xff]  ;;  %v49_v11 = vld [vmem:[%s409_s1 + $0x38] sm:$0xff]  ;;  %v48_v12 = vld [vmem:[%s409_s1 + $0x30] sm:$0xff] }
  0x1e   :  { %85 = vmatpush1.msra.mxu0 %v56_v2  ;;  %v47_v13 = vld [vmem:[%s409_s1 + $0x28] sm:$0xff]  ;;  %v46_v14 = vld [vmem:[%s409_s1 + $0x20] sm:$0xff]  ;;  %v45_v15 = vld [vmem:[%s409_s1 + $0x18] sm:$0xff] }
  0x1f   :  { %86 = vmatprep.subr.mxu0 %v254_v0  ;;  %200 = vmatprep.mubr.msk.f32.mxu0 %vm79_vm0, %v77_v9  ;;  %v44_v16 = vld [vmem:[%s409_s1 + $0x10] sm:$0xff]  ;;  %v43_v17 = vld [vmem:[%s409_s1 + $0x8] sm:$0xff]  ;;  %v42_v18 = vld [vmem:[%s409_s1] sm:$0xff] }
  0x20   :  { %87 = vmatpush1.msra.mxu0 %v55_v3  ;;  %v68_v19 = vld [vmem:[%s409_s1 + $0xd0] sm:$0xff]  ;;  %v67_v20 = vld [vmem:[%s409_s1 + $0xc8] sm:$0xff]  ;;  %v66_v21 = vld [vmem:[%s409_s1 + $0xc0] sm:$0xff] }
  0x21   :  { %88 = vmatprep.subr.mxu0 %v254_v0  ;;  %v65_v22 = vld [vmem:[%s409_s1 + $0xb8] sm:$0xff]  ;;  %v64_v23 = vld [vmem:[%s409_s1 + $0xb0] sm:$0xff]  ;;  %v63_v24 = vld [vmem:[%s409_s1 + $0xa8] sm:$0xff] }
  0x22   :  { %89 = vmatpush1.msra.mxu0 %v54_v4  ;;  %v62_v25 = vld [vmem:[%s409_s1 + $0xa0] sm:$0xff]  ;;  %v61_v26 = vld [vmem:[%s409_s1 + $0x98] sm:$0xff]  ;;  %v60_v27 = vld [vmem:[%s409_s1 + $0x90] sm:$0xff] }
  0x23   :  { %90 = vmatprep.subr.mxu0 %v254_v0  ;;  %v59_v28 = vld [vmem:[%s409_s1 + $0x88] sm:$0xff]  ;;  %v58_v29 = vld [vmem:[%s409_s1 + $0x80] sm:$0xff] }
  0x24   :  { %91 = vmatpush1.msra.mxu0 %v53_v5  ;;  %v201_v52 = vld [vmem:[#allocation2] ss:$0 sm:$0xff]  ;;  %v202_v54 = vld [vmem:[#allocation4] ss:$0 sm:$0xff] }
  0x25   :  { %92 = vmatprep.subr.mxu0 %v254_v0 }
  0x26   :  { %93 = vmatpush1.msra.mxu0 %v52_v6 }
  0x27   :  { %94 = vmatprep.subr.mxu0 %v254_v0 }
  0x28   :  { %95 = vmatpush1.msra.mxu0 %v51_v8 }
  0x29   :  { %96 = vmatprep.subr.mxu0 %v254_v0 }
  0x2a   :  { %97 = vmatpush1.msra.mxu0 %v50_v10 }
  0x2b   :  { %98 = vmatprep.subr.mxu0 %v254_v0 }
  0x2c   :  { %99 = vmatpush1.msra.mxu0 %v49_v11 }
  0x2d   :  { %100 = vmatprep.subr.mxu0 %v254_v0 }
  0x2e   :  { %101 = vmatpush1.msra.mxu0 %v48_v12 }
  0x2f   :  { %102 = vmatprep.subr.mxu0 %v254_v0 }
  0x30   :  { %103 = vmatpush1.msra.mxu0 %v47_v13 }
  0x31   :  { %104 = vmatprep.subr.mxu0 %v254_v0 }
  0x32   :  { %105 = vmatpush1.msra.mxu0 %v46_v14 }
  0x33   :  { %106 = vmatprep.subr.mxu0 %v254_v0 }
  0x34   :  { %107 = vmatpush1.msra.mxu0 %v45_v15 }
  0x35   :  { %108 = vmatprep.subr.mxu0 %v254_v0 }
  0x36   :  { %109 = vmatpush1.msra.mxu0 %v44_v16 }
  0x37   :  { %110 = vmatprep.subr.mxu0 %v254_v0 }
  0x38   :  { %111 = vmatpush1.msra.mxu0 %v43_v17 }
  0x39   :  { %112 = vmatprep.subr.mxu0 %v254_v0 }
  0x3a   :  { %113 = vmatpush1.msra.mxu0 %v42_v18 }
  0x3b   :  { %124 = vmatprep.subr.mxu0 %v254_v0 }
  0x3c   :  { %125 = vmatpush2.msra.mxu0 %v68_v19 }
  0x3d   :  { %126 = vmatprep.subr.mxu0 %v254_v0 }
  0x3e   :  { %127 = vmatpush2.msra.mxu0 %v67_v20 }
  0x3f   :  { %128 = vmatprep.subr.mxu0 %v254_v0 }
  0x40   :  { %129 = vmatpush2.msra.mxu0 %v66_v21 }
  0x41   :  { %130 = vmatprep.subr.mxu0 %v254_v0 }
  0x42   :  { %131 = vmatpush2.msra.mxu0 %v65_v22 }
  0x43   :  { %132 = vmatprep.subr.mxu0 %v254_v0 }
  0x44   :  { %133 = vmatpush2.msra.mxu0 %v64_v23 }
  0x45   :  { %134 = vmatprep.subr.mxu0 %v254_v0 }
  0x46   :  { %135 = vmatpush2.msra.mxu0 %v63_v24 }
  0x47   :  { %136 = vmatprep.subr.mxu0 %v254_v0 }
  0x48   :  { %137 = vmatpush2.msra.mxu0 %v62_v25 }
  0x49   :  { %138 = vmatprep.subr.mxu0 %v254_v0 }
  0x4a   :  { %139 = vmatpush2.msra.mxu0 %v61_v26 }
  0x4b   :  { %140 = vmatprep.subr.mxu0 %v254_v0 }
  0x4c   :  { %141 = vmatpush2.msra.mxu0 %v60_v27 }
  0x4d   :  { %142 = vmatprep.subr.mxu0 %v254_v0 }
  0x4e   :  { %143 = vmatpush2.msra.mxu0 %v59_v28 }
  0x4f   :  { %144 = vmatprep.subr.mxu0 %v254_v0 }
  0x50   :  { %145 = vmatpush2.msra.mxu0 %v58_v29 }
  0x51   :  { %147 = vmatmul.mubr.f32.vlgmr.msra.gmra.mxu0 %v312_v7 }
 0x111   :  { %v148_v30 = vpop.f32.mrf.mxu0 }
 0x112   :  { %v153_v31 = vsel %vm152_vm1, %v148_v30, 0.0 }
 0x113   :  { %v154_v32 = vrot.slane %v153_v31, 4  ;;  %v150_v33 = vpop.f32.mrf.mxu0 }
 0x115   :  { %v155_v34 = vadd.f32 %v154_v32, %v153_v31 }
 0x117   :  { %v156_v35 = vrot.slane %v155_v34, 2 }
 0x119   :  { %v157_v36 = vadd.f32 %v156_v35, %v155_v34 }
 0x11b   :  { %v158_v37 = vrot.slane %v157_v36, 1 }
 0x11d   :  { %v159_v38 = vadd.f32 %v158_v37, %v157_v36 }
 0x11f   :  { %v161_v39 = vmul.f32 0.5, %v159_v38 }
 0x121   :  { %v162_v40 = vsub.f32 %v148_v30, %v161_v39 }
 0x123   :  { %v163_v41 = vmul.f32 %v162_v40, %v162_v40 }
 0x125   :  { %v164_v42 = vsel %vm152_vm1, %v163_v41, 0.0 }
 0x126   :  { %v165_v43 = vrot.slane %v164_v42, 4 }
 0x128   :  { %v166_v44 = vadd.f32 %v165_v43, %v164_v42 }
 0x12a   :  { %v167_v45 = vrot.slane %v166_v44, 2 }
 0x12c   :  { %v168_v46 = vadd.f32 %v167_v45, %v166_v44 }
 0x12e   :  { %v169_v47 = vrot.slane %v168_v46, 1 }
 0x130   :  { %v170_v48 = vadd.f32 %v169_v47, %v168_v46 }
 0x132   :  { %v171_v49 = vmul.f32 0.5, %v170_v48 }
 0x134   :  { %v172_v50 = vadd.f32 1e-05, %v171_v49 }
 0x136   :  { %206 = vrsqrt.f32 %v172_v50 }
 0x143   :  { %v207_v51 = vpop.eup %206 }
 0x144   :  { %v174_v53 = vmul.f32 %v207_v51, %v162_v40 }
 0x146   :  { %v182_v55 = vmul.f32 %v201_v52, %v174_v53 }
 0x148   :  { %v190_v56 = vadd.f32 %v202_v54, %v182_v55 }
 0x14a   :  { %v191_v57 = vmax.f32 %v190_v56, 0.0 }
 0x14c   :  { %192 = vst.msk [vmem:[%s412_s4] sm:$0x3] %vm152_vm1, %v191_v57 }
 0x14d   :  { %197 = vsyncpa [#allocation3], 1 }
 0x14e   :  { %198 = vsyncpa [#allocation5], 1 }

// kernel: densenet_forward.59
= control target key start
LH: loop header
LB: loop body
LE: loop exit
PB: predicated region body
PF: predicated region fallthrough
CT: control target
= control target key end

     0   :  { %11 = vsyncpa [#allocation3], 0  ;;  %s422_s0 = inlined_call_operand.vmem [shape: f32[8,24], index: 0, kind: input, shape index: {}]   ;;  %s423_s1 = inlined_call_operand.vmem [shape: f32[24,16], index: 1, kind: input, shape index: {}]   ;;  %s424_s2 = inlined_call_operand.hbm [shape: f32[1,24], index: 2, kind: input, shape index: {}]   ;;  %s425_s3 = inlined_call_operand.hbm [shape: f32[1,24], index: 3, kind: input, shape index: {}]   ;;  %s426_s4 = inlined_call_operand.hbm [shape: f32[1,16], index: 4, kind: input, shape index: {}]   ;;  %s427_s5 = inlined_call_operand.hbm [shape: f32[1,16], index: 5, kind: input, shape index: {}]   ;;  %s428_s6 = inlined_call_operand.vmem [shape: f32[8,16], index: 6, kind: output, shape index: {}]  }
   0x1   :  { %12 = vsyncpa [#allocation5], 0 }
   0x2   :  { %13 = vsyncpa [#allocation8], 0  ;;  %s348_s21 = smov [#allocation4]   ;;  %s349_s23 = smov [#allocation2]  }
   0x3   :  { %s34_s22 = sshll.u32 %s348_s21, 4  ;;  %s24_s24 = sshll.u32 %s349_s23, 4  ;;  %s35_s22 = int_to_ptr.vmem [resolvable:$true] %s34_s22  ;;  %s25_s24 = int_to_ptr.vmem [resolvable:$true] %s24_s24 }
   0x4   :  { %s270_s25 = scalar_lea.vmem %s35_s22, 16  ;;  %s274_s26 = scalar_lea.vmem %s35_s22, 32 }
   0x5   :  { %p271_p0 = scmp.ne.s32.totalorder %s35_s22, %s270_s25  ;;  %p275_p1 = scmp.lt.s32.totalorder %s35_s22, %s35_s22 }
   0x6   :  { %p276_p2 = scmp.lt.s32.totalorder %s274_s26, %s270_s25 }
   0x8   :  { %p277_p3 = por %p276_p2, %p275_p1 }
   0xa   :  { %p278_p4 = pnand %p277_p3, %p271_p0 }
   0xc   :  { %281 = shalt.err (!%p278_p4)
}
   0xd   :  { %37 = dma.hbm_to_vmem [thread:$0]  %s425_s3, 16, %s35_s22, [#allocation5]  }
   0xe   :  { %s290_s29 = scalar_lea.vmem %s25_s24, 16  ;;  %s294_s30 = scalar_lea.vmem %s25_s24, 32 }
   0xf   :  { %p291_p5 = scmp.ne.s32.totalorder %s25_s24, %s290_s29  ;;  %p295_p6 = scmp.lt.s32.totalorder %s25_s24, %s25_s24 }
  0x10   :  { %p296_p7 = scmp.lt.s32.totalorder %s294_s30, %s290_s29 }
  0x12   :  { %p297_p8 = por %p296_p7, %p295_p6 }
  0x14   :  { %p298_p9 = pnand %p297_p8, %p291_p5 }
  0x16   :  { %301 = shalt.err (!%p298_p9)
}
  0x17   :  { %27 = dma.hbm_to_vmem [thread:$0]  %s424_s2, 16, %s25_s24, [#allocation3]  }
  0x18   :  { %s350_s9 = smov [#allocation6]   ;;  %s351_s11 = smov [#allocation7]  }
  0x19   :  { %s44_s10 = sshll.u32 %s350_s9, 4  ;;  %s54_s12 = sshll.u32 %s351_s11, 4  ;;  %s45_s10 = int_to_ptr.vmem [resolvable:$true] %s44_s10  ;;  %s55_s12 = int_to_ptr.vmem [resolvable:$true] %s54_s12 }
  0x1a   :  { %s310_s13 = scalar_lea.vmem %s45_s10, 16  ;;  %s314_s3 = scalar_lea.vmem %s45_s10, 32 }
  0x1b   :  { %p311_p10 = scmp.ne.s32.totalorder %s45_s10, %s310_s13  ;;  %p315_p11 = scmp.lt.s32.totalorder %s45_s10, %s45_s10 }
  0x1c   :  { %p316_p12 = scmp.lt.s32.totalorder %s314_s3, %s310_s13 }
  0x1e   :  { %p317_p13 = por %p316_p12, %p315_p11 }
  0x20   :  { %p318_p0 = pnand %p317_p13, %p311_p10 }
  0x22   :  { %321 = shalt.err (!%p318_p0)
}
  0x23   :  { %47 = dma.hbm_to_vmem [thread:$0]  %s426_s4, 16, %s45_s10, [#allocation5]  }
  0x24   :  { %s330_s16 = scalar_lea.vmem %s55_s12, 16  ;;  %s334_s2 = scalar_lea.vmem %s55_s12, 32 }
  0x25   :  { %p331_p1 = scmp.ne.s32.totalorder %s55_s12, %s330_s16  ;;  %p335_p2 = scmp.lt.s32.totalorder %s55_s12, %s55_s12 }
  0x26   :  { %p336_p3 = scmp.lt.s32.totalorder %s334_s2, %s330_s16 }
  0x28   :  { %p337_p4 = por %p336_p3, %p335_p2 }
  0x2a   :  { %p338_p5 = pnand %p337_p4, %p331_p1 }
  0x2c   :  { %341 = shalt.err (!%p338_p5)
}
  0x2d   :  { %57 = dma.hbm_to_vmem [thread:$0]  %s427_s5, 16, %s55_s12, [#allocation8]  }
  0x2e   :  { %342 = dma.done.wait [#allocation3], 16  }
  0x2f   :  { %343 = vsyncadd [#allocation3], 4294967280 }
  0x30   :  { %344 = dma.done.wait [#allocation5], 32  }
  0x31   :  { %345 = vsyncadd [#allocation5], 4294967264 }
  0x32   :  { %346 = dma.done.wait [#allocation8], 16  }
  0x33   :  { %347 = vsyncadd [#allocation8], 4294967280  ;;  %v352_v0 = vmov 0.0   ;;  %vm353_vm0 = vmmov 0   ;;  %vm71_vm1 = vcmask 195584   ;;  %v113_v1 = vld [vmem:[%s423_s1 + $0x10] sm:$0xff] }
  0x34   :  { %243 = vmatprep.subr.mxu0 %v352_v0  ;;  %249 = vmatprep.mubr.msk.f32.mxu0 %vm353_vm0, %v352_v0  ;;  %v112_v2 = vld [vmem:[%s423_s1 + $0x8] sm:$0xff]  ;;  %v70_v3 = vld [vmem:[%s422_s0] sm:$0xff]  ;;  %vm187_vm2 = vcmask 130048  }
  0x35   :  { %244 = vmatpush3.msra.mxu0 %v113_v1  ;;  %v111_v4 = vld [vmem:[%s423_s1] sm:$0xff]  ;;  %v72_v5 = vsel %vm71_vm1, %v70_v3, 0.0 }
  0x36   :  { %245 = vmatprep.subr.mxu0 %v352_v0  ;;  %v73_v6 = vrot.slane %v72_v5, 4  ;;  %v234_v25 = vld [vmem:[#allocation2] ss:$0 sm:$0xff]  ;;  %v235_v27 = vld [vmem:[#allocation4] ss:$0 sm:$0xff] }
  0x37   :  { %246 = vmatpush3.msra.mxu0 %v112_v2  ;;  %v237_v53 = vld [vmem:[#allocation6] ss:$0 sm:$0xff]  ;;  %v238_v55 = vld [vmem:[#allocation7] ss:$0 sm:$0xff] }
  0x38   :  { %247 = vmatprep.subr.mxu0 %v352_v0  ;;  %v74_v7 = vadd.f32 %v73_v6, %v72_v5 }
  0x39   :  { %248 = vmatpush3.msra.mxu0 %v111_v4 }
  0x3a   :  { %v75_v8 = vrot.slane %v74_v7, 2 }
  0x3c   :  { %v76_v9 = vadd.f32 %v75_v8, %v74_v7 }
  0x3e   :  { %v77_v10 = vrot.slane %v76_v9, 1 }
  0x40   :  { %v78_v11 = vadd.f32 %v77_v10, %v76_v9 }
  0x42   :  { %v80_v12 = vmul.f32 0.125, %v78_v11 }
  0x44   :  { %v81_v13 = vsub.f32 %v70_v3, %v80_v12 }
  0x46   :  { %v82_v14 = vmul.f32 %v81_v13, %v81_v13 }
  0x48   :  { %v83_v15 = vsel %vm71_vm1, %v82_v14, 0.0 }
  0x49   :  { %v84_v16 = vrot.slane %v83_v15, 4 }
  0x4b   :  { %v85_v17 = vadd.f32 %v84_v16, %v83_v15 }
  0x4d   :  { %v86_v18 = vrot.slane %v85_v17, 2 }
  0x4f   :  { %v87_v19 = vadd.f32 %v86_v18, %v85_v17 }
  0x51   :  { %v88_v20 = vrot.slane %v87_v19, 1 }
  0x53   :  { %v89_v21 = vadd.f32 %v88_v20, %v87_v19 }
  0x55   :  { %v90_v22 = vmul.f32 0.125, %v89_v21 }
  0x57   :  { %v91_v23 = vadd.f32 1e-05, %v90_v22 }
  0x59   :  { %258 = vrsqrt.f32 %v91_v23 }
  0x66   :  { %v259_v24 = vpop.eup %258 }
  0x67   :  { %v93_v26 = vmul.f32 %v259_v24, %v81_v13 }
  0x69   :  { %v101_v28 = vmul.f32 %v234_v25, %v93_v26 }
  0x6b   :  { %v109_v29 = vadd.f32 %v235_v27, %v101_v28 }
  0x6d   :  { %v110_v30 = vmax.f32 %v109_v29, 0.0 }
  0x6f   :  { %250 = vmatmul.mubr.msk.f32.vlgmr.msra.gmra.mxu0 %vm71_vm1, %v110_v30 }
 0x12f   :  { %v183_v31 = vpop.f32.mrf.mxu0 }
 0x130   :  { %v188_v32 = vsel %vm187_vm2, %v183_v31, 0.0 }
 0x131   :  { %v189_v33 = vrot.slane %v188_v32, 4  ;;  %v251_v34 = vpop.f32.mrf.mxu0 }
 0x133   :  { %v190_v35 = vadd.f32 %v189_v33, %v188_v32 }
 0x135   :  { %v191_v36 = vrot.slane %v190_v35, 2 }
 0x137   :  { %v192_v37 = vadd.f32 %v191_v36, %v190_v35 }
 0x139   :  { %v193_v38 = vrot.slane %v192_v37, 1 }
 0x13b   :  { %v194_v39 = vadd.f32 %v193_v38, %v192_v37 }
 0x13d   :  { %v195_v40 = vmul.f32 0.125, %v194_v39 }
 0x13f   :  { %v196_v41 = vsub.f32 %v183_v31, %v195_v40 }
 0x141   :  { %v197_v42 = vmul.f32 %v196_v41, %v196_v41 }
 0x143   :  { %v198_v43 = vsel %vm187_vm2, %v197_v42, 0.0 }
 0x144   :  { %v199_v44 = vrot.slane %v198_v43, 4 }
 0x146   :  { %v200_v45 = vadd.f32 %v199_v44, %v198_v43 }
 0x148   :  { %v201_v46 = vrot.slane %v200_v45, 2 }
 0x14a   :  { %v202_v47 = vadd.f32 %v201_v46, %v200_v45 }
 0x14c   :  { %v203_v48 = vrot.slane %v202_v47, 1 }
 0x14e   :  { %v204_v49 = vadd.f32 %v203_v48, %v202_v47 }
 0x150   :  { %v205_v50 = vmul.f32 0.125, %v204_v49 }
 0x152   :  { %v206_v51 = vadd.f32 1e-05, %v205_v50 }
 0x154   :  { %260 = vrsqrt.f32 %v206_v51 }
 0x161   :  { %v261_v52 = vpop.eup %260 }
 0x162   :  { %v208_v54 = vmul.f32 %v261_v52, %v196_v41 }
 0x164   :  { %v216_v56 = vmul.f32 %v237_v53, %v208_v54 }
 0x166   :  { %v224_v57 = vadd.f32 %v238_v55, %v216_v56 }
 0x168   :  { %v225_v58 = vmax.f32 %v224_v57, 0.0 }
 0x16a   :  { %226 = vst.msk [vmem:[%s428_s6] sm:$0xff] %vm187_vm2, %v225_v58 }
 0x16b   :  { %231 = vsyncpa [#allocation3], 1 }
 0x16c   :  { %232 = vsyncpa [#allocation5], 1 }
 0x16d   :  { %233 = vsyncpa [#allocation8], 1 }

// kernel: densenet_forward.61
= control target key start
LH: loop header
LB: loop body
LE: loop exit
PB: predicated region body
PF: predicated region fallthrough
CT: control target
= control target key end

     0   :  { %9 = vsyncpa [#allocation3], 0  ;;  %s546_s0 = inlined_call_operand.vmem [shape: f32[2,288], index: 0, kind: input, shape index: {}]   ;;  %s547_s1 = inlined_call_operand.vmem [shape: f32[288,32], index: 1, kind: input, shape index: {}]   ;;  %s548_s2 = inlined_call_operand.hbm [shape: f32[1,32], index: 2, kind: input, shape index: {}]   ;;  %s549_s3 = inlined_call_operand.hbm [shape: f32[1,32], index: 3, kind: input, shape index: {}]   ;;  %s550_s4 = inlined_call_operand.vmem [shape: f32[2,32], index: 4, kind: output, shape index: {}]  }
   0x1   :  { %10 = vsyncpa [#allocation5], 0  ;;  %s393_s15 = smov [#allocation2]   ;;  %s394_s17 = smov [#allocation4]  }
   0x2   :  { %s21_s16 = sshll.u32 %s393_s15, 4  ;;  %s31_s18 = sshll.u32 %s394_s17, 4  ;;  %s22_s16 = int_to_ptr.vmem [resolvable:$true] %s21_s16  ;;  %s32_s18 = int_to_ptr.vmem [resolvable:$true] %s31_s18 }
   0x3   :  { %s357_s19 = scalar_lea.vmem %s22_s16, 16  ;;  %s361_s20 = scalar_lea.vmem %s22_s16, 32 }
   0x4   :  { %p358_p0 = scmp.ne.s32.totalorder %s22_s16, %s357_s19  ;;  %p362_p1 = scmp.lt.s32.totalorder %s22_s16, %s22_s16 }
   0x5   :  { %p363_p2 = scmp.lt.s32.totalorder %s361_s20, %s357_s19 }
   0x7   :  { %p364_p3 = por %p363_p2, %p362_p1 }
   0x9   :  { %p365_p4 = pnand %p364_p3, %p358_p0 }
   0xb   :  { %368 = shalt.err (!%p365_p4)
}
   0xc   :  { %24 = dma.hbm_to_vmem [thread:$0]  %s548_s2, 16, %s22_s16, [#allocation3]  }
   0xd   :  { %s377_s23 = scalar_lea.vmem %s32_s18, 16  ;;  %s381_s24 = scalar_lea.vmem %s32_s18, 32 }
   0xe   :  { %p378_p5 = scmp.ne.s32.totalorder %s32_s18, %s377_s23  ;;  %p382_p6 = scmp.lt.s32.totalorder %s32_s18, %s32_s18 }
   0xf   :  { %p383_p7 = scmp.lt.s32.totalorder %s381_s24, %s377_s23 }
  0x11   :  { %p384_p8 = por %p383_p7, %p382_p6 }
  0x13   :  { %p385_p9 = pnand %p384_p8, %p378_p5 }
  0x15   :  { %388 = shalt.err (!%p385_p9)
}
  0x16   :  { %34 = dma.hbm_to_vmem [thread:$0]  %s549_s3, 16, %s32_s18, [#allocation5]  }
  0x17   :  { %389 = dma.done.wait [#allocation3], 16  }
  0x18   :  { %390 = vsyncadd [#allocation3], 4294967280 }
  0x19   :  { %391 = dma.done.wait [#allocation5], 16  }
  0x1a   :  { %392 = vsyncadd [#allocation5], 4294967280  ;;  %v395_v0 = vmov 0.0   ;;  %vm396_vm0 = vmmov 0   ;;  %v73_v1 = vld [vmem:[%s547_s1 + $0xf8] sm:$0xff]  ;;  %v72_v3 = vld [vmem:[%s547_s1 + $0xf0] sm:$0xff]  ;;  %v83_v6 = vlaneseq }
  0x1b   :  { %330 = vmatprep.subr.mxu1 %v395_v0  ;;  %338 = vmatprep.mubr.msk.f32.mxu1 %vm396_vm0, %v395_v0  ;;  %v57_v2 = vld [vmem:[%s547_s1 + $0x78] sm:$0xff]  ;;  %v397_v4 = vmov 1983009808   ;;  %v56_v7 = vld [vmem:[%s547_s1 + $0x70] sm:$0xff]  ;;  %v71_v8 = vld [vmem:[%s547_s1 + $0xe8] sm:$0xff]  ;;  %vm97_vm1 = vcmask 261120  }
  0x1c   :  { %v81_v5 = vunpack.c.l.s4 %v397_v4  ;;  %290 = vmatprep.subr.mxu0 %v73_v1  ;;  %v55_v9 = vld [vmem:[%s547_s1 + $0x68] sm:$0xff]  ;;  %v70_v10 = vld [vmem:[%s547_s1 + $0xe0] sm:$0xff]  ;;  %v84_v12 = vshrl.u32 %v83_v6, 7  ;;  %v69_v14 = vld [vmem:[%s547_s1 + $0xd8] sm:$0xff]  ;;  %vm240_vm2 = vcmask 254976  }
  0x1d   :  { %291 = vmatpush3.msra.mxu0 %v57_v2  ;;  %v54_v13 = vld [vmem:[%s547_s1 + $0x60] sm:$0xff]  ;;  %v53_v15 = vld [vmem:[%s547_s1 + $0x58] sm:$0xff]  ;;  %v68_v16 = vld [vmem:[%s547_s1 + $0xd0] sm:$0xff] }
  0x1e   :  { %292 = vmatprep.subr.mxu0 %v72_v3  ;;  %v82_v11 = vunpack.c.0.s8 %v81_v5  ;;  %v52_v18 = vld [vmem:[%s547_s1 + $0x50] sm:$0xff]  ;;  %v77_v19 = vld [vmem:[%s547_s1 + $0x118] sm:$0xff]  ;;  %v67_v20 = vld [vmem:[%s547_s1 + $0xc8] sm:$0xff] }
  0x1f   :  { %293 = vmatpush3.msra.mxu0 %v56_v7  ;;  %331 = vmatpush3.msra.mxu1 %v77_v19  ;;  %v76_v21 = vld [vmem:[%s547_s1 + $0x110] sm:$0xff]  ;;  %v51_v22 = vld [vmem:[%s547_s1 + $0x48] sm:$0xff]  ;;  %v41_v23 = vld [vmem:[%s546_s0] sm:$0x3f] }
  0x20   :  { %294 = vmatprep.subr.mxu0 %v71_v8  ;;  %v85_v17 = vsub.s32 %v82_v11, %v84_v12  ;;  %332 = vmatprep.subr.mxu1 %v395_v0  ;;  %v75_v24 = vld [vmem:[%s547_s1 + $0x108] sm:$0xff]  ;;  %v66_v25 = vld [vmem:[%s547_s1 + $0xc0] sm:$0xff]  ;;  %v79_v26 = vcombine.high %v41_v23, %v41_v23  ;;  %v65_v29 = vld [vmem:[%s547_s1 + $0xb8] sm:$0xff] }
  0x21   :  { %295 = vmatpush3.msra.mxu0 %v55_v9  ;;  %333 = vmatpush3.msra.mxu1 %v76_v21  ;;  %v50_v28 = vld [vmem:[%s547_s1 + $0x40] sm:$0xff]  ;;  %v49_v33 = vld [vmem:[%s547_s1 + $0x38] sm:$0xff]  ;;  %v64_v34 = vld [vmem:[%s547_s1 + $0xb0] sm:$0xff] }
  0x22   :  { %296 = vmatprep.subr.mxu0 %v70_v10  ;;  %v86_v27 = vrot.slane %v41_v23, %v85_v17  ;;  %334 = vmatprep.subr.mxu1 %v395_v0  ;;  %v93_v30 = vrot.slane %v79_v26, %v85_v17  ;;  %v74_v32 = vld [vmem:[%s547_s1 + $0x100] sm:$0xff]  ;;  %v48_v35 = vld [vmem:[%s547_s1 + $0x30] sm:$0xff]  ;;  %v63_v36 = vld [vmem:[%s547_s1 + $0xa8] sm:$0xff] }
  0x23   :  { %297 = vmatpush3.msra.mxu0 %v54_v13  ;;  %335 = vmatpush3.msra.mxu1 %v75_v24  ;;  %v47_v37 = vld [vmem:[%s547_s1 + $0x28] sm:$0xff]  ;;  %v62_v38 = vld [vmem:[%s547_s1 + $0xa0] sm:$0xff]  ;;  %v61_v40 = vld [vmem:[%s547_s1 + $0x98] sm:$0xff] }
  0x24   :  { %298 = vmatprep.subr.mxu0 %v69_v14  ;;  %v94_v31 = vcombine.high %v86_v27, %v86_v27  ;;  %336 = vmatprep.subr.mxu1 %v395_v0  ;;  %v46_v39 = vld [vmem:[%s547_s1 + $0x20] sm:$0xff]  ;;  %v45_v41 = vld [vmem:[%s547_s1 + $0x18] sm:$0xff]  ;;  %v60_v42 = vld [vmem:[%s547_s1 + $0x90] sm:$0xff] }
  0x25   :  { %299 = vmatpush3.msra.mxu0 %v53_v15  ;;  %337 = vmatpush3.msra.mxu1 %v74_v32  ;;  %v44_v43 = vld [vmem:[%s547_s1 + $0x10] sm:$0xff]  ;;  %v59_v44 = vld [vmem:[%s547_s1 + $0x88] sm:$0xff]  ;;  %v58_v46 = vld [vmem:[%s547_s1 + $0x80] sm:$0xff] }
  0x26   :  { %300 = vmatprep.subr.mxu0 %v68_v16  ;;  %164 = vmatprep.mubr.f32.mxu0 %v94_v31  ;;  %v43_v45 = vld [vmem:[%s547_s1 + $0x8] sm:$0xff]  ;;  %v42_v47 = vld [vmem:[%s547_s1] sm:$0xff] }
  0x27   :  { %301 = vmatpush3.msra.mxu0 %v52_v18  ;;  %339 = vmatmul.mubr.msk.f32.vlgmr.msra.gmra.mxu1 %vm97_vm1, %v93_v30  ;;  %v288_v10 = vld [vmem:[#allocation2] ss:$0 sm:$0xff]  ;;  %v289_v12 = vld [vmem:[#allocation4] ss:$0 sm:$0xff] }
  0x28   :  { %302 = vmatprep.subr.mxu0 %v67_v20 }
  0x29   :  { %303 = vmatpush3.msra.mxu0 %v51_v22 }
  0x2a   :  { %304 = vmatprep.subr.mxu0 %v66_v25 }
  0x2b   :  { %305 = vmatpush3.msra.mxu0 %v50_v28 }
  0x2c   :  { %306 = vmatprep.subr.mxu0 %v65_v29 }
  0x2d   :  { %307 = vmatpush3.msra.mxu0 %v49_v33 }
  0x2e   :  { %308 = vmatprep.subr.mxu0 %v64_v34 }
  0x2f   :  { %309 = vmatpush3.msra.mxu0 %v48_v35 }
  0x30   :  { %310 = vmatprep.subr.mxu0 %v63_v36 }
  0x31   :  { %311 = vmatpush3.msra.mxu0 %v47_v37 }
  0x32   :  { %312 = vmatprep.subr.mxu0 %v62_v38 }
  0x33   :  { %313 = vmatpush3.msra.mxu0 %v46_v39 }
  0x34   :  { %314 = vmatprep.subr.mxu0 %v61_v40 }
  0x35   :  { %315 = vmatpush3.msra.mxu0 %v45_v41 }
  0x36   :  { %316 = vmatprep.subr.mxu0 %v60_v42 }
  0x37   :  { %317 = vmatpush3.msra.mxu0 %v44_v43 }
  0x38   :  { %318 = vmatprep.subr.mxu0 %v59_v44 }
  0x39   :  { %319 = vmatpush3.msra.mxu0 %v43_v45 }
  0x3a   :  { %320 = vmatprep.subr.mxu0 %v58_v46 }
  0x3b   :  { %321 = vmatpush3.msra.mxu0 %v42_v47 }
  0x3c   :  { %165 = vmatmul.mubr.f32.vlgmr.msra.gmra.mxu0 %v86_v27 }
  0xe7   :  { %v236_v48 = vpop.f32.mrf.mxu1 }
  0xe9   :  { %v340_v49 = vpop.f32.mrf.mxu1 }
  0xfc   :  { %v322_v50 = vpop.f32.mrf.mxu0 }
  0xfe   :  { %v323_v51 = vpop.f32.mrf.mxu0 }
  0xff   :  { %v324_v52 = vadd.f32 %v323_v51, %v322_v50 }
 0x101   :  { %v237_v53 = vadd.f32 %v324_v52, %v236_v48 }
 0x103   :  { %v241_v54 = vsel %vm240_vm2, %v237_v53, 0.0 }
 0x104   :  { %v242_v55 = vrot.slane %v241_v54, 4 }
 0x106   :  { %v243_v56 = vadd.f32 %v242_v55, %v241_v54 }
 0x108   :  { %v244_v57 = vrot.slane %v243_v56, 2 }
 0x10a   :  { %v245_v58 = vadd.f32 %v244_v57, %v243_v56 }
 0x10c   :  { %v246_v59 = vrot.slane %v245_v58, 1 }
 0x10e   :  { %v247_v60 = vadd.f32 %v246_v59, %v245_v58 }
 0x110   :  { %v249_v61 = vmul.f32 0.5, %v247_v60 }
 0x112   :  { %v250_v62 = vsub.f32 %v237_v53, %v249_v61 }
 0x114   :  { %v251_v63 = vmul.f32 %v250_v62, %v250_v62 }
 0x116   :  { %v252_v0 = vsel %vm240_vm2, %v251_v63, 0.0 }
 0x117   :  { %v253_v1 = vrot.slane %v252_v0, 4 }
 0x119   :  { %v254_v2 = vadd.f32 %v253_v1, %v252_v0 }
 0x11b   :  { %v255_v3 = vrot.slane %v254_v2, 2 }
 0x11d   :  { %v256_v4 = vadd.f32 %v255_v3, %v254_v2 }
 0x11f   :  { %v257_v5 = vrot.slane %v256_v4, 1 }
 0x121   :  { %v258_v6 = vadd.f32 %v257_v5, %v256_v4 }
 0x123   :  { %v259_v7 = vmul.f32 0.5, %v258_v6 }
 0x125   :  { %v260_v8 = vadd.f32 1e-05, %v259_v7 }
 0x127   :  { %347 = vrsqrt.f32 %v260_v8 }
 0x134   :  { %v348_v9 = vpop.eup %347 }
 0x135   :  { %v262_v11 = vmul.f32 %v348_v9, %v250_v62 }
 0x137   :  { %v270_v13 = vmul.f32 %v288_v10, %v262_v11 }
 0x139   :  { %v278_v14 = vadd.f32 %v289_v12, %v270_v13 }
 0x13b   :  { %v279_v15 = vmax.f32 %v278_v14, 0.0 }
 0x13d   :  { %280 = vst.msk [vmem:[%s550_s4] sm:$0x3] %vm240_vm2, %v279_v15 }
 0x13e   :  { %285 = vsyncpa [#allocation3], 1 }
 0x13f   :  { %286 = vsyncpa [#allocation5], 1 }

// kernel: densenet_forward.63
= control target key start
LH: loop header
LB: loop body
LE: loop exit
PB: predicated region body
PF: predicated region fallthrough
CT: control target
= control target key end

     0   :  { %vm18_vm0 = vcmask 261120   ;;  %v164_v0 = vmov 0.0   ;;  %vm165_vm1 = vmmov 0   ;;  %vm135_vm2 = vcmask 130048   ;;  %s218_s1 = inlined_call_operand.vmem [shape: f32[32,16], index: 1, kind: input, shape index: {}]   ;;  %s219_s0 = inlined_call_operand.vmem [shape: f32[8,32], index: 0, kind: input, shape index: {}]   ;;  %s220_s2 = inlined_call_operand.vmem [shape: f32[1,32], index: 2, kind: input, shape index: {}]   ;;  %s221_s3 = inlined_call_operand.vmem [shape: f32[1,32], index: 3, kind: input, shape index: {}]   ;;  %s222_s4 = inlined_call_operand.vmem [shape: f32[8,16], index: 4, kind: output, shape index: {}]  }
   0x1   :  { %149 = vmatprep.subr.mxu0 %v164_v0  ;;  %v61_v1 = vld [vmem:[%s218_s1 + $0x18] sm:$0xff]  ;;  %v60_v2 = vld [vmem:[%s218_s1 + $0x10] sm:$0xff]  ;;  %157 = vmatprep.mubr.msk.f32.mxu0 %vm165_vm1, %v164_v0  ;;  %v17_v3 = vld [vmem:[%s219_s0] sm:$0xff] }
   0x2   :  { %150 = vmatpush3.msra.mxu0 %v61_v1  ;;  %v59_v4 = vld [vmem:[%s218_s1 + $0x8] sm:$0xff]  ;;  %v19_v5 = vsel %vm18_vm0, %v17_v3, 0.0  ;;  %v58_v7 = vld [vmem:[%s218_s1] sm:$0xff] }
   0x3   :  { %151 = vmatprep.subr.mxu0 %v164_v0  ;;  %v20_v6 = vrot.slane %v19_v5, 4  ;;  %v141_v26 = vld [vmem:[%s220_s2] ss:$0 sm:$0xff] }
   0x4   :  { %152 = vmatpush3.msra.mxu0 %v60_v2  ;;  %v142_v28 = vld [vmem:[%s221_s3] ss:$0 sm:$0xff] }
   0x5   :  { %153 = vmatprep.subr.mxu0 %v164_v0  ;;  %v21_v8 = vadd.f32 %v20_v6, %v19_v5 }
   0x6   :  { %154 = vmatpush3.msra.mxu0 %v59_v4 }
   0x7   :  { %155 = vmatprep.subr.mxu0 %v164_v0  ;;  %v22_v9 = vrot.slane %v21_v8, 2 }
   0x8   :  { %156 = vmatpush3.msra.mxu0 %v58_v7 }
   0x9   :  { %v23_v10 = vadd.f32 %v22_v9, %v21_v8 }
   0xb   :  { %v24_v11 = vrot.slane %v23_v10, 1 }
   0xd   :  { %v25_v12 = vadd.f32 %v24_v11, %v23_v10 }
   0xf   :  { %v27_v13 = vmul.f32 0.125, %v25_v12 }
  0x11   :  { %v28_v14 = vsub.f32 %v17_v3, %v27_v13 }
  0x13   :  { %v29_v15 = vmul.f32 %v28_v14, %v28_v14 }
  0x15   :  { %v30_v16 = vsel %vm18_vm0, %v29_v15, 0.0 }
  0x16   :  { %v31_v17 = vrot.slane %v30_v16, 4 }
  0x18   :  { %v32_v18 = vadd.f32 %v31_v17, %v30_v16 }
  0x1a   :  { %v33_v19 = vrot.slane %v32_v18, 2 }
  0x1c   :  { %v34_v20 = vadd.f32 %v33_v19, %v32_v18 }
  0x1e   :  { %v35_v21 = vrot.slane %v34_v20, 1 }
  0x20   :  { %v36_v22 = vadd.f32 %v35_v21, %v34_v20 }
  0x22   :  { %v37_v23 = vmul.f32 0.125, %v36_v22 }
  0x24   :  { %v38_v24 = vadd.f32 1e-05, %v37_v23 }
  0x26   :  { %162 = vrsqrt.f32 %v38_v24 }
  0x33   :  { %v163_v25 = vpop.eup %162 }
  0x34   :  { %v40_v27 = vmul.f32 %v163_v25, %v28_v14 }
  0x36   :  { %v48_v29 = vmul.f32 %v141_v26, %v40_v27 }
  0x38   :  { %v56_v30 = vadd.f32 %v142_v28, %v48_v29 }
  0x3a   :  { %v57_v31 = vmax.f32 %v56_v30, 0.0 }
  0x3c   :  { %158 = vmatmul.mubr.msk.f32.vlgmr.msra.gmra.mxu0 %vm18_vm0, %v57_v31 }
  0xfc   :  { %v131_v32 = vpop.f32.mrf.mxu0 }
  0xfd   :  { %136 = vst.msk [vmem:[%s222_s4] sm:$0xff] %vm135_vm2, %v131_v32 }
  0xfe   :  { %v159_v33 = vpop.f32.mrf.mxu0 }

// kernel: densenet_forward.64
= control target key start
LH: loop header
LB: loop body
LE: loop exit
PB: predicated region body
PF: predicated region fallthrough
CT: control target
= control target key end

     0   :  { %vm24_vm0 = vcmask 123904   ;;  %v204_v0 = vmov 0.0   ;;  %vm205_vm1 = vmmov 0   ;;  %vm66_vm2 = vcmask 130048   ;;  %s270_s1 = inlined_call_operand.vmem [shape: f32[16,16], index: 1, kind: input, shape index: {}]   ;;  %s271_s0 = inlined_call_operand.vmem [shape: f32[2,16], index: 0, kind: input, shape index: {}]   ;;  %s272_s2 = inlined_call_operand.vmem [shape: f32[1,16], index: 2, kind: input, shape index: {}]   ;;  %s273_s3 = inlined_call_operand.vmem [shape: f32[1,16], index: 3, kind: input, shape index: {}]   ;;  %s274_s4 = inlined_call_operand.vmem [shape: f32[1,16], index: 4, kind: input, shape index: {}]   ;;  %s275_s5 = inlined_call_operand.vmem [shape: f32[1,16], index: 5, kind: input, shape index: {}]   ;;  %s276_s6 = inlined_call_operand.vmem [shape: f32[2,16], index: 6, kind: output, shape index: {}]  }
   0x1   :  { %191 = vmatprep.subr.mxu0 %v204_v0  ;;  %v65_v1 = vld [vmem:[%s270_s1 + $0x8] sm:$0xff]  ;;  %v64_v2 = vld [vmem:[%s270_s1] sm:$0xff]  ;;  %195 = vmatprep.mubr.msk.f32.mxu0 %vm205_vm1, %v204_v0 }
   0x2   :  { %v23_v3 = vld [vmem:[%s271_s0] sm:$0x3]  ;;  %192 = vmatpush3.msra.mxu0 %v65_v1 }
   0x3   :  { %v25_v4 = vsel %vm24_vm0, %v23_v3, 0.0  ;;  %193 = vmatprep.subr.mxu0 %v204_v0  ;;  %v183_v24 = vld [vmem:[%s272_s2] ss:$0 sm:$0xff] }
   0x4   :  { %v26_v5 = vrot.slane %v25_v4, 4  ;;  %194 = vmatpush3.msra.mxu0 %v64_v2  ;;  %v184_v26 = vld [vmem:[%s273_s3] ss:$0 sm:$0xff] }
   0x5   :  { %v186_v52 = vld [vmem:[%s274_s4] ss:$0 sm:$0xff] }
   0x6   :  { %v27_v6 = vadd.f32 %v26_v5, %v25_v4  ;;  %v187_v54 = vld [vmem:[%s275_s5] ss:$0 sm:$0xff] }
   0x8   :  { %v28_v7 = vrot.slane %v27_v6, 2 }
   0xa   :  { %v29_v8 = vadd.f32 %v28_v7, %v27_v6 }
   0xc   :  { %v30_v9 = vrot.slane %v29_v8, 1 }
   0xe   :  { %v31_v10 = vadd.f32 %v30_v9, %v29_v8 }
  0x10   :  { %v33_v11 = vmul.f32 0.5, %v31_v10 }
  0x12   :  { %v34_v12 = vsub.f32 %v23_v3, %v33_v11 }
  0x14   :  { %v35_v13 = vmul.f32 %v34_v12, %v34_v12 }
  0x16   :  { %v36_v14 = vsel %vm24_vm0, %v35_v13, 0.0 }
  0x17   :  { %v37_v15 = vrot.slane %v36_v14, 4 }
  0x19   :  { %v38_v16 = vadd.f32 %v37_v15, %v36_v14 }
  0x1b   :  { %v39_v17 = vrot.slane %v38_v16, 2 }
  0x1d   :  { %v40_v18 = vadd.f32 %v39_v17, %v38_v16 }
  0x1f   :  { %v41_v19 = vrot.slane %v40_v18, 1 }
  0x21   :  { %v42_v20 = vadd.f32 %v41_v19, %v40_v18 }
  0x23   :  { %v43_v21 = vmul.f32 0.5, %v42_v20 }
  0x25   :  { %v44_v22 = vadd.f32 1e-05, %v43_v21 }
  0x27   :  { %200 = vrsqrt.f32 %v44_v22 }
  0x34   :  { %v201_v23 = vpop.eup %200 }
  0x35   :  { %v46_v25 = vmul.f32 %v201_v23, %v34_v12 }
  0x37   :  { %v54_v27 = vmul.f32 %v183_v24, %v46_v25 }
  0x39   :  { %v62_v28 = vadd.f32 %v184_v26, %v54_v27 }
  0x3b   :  { %v63_v29 = vmax.f32 %v62_v28, 0.0 }
  0x3d   :  { %196 = vmatmul.mubr.msk.f32.vlgmr.msra.gmra.mxu0 %vm66_vm2, %v63_v29 }
  0xfd   :  { %v136_v30 = vpop.f32.mrf.mxu0 }
  0xfe   :  { %v140_v31 = vsel %vm24_vm0, %v136_v30, 0.0 }
  0xff   :  { %v141_v32 = vrot.slane %v140_v31, 4  ;;  %v197_v33 = vpop.f32.mrf.mxu0 }
 0x101   :  { %v142_v34 = vadd.f32 %v141_v32, %v140_v31 }
 0x103   :  { %v143_v35 = vrot.slane %v142_v34, 2 }
 0x105   :  { %v144_v36 = vadd.f32 %v143_v35, %v142_v34 }
 0x107   :  { %v145_v37 = vrot.slane %v144_v36, 1 }
 0x109   :  { %v146_v38 = vadd.f32 %v145_v37, %v144_v36 }
 0x10b   :  { %v147_v39 = vmul.f32 0.5, %v146_v38 }
 0x10d   :  { %v148_v40 = vsub.f32 %v136_v30, %v147_v39 }
 0x10f   :  { %v149_v41 = vmul.f32 %v148_v40, %v148_v40 }
 0x111   :  { %v150_v42 = vsel %vm24_vm0, %v149_v41, 0.0 }
 0x112   :  { %v151_v43 = vrot.slane %v150_v42, 4 }
 0x114   :  { %v152_v44 = vadd.f32 %v151_v43, %v150_v42 }
 0x116   :  { %v153_v45 = vrot.slane %v152_v44, 2 }
 0x118   :  { %v154_v46 = vadd.f32 %v153_v45, %v152_v44 }
 0x11a   :  { %v155_v47 = vrot.slane %v154_v46, 1 }
 0x11c   :  { %v156_v48 = vadd.f32 %v155_v47, %v154_v46 }
 0x11e   :  { %v157_v49 = vmul.f32 0.5, %v156_v48 }
 0x120   :  { %v158_v50 = vadd.f32 1e-05, %v157_v49 }
 0x122   :  { %202 = vrsqrt.f32 %v158_v50 }
 0x12f   :  { %v203_v51 = vpop.eup %202 }
 0x130   :  { %v160_v53 = vmul.f32 %v203_v51, %v148_v40 }
 0x132   :  { %v168_v55 = vmul.f32 %v186_v52, %v160_v53 }
 0x134   :  { %v176_v56 = vadd.f32 %v187_v54, %v168_v55 }
 0x136   :  { %v177_v57 = vmax.f32 %v176_v56, 0.0 }
 0x138   :  { %178 = vst.msk [vmem:[%s276_s6] sm:$0x3] %vm24_vm0, %v177_v57 }

// kernel: densenet_forward.65
= control target key start
LH: loop header
LB: loop body
LE: loop exit
PB: predicated region body
PF: predicated region fallthrough
CT: control target
= control target key end

     0   :  { %v122_v0 = vmov 0.0   ;;  %vm40_vm0 = vcmask 130048   ;;  %vm113_vm1 = vcmask 58368   ;;  %s198_s1 = inlined_call_operand.vmem [shape: f32[144,8], index: 1, kind: input, shape index: {}]   ;;  %s199_s0 = inlined_call_operand.vmem [shape: f32[2,144], index: 0, kind: input, shape index: {}]   ;;  %s200_s2 = inlined_call_operand.vmem [shape: f32[2,8], index: 2, kind: output, shape index: {}]  }
   0x1   :  { %43 = vmatprep.subr.mxu0 %v122_v0  ;;  %v27_v1 = vld [vmem:[%s198_s1 + $0x78] sm:$0xff]  ;;  %v26_v2 = vld [vmem:[%s198_s1 + $0x70] sm:$0xff]  ;;  %v25_v3 = vld [vmem:[%s198_s1 + $0x68] sm:$0xff] }
   0x2   :  { %44 = vmatpush1.msra.mxu0 %v27_v1  ;;  %v24_v4 = vld [vmem:[%s198_s1 + $0x60] sm:$0xff]  ;;  %v23_v5 = vld [vmem:[%s198_s1 + $0x58] sm:$0xff]  ;;  %v22_v8 = vld [vmem:[%s198_s1 + $0x50] sm:$0xff] }
   0x3   :  { %45 = vmatprep.subr.mxu0 %v122_v0  ;;  %v119_v6 = vld.sshfl [vmem:[%s199_s0] sm:$0x33 pattern:$0x76325410]  ;;  %v21_v9 = vld [vmem:[%s198_s1 + $0x48] sm:$0xff]  ;;  %v19_v11 = vld [vmem:[%s198_s1 + $0x38] sm:$0xff] }
   0x4   :  { %46 = vmatpush1.msra.mxu0 %v26_v2  ;;  %v38_v7 = vcombine.high %v119_v6, %v119_v6  ;;  %v20_v10 = vld [vmem:[%s198_s1 + $0x40] sm:$0xff]  ;;  %v18_v12 = vld [vmem:[%s198_s1 + $0x30] sm:$0xff]  ;;  %v17_v13 = vld [vmem:[%s198_s1 + $0x28] sm:$0xff] }
   0x5   :  { %47 = vmatprep.subr.mxu0 %v122_v0  ;;  %v16_v14 = vld [vmem:[%s198_s1 + $0x20] sm:$0xff]  ;;  %v15_v15 = vld [vmem:[%s198_s1 + $0x18] sm:$0xff]  ;;  %v14_v16 = vld [vmem:[%s198_s1 + $0x10] sm:$0xff] }
   0x6   :  { %48 = vmatpush1.msra.mxu0 %v25_v3  ;;  %120 = vmatprep.mubr.msk.f32.mxu0 %vm40_vm0, %v38_v7  ;;  %v13_v17 = vld [vmem:[%s198_s1 + $0x8] sm:$0xff]  ;;  %v12_v18 = vld [vmem:[%s198_s1] sm:$0xff] }
   0x7   :  { %49 = vmatprep.subr.mxu0 %v122_v0  ;;  %v29_v19 = vld [vmem:[%s198_s1 + $0x88] sm:$0xff]  ;;  %v28_v20 = vld [vmem:[%s198_s1 + $0x80] sm:$0xff] }
   0x8   :  { %50 = vmatpush1.msra.mxu0 %v24_v4 }
   0x9   :  { %51 = vmatprep.subr.mxu0 %v122_v0 }
   0xa   :  { %52 = vmatpush1.msra.mxu0 %v23_v5 }
   0xb   :  { %53 = vmatprep.subr.mxu0 %v122_v0 }
   0xc   :  { %54 = vmatpush1.msra.mxu0 %v22_v8 }
   0xd   :  { %55 = vmatprep.subr.mxu0 %v122_v0 }
   0xe   :  { %56 = vmatpush1.msra.mxu0 %v21_v9 }
   0xf   :  { %57 = vmatprep.subr.mxu0 %v122_v0 }
  0x10   :  { %58 = vmatpush1.msra.mxu0 %v20_v10 }
  0x11   :  { %59 = vmatprep.subr.mxu0 %v122_v0 }
  0x12   :  { %60 = vmatpush1.msra.mxu0 %v19_v11 }
  0x13   :  { %61 = vmatprep.subr.mxu0 %v122_v0 }
  0x14   :  { %62 = vmatpush1.msra.mxu0 %v18_v12 }
  0x15   :  { %63 = vmatprep.subr.mxu0 %v122_v0 }
  0x16   :  { %64 = vmatpush1.msra.mxu0 %v17_v13 }
  0x17   :  { %65 = vmatprep.subr.mxu0 %v122_v0 }
  0x18   :  { %66 = vmatpush1.msra.mxu0 %v16_v14 }
  0x19   :  { %67 = vmatprep.subr.mxu0 %v122_v0 }
  0x1a   :  { %68 = vmatpush1.msra.mxu0 %v15_v15 }
  0x1b   :  { %69 = vmatprep.subr.mxu0 %v122_v0 }
  0x1c   :  { %70 = vmatpush1.msra.mxu0 %v14_v16 }
  0x1d   :  { %71 = vmatprep.subr.mxu0 %v122_v0 }
  0x1e   :  { %72 = vmatpush1.msra.mxu0 %v13_v17 }
  0x1f   :  { %73 = vmatprep.subr.mxu0 %v122_v0 }
  0x20   :  { %74 = vmatpush1.msra.mxu0 %v12_v18 }
  0x21   :  { %103 = vmatprep.subr.mxu0 %v122_v0 }
  0x22   :  { %104 = vmatpush2.msra.mxu0 %v29_v19 }
  0x23   :  { %105 = vmatprep.subr.mxu0 %v122_v0 }
  0x24   :  { %106 = vmatpush2.msra.mxu0 %v28_v20 }
  0x25   :  { %108 = vmatmul.mubr.f32.vlgmr.msra.gmra.mxu0 %v119_v6 }
  0xe5   :  { %v109_v21 = vpop.f32.mrf.mxu0 }
  0xe6   :  { %114 = vst.msk [vmem:[%s200_s2] sm:$0x3] %vm113_vm1, %v109_v21 }
  0xe7   :  { %v111_v22 = vpop.f32.mrf.mxu0 }

// kernel: densenet_forward.66
= control target key start
LH: loop header
LB: loop body
LE: loop exit
PB: predicated region body
PF: predicated region fallthrough
CT: control target
= control target key end

     0   :  { %v180_v0 = vmov 0.0   ;;  %vm55_vm0 = vcmask 719872   ;;  %vm128_vm1 = vcmask 189440   ;;  %s334_s1 = inlined_call_operand.vmem [shape: f32[216,24], index: 1, kind: input, shape index: {}]   ;;  %s335_s0 = inlined_call_operand.vmem [shape: f32[2,216], index: 0, kind: input, shape index: {}]   ;;  %s336_s2 = inlined_call_operand.vmem [shape: f32[1,24], index: 2, kind: input, shape index: {}]   ;;  %s337_s3 = inlined_call_operand.vmem [shape: f32[1,24], index: 3, kind: input, shape index: {}]   ;;  %s338_s4 = inlined_call_operand.vmem [shape: f32[2,24], index: 4, kind: output, shape index: {}]  }
   0x1   :  { %58 = vmatprep.subr.mxu0 %v180_v0  ;;  %v33_v1 = vld [vmem:[%s334_s1 + $0x78] sm:$0xff]  ;;  %v32_v2 = vld [vmem:[%s334_s1 + $0x70] sm:$0xff]  ;;  %v31_v3 = vld [vmem:[%s334_s1 + $0x68] sm:$0xff] }
   0x2   :  { %59 = vmatpush1.msra.mxu0 %v33_v1  ;;  %v30_v4 = vld [vmem:[%s334_s1 + $0x60] sm:$0xff]  ;;  %v29_v5 = vld [vmem:[%s334_s1 + $0x58] sm:$0xff]  ;;  %v28_v6 = vld [vmem:[%s334_s1 + $0x50] sm:$0xff] }
   0x3   :  { %60 = vmatprep.subr.mxu0 %v180_v0  ;;  %v232_v7 = vld.sshfl [vmem:[%s335_s0] sm:$0x33 pattern:$0x76325410]  ;;  %v27_v8 = vld [vmem:[%s334_s1 + $0x48] sm:$0xff]  ;;  %v25_v11 = vld [vmem:[%s334_s1 + $0x38] sm:$0xff] }
   0x4   :  { %61 = vmatpush1.msra.mxu0 %v32_v2  ;;  %v53_v9 = vcombine.high %v232_v7, %v232_v7  ;;  %v26_v10 = vld [vmem:[%s334_s1 + $0x40] sm:$0xff]  ;;  %v24_v12 = vld [vmem:[%s334_s1 + $0x30] sm:$0xff]  ;;  %v23_v13 = vld [vmem:[%s334_s1 + $0x28] sm:$0xff] }
   0x5   :  { %62 = vmatprep.subr.mxu0 %v180_v0  ;;  %v22_v14 = vld [vmem:[%s334_s1 + $0x20] sm:$0xff]  ;;  %v21_v15 = vld [vmem:[%s334_s1 + $0x18] sm:$0xff]  ;;  %v20_v16 = vld [vmem:[%s334_s1 + $0x10] sm:$0xff] }
   0x6   :  { %63 = vmatpush1.msra.mxu0 %v31_v3  ;;  %174 = vmatprep.mubr.msk.f32.mxu0 %vm55_vm0, %v53_v9  ;;  %v19_v17 = vld [vmem:[%s334_s1 + $0x8] sm:$0xff]  ;;  %v18_v18 = vld [vmem:[%s334_s1] sm:$0xff]  ;;  %v44_v19 = vld [vmem:[%s334_s1 + $0xd0] sm:$0xff] }
   0x7   :  { %64 = vmatprep.subr.mxu0 %v180_v0  ;;  %v43_v20 = vld [vmem:[%s334_s1 + $0xc8] sm:$0xff]  ;;  %v42_v21 = vld [vmem:[%s334_s1 + $0xc0] sm:$0xff]  ;;  %v41_v22 = vld [vmem:[%s334_s1 + $0xb8] sm:$0xff] }
   0x8   :  { %65 = vmatpush1.msra.mxu0 %v30_v4  ;;  %v40_v23 = vld [vmem:[%s334_s1 + $0xb0] sm:$0xff]  ;;  %v39_v24 = vld [vmem:[%s334_s1 + $0xa8] sm:$0xff]  ;;  %v38_v25 = vld [vmem:[%s334_s1 + $0xa0] sm:$0xff] }
   0x9   :  { %66 = vmatprep.subr.mxu0 %v180_v0  ;;  %v37_v26 = vld [vmem:[%s334_s1 + $0x98] sm:$0xff]  ;;  %v36_v27 = vld [vmem:[%s334_s1 + $0x90] sm:$0xff]  ;;  %v35_v28 = vld [vmem:[%s334_s1 + $0x88] sm:$0xff] }
   0xa   :  { %67 = vmatpush1.msra.mxu0 %v29_v5  ;;  %v34_v29 = vld [vmem:[%s334_s1 + $0x80] sm:$0xff] }
   0xb   :  { %68 = vmatprep.subr.mxu0 %v180_v0  ;;  %v175_v52 = vld [vmem:[%s336_s2] ss:$0 sm:$0xff] }
   0xc   :  { %69 = vmatpush1.msra.mxu0 %v28_v6  ;;  %v176_v54 = vld [vmem:[%s337_s3] ss:$0 sm:$0xff] }
   0xd   :  { %70 = vmatprep.subr.mxu0 %v180_v0 }
   0xe   :  { %71 = vmatpush1.msra.mxu0 %v27_v8 }
   0xf   :  { %72 = vmatprep.subr.mxu0 %v180_v0 }
  0x10   :  { %73 = vmatpush1.msra.mxu0 %v26_v10 }
  0x11   :  { %74 = vmatprep.subr.mxu0 %v180_v0 }
  0x12   :  { %75 = vmatpush1.msra.mxu0 %v25_v11 }
  0x13   :  { %76 = vmatprep.subr.mxu0 %v180_v0 }
  0x14   :  { %77 = vmatpush1.msra.mxu0 %v24_v12 }
  0x15   :  { %78 = vmatprep.subr.mxu0 %v180_v0 }
  0x16   :  { %79 = vmatpush1.msra.mxu0 %v23_v13 }
  0x17   :  { %80 = vmatprep.subr.mxu0 %v180_v0 }
  0x18   :  { %81 = vmatpush1.msra.mxu0 %v22_v14 }
  0x19   :  { %82 = vmatprep.subr.mxu0 %v180_v0 }
  0x1a   :  { %83 = vmatpush1.msra.mxu0 %v21_v15 }
  0x1b   :  { %84 = vmatprep.subr.mxu0 %v180_v0 }
  0x1c   :  { %85 = vmatpush1.msra.mxu0 %v20_v16 }
  0x1d   :  { %86 = vmatprep.subr.mxu0 %v180_v0 }
  0x1e   :  { %87 = vmatpush1.msra.mxu0 %v19_v17 }
  0x1f   :  { %88 = vmatprep.subr.mxu0 %v180_v0 }
  0x20   :  { %89 = vmatpush1.msra.mxu0 %v18_v18 }
  0x21   :  { %100 = vmatprep.subr.mxu0 %v180_v0 }
  0x22   :  { %101 = vmatpush2.msra.mxu0 %v44_v19 }
  0x23   :  { %102 = vmatprep.subr.mxu0 %v180_v0 }
  0x24   :  { %103 = vmatpush2.msra.mxu0 %v43_v20 }
  0x25   :  { %104 = vmatprep.subr.mxu0 %v180_v0 }
  0x26   :  { %105 = vmatpush2.msra.mxu0 %v42_v21 }
  0x27   :  { %106 = vmatprep.subr.mxu0 %v180_v0 }
  0x28   :  { %107 = vmatpush2.msra.mxu0 %v41_v22 }
  0x29   :  { %108 = vmatprep.subr.mxu0 %v180_v0 }
  0x2a   :  { %109 = vmatpush2.msra.mxu0 %v40_v23 }
  0x2b   :  { %110 = vmatprep.subr.mxu0 %v180_v0 }
  0x2c   :  { %111 = vmatpush2.msra.mxu0 %v39_v24 }
  0x2d   :  { %112 = vmatprep.subr.mxu0 %v180_v0 }
  0x2e   :  { %113 = vmatpush2.msra.mxu0 %v38_v25 }
  0x2f   :  { %114 = vmatprep.subr.mxu0 %v180_v0 }
  0x30   :  { %115 = vmatpush2.msra.mxu0 %v37_v26 }
  0x31   :  { %116 = vmatprep.subr.mxu0 %v180_v0 }
  0x32   :  { %117 = vmatpush2.msra.mxu0 %v36_v27 }
  0x33   :  { %118 = vmatprep.subr.mxu0 %v180_v0 }
  0x34   :  { %119 = vmatpush2.msra.mxu0 %v35_v28 }
  0x35   :  { %120 = vmatprep.subr.mxu0 %v180_v0 }
  0x36   :  { %121 = vmatpush2.msra.mxu0 %v34_v29 }
  0x37   :  { %123 = vmatmul.mubr.f32.vlgmr.msra.gmra.mxu0 %v232_v7 }
  0xf7   :  { %v124_v30 = vpop.f32.mrf.mxu0 }
  0xf8   :  { %v129_v31 = vsel %vm128_vm1, %v124_v30, 0.0 }
  0xf9   :  { %v130_v32 = vrot.slane %v129_v31, 4  ;;  %v126_v33 = vpop.f32.mrf.mxu0 }
  0xfb   :  { %v131_v34 = vadd.f32 %v130_v32, %v129_v31 }
  0xfd   :  { %v132_v35 = vrot.slane %v131_v34, 2 }
  0xff   :  { %v133_v36 = vadd.f32 %v132_v35, %v131_v34 }
 0x101   :  { %v134_v37 = vrot.slane %v133_v36, 1 }
 0x103   :  { %v135_v38 = vadd.f32 %v134_v37, %v133_v36 }
 0x105   :  { %v137_v39 = vmul.f32 0.5, %v135_v38 }
 0x107   :  { %v138_v40 = vsub.f32 %v124_v30, %v137_v39 }
 0x109   :  { %v139_v41 = vmul.f32 %v138_v40, %v138_v40 }
 0x10b   :  { %v140_v42 = vsel %vm128_vm1, %v139_v41, 0.0 }
 0x10c   :  { %v141_v43 = vrot.slane %v140_v42, 4 }
 0x10e   :  { %v142_v44 = vadd.f32 %v141_v43, %v140_v42 }
 0x110   :  { %v143_v45 = vrot.slane %v142_v44, 2 }
 0x112   :  { %v144_v46 = vadd.f32 %v143_v45, %v142_v44 }
 0x114   :  { %v145_v47 = vrot.slane %v144_v46, 1 }
 0x116   :  { %v146_v48 = vadd.f32 %v145_v47, %v144_v46 }
 0x118   :  { %v147_v49 = vmul.f32 0.5, %v146_v48 }
 0x11a   :  { %v148_v50 = vadd.f32 1e-05, %v147_v49 }
 0x11c   :  { %178 = vrsqrt.f32 %v148_v50 }
 0x129   :  { %v179_v51 = vpop.eup %178 }
 0x12a   :  { %v150_v53 = vmul.f32 %v179_v51, %v138_v40 }
 0x12c   :  { %v158_v55 = vmul.f32 %v175_v52, %v150_v53 }
 0x12e   :  { %v166_v56 = vadd.f32 %v176_v54, %v158_v55 }
 0x130   :  { %v167_v57 = vmax.f32 %v166_v56, 0.0 }
 0x132   :  { %168 = vst.msk [vmem:[%s338_s4] sm:$0x3] %vm128_vm1, %v167_v57 }

// kernel: densenet_forward.68
= control target key start
LH: loop header
LB: loop body
LE: loop exit
PB: predicated region body
PF: predicated region fallthrough
CT: control target
= control target key end

     0   :  { %vm24_vm0 = vcmask 189440   ;;  %v209_v0 = vmov 0.0   ;;  %vm210_vm1 = vmmov 0   ;;  %vm67_vm2 = vcmask 195584   ;;  %s278_s1 = inlined_call_operand.vmem [shape: f32[24,16], index: 1, kind: input, shape index: {}]   ;;  %s279_s0 = inlined_call_operand.vmem [shape: f32[2,24], index: 0, kind: input, shape index: {}]   ;;  %s280_s2 = inlined_call_operand.vmem [shape: f32[1,24], index: 2, kind: input, shape index: {}]   ;;  %s281_s3 = inlined_call_operand.vmem [shape: f32[1,24], index: 3, kind: input, shape index: {}]   ;;  %s282_s4 = inlined_call_operand.vmem [shape: f32[1,16], index: 4, kind: input, shape index: {}]   ;;  %s283_s5 = inlined_call_operand.vmem [shape: f32[1,16], index: 5, kind: input, shape index: {}]   ;;  %s284_s6 = inlined_call_operand.vmem [shape: f32[2,16], index: 6, kind: output, shape index: {}]  }
   0x1   :  { %194 = vmatprep.subr.mxu0 %v209_v0  ;;  %v66_v1 = vld [vmem:[%s278_s1 + $0x10] sm:$0xff]  ;;  %v65_v2 = vld [vmem:[%s278_s1 + $0x8] sm:$0xff]  ;;  %200 = vmatprep.mubr.msk.f32.mxu0 %vm210_vm1, %v209_v0  ;;  %v23_v3 = vld [vmem:[%s279_s0] sm:$0x3]  ;;  %vm141_vm3 = vcmask 123904  }
   0x2   :  { %195 = vmatpush3.msra.mxu0 %v66_v1  ;;  %v64_v4 = vld [vmem:[%s278_s1] sm:$0xff]  ;;  %v25_v5 = vsel %vm24_vm0, %v23_v3, 0.0 }
   0x3   :  { %196 = vmatprep.subr.mxu0 %v209_v0  ;;  %v26_v6 = vrot.slane %v25_v5, 4  ;;  %v185_v25 = vld [vmem:[%s280_s2] ss:$0 sm:$0xff] }
   0x4   :  { %197 = vmatpush3.msra.mxu0 %v65_v2  ;;  %v186_v27 = vld [vmem:[%s281_s3] ss:$0 sm:$0xff] }
   0x5   :  { %198 = vmatprep.subr.mxu0 %v209_v0  ;;  %v27_v7 = vadd.f32 %v26_v6, %v25_v5  ;;  %v188_v53 = vld [vmem:[%s282_s4] ss:$0 sm:$0xff] }
   0x6   :  { %199 = vmatpush3.msra.mxu0 %v64_v4  ;;  %v189_v55 = vld [vmem:[%s283_s5] ss:$0 sm:$0xff] }
   0x7   :  { %v28_v8 = vrot.slane %v27_v7, 2 }
   0x9   :  { %v29_v9 = vadd.f32 %v28_v8, %v27_v7 }
   0xb   :  { %v30_v10 = vrot.slane %v29_v9, 1 }
   0xd   :  { %v31_v11 = vadd.f32 %v30_v10, %v29_v9 }
   0xf   :  { %v33_v12 = vmul.f32 0.5, %v31_v11 }
  0x11   :  { %v34_v13 = vsub.f32 %v23_v3, %v33_v12 }
  0x13   :  { %v35_v14 = vmul.f32 %v34_v13, %v34_v13 }
  0x15   :  { %v36_v15 = vsel %vm24_vm0, %v35_v14, 0.0 }
  0x16   :  { %v37_v16 = vrot.slane %v36_v15, 4 }
  0x18   :  { %v38_v17 = vadd.f32 %v37_v16, %v36_v15 }
  0x1a   :  { %v39_v18 = vrot.slane %v38_v17, 2 }
  0x1c   :  { %v40_v19 = vadd.f32 %v39_v18, %v38_v17 }
  0x1e   :  { %v41_v20 = vrot.slane %v40_v19, 1 }
  0x20   :  { %v42_v21 = vadd.f32 %v41_v20, %v40_v19 }
  0x22   :  { %v43_v22 = vmul.f32 0.5, %v42_v21 }
  0x24   :  { %v44_v23 = vadd.f32 1e-05, %v43_v22 }
  0x26   :  { %205 = vrsqrt.f32 %v44_v23 }
  0x33   :  { %v206_v24 = vpop.eup %205 }
  0x34   :  { %v46_v26 = vmul.f32 %v206_v24, %v34_v13 }
  0x36   :  { %v54_v28 = vmul.f32 %v185_v25, %v46_v26 }
  0x38   :  { %v62_v29 = vadd.f32 %v186_v27, %v54_v28 }
  0x3a   :  { %v63_v30 = vmax.f32 %v62_v29, 0.0 }
  0x3c   :  { %201 = vmatmul.mubr.msk.f32.vlgmr.msra.gmra.mxu0 %vm67_vm2, %v63_v30 }
  0xfc   :  { %v137_v31 = vpop.f32.mrf.mxu0 }
  0xfd   :  { %v142_v32 = vsel %vm141_vm3, %v137_v31, 0.0 }
  0xfe   :  { %v143_v33 = vrot.slane %v142_v32, 4  ;;  %v202_v34 = vpop.f32.mrf.mxu0 }
 0x100   :  { %v144_v35 = vadd.f32 %v143_v33, %v142_v32 }
 0x102   :  { %v145_v36 = vrot.slane %v144_v35, 2 }
 0x104   :  { %v146_v37 = vadd.f32 %v145_v36, %v144_v35 }
 0x106   :  { %v147_v38 = vrot.slane %v146_v37, 1 }
 0x108   :  { %v148_v39 = vadd.f32 %v147_v38, %v146_v37 }
 0x10a   :  { %v149_v40 = vmul.f32 0.5, %v148_v39 }
 0x10c   :  { %v150_v41 = vsub.f32 %v137_v31, %v149_v40 }
 0x10e   :  { %v151_v42 = vmul.f32 %v150_v41, %v150_v41 }
 0x110   :  { %v152_v43 = vsel %vm141_vm3, %v151_v42, 0.0 }
 0x111   :  { %v153_v44 = vrot.slane %v152_v43, 4 }
 0x113   :  { %v154_v45 = vadd.f32 %v153_v44, %v152_v43 }
 0x115   :  { %v155_v46 = vrot.slane %v154_v45, 2 }
 0x117   :  { %v156_v47 = vadd.f32 %v155_v46, %v154_v45 }
 0x119   :  { %v157_v48 = vrot.slane %v156_v47, 1 }
 0x11b   :  { %v158_v49 = vadd.f32 %v157_v48, %v156_v47 }
 0x11d   :  { %v159_v50 = vmul.f32 0.5, %v158_v49 }
 0x11f   :  { %v160_v51 = vadd.f32 1e-05, %v159_v50 }
 0x121   :  { %207 = vrsqrt.f32 %v160_v51 }
 0x12e   :  { %v208_v52 = vpop.eup %207 }
 0x12f   :  { %v162_v54 = vmul.f32 %v208_v52, %v150_v41 }
 0x131   :  { %v170_v56 = vmul.f32 %v188_v53, %v162_v54 }
 0x133   :  { %v178_v57 = vadd.f32 %v189_v55, %v170_v56 }
 0x135   :  { %v179_v58 = vmax.f32 %v178_v57, 0.0 }
 0x137   :  { %180 = vst.msk [vmem:[%s284_s6] sm:$0x3] %vm141_vm3, %v179_v58 }

// kernel: densenet_forward.70
= control target key start
LH: loop header
LB: loop body
LE: loop exit
PB: predicated region body
PF: predicated region fallthrough
CT: control target
= control target key end

     0   :  { %vm15_vm0 = vcmask 254976   ;;  %s99_s0 = inlined_call_operand.vmem [shape: f32[2,32], index: 0, kind: input, shape index: {}]   ;;  %s100_s1 = inlined_call_operand.vmem [shape: f32[1,32], index: 1, kind: input, shape index: {}]   ;;  %s101_s2 = inlined_call_operand.vmem [shape: f32[1,32], index: 2, kind: input, shape index: {}]   ;;  %s102_s3 = inlined_call_operand.vmem [shape: f32[2,32], index: 3, kind: output, shape index: {}]  }
   0x1   :  { %v14_v0 = vld [vmem:[%s99_s0] sm:$0x3] }
   0x2   :  { %v16_v1 = vsel %vm15_vm0, %v14_v0, 0.0  ;;  %v60_v21 = vld [vmem:[%s100_s1] ss:$0 sm:$0xff] }
   0x3   :  { %v17_v2 = vrot.slane %v16_v1, 4  ;;  %v61_v23 = vld [vmem:[%s101_s2] ss:$0 sm:$0xff] }
   0x5   :  { %v18_v3 = vadd.f32 %v17_v2, %v16_v1 }
   0x7   :  { %v19_v4 = vrot.slane %v18_v3, 2 }
   0x9   :  { %v20_v5 = vadd.f32 %v19_v4, %v18_v3 }
   0xb   :  { %v21_v6 = vrot.slane %v20_v5, 1 }
   0xd   :  { %v22_v7 = vadd.f32 %v21_v6, %v20_v5 }
   0xf   :  { %v24_v8 = vmul.f32 0.5, %v22_v7 }
  0x11   :  { %v25_v9 = vsub.f32 %v14_v0, %v24_v8 }
  0x13   :  { %v26_v10 = vmul.f32 %v25_v9, %v25_v9 }
  0x15   :  { %v27_v11 = vsel %vm15_vm0, %v26_v10, 0.0 }
  0x16   :  { %v28_v12 = vrot.slane %v27_v11, 4 }
  0x18   :  { %v29_v13 = vadd.f32 %v28_v12, %v27_v11 }
  0x1a   :  { %v30_v14 = vrot.slane %v29_v13, 2 }
  0x1c   :  { %v31_v15 = vadd.f32 %v30_v14, %v29_v13 }
  0x1e   :  { %v32_v16 = vrot.slane %v31_v15, 1 }
  0x20   :  { %v33_v17 = vadd.f32 %v32_v16, %v31_v15 }
  0x22   :  { %v34_v18 = vmul.f32 0.5, %v33_v17 }
  0x24   :  { %v35_v19 = vadd.f32 1e-05, %v34_v18 }
  0x26   :  { %62 = vrsqrt.f32 %v35_v19 }
  0x33   :  { %v63_v20 = vpop.eup %62 }
  0x34   :  { %v37_v22 = vmul.f32 %v63_v20, %v25_v9 }
  0x36   :  { %v45_v24 = vmul.f32 %v60_v21, %v37_v22 }
  0x38   :  { %v53_v25 = vadd.f32 %v61_v23, %v45_v24 }
  0x3a   :  { %v54_v26 = vmax.f32 %v53_v25, 0.0 }
  0x3c   :  { %55 = vst.msk [vmem:[%s102_s3] sm:$0x3] %vm15_vm0, %v54_v26 }

// kernel: densenet_forward.71
= control target key start
LH: loop header
LB: loop body
LE: loop exit
PB: predicated region body
PF: predicated region fallthrough
CT: control target
= control target key end

     0   :  { %v160_v1 = vmov 0.0   ;;  %vm161_vm0 = vmmov 0   ;;  %s204_s0 = inlined_call_operand.vmem [shape: f32[2,32], index: 0, kind: input, shape index: {}]   ;;  %s205_s1 = inlined_call_operand.vmem [shape: f32[32,10], index: 1, kind: input, shape index: {}]   ;;  %s206_s2 = inlined_call_operand.vmem [shape: f32[1,10], index: 2, kind: input, shape index: {}]   ;;  %s207_s3 = inlined_call_operand.hbm [shape: f32[2,10], index: 3, kind: output, shape index: {}]  }
   0x1   :  { %v19_v0 = vld [vmem:[%s205_s1 + $0x18] sm:$0xff]  ;;  %124 = vmatprep.subr.mxu0 %v160_v1  ;;  %v18_v2 = vld [vmem:[%s205_s1 + $0x10] sm:$0xff]  ;;  %132 = vmatprep.mubr.msk.f32.mxu0 %vm161_vm0, %v160_v1 }
   0x2   :  { %125 = vmatpush3.msra.mxu0 %v19_v0 }
   0x3   :  { %8 = vsyncpa [#allocation3], 0  ;;  %126 = vmatprep.subr.mxu0 %v160_v1  ;;  %v17_v3 = vld [vmem:[%s205_s1 + $0x8] sm:$0xff]  ;;  %v16_v4 = vld [vmem:[%s205_s1] sm:$0xff]  ;;  %vm27_vm1 = vcmask 261120   ;;  %s162_s24 = smov [#allocation2]  }
   0x4   :  { %127 = vmatpush3.msra.mxu0 %v18_v2  ;;  %v15_v5 = vld [vmem:[%s204_s0] sm:$0x3]  ;;  %s109_s25 = sshll.u32 %s162_s24, 4  ;;  %vm101_vm2 = vcmask 74752   ;;  %s110_s25 = int_to_ptr.vmem [resolvable:$true] %s109_s25 }
   0x5   :  { %128 = vmatprep.subr.mxu0 %v160_v1  ;;  %v117_v6 = vld [vmem:[%s206_s2] ss:$0 sm:$0xff]  ;;  %s138_s1 = scalar_lea.vmem %s110_s25, 32  ;;  %p143_p1 = scmp.lt.s32.totalorder %s110_s25, %s110_s25 }
   0x6   :  { %129 = vmatpush3.msra.mxu0 %v17_v3  ;;  %p139_p0 = scmp.ne.s32.totalorder %s110_s25, %s138_s1  ;;  %p144_p2 = scmp.lt.s32.totalorder %s138_s1, %s138_s1 }
   0x7   :  { %130 = vmatprep.subr.mxu0 %v160_v1 }
   0x8   :  { %131 = vmatpush3.msra.mxu0 %v16_v4  ;;  %p145_p3 = por %p144_p2, %p143_p1 }
   0x9   :  { %133 = vmatmul.mubr.msk.f32.vlgmr.msra.gmra.mxu0 %vm27_vm1, %v15_v5 }
   0xa   :  { %p146_p4 = pnand %p145_p3, %p139_p0 }
  0xc9   :  { %v97_v7 = vpop.f32.mrf.mxu0 }
  0xca   :  { %v98_v8 = vadd.f32 %v117_v6, %v97_v7 }
  0xcb   :  { %v134_v9 = vpop.f32.mrf.mxu0 }
  0xcc   :  { %102 = vst.msk [vmem:[#allocation2] sm:$0x3] %vm101_vm2, %v98_v8 }
  0xcd   :  { %149 = shalt.err (!%p146_p4)
}
  0xce   :  { %112 = dma.vmem_to_hbm [thread:$0]  %s110_s25, 32, %s207_s3, [#allocation3]  }
  0xcf   :  { %158 = dma.done.wait [#allocation3], 32  }
  0xd0   :  { %159 = vsyncadd [#allocation3], 4294967264 }
  0xd1   :  { %116 = vsyncpa [#allocation3], 1 }

</bundles_post_ra>
